<compile_context>
chip_gen: v7x
topology: tpu7x:2x2x1
jax: 0.10.0
libtpu: 0.0.40
codegen_flags: <defaults>
</compile_context>

<pallas_src>
import functools

import jax
import jax.numpy as jnp
from jax.experimental import pallas as pl
from jax.experimental.pallas import tpu as pltpu


def _erf(x):
    """Abramowitz & Stegun 7.1.26 rational erf approximation (|abs err| < 1.5e-7).

    Only uses mul/add/abs/where/exp/div so it lowers cleanly in Mosaic.
    """
    a1, a2, a3, a4, a5 = 0.254829592, -0.284496736, 1.421413741, -1.453152027, 1.061405429
    p = 0.3275911
    sgn = jnp.where(x >= 0, 1.0, -1.0).astype(x.dtype)
    ax = jnp.abs(x)
    t = 1.0 / (1.0 + p * ax)
    poly = ((((a5 * t + a4) * t + a3) * t + a2) * t + a1) * t
    return sgn * (1.0 - poly * jnp.exp(-ax * ax))


def _gelu_exact(x):
    # Matches nn.GELU() (erf formulation) to ~1e-7 absolute.
    return 0.5 * x * (1.0 + _erf(x * 0.7071067811865476))


def _spatial_attn_block_kernel(
    x_ref,                       # (G, S, E)  f32 activations (G slabs per grid step)
    n1w_ref, n1b_ref,            # (1, E) f32
    wq_ref, bq_ref,              # (heads, E, hd) bf16 (scale folded), (heads, 1, hd) f32
    wk_ref, bk_ref,              # (heads, E, hd) bf16, (heads, 1, hd) f32
    wv_ref, bv_ref,              # (heads, E, hd) bf16, (heads, 1, hd) f32
    pw_ref, pb_ref,              # (heads, hd, E) bf16, (1, E) f32
    n2w_ref, n2b_ref,            # (1, E) f32
    w1_ref, b1_ref,              # (E, M) bf16, (1, M) f32
    w2_ref, b2_ref,              # (M, E) bf16, (1, E) f32
    o_ref,                       # (G, S, E)
    *, num_heads, eps,
):
    G, S, E = x_ref.shape
    hd = E // num_heads
    GS = G * S

    # Flatten the G slabs for all dense layers (fat matmul M-dim, dense sublanes).
    x = x_ref[...].astype(jnp.float32).reshape(GS, E)

    def layer_norm(v, w, b):
        mu = jnp.mean(v, axis=-1, keepdims=True)
        var = jnp.mean((v - mu) ** 2, axis=-1, keepdims=True)
        return (v - mu) * jax.lax.rsqrt(var + eps) * w + b

    # ---- norm1 -> per-head q/k/v projections (bf16 operands, f32 accumulation) ----
    xn = layer_norm(x, n1w_ref[0], n1b_ref[0]).astype(jnp.bfloat16)

    q_h, k_h, v_h = [], [], []
    for h in range(num_heads):   # small unrolled loop over per-head weight tiles
        q_h.append((jnp.dot(xn, wq_ref[h], preferred_element_type=jnp.float32)
                    + bq_ref[h]).astype(jnp.bfloat16))
        k_h.append((jnp.dot(xn, wk_ref[h], preferred_element_type=jnp.float32)
                    + bk_ref[h]).astype(jnp.bfloat16))
        v_h.append((jnp.dot(xn, wv_ref[h], preferred_element_type=jnp.float32)
                    + bv_ref[h]).astype(jnp.bfloat16))
    # Stack along a new leading axis (no lane-axis relayout) and split G*S -> (G, S):
    # attention batch axis = (head, slab), shape (heads*G, S, hd).
    q = jnp.stack(q_h, axis=0).reshape(num_heads * G, S, hd)
    k = jnp.stack(k_h, axis=0).reshape(num_heads * G, S, hd)
    v = jnp.stack(v_h, axis=0).reshape(num_heads * G, S, hd)

    # ---- batched scaled-dot-product attention over all (head, slab) pairs ----
    logits = jnp.einsum("bqd,bkd->bqk", q, k, preferred_element_type=jnp.float32)
    logits = logits - jnp.max(logits, axis=-1, keepdims=True)
    p = jnp.exp(logits)
    p = p * pl.reciprocal(jnp.sum(p, axis=-1, keepdims=True), approx=True)
    o = jnp.einsum("bqk,bkd->bqd", p.astype(jnp.bfloat16), v,
                   preferred_element_type=jnp.float32)          # (heads*G, S, hd)

    # ---- output projection: contract (head, hd) directly, no lane concatenate ----
    o = o.reshape(num_heads, GS, hd).astype(jnp.bfloat16)
    proj = jnp.zeros((GS, E), jnp.float32)
    for h in range(num_heads):
        proj = proj + jnp.dot(o[h], pw_ref[h], preferred_element_type=jnp.float32)
    h1 = x + proj + pb_ref[0]                                    # residual 1 (f32)

    # ---- norm2 + MLP (Linear -> exact GELU -> Linear) + residual 2 ----
    h1n = layer_norm(h1, n2w_ref[0], n2b_ref[0]).astype(jnp.bfloat16)
    z = jnp.dot(h1n, w1_ref[...], preferred_element_type=jnp.float32) + b1_ref[0]
    z = _gelu_exact(z).astype(jnp.bfloat16)                      # matches nn.GELU (erf)
    mlp = jnp.dot(z, w2_ref[...], preferred_element_type=jnp.float32) + b2_ref[0]

    # TODO(synk): E=32 -> writeback is 32/128-lane masked vst; if profiling shows store
    # cost, present the output as a lane-dense (N, S*E) slab from the wrapper.
    o_ref[...] = (h1 + mlp).reshape(G, S, E).astype(o_ref.dtype)


def _pick_group_size(n):
    """Slabs per grid step: batch slabs for a fat matmul M-dim and few grid steps,
    while keeping >= 2 grid steps so v7x's two TensorCores both get work."""
    for steps in (2, 4):
        if n % steps == 0:
            return n // steps
    return 1


def spatial_attention_block(x, params, *, num_heads, eps=1e-5, group_size=None):
    """x: (B, C, H, W, E) float32. Returns same shape."""
    B, C, H, W, E = x.shape
    N, S = B * C, H * W
    hd = E // num_heads
    scale = hd ** (-0.5)
    M = params["w1"].shape[1]
    G = group_size if group_size is not None else _pick_group_size(N)
    assert N % G == 0, "group size must divide B*C"

    x2 = x.reshape(N, S, E)

    # ---- wrapper-side weight restructuring (free, traced once under jit) ----
    qkvw = params["qkvw"]                         # (E, 3E), x @ W layout
    qkvb = params["qkvb"].reshape(3 * E)
    wq, wk, wv = qkvw[:, :E] * scale, qkvw[:, E:2 * E], qkvw[:, 2 * E:]
    bq, bk, bv = qkvb[:E] * scale, qkvb[E:2 * E], qkvb[2 * E:]   # scale the bias too

    def head_w(w):   # (E, E) -> (heads, E, hd), bf16
        return jnp.transpose(w.reshape(E, num_heads, hd), (1, 0, 2)).astype(jnp.bfloat16)

    def head_b(b):   # (E,) -> (heads, 1, hd), f32
        return b.reshape(num_heads, 1, hd).astype(jnp.float32)

    wq_h, wk_h, wv_h = head_w(wq), head_w(wk), head_w(wv)
    bq_h, bk_h, bv_h = head_b(bq), head_b(bk), head_b(bv)
    pw_h = params["projw"].reshape(num_heads, hd, E).astype(jnp.bfloat16)
    w1 = params["w1"].astype(jnp.bfloat16)
    w2 = params["w2"].astype(jnp.bfloat16)

    def _full(shape):
        # Untiled parameter: whole (small) array resident every grid step. At production
        # ViT sizes these would need bf16 + pipeline_mode=pl.Buffered(1) / K,N tiling to
        # stay under the 64 MiB v7x VMEM.
        return pl.BlockSpec(shape, lambda n: tuple(0 for _ in shape))

    kernel = functools.partial(_spatial_attn_block_kernel, num_heads=num_heads, eps=eps)

    out = pl.pallas_call(
        kernel,
        out_shape=jax.ShapeDtypeStruct((N, S, E), x.dtype),
        grid_spec=pltpu.PrefetchScalarGridSpec(
            num_scalar_prefetch=0,
            grid=(N // G,),
            in_specs=[
                pl.BlockSpec((G, S, E), lambda n: (n, 0, 0)),           # x block (G slabs)
                _full((1, E)), _full((1, E)),                           # norm1 w, b
                _full((num_heads, E, hd)), _full((num_heads, 1, hd)),   # q (scale folded)
                _full((num_heads, E, hd)), _full((num_heads, 1, hd)),   # k
                _full((num_heads, E, hd)), _full((num_heads, 1, hd)),   # v
                _full((num_heads, hd, E)), _full((1, E)),               # proj w, b
                _full((1, E)), _full((1, E)),                           # norm2 w, b
                _full((E, M)), _full((1, M)),                           # mlp lin1 w, b
                _full((M, E)), _full((1, E)),                           # mlp lin2 w, b
            ],
            out_specs=pl.BlockSpec((G, S, E), lambda n: (n, 0, 0)),
        ),
        compiler_params=pltpu.CompilerParams(
            dimension_semantics=("parallel",),
            vmem_limit_bytes=32 * 1024 * 1024,
        ),
    )(
        x2,
        params["n1w"], params["n1b"],
        wq_h, bq_h, wk_h, bk_h, wv_h, bv_h,
        pw_h, params["projb"],
        params["n2w"], params["n2b"],
        w1, params["b1"],
        w2, params["b2"],
    )
    return out.reshape(B, C, H, W, E)


def _reference_forward(x, p, *, num_heads, eps=1e-5):
    """Pure-JAX f32 reference mirroring the PyTorch module semantics."""
    B, C, H, W, E = x.shape
    N, S = B * C, H * W
    hd = E // num_heads
    xs = x.reshape(N, S, E)

    def ln(v, w, b):
        mu = v.mean(-1, keepdims=True)
        var = ((v - mu) ** 2).mean(-1, keepdims=True)
        return (v - mu) / jnp.sqrt(var + eps) * w + b

    xn = ln(xs, p["n1w"], p["n1b"])
    qkv = xn @ p["qkvw"] + p["qkvb"]
    q, k, v = jnp.split(qkv, 3, axis=-1)

    def split_heads(t):
        return t.reshape(N, S, num_heads, hd).transpose(0, 2, 1, 3)

    q, k, v = map(split_heads, (q, k, v))
    logits = (q * hd ** -0.5) @ jnp.swapaxes(k, -1, -2)
    a = jax.nn.softmax(logits, axis=-1)
    o = (a @ v).transpose(0, 2, 1, 3).reshape(N, S, E)
    o = o @ p["projw"] + p["projb"]
    h1 = xs + o
    h1n = ln(h1, p["n2w"], p["n2b"])
    m = jax.nn.gelu(h1n @ p["w1"] + p["b1"], approximate=False) @ p["w2"] + p["b2"]
    return (h1 + m).reshape(B, C, H, W, E)


def _init_params(key, E, mlp_dim):
    ks = jax.random.split(key, 4)
    std = 0.02
    return {
        "n1w": jnp.ones((1, E), jnp.float32),
        "n1b": jnp.zeros((1, E), jnp.float32),
        "qkvw": std * jax.random.normal(ks[0], (E, 3 * E), jnp.float32),
        "qkvb": jnp.zeros((1, 3 * E), jnp.float32),
        "projw": std * jax.random.normal(ks[1], (E, E), jnp.float32),
        "projb": jnp.zeros((1, E), jnp.float32),
        "n2w": jnp.ones((1, E), jnp.float32),
        "n2b": jnp.zeros((1, E), jnp.float32),
        "w1": std * jax.random.normal(ks[2], (E, mlp_dim), jnp.float32),
        "b1": jnp.zeros((1, mlp_dim), jnp.float32),
        "w2": std * jax.random.normal(ks[3], (mlp_dim, E), jnp.float32),
        "b2": jnp.zeros((1, E), jnp.float32),
    }


if __name__ == "__main__":
    B, C, H, W, E = 2, 4, 8, 8, 32
    num_heads = 4
    mlp_dim = 64

    key = jax.random.PRNGKey(0)
    kx, kp = jax.random.split(key)
    x = jax.random.normal(kx, (B, C, H, W, E), jnp.float32)
    params = _init_params(kp, E, mlp_dim)

    out = spatial_attention_block(x, params, num_heads=num_heads)
    out = jax.block_until_ready(out)

    ref = _reference_forward(x, params, num_heads=num_heads)
    assert out.shape == (B, C, H, W, E)
    # bf16 matmul operands + approx reciprocal + approximated erf -> bf16-level tolerance.
    assert jnp.allclose(out, ref, rtol=1e-2, atol=1e-2), "mismatch vs pure-JAX reference"

    print("KERNEL_OK")
</pallas_src>

<mosaic_0001>
module attributes {stable_mosaic.version = 11 : i64} {
  func.func @_spatial_attn_block_kernel(%arg0: i32, %arg1: memref<4x64x32xf32, #tpu.memory_space<vmem>>, %arg2: memref<1x32xf32, #tpu.memory_space<vmem>>, %arg3: memref<1x32xf32, #tpu.memory_space<vmem>>, %arg4: memref<4x32x8xbf16, #tpu.memory_space<vmem>>, %arg5: memref<4x1x8xf32, #tpu.memory_space<vmem>>, %arg6: memref<4x32x8xbf16, #tpu.memory_space<vmem>>, %arg7: memref<4x1x8xf32, #tpu.memory_space<vmem>>, %arg8: memref<4x32x8xbf16, #tpu.memory_space<vmem>>, %arg9: memref<4x1x8xf32, #tpu.memory_space<vmem>>, %arg10: memref<4x8x32xbf16, #tpu.memory_space<vmem>>, %arg11: memref<1x32xf32, #tpu.memory_space<vmem>>, %arg12: memref<1x32xf32, #tpu.memory_space<vmem>>, %arg13: memref<1x32xf32, #tpu.memory_space<vmem>>, %arg14: memref<32x64xbf16, #tpu.memory_space<vmem>>, %arg15: memref<1x64xf32, #tpu.memory_space<vmem>>, %arg16: memref<64x32xbf16, #tpu.memory_space<vmem>>, %arg17: memref<1x32xf32, #tpu.memory_space<vmem>>, %arg18: memref<4x64x32xf32, #tpu.memory_space<vmem>>) attributes {dimension_semantics = [#tpu.dimension_semantics<parallel>], iteration_bounds = array<i64: 2>, scalar_prefetch = 0 : i64, scratch_operands = 0 : i64, tpu.core_type = #tpu.core_type<tc>, window_params = [{transform_indices = @transform_0, window_bounds = array<i64: 4, 64, 32>}, {pipeline_mode = #tpu.pipeline_mode<synchronous>, transform_indices = @transform_1, window_bounds = array<i64: 1, 32>}, {pipeline_mode = #tpu.pipeline_mode<synchronous>, transform_indices = @transform_2, window_bounds = array<i64: 1, 32>}, {pipeline_mode = #tpu.pipeline_mode<synchronous>, transform_indices = @transform_3, window_bounds = array<i64: 4, 32, 8>}, {pipeline_mode = #tpu.pipeline_mode<synchronous>, transform_indices = @transform_4, window_bounds = array<i64: 4, 1, 8>}, {pipeline_mode = #tpu.pipeline_mode<synchronous>, transform_indices = @transform_5, window_bounds = array<i64: 4, 32, 8>}, {pipeline_mode = #tpu.pipeline_mode<synchronous>, transform_indices = @transform_6, window_bounds = array<i64: 4, 1, 8>}, {pipeline_mode = #tpu.pipeline_mode<synchronous>, transform_indices = @transform_7, window_bounds = array<i64: 4, 32, 8>}, {pipeline_mode = #tpu.pipeline_mode<synchronous>, transform_indices = @transform_8, window_bounds = array<i64: 4, 1, 8>}, {pipeline_mode = #tpu.pipeline_mode<synchronous>, transform_indices = @transform_9, window_bounds = array<i64: 4, 8, 32>}, {pipeline_mode = #tpu.pipeline_mode<synchronous>, transform_indices = @transform_10, window_bounds = array<i64: 1, 32>}, {pipeline_mode = #tpu.pipeline_mode<synchronous>, transform_indices = @transform_11, window_bounds = array<i64: 1, 32>}, {pipeline_mode = #tpu.pipeline_mode<synchronous>, transform_indices = @transform_12, window_bounds = array<i64: 1, 32>}, {pipeline_mode = #tpu.pipeline_mode<synchronous>, transform_indices = @transform_13, window_bounds = array<i64: 32, 64>}, {pipeline_mode = #tpu.pipeline_mode<synchronous>, transform_indices = @transform_14, window_bounds = array<i64: 1, 64>}, {pipeline_mode = #tpu.pipeline_mode<synchronous>, transform_indices = @transform_15, window_bounds = array<i64: 64, 32>}, {pipeline_mode = #tpu.pipeline_mode<synchronous>, transform_indices = @transform_16, window_bounds = array<i64: 1, 32>}, {transform_indices = @transform_17, window_bounds = array<i64: 4, 64, 32>}]} {
    %c0 = arith.constant 0 : index
    %c0_0 = arith.constant 0 : index
    %c0_1 = arith.constant 0 : index
    %0 = vector.load %arg1[%c0, %c0_0, %c0_1] : memref<4x64x32xf32, #tpu.memory_space<vmem>>, vector<4x64x32xf32>
    %1 = vector.shape_cast %0 : vector<4x64x32xf32> to vector<256x32xf32>
    %c0_2 = arith.constant 0 : index
    %c0_3 = arith.constant 0 : index
    %2 = vector.load %arg2[%c0_2, %c0_3] : memref<1x32xf32, #tpu.memory_space<vmem>>, vector<1x32xf32>
    %3 = vector.shape_cast %2 : vector<1x32xf32> to vector<32xf32>
    %c0_4 = arith.constant 0 : index
    %c0_5 = arith.constant 0 : index
    %4 = vector.load %arg3[%c0_4, %c0_5] : memref<1x32xf32, #tpu.memory_space<vmem>>, vector<1x32xf32>
    %5 = vector.shape_cast %4 : vector<1x32xf32> to vector<32xf32>
    %cst = arith.constant dense<0.000000e+00> : vector<256xf32>
    %6 = vector.multi_reduction <add>, %1, %cst [1] : vector<256x32xf32> to vector<256xf32>
    %7 = vector.shape_cast %6 : vector<256xf32> to vector<256x1xf32>
    %cst_6 = arith.constant 3.200000e+01 : f32
    %8 = vector.broadcast %cst_6 : f32 to vector<256x1xf32>
    %9 = arith.divf %7, %8 : vector<256x1xf32>
    %10 = vector.broadcast %9 : vector<256x1xf32> to vector<256x32xf32>
    %11 = arith.subf %1, %10 : vector<256x32xf32>
    %12 = arith.mulf %11, %11 : vector<256x32xf32>
    %cst_7 = arith.constant dense<0.000000e+00> : vector<256xf32>
    %13 = vector.multi_reduction <add>, %12, %cst_7 [1] : vector<256x32xf32> to vector<256xf32>
    %14 = vector.shape_cast %13 : vector<256xf32> to vector<256x1xf32>
    %cst_8 = arith.constant 3.200000e+01 : f32
    %15 = vector.broadcast %cst_8 : f32 to vector<256x1xf32>
    %16 = arith.divf %14, %15 : vector<256x1xf32>
    %17 = vector.broadcast %9 : vector<256x1xf32> to vector<256x32xf32>
    %18 = arith.subf %1, %17 : vector<256x32xf32>
    %cst_9 = arith.constant 9.99999974E-6 : f32
    %19 = vector.broadcast %cst_9 : f32 to vector<256x1xf32>
    %20 = arith.addf %16, %19 : vector<256x1xf32>
    %21 = math.rsqrt %20 : vector<256x1xf32>
    %22 = vector.broadcast %21 : vector<256x1xf32> to vector<256x32xf32>
    %23 = arith.mulf %18, %22 : vector<256x32xf32>
    %24 = vector.shape_cast %3 : vector<32xf32> to vector<1x32xf32>
    %25 = vector.broadcast %24 : vector<1x32xf32> to vector<256x32xf32>
    %26 = arith.mulf %23, %25 : vector<256x32xf32>
    %27 = vector.shape_cast %5 : vector<32xf32> to vector<1x32xf32>
    %28 = vector.broadcast %27 : vector<1x32xf32> to vector<256x32xf32>
    %29 = arith.addf %26, %28 : vector<256x32xf32>
    %30 = arith.truncf %29 : vector<256x32xf32> to vector<256x32xbf16>
    %c0_10 = arith.constant 0 : index
    %c0_11 = arith.constant 0 : index
    %c0_12 = arith.constant 0 : index
    %31 = vector.load %arg4[%c0_10, %c0_11, %c0_12] : memref<4x32x8xbf16, #tpu.memory_space<vmem>>, vector<1x32x8xbf16>
    %32 = vector.shape_cast %31 : vector<1x32x8xbf16> to vector<32x8xbf16>
    %cst_13 = arith.constant dense<0.000000e+00> : vector<256x8xf32>
    %33 = tpu.matmul %30, %32, %cst_13 {dimension_numbers = #tpu.dot_dimension_numbers<[1], [0], [0], [1], [0, 0, 1, 1], [], []>} : vector<256x32xbf16>, vector<32x8xbf16>, vector<256x8xf32> -> vector<256x8xf32>
    %c0_14 = arith.constant 0 : index
    %c0_15 = arith.constant 0 : index
    %c0_16 = arith.constant 0 : index
    %34 = vector.load %arg5[%c0_14, %c0_15, %c0_16] : memref<4x1x8xf32, #tpu.memory_space<vmem>>, vector<1x1x8xf32>
    %35 = vector.shape_cast %34 : vector<1x1x8xf32> to vector<1x8xf32>
    %36 = vector.broadcast %35 : vector<1x8xf32> to vector<256x8xf32>
    %37 = arith.addf %33, %36 : vector<256x8xf32>
    %38 = arith.truncf %37 : vector<256x8xf32> to vector<256x8xbf16>
    %c0_17 = arith.constant 0 : index
    %c0_18 = arith.constant 0 : index
    %c0_19 = arith.constant 0 : index
    %39 = vector.load %arg6[%c0_17, %c0_18, %c0_19] : memref<4x32x8xbf16, #tpu.memory_space<vmem>>, vector<1x32x8xbf16>
    %40 = vector.shape_cast %39 : vector<1x32x8xbf16> to vector<32x8xbf16>
    %cst_20 = arith.constant dense<0.000000e+00> : vector<256x8xf32>
    %41 = tpu.matmul %30, %40, %cst_20 {dimension_numbers = #tpu.dot_dimension_numbers<[1], [0], [0], [1], [0, 0, 1, 1], [], []>} : vector<256x32xbf16>, vector<32x8xbf16>, vector<256x8xf32> -> vector<256x8xf32>
    %c0_21 = arith.constant 0 : index
    %c0_22 = arith.constant 0 : index
    %c0_23 = arith.constant 0 : index
    %42 = vector.load %arg7[%c0_21, %c0_22, %c0_23] : memref<4x1x8xf32, #tpu.memory_space<vmem>>, vector<1x1x8xf32>
    %43 = vector.shape_cast %42 : vector<1x1x8xf32> to vector<1x8xf32>
    %44 = vector.broadcast %43 : vector<1x8xf32> to vector<256x8xf32>
    %45 = arith.addf %41, %44 : vector<256x8xf32>
    %46 = arith.truncf %45 : vector<256x8xf32> to vector<256x8xbf16>
    %c0_24 = arith.constant 0 : index
    %c0_25 = arith.constant 0 : index
    %c0_26 = arith.constant 0 : index
    %47 = vector.load %arg8[%c0_24, %c0_25, %c0_26] : memref<4x32x8xbf16, #tpu.memory_space<vmem>>, vector<1x32x8xbf16>
    %48 = vector.shape_cast %47 : vector<1x32x8xbf16> to vector<32x8xbf16>
    %cst_27 = arith.constant dense<0.000000e+00> : vector<256x8xf32>
    %49 = tpu.matmul %30, %48, %cst_27 {dimension_numbers = #tpu.dot_dimension_numbers<[1], [0], [0], [1], [0, 0, 1, 1], [], []>} : vector<256x32xbf16>, vector<32x8xbf16>, vector<256x8xf32> -> vector<256x8xf32>
    %c0_28 = arith.constant 0 : index
    %c0_29 = arith.constant 0 : index
    %c0_30 = arith.constant 0 : index
    %50 = vector.load %arg9[%c0_28, %c0_29, %c0_30] : memref<4x1x8xf32, #tpu.memory_space<vmem>>, vector<1x1x8xf32>
    %51 = vector.shape_cast %50 : vector<1x1x8xf32> to vector<1x8xf32>
    %52 = vector.broadcast %51 : vector<1x8xf32> to vector<256x8xf32>
    %53 = arith.addf %49, %52 : vector<256x8xf32>
    %54 = arith.truncf %53 : vector<256x8xf32> to vector<256x8xbf16>
    %c1 = arith.constant 1 : index
    %c0_31 = arith.constant 0 : index
    %c0_32 = arith.constant 0 : index
    %55 = vector.load %arg4[%c1, %c0_31, %c0_32] : memref<4x32x8xbf16, #tpu.memory_space<vmem>>, vector<1x32x8xbf16>
    %56 = vector.shape_cast %55 : vector<1x32x8xbf16> to vector<32x8xbf16>
    %cst_33 = arith.constant dense<0.000000e+00> : vector<256x8xf32>
    %57 = tpu.matmul %30, %56, %cst_33 {dimension_numbers = #tpu.dot_dimension_numbers<[1], [0], [0], [1], [0, 0, 1, 1], [], []>} : vector<256x32xbf16>, vector<32x8xbf16>, vector<256x8xf32> -> vector<256x8xf32>
    %c1_34 = arith.constant 1 : index
    %c0_35 = arith.constant 0 : index
    %c0_36 = arith.constant 0 : index
    %58 = vector.load %arg5[%c1_34, %c0_35, %c0_36] : memref<4x1x8xf32, #tpu.memory_space<vmem>>, vector<1x1x8xf32>
    %59 = vector.shape_cast %58 : vector<1x1x8xf32> to vector<1x8xf32>
    %60 = vector.broadcast %59 : vector<1x8xf32> to vector<256x8xf32>
    %61 = arith.addf %57, %60 : vector<256x8xf32>
    %62 = arith.truncf %61 : vector<256x8xf32> to vector<256x8xbf16>
    %c1_37 = arith.constant 1 : index
    %c0_38 = arith.constant 0 : index
    %c0_39 = arith.constant 0 : index
    %63 = vector.load %arg6[%c1_37, %c0_38, %c0_39] : memref<4x32x8xbf16, #tpu.memory_space<vmem>>, vector<1x32x8xbf16>
    %64 = vector.shape_cast %63 : vector<1x32x8xbf16> to vector<32x8xbf16>
    %cst_40 = arith.constant dense<0.000000e+00> : vector<256x8xf32>
    %65 = tpu.matmul %30, %64, %cst_40 {dimension_numbers = #tpu.dot_dimension_numbers<[1], [0], [0], [1], [0, 0, 1, 1], [], []>} : vector<256x32xbf16>, vector<32x8xbf16>, vector<256x8xf32> -> vector<256x8xf32>
    %c1_41 = arith.constant 1 : index
    %c0_42 = arith.constant 0 : index
    %c0_43 = arith.constant 0 : index
    %66 = vector.load %arg7[%c1_41, %c0_42, %c0_43] : memref<4x1x8xf32, #tpu.memory_space<vmem>>, vector<1x1x8xf32>
    %67 = vector.shape_cast %66 : vector<1x1x8xf32> to vector<1x8xf32>
    %68 = vector.broadcast %67 : vector<1x8xf32> to vector<256x8xf32>
    %69 = arith.addf %65, %68 : vector<256x8xf32>
    %70 = arith.truncf %69 : vector<256x8xf32> to vector<256x8xbf16>
    %c1_44 = arith.constant 1 : index
    %c0_45 = arith.constant 0 : index
    %c0_46 = arith.constant 0 : index
    %71 = vector.load %arg8[%c1_44, %c0_45, %c0_46] : memref<4x32x8xbf16, #tpu.memory_space<vmem>>, vector<1x32x8xbf16>
    %72 = vector.shape_cast %71 : vector<1x32x8xbf16> to vector<32x8xbf16>
    %cst_47 = arith.constant dense<0.000000e+00> : vector<256x8xf32>
    %73 = tpu.matmul %30, %72, %cst_47 {dimension_numbers = #tpu.dot_dimension_numbers<[1], [0], [0], [1], [0, 0, 1, 1], [], []>} : vector<256x32xbf16>, vector<32x8xbf16>, vector<256x8xf32> -> vector<256x8xf32>
    %c1_48 = arith.constant 1 : index
    %c0_49 = arith.constant 0 : index
    %c0_50 = arith.constant 0 : index
    %74 = vector.load %arg9[%c1_48, %c0_49, %c0_50] : memref<4x1x8xf32, #tpu.memory_space<vmem>>, vector<1x1x8xf32>
    %75 = vector.shape_cast %74 : vector<1x1x8xf32> to vector<1x8xf32>
    %76 = vector.broadcast %75 : vector<1x8xf32> to vector<256x8xf32>
    %77 = arith.addf %73, %76 : vector<256x8xf32>
    %78 = arith.truncf %77 : vector<256x8xf32> to vector<256x8xbf16>
    %c2 = arith.constant 2 : index
    %c0_51 = arith.constant 0 : index
    %c0_52 = arith.constant 0 : index
    %79 = vector.load %arg4[%c2, %c0_51, %c0_52] : memref<4x32x8xbf16, #tpu.memory_space<vmem>>, vector<1x32x8xbf16>
    %80 = vector.shape_cast %79 : vector<1x32x8xbf16> to vector<32x8xbf16>
    %cst_53 = arith.constant dense<0.000000e+00> : vector<256x8xf32>
    %81 = tpu.matmul %30, %80, %cst_53 {dimension_numbers = #tpu.dot_dimension_numbers<[1], [0], [0], [1], [0, 0, 1, 1], [], []>} : vector<256x32xbf16>, vector<32x8xbf16>, vector<256x8xf32> -> vector<256x8xf32>
    %c2_54 = arith.constant 2 : index
    %c0_55 = arith.constant 0 : index
    %c0_56 = arith.constant 0 : index
    %82 = vector.load %arg5[%c2_54, %c0_55, %c0_56] : memref<4x1x8xf32, #tpu.memory_space<vmem>>, vector<1x1x8xf32>
    %83 = vector.shape_cast %82 : vector<1x1x8xf32> to vector<1x8xf32>
    %84 = vector.broadcast %83 : vector<1x8xf32> to vector<256x8xf32>
    %85 = arith.addf %81, %84 : vector<256x8xf32>
    %86 = arith.truncf %85 : vector<256x8xf32> to vector<256x8xbf16>
    %c2_57 = arith.constant 2 : index
    %c0_58 = arith.constant 0 : index
    %c0_59 = arith.constant 0 : index
    %87 = vector.load %arg6[%c2_57, %c0_58, %c0_59] : memref<4x32x8xbf16, #tpu.memory_space<vmem>>, vector<1x32x8xbf16>
    %88 = vector.shape_cast %87 : vector<1x32x8xbf16> to vector<32x8xbf16>
    %cst_60 = arith.constant dense<0.000000e+00> : vector<256x8xf32>
    %89 = tpu.matmul %30, %88, %cst_60 {dimension_numbers = #tpu.dot_dimension_numbers<[1], [0], [0], [1], [0, 0, 1, 1], [], []>} : vector<256x32xbf16>, vector<32x8xbf16>, vector<256x8xf32> -> vector<256x8xf32>
    %c2_61 = arith.constant 2 : index
    %c0_62 = arith.constant 0 : index
    %c0_63 = arith.constant 0 : index
    %90 = vector.load %arg7[%c2_61, %c0_62, %c0_63] : memref<4x1x8xf32, #tpu.memory_space<vmem>>, vector<1x1x8xf32>
    %91 = vector.shape_cast %90 : vector<1x1x8xf32> to vector<1x8xf32>
    %92 = vector.broadcast %91 : vector<1x8xf32> to vector<256x8xf32>
    %93 = arith.addf %89, %92 : vector<256x8xf32>
    %94 = arith.truncf %93 : vector<256x8xf32> to vector<256x8xbf16>
    %c2_64 = arith.constant 2 : index
    %c0_65 = arith.constant 0 : index
    %c0_66 = arith.constant 0 : index
    %95 = vector.load %arg8[%c2_64, %c0_65, %c0_66] : memref<4x32x8xbf16, #tpu.memory_space<vmem>>, vector<1x32x8xbf16>
    %96 = vector.shape_cast %95 : vector<1x32x8xbf16> to vector<32x8xbf16>
    %cst_67 = arith.constant dense<0.000000e+00> : vector<256x8xf32>
    %97 = tpu.matmul %30, %96, %cst_67 {dimension_numbers = #tpu.dot_dimension_numbers<[1], [0], [0], [1], [0, 0, 1, 1], [], []>} : vector<256x32xbf16>, vector<32x8xbf16>, vector<256x8xf32> -> vector<256x8xf32>
    %c2_68 = arith.constant 2 : index
    %c0_69 = arith.constant 0 : index
    %c0_70 = arith.constant 0 : index
    %98 = vector.load %arg9[%c2_68, %c0_69, %c0_70] : memref<4x1x8xf32, #tpu.memory_space<vmem>>, vector<1x1x8xf32>
    %99 = vector.shape_cast %98 : vector<1x1x8xf32> to vector<1x8xf32>
    %100 = vector.broadcast %99 : vector<1x8xf32> to vector<256x8xf32>
    %101 = arith.addf %97, %100 : vector<256x8xf32>
    %102 = arith.truncf %101 : vector<256x8xf32> to vector<256x8xbf16>
    %c3 = arith.constant 3 : index
    %c0_71 = arith.constant 0 : index
    %c0_72 = arith.constant 0 : index
    %103 = vector.load %arg4[%c3, %c0_71, %c0_72] : memref<4x32x8xbf16, #tpu.memory_space<vmem>>, vector<1x32x8xbf16>
    %104 = vector.shape_cast %103 : vector<1x32x8xbf16> to vector<32x8xbf16>
    %cst_73 = arith.constant dense<0.000000e+00> : vector<256x8xf32>
    %105 = tpu.matmul %30, %104, %cst_73 {dimension_numbers = #tpu.dot_dimension_numbers<[1], [0], [0], [1], [0, 0, 1, 1], [], []>} : vector<256x32xbf16>, vector<32x8xbf16>, vector<256x8xf32> -> vector<256x8xf32>
    %c3_74 = arith.constant 3 : index
    %c0_75 = arith.constant 0 : index
    %c0_76 = arith.constant 0 : index
    %106 = vector.load %arg5[%c3_74, %c0_75, %c0_76] : memref<4x1x8xf32, #tpu.memory_space<vmem>>, vector<1x1x8xf32>
    %107 = vector.shape_cast %106 : vector<1x1x8xf32> to vector<1x8xf32>
    %108 = vector.broadcast %107 : vector<1x8xf32> to vector<256x8xf32>
    %109 = arith.addf %105, %108 : vector<256x8xf32>
    %110 = arith.truncf %109 : vector<256x8xf32> to vector<256x8xbf16>
    %c3_77 = arith.constant 3 : index
    %c0_78 = arith.constant 0 : index
    %c0_79 = arith.constant 0 : index
    %111 = vector.load %arg6[%c3_77, %c0_78, %c0_79] : memref<4x32x8xbf16, #tpu.memory_space<vmem>>, vector<1x32x8xbf16>
    %112 = vector.shape_cast %111 : vector<1x32x8xbf16> to vector<32x8xbf16>
    %cst_80 = arith.constant dense<0.000000e+00> : vector<256x8xf32>
    %113 = tpu.matmul %30, %112, %cst_80 {dimension_numbers = #tpu.dot_dimension_numbers<[1], [0], [0], [1], [0, 0, 1, 1], [], []>} : vector<256x32xbf16>, vector<32x8xbf16>, vector<256x8xf32> -> vector<256x8xf32>
    %c3_81 = arith.constant 3 : index
    %c0_82 = arith.constant 0 : index
    %c0_83 = arith.constant 0 : index
    %114 = vector.load %arg7[%c3_81, %c0_82, %c0_83] : memref<4x1x8xf32, #tpu.memory_space<vmem>>, vector<1x1x8xf32>
    %115 = vector.shape_cast %114 : vector<1x1x8xf32> to vector<1x8xf32>
    %116 = vector.broadcast %115 : vector<1x8xf32> to vector<256x8xf32>
    %117 = arith.addf %113, %116 : vector<256x8xf32>
    %118 = arith.truncf %117 : vector<256x8xf32> to vector<256x8xbf16>
    %c3_84 = arith.constant 3 : index
    %c0_85 = arith.constant 0 : index
    %c0_86 = arith.constant 0 : index
    %119 = vector.load %arg8[%c3_84, %c0_85, %c0_86] : memref<4x32x8xbf16, #tpu.memory_space<vmem>>, vector<1x32x8xbf16>
    %120 = vector.shape_cast %119 : vector<1x32x8xbf16> to vector<32x8xbf16>
    %cst_87 = arith.constant dense<0.000000e+00> : vector<256x8xf32>
    %121 = tpu.matmul %30, %120, %cst_87 {dimension_numbers = #tpu.dot_dimension_numbers<[1], [0], [0], [1], [0, 0, 1, 1], [], []>} : vector<256x32xbf16>, vector<32x8xbf16>, vector<256x8xf32> -> vector<256x8xf32>
    %c3_88 = arith.constant 3 : index
    %c0_89 = arith.constant 0 : index
    %c0_90 = arith.constant 0 : index
    %122 = vector.load %arg9[%c3_88, %c0_89, %c0_90] : memref<4x1x8xf32, #tpu.memory_space<vmem>>, vector<1x1x8xf32>
    %123 = vector.shape_cast %122 : vector<1x1x8xf32> to vector<1x8xf32>
    %124 = vector.broadcast %123 : vector<1x8xf32> to vector<256x8xf32>
    %125 = arith.addf %121, %124 : vector<256x8xf32>
    %126 = arith.truncf %125 : vector<256x8xf32> to vector<256x8xbf16>
    %127 = vector.shape_cast %38 : vector<256x8xbf16> to vector<1x256x8xbf16>
    %128 = vector.shape_cast %62 : vector<256x8xbf16> to vector<1x256x8xbf16>
    %129 = vector.shape_cast %86 : vector<256x8xbf16> to vector<1x256x8xbf16>
    %130 = vector.shape_cast %110 : vector<256x8xbf16> to vector<1x256x8xbf16>
    %131 = tpu.concatenate %127, %128, %129, %130 in 0 : vector<1x256x8xbf16>, vector<1x256x8xbf16>, vector<1x256x8xbf16>, vector<1x256x8xbf16> -> vector<4x256x8xbf16>
    %132 = vector.shape_cast %131 : vector<4x256x8xbf16> to vector<16x64x8xbf16>
    %133 = vector.shape_cast %46 : vector<256x8xbf16> to vector<1x256x8xbf16>
    %134 = vector.shape_cast %70 : vector<256x8xbf16> to vector<1x256x8xbf16>
    %135 = vector.shape_cast %94 : vector<256x8xbf16> to vector<1x256x8xbf16>
    %136 = vector.shape_cast %118 : vector<256x8xbf16> to vector<1x256x8xbf16>
    %137 = tpu.concatenate %133, %134, %135, %136 in 0 : vector<1x256x8xbf16>, vector<1x256x8xbf16>, vector<1x256x8xbf16>, vector<1x256x8xbf16> -> vector<4x256x8xbf16>
    %138 = vector.shape_cast %137 : vector<4x256x8xbf16> to vector<16x64x8xbf16>
    %139 = vector.shape_cast %54 : vector<256x8xbf16> to vector<1x256x8xbf16>
    %140 = vector.shape_cast %78 : vector<256x8xbf16> to vector<1x256x8xbf16>
    %141 = vector.shape_cast %102 : vector<256x8xbf16> to vector<1x256x8xbf16>
    %142 = vector.shape_cast %126 : vector<256x8xbf16> to vector<1x256x8xbf16>
    %143 = tpu.concatenate %139, %140, %141, %142 in 0 : vector<1x256x8xbf16>, vector<1x256x8xbf16>, vector<1x256x8xbf16>, vector<1x256x8xbf16> -> vector<4x256x8xbf16>
    %144 = vector.shape_cast %143 : vector<4x256x8xbf16> to vector<16x64x8xbf16>
    "tpu.trace_start"() <{level = 10 : i32, message = "bqd,bkd->bqk"}> : () -> ()
    %cst_91 = arith.constant dense<0.000000e+00> : vector<16x64x64xf32>
    %145 = tpu.matmul %132, %138, %cst_91 {dimension_numbers = #tpu.dot_dimension_numbers<[2], [2], [1], [1], [0, 0, 0, 1, 1, 1], [0], [0]>} : vector<16x64x8xbf16>, vector<16x64x8xbf16>, vector<16x64x64xf32> -> vector<16x64x64xf32>
    "tpu.trace_stop"() : () -> ()
    %cst_92 = arith.constant dense<0xFF800000> : vector<16x64xf32>
    %146 = vector.multi_reduction <maximumf>, %145, %cst_92 [2] : vector<16x64x64xf32> to vector<16x64xf32>
    %147 = vector.shape_cast %146 : vector<16x64xf32> to vector<16x64x1xf32>
    %148 = vector.broadcast %147 : vector<16x64x1xf32> to vector<16x64x64xf32>
    %149 = arith.subf %145, %148 : vector<16x64x64xf32>
    %150 = math.exp %149 : vector<16x64x64xf32>
    %cst_93 = arith.constant dense<0.000000e+00> : vector<16x64xf32>
    %151 = vector.multi_reduction <add>, %150, %cst_93 [2] : vector<16x64x64xf32> to vector<16x64xf32>
    %152 = vector.shape_cast %151 : vector<16x64xf32> to vector<16x64x1xf32>
    %153 = tpu.reciprocal %152 {approx = true} : vector<16x64x1xf32> -> vector<16x64x1xf32>
    %154 = vector.broadcast %153 : vector<16x64x1xf32> to vector<16x64x64xf32>
    %155 = arith.mulf %150, %154 : vector<16x64x64xf32>
    %156 = arith.truncf %155 : vector<16x64x64xf32> to vector<16x64x64xbf16>
    "tpu.trace_start"() <{level = 10 : i32, message = "bqk,bkd->bqd"}> : () -> ()
    %cst_94 = arith.constant dense<0.000000e+00> : vector<16x64x8xf32>
    %157 = tpu.matmul %156, %144, %cst_94 {dimension_numbers = #tpu.dot_dimension_numbers<[2], [1], [1], [2], [0, 0, 0, 1, 1, 2], [0], [0]>} : vector<16x64x64xbf16>, vector<16x64x8xbf16>, vector<16x64x8xf32> -> vector<16x64x8xf32>
    "tpu.trace_stop"() : () -> ()
    %158 = vector.shape_cast %157 : vector<16x64x8xf32> to vector<4x256x8xf32>
    %159 = arith.truncf %158 : vector<4x256x8xf32> to vector<4x256x8xbf16>
    %cst_95 = arith.constant 0.000000e+00 : f32
    %160 = vector.broadcast %cst_95 : f32 to vector<256x32xf32>
    %161 = vector.extract_strided_slice %159 {offsets = [0, 0, 0], sizes = [1, 256, 8], strides = [1, 1, 1]} : vector<4x256x8xbf16> to vector<1x256x8xbf16>
    %162 = vector.shape_cast %161 : vector<1x256x8xbf16> to vector<256x8xbf16>
    %c0_96 = arith.constant 0 : index
    %c0_97 = arith.constant 0 : index
    %c0_98 = arith.constant 0 : index
    %163 = vector.load %arg10[%c0_96, %c0_97, %c0_98] : memref<4x8x32xbf16, #tpu.memory_space<vmem>>, vector<1x8x32xbf16>
    %164 = vector.shape_cast %163 : vector<1x8x32xbf16> to vector<8x32xbf16>
    %cst_99 = arith.constant dense<0.000000e+00> : vector<256x32xf32>
    %165 = tpu.matmul %162, %164, %cst_99 {dimension_numbers = #tpu.dot_dimension_numbers<[1], [0], [0], [1], [0, 0, 1, 1], [], []>} : vector<256x8xbf16>, vector<8x32xbf16>, vector<256x32xf32> -> vector<256x32xf32>
    %166 = arith.addf %160, %165 : vector<256x32xf32>
    %167 = vector.extract_strided_slice %159 {offsets = [1, 0, 0], sizes = [1, 256, 8], strides = [1, 1, 1]} : vector<4x256x8xbf16> to vector<1x256x8xbf16>
    %168 = vector.shape_cast %167 : vector<1x256x8xbf16> to vector<256x8xbf16>
    %c1_100 = arith.constant 1 : index
    %c0_101 = arith.constant 0 : index
    %c0_102 = arith.constant 0 : index
    %169 = vector.load %arg10[%c1_100, %c0_101, %c0_102] : memref<4x8x32xbf16, #tpu.memory_space<vmem>>, vector<1x8x32xbf16>
    %170 = vector.shape_cast %169 : vector<1x8x32xbf16> to vector<8x32xbf16>
    %cst_103 = arith.constant dense<0.000000e+00> : vector<256x32xf32>
    %171 = tpu.matmul %168, %170, %cst_103 {dimension_numbers = #tpu.dot_dimension_numbers<[1], [0], [0], [1], [0, 0, 1, 1], [], []>} : vector<256x8xbf16>, vector<8x32xbf16>, vector<256x32xf32> -> vector<256x32xf32>
    %172 = arith.addf %166, %171 : vector<256x32xf32>
    %173 = vector.extract_strided_slice %159 {offsets = [2, 0, 0], sizes = [1, 256, 8], strides = [1, 1, 1]} : vector<4x256x8xbf16> to vector<1x256x8xbf16>
    %174 = vector.shape_cast %173 : vector<1x256x8xbf16> to vector<256x8xbf16>
    %c2_104 = arith.constant 2 : index
    %c0_105 = arith.constant 0 : index
    %c0_106 = arith.constant 0 : index
    %175 = vector.load %arg10[%c2_104, %c0_105, %c0_106] : memref<4x8x32xbf16, #tpu.memory_space<vmem>>, vector<1x8x32xbf16>
    %176 = vector.shape_cast %175 : vector<1x8x32xbf16> to vector<8x32xbf16>
    %cst_107 = arith.constant dense<0.000000e+00> : vector<256x32xf32>
    %177 = tpu.matmul %174, %176, %cst_107 {dimension_numbers = #tpu.dot_dimension_numbers<[1], [0], [0], [1], [0, 0, 1, 1], [], []>} : vector<256x8xbf16>, vector<8x32xbf16>, vector<256x32xf32> -> vector<256x32xf32>
    %178 = arith.addf %172, %177 : vector<256x32xf32>
    %179 = vector.extract_strided_slice %159 {offsets = [3, 0, 0], sizes = [1, 256, 8], strides = [1, 1, 1]} : vector<4x256x8xbf16> to vector<1x256x8xbf16>
    %180 = vector.shape_cast %179 : vector<1x256x8xbf16> to vector<256x8xbf16>
    %c3_108 = arith.constant 3 : index
    %c0_109 = arith.constant 0 : index
    %c0_110 = arith.constant 0 : index
    %181 = vector.load %arg10[%c3_108, %c0_109, %c0_110] : memref<4x8x32xbf16, #tpu.memory_space<vmem>>, vector<1x8x32xbf16>
    %182 = vector.shape_cast %181 : vector<1x8x32xbf16> to vector<8x32xbf16>
    %cst_111 = arith.constant dense<0.000000e+00> : vector<256x32xf32>
    %183 = tpu.matmul %180, %182, %cst_111 {dimension_numbers = #tpu.dot_dimension_numbers<[1], [0], [0], [1], [0, 0, 1, 1], [], []>} : vector<256x8xbf16>, vector<8x32xbf16>, vector<256x32xf32> -> vector<256x32xf32>
    %184 = arith.addf %178, %183 : vector<256x32xf32>
    %185 = arith.addf %1, %184 : vector<256x32xf32>
    %c0_112 = arith.constant 0 : index
    %c0_113 = arith.constant 0 : index
    %186 = vector.load %arg11[%c0_112, %c0_113] : memref<1x32xf32, #tpu.memory_space<vmem>>, vector<1x32xf32>
    %187 = vector.shape_cast %186 : vector<1x32xf32> to vector<32xf32>
    %188 = vector.shape_cast %187 : vector<32xf32> to vector<1x32xf32>
    %189 = vector.broadcast %188 : vector<1x32xf32> to vector<256x32xf32>
    %190 = arith.addf %185, %189 : vector<256x32xf32>
    %c0_114 = arith.constant 0 : index
    %c0_115 = arith.constant 0 : index
    %191 = vector.load %arg12[%c0_114, %c0_115] : memref<1x32xf32, #tpu.memory_space<vmem>>, vector<1x32xf32>
    %192 = vector.shape_cast %191 : vector<1x32xf32> to vector<32xf32>
    %c0_116 = arith.constant 0 : index
    %c0_117 = arith.constant 0 : index
    %193 = vector.load %arg13[%c0_116, %c0_117] : memref<1x32xf32, #tpu.memory_space<vmem>>, vector<1x32xf32>
    %194 = vector.shape_cast %193 : vector<1x32xf32> to vector<32xf32>
    %cst_118 = arith.constant dense<0.000000e+00> : vector<256xf32>
    %195 = vector.multi_reduction <add>, %190, %cst_118 [1] : vector<256x32xf32> to vector<256xf32>
    %196 = vector.shape_cast %195 : vector<256xf32> to vector<256x1xf32>
    %cst_119 = arith.constant 3.200000e+01 : f32
    %197 = vector.broadcast %cst_119 : f32 to vector<256x1xf32>
    %198 = arith.divf %196, %197 : vector<256x1xf32>
    %199 = vector.broadcast %198 : vector<256x1xf32> to vector<256x32xf32>
    %200 = arith.subf %190, %199 : vector<256x32xf32>
    %201 = arith.mulf %200, %200 : vector<256x32xf32>
    %cst_120 = arith.constant dense<0.000000e+00> : vector<256xf32>
    %202 = vector.multi_reduction <add>, %201, %cst_120 [1] : vector<256x32xf32> to vector<256xf32>
    %203 = vector.shape_cast %202 : vector<256xf32> to vector<256x1xf32>
    %cst_121 = arith.constant 3.200000e+01 : f32
    %204 = vector.broadcast %cst_121 : f32 to vector<256x1xf32>
    %205 = arith.divf %203, %204 : vector<256x1xf32>
    %206 = vector.broadcast %198 : vector<256x1xf32> to vector<256x32xf32>
    %207 = arith.subf %190, %206 : vector<256x32xf32>
    %cst_122 = arith.constant 9.99999974E-6 : f32
    %208 = vector.broadcast %cst_122 : f32 to vector<256x1xf32>
    %209 = arith.addf %205, %208 : vector<256x1xf32>
    %210 = math.rsqrt %209 : vector<256x1xf32>
    %211 = vector.broadcast %210 : vector<256x1xf32> to vector<256x32xf32>
    %212 = arith.mulf %207, %211 : vector<256x32xf32>
    %213 = vector.shape_cast %192 : vector<32xf32> to vector<1x32xf32>
    %214 = vector.broadcast %213 : vector<1x32xf32> to vector<256x32xf32>
    %215 = arith.mulf %212, %214 : vector<256x32xf32>
    %216 = vector.shape_cast %194 : vector<32xf32> to vector<1x32xf32>
    %217 = vector.broadcast %216 : vector<1x32xf32> to vector<256x32xf32>
    %218 = arith.addf %215, %217 : vector<256x32xf32>
    %219 = arith.truncf %218 : vector<256x32xf32> to vector<256x32xbf16>
    %c0_123 = arith.constant 0 : index
    %c0_124 = arith.constant 0 : index
    %220 = vector.load %arg14[%c0_123, %c0_124] : memref<32x64xbf16, #tpu.memory_space<vmem>>, vector<32x64xbf16>
    %cst_125 = arith.constant dense<0.000000e+00> : vector<256x64xf32>
    %221 = tpu.matmul %219, %220, %cst_125 {dimension_numbers = #tpu.dot_dimension_numbers<[1], [0], [0], [1], [0, 0, 1, 1], [], []>} : vector<256x32xbf16>, vector<32x64xbf16>, vector<256x64xf32> -> vector<256x64xf32>
    %c0_126 = arith.constant 0 : index
    %c0_127 = arith.constant 0 : index
    %222 = vector.load %arg15[%c0_126, %c0_127] : memref<1x64xf32, #tpu.memory_space<vmem>>, vector<1x64xf32>
    %223 = vector.shape_cast %222 : vector<1x64xf32> to vector<64xf32>
    %224 = vector.shape_cast %223 : vector<64xf32> to vector<1x64xf32>
    %225 = vector.broadcast %224 : vector<1x64xf32> to vector<256x64xf32>
    %226 = arith.addf %221, %225 : vector<256x64xf32>
    %cst_128 = arith.constant 5.000000e-01 : f32
    %227 = vector.broadcast %cst_128 : f32 to vector<256x64xf32>
    %228 = arith.mulf %227, %226 : vector<256x64xf32>
    %cst_129 = arith.constant 0.707106769 : f32
    %229 = vector.broadcast %cst_129 : f32 to vector<256x64xf32>
    %230 = arith.mulf %226, %229 : vector<256x64xf32>
    %cst_130 = arith.constant 0.000000e+00 : f32
    %231 = vector.broadcast %cst_130 : f32 to vector<256x64xf32>
    %232 = arith.cmpf oge, %230, %231 : vector<256x64xf32>
    %cst_131 = arith.constant 1.000000e+00 : f32
    %cst_132 = arith.constant -1.000000e+00 : f32
    %233 = vector.broadcast %cst_131 : f32 to vector<256x64xf32>
    %234 = vector.broadcast %cst_132 : f32 to vector<256x64xf32>
    %235 = arith.select %232, %233, %234 : vector<256x64xi1>, vector<256x64xf32>
    %236 = math.absf %230 : vector<256x64xf32>
    %cst_133 = arith.constant 0.327591091 : f32
    %237 = vector.broadcast %cst_133 : f32 to vector<256x64xf32>
    %238 = arith.mulf %237, %236 : vector<256x64xf32>
    %cst_134 = arith.constant 1.000000e+00 : f32
    %239 = vector.broadcast %cst_134 : f32 to vector<256x64xf32>
    %240 = arith.addf %239, %238 : vector<256x64xf32>
    %cst_135 = arith.constant 1.000000e+00 : f32
    %241 = vector.broadcast %cst_135 : f32 to vector<256x64xf32>
    %242 = arith.divf %241, %240 : vector<256x64xf32>
    %cst_136 = arith.constant 1.06140542 : f32
    %243 = vector.broadcast %cst_136 : f32 to vector<256x64xf32>
    %244 = arith.mulf %243, %242 : vector<256x64xf32>
    %cst_137 = arith.constant -1.45315206 : f32
    %245 = vector.broadcast %cst_137 : f32 to vector<256x64xf32>
    %246 = arith.addf %244, %245 : vector<256x64xf32>
    %247 = arith.mulf %246, %242 : vector<256x64xf32>
    %cst_138 = arith.constant 1.42141378 : f32
    %248 = vector.broadcast %cst_138 : f32 to vector<256x64xf32>
    %249 = arith.addf %247, %248 : vector<256x64xf32>
    %250 = arith.mulf %249, %242 : vector<256x64xf32>
    %cst_139 = arith.constant -0.284496725 : f32
    %251 = vector.broadcast %cst_139 : f32 to vector<256x64xf32>
    %252 = arith.addf %250, %251 : vector<256x64xf32>
    %253 = arith.mulf %252, %242 : vector<256x64xf32>
    %cst_140 = arith.constant 0.254829586 : f32
    %254 = vector.broadcast %cst_140 : f32 to vector<256x64xf32>
    %255 = arith.addf %253, %254 : vector<256x64xf32>
    %256 = arith.mulf %255, %242 : vector<256x64xf32>
    %cst_141 = arith.constant 0.000000e+00 : f32
    %257 = vector.broadcast %cst_141 : f32 to vector<256x64xf32>
    %258 = arith.subf %257, %236 : vector<256x64xf32>
    %259 = arith.mulf %258, %236 : vector<256x64xf32>
    %260 = math.exp %259 : vector<256x64xf32>
    %261 = arith.mulf %256, %260 : vector<256x64xf32>
    %cst_142 = arith.constant 1.000000e+00 : f32
    %262 = vector.broadcast %cst_142 : f32 to vector<256x64xf32>
    %263 = arith.subf %262, %261 : vector<256x64xf32>
    %264 = arith.mulf %235, %263 : vector<256x64xf32>
    %cst_143 = arith.constant 1.000000e+00 : f32
    %265 = vector.broadcast %cst_143 : f32 to vector<256x64xf32>
    %266 = arith.addf %265, %264 : vector<256x64xf32>
    %267 = arith.mulf %228, %266 : vector<256x64xf32>
    %268 = arith.truncf %267 : vector<256x64xf32> to vector<256x64xbf16>
    %c0_144 = arith.constant 0 : index
    %c0_145 = arith.constant 0 : index
    %269 = vector.load %arg16[%c0_144, %c0_145] : memref<64x32xbf16, #tpu.memory_space<vmem>>, vector<64x32xbf16>
    %cst_146 = arith.constant dense<0.000000e+00> : vector<256x32xf32>
    %270 = tpu.matmul %268, %269, %cst_146 {dimension_numbers = #tpu.dot_dimension_numbers<[1], [0], [0], [1], [0, 0, 1, 1], [], []>} : vector<256x64xbf16>, vector<64x32xbf16>, vector<256x32xf32> -> vector<256x32xf32>
    %c0_147 = arith.constant 0 : index
    %c0_148 = arith.constant 0 : index
    %271 = vector.load %arg17[%c0_147, %c0_148] : memref<1x32xf32, #tpu.memory_space<vmem>>, vector<1x32xf32>
    %272 = vector.shape_cast %271 : vector<1x32xf32> to vector<32xf32>
    %273 = vector.shape_cast %272 : vector<32xf32> to vector<1x32xf32>
    %274 = vector.broadcast %273 : vector<1x32xf32> to vector<256x32xf32>
    %275 = arith.addf %270, %274 : vector<256x32xf32>
    %276 = arith.addf %190, %275 : vector<256x32xf32>
    %277 = vector.shape_cast %276 : vector<256x32xf32> to vector<4x64x32xf32>
    %c0_149 = arith.constant 0 : index
    %c0_150 = arith.constant 0 : index
    %c0_151 = arith.constant 0 : index
    %278 = vector.load %arg18[%c0_149, %c0_150, %c0_151] : memref<4x64x32xf32, #tpu.memory_space<vmem>>, vector<4x64x32xf32>
    tpu.vector_store %arg18[%c0_149, %c0_150, %c0_151], %277 {strides = array<i32>} : memref<4x64x32xf32, #tpu.memory_space<vmem>>, vector<4x64x32xf32>,
    return
  }
  func.func @transform_0(%arg0: i32) -> (i32, i32, i32) {
    %c0_i32 = arith.constant 0 : i32
    %c0_i32_0 = arith.constant 0 : i32
    %c0_i32_1 = arith.constant 0 : i32
    return %arg0, %c0_i32, %c0_i32_0 : i32, i32, i32
  }
  func.func @transform_1(%arg0: i32) -> (i32, i32) {
    %c0_i32 = arith.constant 0 : i32
    %c0_i32_0 = arith.constant 0 : i32
    %c0_i32_1 = arith.constant 0 : i32
    return %c0_i32, %c0_i32_0 : i32, i32
  }
  func.func @transform_2(%arg0: i32) -> (i32, i32) {
    %c0_i32 = arith.constant 0 : i32
    %c0_i32_0 = arith.constant 0 : i32
    %c0_i32_1 = arith.constant 0 : i32
    return %c0_i32, %c0_i32_0 : i32, i32
  }
  func.func @transform_3(%arg0: i32) -> (i32, i32, i32) {
    %c0_i32 = arith.constant 0 : i32
    %c0_i32_0 = arith.constant 0 : i32
    %c0_i32_1 = arith.constant 0 : i32
    %c0_i32_2 = arith.constant 0 : i32
    return %c0_i32, %c0_i32_0, %c0_i32_1 : i32, i32, i32
  }
  func.func @transform_4(%arg0: i32) -> (i32, i32, i32) {
    %c0_i32 = arith.constant 0 : i32
    %c0_i32_0 = arith.constant 0 : i32
    %c0_i32_1 = arith.constant 0 : i32
    %c0_i32_2 = arith.constant 0 : i32
    return %c0_i32, %c0_i32_0, %c0_i32_1 : i32, i32, i32
  }
  func.func @transform_5(%arg0: i32) -> (i32, i32, i32) {
    %c0_i32 = arith.constant 0 : i32
    %c0_i32_0 = arith.constant 0 : i32
    %c0_i32_1 = arith.constant 0 : i32
    %c0_i32_2 = arith.constant 0 : i32
    return %c0_i32, %c0_i32_0, %c0_i32_1 : i32, i32, i32
  }
  func.func @transform_6(%arg0: i32) -> (i32, i32, i32) {
    %c0_i32 = arith.constant 0 : i32
    %c0_i32_0 = arith.constant 0 : i32
    %c0_i32_1 = arith.constant 0 : i32
    %c0_i32_2 = arith.constant 0 : i32
    return %c0_i32, %c0_i32_0, %c0_i32_1 : i32, i32, i32
  }
  func.func @transform_7(%arg0: i32) -> (i32, i32, i32) {
    %c0_i32 = arith.constant 0 : i32
    %c0_i32_0 = arith.constant 0 : i32
    %c0_i32_1 = arith.constant 0 : i32
    %c0_i32_2 = arith.constant 0 : i32
    return %c0_i32, %c0_i32_0, %c0_i32_1 : i32, i32, i32
  }
  func.func @transform_8(%arg0: i32) -> (i32, i32, i32) {
    %c0_i32 = arith.constant 0 : i32
    %c0_i32_0 = arith.constant 0 : i32
    %c0_i32_1 = arith.constant 0 : i32
    %c0_i32_2 = arith.constant 0 : i32
    return %c0_i32, %c0_i32_0, %c0_i32_1 : i32, i32, i32
  }
  func.func @transform_9(%arg0: i32) -> (i32, i32, i32) {
    %c0_i32 = arith.constant 0 : i32
    %c0_i32_0 = arith.constant 0 : i32
    %c0_i32_1 = arith.constant 0 : i32
    %c0_i32_2 = arith.constant 0 : i32
    return %c0_i32, %c0_i32_0, %c0_i32_1 : i32, i32, i32
  }
  func.func @transform_10(%arg0: i32) -> (i32, i32) {
    %c0_i32 = arith.constant 0 : i32
    %c0_i32_0 = arith.constant 0 : i32
    %c0_i32_1 = arith.constant 0 : i32
    return %c0_i32, %c0_i32_0 : i32, i32
  }
  func.func @transform_11(%arg0: i32) -> (i32, i32) {
    %c0_i32 = arith.constant 0 : i32
    %c0_i32_0 = arith.constant 0 : i32
    %c0_i32_1 = arith.constant 0 : i32
    return %c0_i32, %c0_i32_0 : i32, i32
  }
  func.func @transform_12(%arg0: i32) -> (i32, i32) {
    %c0_i32 = arith.constant 0 : i32
    %c0_i32_0 = arith.constant 0 : i32
    %c0_i32_1 = arith.constant 0 : i32
    return %c0_i32, %c0_i32_0 : i32, i32
  }
  func.func @transform_13(%arg0: i32) -> (i32, i32) {
    %c0_i32 = arith.constant 0 : i32
    %c0_i32_0 = arith.constant 0 : i32
    %c0_i32_1 = arith.constant 0 : i32
    return %c0_i32, %c0_i32_0 : i32, i32
  }
  func.func @transform_14(%arg0: i32) -> (i32, i32) {
    %c0_i32 = arith.constant 0 : i32
    %c0_i32_0 = arith.constant 0 : i32
    %c0_i32_1 = arith.constant 0 : i32
    return %c0_i32, %c0_i32_0 : i32, i32
  }
  func.func @transform_15(%arg0: i32) -> (i32, i32) {
    %c0_i32 = arith.constant 0 : i32
    %c0_i32_0 = arith.constant 0 : i32
    %c0_i32_1 = arith.constant 0 : i32
    return %c0_i32, %c0_i32_0 : i32, i32
  }
  func.func @transform_16(%arg0: i32) -> (i32, i32) {
    %c0_i32 = arith.constant 0 : i32
    %c0_i32_0 = arith.constant 0 : i32
    %c0_i32_1 = arith.constant 0 : i32
    return %c0_i32, %c0_i32_0 : i32, i32
  }
  func.func @transform_17(%arg0: i32) -> (i32, i32, i32) {
    %c0_i32 = arith.constant 0 : i32
    %c0_i32_0 = arith.constant 0 : i32
    %c0_i32_1 = arith.constant 0 : i32
    return %arg0, %c0_i32, %c0_i32_0 : i32, i32, i32
  }
}

</mosaic_0001>

<bundles_post_ra>
// kernel: tpu_custom_call.1
= control target key start
LH: loop header
LB: loop body
LE: loop exit
PB: predicated region body
PF: predicated region fallthrough
CT: control target
= control target key end

     0   :  { %s14110_s24 = smov 0   ;;  %s20046_s0 = inlined_call_operand.vmem [shape: f32[8,64,32], index: 0, kind: input, shape index: {}]   ;;  %s20047_s1 = inlined_call_operand.vmem [shape: f32[1,32], index: 1, kind: input, shape index: {}]   ;;  %s20048_s2 = inlined_call_operand.vmem [shape: f32[1,32], index: 2, kind: input, shape index: {}]   ;;  %s20049_s3 = inlined_call_operand.vmem [shape: bf16[4,32,8], index: 3, kind: input, shape index: {}]   ;;  %s20050_s4 = inlined_call_operand.vmem [shape: f32[4,1,8], index: 4, kind: input, shape index: {}]   ;;  %s20051_s5 = inlined_call_operand.vmem [shape: bf16[4,32,8], index: 5, kind: input, shape index: {}]   ;;  %s20052_s6 = inlined_call_operand.vmem [shape: f32[4,1,8], index: 6, kind: input, shape index: {}]   ;;  %s20053_s7 = inlined_call_operand.vmem [shape: bf16[4,32,8], index: 7, kind: input, shape index: {}]   ;;  %s20054_s8 = inlined_call_operand.vmem [shape: f32[4,1,8], index: 8, kind: input, shape index: {}]   ;;  %s20055_s9 = inlined_call_operand.vmem [shape: bf16[4,8,32], index: 9, kind: input, shape index: {}]   ;;  %s20056_s10 = inlined_call_operand.vmem [shape: f32[1,32], index: 10, kind: input, shape index: {}]   ;;  %s20057_s11 = inlined_call_operand.vmem [shape: f32[1,32], index: 11, kind: input, shape index: {}]   ;;  %s20058_s12 = inlined_call_operand.vmem [shape: f32[1,32], index: 12, kind: input, shape index: {}]   ;;  %s20059_s13 = inlined_call_operand.vmem [shape: bf16[32,64], index: 13, kind: input, shape index: {}]   ;;  %s20060_s14 = inlined_call_operand.vmem [shape: f32[1,64], index: 14, kind: input, shape index: {}]   ;;  %s20061_s15 = inlined_call_operand.vmem [shape: bf16[64,32], index: 15, kind: input, shape index: {}]   ;;  %s20062_s16 = inlined_call_operand.vmem [shape: f32[1,32], index: 16, kind: input, shape index: {}]   ;;  %s20063_s17 = inlined_call_operand.vmem [shape: f32[8,64,32], index: 17, kind: output, shape index: {}]  }
   0x1   :  { %20370 = sst [smem:[#allocation137_spill]] %s20046_s0 }
   0x2   :  { %20371 = sst [smem:[#allocation138_spill]] %s20047_s1 }
   0x3 LB: > { %s10745_s25 = sadd.s32 4294967295, %s14017_s24   ;;  %p10749_p0 = scmp.ge.s32.totalorder %s14017_s24, 1  ;;  %s14017_s24 = sphi %s14110_s24, %s27_s24  }
   0x4   : > { %p489_p1 = scmp.lt.s32.totalorder %s14017_s24, 3 }
   0x6   : > { %p490_p2 = pnand %p10749_p0, %p489_p1 }
   0x8   : > { %493 = sbr.rel (%p490_p2) target bundleno = 3083 (0xc0b), region = 88 }
   0xf   : > { %s10750_s26 = sshll.u32 %s10745_s25, 2  ;;  %vm592_vm0 = vcmask 261120   ;;  %s20372_s0 = sld [smem:[#allocation137_spill]]  ;;  %vm3568_vm1 = vcmask 64512   ;;  %vm4993_vm2 = vcmask 523264   ;;  %vm7813_vm3 = vcmask 1043456  }
  0x10   : > { %p544_p3 = scmp.lt.s32.totalorder %s10750_s26, 7  ;;  %s20373_s20 = sld [smem:[#allocation138_spill]] }
  0x12   : > { %s21087_s26 = smov (!%p544_p3, %s10750_s26), 7 }
  0x13   : > { %s11271_s27 = sshll.u32 %s21087_s26, 6 }
  0x15   : > { %s14126_s30 = scalar_lea.vmem %s20372_s0, %s11271_s27 }
  0x16   : > { %v14129_v0 = vld [vmem:[%s14126_s30] sm:$0xff]  ;;  %v14132_v1 = vld [vmem:[%s14126_s30 + $0x10] sm:$0xff]  ;;  %v14135_v2 = vld [vmem:[%s14126_s30 + $0x8] sm:$0xff] }
  0x17   : > { %v593_v3 = vsel %vm592_vm0, %v14129_v0, 0.0  ;;  %v599_v4 = vsel %vm592_vm0, %v14132_v1, 0.0  ;;  %v14142_v5 = vld [vmem:[%s14126_s30 + $0x18] sm:$0xff]  ;;  %v596_v6 = vsel %vm592_vm0, %v14135_v2, 0.0  ;;  %v14149_v8 = vld [vmem:[%s14126_s30 + $0x20] sm:$0xff]  ;;  %v14152_v9 = vld [vmem:[%s14126_s30 + $0x28] sm:$0xff] }
  0x18   : > { %594 = vadd.xlane.f32.xlu0 %v593_v3  ;;  %600 = vadd.xlane.f32.xlu1 %v599_v4  ;;  %v602_v7 = vsel %vm592_vm0, %v14142_v5, 0.0  ;;  %v14155_v10 = vld [vmem:[%s14126_s30 + $0x30] sm:$0xff]  ;;  %v14158_v11 = vld [vmem:[%s14126_s30 + $0x38] sm:$0xff]  ;;  %v14161_v12 = vld [vmem:[%s14126_s30 + $0x40] sm:$0xff]  ;;  %v605_v13 = vsel %vm592_vm0, %v14149_v8, 0.0  ;;  %v608_v14 = vsel %vm592_vm0, %v14152_v9, 0.0 }
  0x19   : > { %v14168_v15 = vld [vmem:[%s14126_s30 + $0x48] sm:$0xff]  ;;  %v14171_v16 = vld [vmem:[%s14126_s30 + $0x50] sm:$0xff]  ;;  %v14174_v17 = vld [vmem:[%s14126_s30 + $0x58] sm:$0xff]  ;;  %v611_v20 = vsel %vm592_vm0, %v14155_v10, 0.0  ;;  %v614_v21 = vsel %vm592_vm0, %v14158_v11, 0.0  ;;  %v617_v22 = vsel %vm592_vm0, %v14161_v12, 0.0 }
  0x1a   : > { %v14177_v18 = vld [vmem:[%s14126_s30 + $0x60] sm:$0xff]  ;;  %v14180_v19 = vld [vmem:[%s14126_s30 + $0x68] sm:$0xff]  ;;  %v620_v23 = vsel %vm592_vm0, %v14168_v15, 0.0  ;;  %v623_v24 = vsel %vm592_vm0, %v14171_v16, 0.0  ;;  %v626_v25 = vsel %vm592_vm0, %v14174_v17, 0.0  ;;  %v14199_v28 = vld [vmem:[%s14126_s30 + $0x70] sm:$0xff] }
  0x1b   : > { %v629_v26 = vsel %vm592_vm0, %v14177_v18, 0.0  ;;  %v632_v27 = vsel %vm592_vm0, %v14180_v19, 0.0  ;;  %v14202_v29 = vld [vmem:[%s14126_s30 + $0x78] sm:$0xff]  ;;  %v635_v30 = vsel %vm592_vm0, %v14199_v28, 0.0  ;;  %v14209_v32 = vld [vmem:[%s14126_s30 + $0x80] sm:$0xff]  ;;  %v14212_v33 = vld [vmem:[%s14126_s30 + $0x88] sm:$0xff] }
  0x1c   : > { %597 = vadd.xlane.f32.xlu0 %v596_v6  ;;  %603 = vadd.xlane.f32.xlu1 %v602_v7  ;;  %v638_v31 = vsel %vm592_vm0, %v14202_v29, 0.0  ;;  %v641_v34 = vsel %vm592_vm0, %v14209_v32, 0.0  ;;  %v644_v35 = vsel %vm592_vm0, %v14212_v33, 0.0  ;;  %v14219_v36 = vld [vmem:[%s14126_s30 + $0x90] sm:$0xff]  ;;  %v14222_v37 = vld [vmem:[%s14126_s30 + $0x98] sm:$0xff]  ;;  %v14229_v40 = vld [vmem:[%s14126_s30 + $0xa0] sm:$0xff] }
  0x1d   : > { %v647_v38 = vsel %vm592_vm0, %v14219_v36, 0.0  ;;  %v650_v39 = vsel %vm592_vm0, %v14222_v37, 0.0  ;;  %v14232_v41 = vld [vmem:[%s14126_s30 + $0xa8] sm:$0xff]  ;;  %v653_v42 = vsel %vm592_vm0, %v14229_v40, 0.0  ;;  %v14239_v44 = vld [vmem:[%s14126_s30 + $0xb0] sm:$0xff]  ;;  %v14242_v45 = vld [vmem:[%s14126_s30 + $0xb8] sm:$0xff] }
  0x1e   : > { %v656_v43 = vsel %vm592_vm0, %v14232_v41, 0.0  ;;  %v659_v46 = vsel %vm592_vm0, %v14239_v44, 0.0  ;;  %v662_v47 = vsel %vm592_vm0, %v14242_v45, 0.0  ;;  %v14249_v48 = vld [vmem:[%s14126_s30 + $0xc0] sm:$0xff]  ;;  %v14252_v49 = vld [vmem:[%s14126_s30 + $0xc8] sm:$0xff]  ;;  %v14259_v52 = vld [vmem:[%s14126_s30 + $0xd0] sm:$0xff] }
  0x1f   : > { %v665_v50 = vsel %vm592_vm0, %v14249_v48, 0.0  ;;  %v668_v51 = vsel %vm592_vm0, %v14252_v49, 0.0  ;;  %v14262_v53 = vld [vmem:[%s14126_s30 + $0xd8] sm:$0xff]  ;;  %v671_v54 = vsel %vm592_vm0, %v14259_v52, 0.0  ;;  %v14269_v56 = vld [vmem:[%s14126_s30 + $0xe0] sm:$0xff]  ;;  %v14272_v57 = vld [vmem:[%s14126_s30 + $0xe8] sm:$0xff] }
  0x20   : > { %606 = vadd.xlane.f32.xlu0 %v605_v13  ;;  %609 = vadd.xlane.f32.xlu1 %v608_v14  ;;  %v674_v55 = vsel %vm592_vm0, %v14262_v53, 0.0  ;;  %v677_v58 = vsel %vm592_vm0, %v14269_v56, 0.0  ;;  %v680_v59 = vsel %vm592_vm0, %v14272_v57, 0.0  ;;  %v14279_v60 = vld [vmem:[%s14126_s30 + $0xf0] sm:$0xff]  ;;  %v14282_v61 = vld [vmem:[%s14126_s30 + $0xf8] sm:$0xff] }
  0x21   : > { %v683_v62 = vsel %vm592_vm0, %v14279_v60, 0.0  ;;  %v686_v63 = vsel %vm592_vm0, %v14282_v61, 0.0 }
  0x24   : > { %612 = vadd.xlane.f32.xlu0 %v611_v20  ;;  %615 = vadd.xlane.f32.xlu1 %v614_v21 }
  0x28   : > { %618 = vadd.xlane.f32.xlu0 %v617_v22  ;;  %621 = vadd.xlane.f32.xlu1 %v620_v23 }
  0x2c   : > { %624 = vadd.xlane.f32.xlu0 %v623_v24  ;;  %627 = vadd.xlane.f32.xlu1 %v626_v25 }
  0x30   : > { %630 = vadd.xlane.f32.xlu0 %v629_v26  ;;  %633 = vadd.xlane.f32.xlu1 %v632_v27 }
  0x34   : > { %636 = vadd.xlane.f32.xlu0 %v635_v30  ;;  %639 = vadd.xlane.f32.xlu1 %v638_v31 }
  0x38   : > { %642 = vadd.xlane.f32.xlu0 %v641_v34  ;;  %645 = vadd.xlane.f32.xlu1 %v644_v35 }
  0x3c   : > { %648 = vadd.xlane.f32.xlu0 %v647_v38  ;;  %651 = vadd.xlane.f32.xlu1 %v650_v39 }
  0x40   : > { %654 = vadd.xlane.f32.xlu0 %v653_v42  ;;  %657 = vadd.xlane.f32.xlu1 %v656_v43 }
  0x44   : > { %660 = vadd.xlane.f32.xlu0 %v659_v46  ;;  %663 = vadd.xlane.f32.xlu1 %v662_v47 }
  0x48   : > { %666 = vadd.xlane.f32.xlu0 %v665_v50  ;;  %669 = vadd.xlane.f32.xlu1 %v668_v51 }
  0x4c   : > { %672 = vadd.xlane.f32.xlu0 %v671_v54  ;;  %675 = vadd.xlane.f32.xlu1 %v674_v55 }
  0x50   : > { %678 = vadd.xlane.f32.xlu0 %v677_v58  ;;  %681 = vadd.xlane.f32.xlu1 %v680_v59 }
  0x54   : > { %684 = vadd.xlane.f32.xlu0 %v683_v62  ;;  %687 = vadd.xlane.f32.xlu1 %v686_v63 }
  0xa5   : > { %v595_v3 = vpop.xlane.xlu0 %594  ;;  %v601_v4 = vpop.xlane.xlu1 %600 }
  0xa6   : > { %v690_v6 = vmul.f32 0.03125, %v595_v3  ;;  %v692_v7 = vmul.f32 0.03125, %v601_v4 }
  0xa8   : > { %v14289_v13 = vsub.f32 %v14129_v0, %v690_v6  ;;  %v14292_v14 = vsub.f32 %v14132_v1, %v692_v7 }
  0xa9   : > { %v598_v20 = vpop.xlane.xlu0 %597  ;;  %v604_v21 = vpop.xlane.xlu1 %603 }
  0xaa   : > { %v691_v22 = vmul.f32 0.03125, %v598_v20  ;;  %v693_v23 = vmul.f32 0.03125, %v604_v21  ;;  %v754_v24 = vmul.f32 %v14289_v13, %v14289_v13  ;;  %v756_v25 = vmul.f32 %v14292_v14, %v14292_v14 }
  0xac   : > { %v14299_v26 = vsub.f32 %v14135_v2, %v691_v22  ;;  %v14302_v27 = vsub.f32 %v14142_v5, %v693_v23  ;;  %v786_v0 = vsel %vm592_vm0, %v754_v24, 0.0  ;;  %v792_v31 = vsel %vm592_vm0, %v756_v25, 0.0 }
  0xad   : > { %787 = vadd.xlane.f32.xlu0 %v786_v0  ;;  %v607_v1 = vpop.xlane.xlu0 %606  ;;  %v610_v30 = vpop.xlane.xlu1 %609 }
  0xae   : > { %v694_v34 = vmul.f32 0.03125, %v607_v1  ;;  %v695_v35 = vmul.f32 0.03125, %v610_v30  ;;  %v755_v38 = vmul.f32 %v14299_v26, %v14299_v26  ;;  %v757_v39 = vmul.f32 %v14302_v27, %v14302_v27 }
  0xb0   : > { %v14311_v2 = vsub.f32 %v14149_v8, %v694_v34  ;;  %v14314_v5 = vsub.f32 %v14152_v9, %v695_v35  ;;  %v789_v42 = vsel %vm592_vm0, %v755_v38, 0.0  ;;  %v795_v47 = vsel %vm592_vm0, %v757_v39, 0.0 }
  0xb1   : > { %793 = vadd.xlane.f32.xlu0 %v792_v31  ;;  %790 = vadd.xlane.f32.xlu1 %v789_v42  ;;  %v613_v43 = vpop.xlane.xlu0 %612  ;;  %v616_v46 = vpop.xlane.xlu1 %615 }
  0xb2   : > { %v696_v50 = vmul.f32 0.03125, %v613_v43  ;;  %v697_v51 = vmul.f32 0.03125, %v616_v46  ;;  %v758_v54 = vmul.f32 %v14311_v2, %v14311_v2  ;;  %v759_v8 = vmul.f32 %v14314_v5, %v14314_v5 }
  0xb4   : > { %v14323_v55 = vsub.f32 %v14155_v10, %v696_v50  ;;  %v14326_v9 = vsub.f32 %v14158_v11, %v697_v51  ;;  %v798_v58 = vsel %vm592_vm0, %v758_v54, 0.0  ;;  %v801_v63 = vsel %vm592_vm0, %v759_v8, 0.0 }
  0xb5   : > { %796 = vadd.xlane.f32.xlu1 %v795_v47  ;;  %799 = vadd.xlane.f32.xlu0 %v798_v58  ;;  %v619_v59 = vpop.xlane.xlu0 %618  ;;  %v622_v62 = vpop.xlane.xlu1 %621 }
  0xb6   : > { %v698_v3 = vmul.f32 0.03125, %v619_v59  ;;  %v699_v4 = vmul.f32 0.03125, %v622_v62  ;;  %v760_v6 = vmul.f32 %v14323_v55, %v14323_v55  ;;  %v761_v10 = vmul.f32 %v14326_v9, %v14326_v9 }
  0xb8   : > { %v14335_v7 = vsub.f32 %v14161_v12, %v698_v3  ;;  %v14338_v11 = vsub.f32 %v14168_v15, %v699_v4  ;;  %v804_v20 = vsel %vm592_vm0, %v760_v6, 0.0  ;;  %v807_v23 = vsel %vm592_vm0, %v761_v10, 0.0 }
  0xb9   : > { %802 = vadd.xlane.f32.xlu1 %v801_v63  ;;  %805 = vadd.xlane.f32.xlu0 %v804_v20  ;;  %v625_v21 = vpop.xlane.xlu0 %624  ;;  %v628_v22 = vpop.xlane.xlu1 %627 }
  0xba   : > { %v700_v24 = vmul.f32 0.03125, %v625_v21  ;;  %v701_v25 = vmul.f32 0.03125, %v628_v22  ;;  %v762_v0 = vmul.f32 %v14335_v7, %v14335_v7  ;;  %v763_v12 = vmul.f32 %v14338_v11, %v14338_v11 }
  0xbc   : > { %v14347_v1 = vsub.f32 %v14171_v16, %v700_v24  ;;  %v14350_v15 = vsub.f32 %v14174_v17, %v701_v25  ;;  %v810_v30 = vsel %vm592_vm0, %v762_v0, 0.0  ;;  %v813_v35 = vsel %vm592_vm0, %v763_v12, 0.0 }
  0xbd   : > { %808 = vadd.xlane.f32.xlu1 %v807_v23  ;;  %811 = vadd.xlane.f32.xlu0 %v810_v30  ;;  %v631_v31 = vpop.xlane.xlu0 %630  ;;  %v634_v34 = vpop.xlane.xlu1 %633 }
  0xbe   : > { %v702_v38 = vmul.f32 0.03125, %v631_v31  ;;  %v703_v39 = vmul.f32 0.03125, %v634_v34  ;;  %v764_v42 = vmul.f32 %v14347_v1, %v14347_v1  ;;  %v765_v16 = vmul.f32 %v14350_v15, %v14350_v15 }
  0xc0   : > { %v14359_v43 = vsub.f32 %v14177_v18, %v702_v38  ;;  %v14362_v17 = vsub.f32 %v14180_v19, %v703_v39  ;;  %v816_v46 = vsel %vm592_vm0, %v764_v42, 0.0  ;;  %v819_v51 = vsel %vm592_vm0, %v765_v16, 0.0 }
  0xc1   : > { %814 = vadd.xlane.f32.xlu1 %v813_v35  ;;  %817 = vadd.xlane.f32.xlu0 %v816_v46  ;;  %v637_v47 = vpop.xlane.xlu0 %636  ;;  %v640_v50 = vpop.xlane.xlu1 %639 }
  0xc2   : > { %v704_v54 = vmul.f32 0.03125, %v637_v47  ;;  %v705_v8 = vmul.f32 0.03125, %v640_v50  ;;  %v766_v58 = vmul.f32 %v14359_v43, %v14359_v43  ;;  %v767_v18 = vmul.f32 %v14362_v17, %v14362_v17 }
  0xc4   : > { %v14371_v59 = vsub.f32 %v14199_v28, %v704_v54  ;;  %v14374_v19 = vsub.f32 %v14202_v29, %v705_v8  ;;  %v822_v62 = vsel %vm592_vm0, %v766_v58, 0.0  ;;  %v825_v4 = vsel %vm592_vm0, %v767_v18, 0.0  ;;  %v13180_v58 = vld [vmem:[%s20049_s3] sm:$0xff]  }
  0xc5   : > { %820 = vadd.xlane.f32.xlu1 %v819_v51  ;;  %823 = vadd.xlane.f32.xlu0 %v822_v62  ;;  %v643_v63 = vpop.xlane.xlu0 %642  ;;  %v646_v3 = vpop.xlane.xlu1 %645 }
  0xc6   : > { %v706_v6 = vmul.f32 0.03125, %v643_v63  ;;  %v707_v10 = vmul.f32 0.03125, %v646_v3  ;;  %v768_v20 = vmul.f32 %v14371_v59, %v14371_v59  ;;  %v769_v28 = vmul.f32 %v14374_v19, %v14374_v19  ;;  %11851 = vmatprep.subr.bf16.mxu1 %v13180_v58 }
  0xc7   : > { %11852 = vmatpush3.bf16.msra.mxu1 %v13180_v58 }
  0xc8   : > { %v14383_v21 = vsub.f32 %v14209_v32, %v706_v6  ;;  %v14386_v29 = vsub.f32 %v14212_v33, %v707_v10  ;;  %v828_v22 = vsel %vm592_vm0, %v768_v20, 0.0  ;;  %v831_v25 = vsel %vm592_vm0, %v769_v28, 0.0 }
  0xc9   : > { %826 = vadd.xlane.f32.xlu1 %v825_v4  ;;  %829 = vadd.xlane.f32.xlu0 %v828_v22  ;;  %v649_v23 = vpop.xlane.xlu0 %648  ;;  %v652_v24 = vpop.xlane.xlu1 %651  ;;  %v13182_v22 = vld [vmem:[%s20049_s3 + $0x8] sm:$0xff]  }
  0xca   : > { %v708_v0 = vmul.f32 0.03125, %v649_v23  ;;  %v709_v12 = vmul.f32 0.03125, %v652_v24  ;;  %v770_v30 = vmul.f32 %v14383_v21, %v14383_v21  ;;  %v771_v32 = vmul.f32 %v14386_v29, %v14386_v29  ;;  %11853 = vmatprep.subr.bf16.mxu1 %v13182_v22 }
  0xcb   : > { %11854 = vmatpush3.bf16.msra.mxu1 %v13182_v22 }
  0xcc   : > { %v14395_v31 = vsub.f32 %v14219_v36, %v708_v0  ;;  %v14398_v33 = vsub.f32 %v14222_v37, %v709_v12  ;;  %v834_v34 = vsel %vm592_vm0, %v770_v30, 0.0  ;;  %v837_v39 = vsel %vm592_vm0, %v771_v32, 0.0 }
  0xcd   : > { %832 = vadd.xlane.f32.xlu1 %v831_v25  ;;  %835 = vadd.xlane.f32.xlu0 %v834_v34  ;;  %v655_v35 = vpop.xlane.xlu0 %654  ;;  %v658_v38 = vpop.xlane.xlu1 %657 }
  0xce   : > { %v710_v42 = vmul.f32 0.03125, %v655_v35  ;;  %v711_v16 = vmul.f32 0.03125, %v658_v38  ;;  %v772_v46 = vmul.f32 %v14395_v31, %v14395_v31  ;;  %v773_v36 = vmul.f32 %v14398_v33, %v14398_v33 }
  0xd0   : > { %v14407_v47 = vsub.f32 %v14229_v40, %v710_v42  ;;  %v14410_v37 = vsub.f32 %v14232_v41, %v711_v16  ;;  %v840_v50 = vsel %vm592_vm0, %v772_v46, 0.0  ;;  %v843_v8 = vsel %vm592_vm0, %v773_v36, 0.0  ;;  %v13181_v40 = vld [vmem:[%s20053_s7] sm:$0xff]  }
  0xd1   : > { %838 = vadd.xlane.f32.xlu1 %v837_v39  ;;  %841 = vadd.xlane.f32.xlu0 %v840_v50  ;;  %v661_v51 = vpop.xlane.xlu0 %660  ;;  %v664_v54 = vpop.xlane.xlu1 %663 }
  0xd2   : > { %v712_v18 = vmul.f32 0.03125, %v661_v51  ;;  %v713_v62 = vmul.f32 0.03125, %v664_v54  ;;  %v774_v41 = vmul.f32 %v14407_v47, %v14407_v47  ;;  %v775_v63 = vmul.f32 %v14410_v37, %v14410_v37  ;;  %11923 = vmatprep.subr.bf16.mxu0 %v13181_v40 }
  0xd3   : > { %11924 = vmatpush3.bf16.msra.mxu0 %v13181_v40 }
  0xd4   : > { %v14425_v3 = vsub.f32 %v14239_v44, %v712_v18  ;;  %v14428_v4 = vsub.f32 %v14242_v45, %v713_v62  ;;  %v846_v6 = vsel %vm592_vm0, %v774_v41, 0.0  ;;  %v849_v28 = vsel %vm592_vm0, %v775_v63, 0.0  ;;  %v13183_v44 = vld [vmem:[%s20053_s7 + $0x8] sm:$0xff]  }
  0xd5   : > { %844 = vadd.xlane.f32.xlu1 %v843_v8  ;;  %847 = vadd.xlane.f32.xlu0 %v846_v6  ;;  %v667_v10 = vpop.xlane.xlu0 %666  ;;  %v670_v20 = vpop.xlane.xlu1 %669 }
  0xd6   : > { %v714_v45 = vmul.f32 0.03125, %v667_v10  ;;  %v715_v23 = vmul.f32 0.03125, %v670_v20  ;;  %v776_v24 = vmul.f32 %v14425_v3, %v14425_v3  ;;  %v777_v25 = vmul.f32 %v14428_v4, %v14428_v4  ;;  %11925 = vmatprep.subr.bf16.mxu0 %v13183_v44 }
  0xd7   : > { %11926 = vmatpush3.bf16.msra.mxu0 %v13183_v44 }
  0xd8   : > { %v14443_v0 = vsub.f32 %v14249_v48, %v714_v45  ;;  %v14446_v12 = vsub.f32 %v14252_v49, %v715_v23  ;;  %v852_v30 = vsel %vm592_vm0, %v776_v24, 0.0  ;;  %v855_v35 = vsel %vm592_vm0, %v777_v25, 0.0  ;;  %v14501_v25 = vld [vmem:[%s20051_s5] sm:$0xff]  }
  0xd9   : > { %850 = vadd.xlane.f32.xlu1 %v849_v28  ;;  %853 = vadd.xlane.f32.xlu0 %v852_v30  ;;  %v673_v32 = vpop.xlane.xlu0 %672  ;;  %v676_v34 = vpop.xlane.xlu1 %675 }
  0xda   : > { %v716_v38 = vmul.f32 0.03125, %v673_v32  ;;  %v717_v39 = vmul.f32 0.03125, %v676_v34  ;;  %v778_v42 = vmul.f32 %v14443_v0, %v14443_v0  ;;  %v779_v48 = vmul.f32 %v14446_v12, %v14446_v12  ;;  %11887 = vmatprep.subr.bf16.mxu1 %v14501_v25 }
  0xdc   : > { %v14455_v49 = vsub.f32 %v14259_v52, %v716_v38  ;;  %v14458_v16 = vsub.f32 %v14262_v53, %v717_v39  ;;  %v858_v46 = vsel %vm592_vm0, %v778_v42, 0.0  ;;  %v861_v51 = vsel %vm592_vm0, %v779_v48, 0.0 }
  0xdd   : > { %856 = vadd.xlane.f32.xlu1 %v855_v35  ;;  %859 = vadd.xlane.f32.xlu0 %v858_v46  ;;  %v679_v36 = vpop.xlane.xlu0 %678  ;;  %v682_v50 = vpop.xlane.xlu1 %681 }
  0xde   : > { %v718_v54 = vmul.f32 0.03125, %v679_v36  ;;  %v719_v8 = vmul.f32 0.03125, %v682_v50  ;;  %v780_v58 = vmul.f32 %v14455_v49, %v14455_v49  ;;  %v781_v52 = vmul.f32 %v14458_v16, %v14458_v16 }
  0xe0   : > { %v14467_v40 = vsub.f32 %v14269_v56, %v718_v54  ;;  %v14470_v53 = vsub.f32 %v14272_v57, %v719_v8  ;;  %v864_v18 = vsel %vm592_vm0, %v780_v58, 0.0  ;;  %v867_v63 = vsel %vm592_vm0, %v781_v52, 0.0 }
  0xe1   : > { %862 = vadd.xlane.f32.xlu1 %v861_v51  ;;  %865 = vadd.xlane.f32.xlu0 %v864_v18  ;;  %v685_v62 = vpop.xlane.xlu0 %684  ;;  %v688_v41 = vpop.xlane.xlu1 %687 }
  0xe2   : > { %v720_v6 = vmul.f32 0.03125, %v685_v62  ;;  %v721_v10 = vmul.f32 0.03125, %v688_v41  ;;  %v782_v20 = vmul.f32 %v14467_v40, %v14467_v40  ;;  %v783_v56 = vmul.f32 %v14470_v53, %v14470_v53 }
  0xe4   : > { %v14479_v28 = vsub.f32 %v14279_v60, %v720_v6  ;;  %v14482_v57 = vsub.f32 %v14282_v61, %v721_v10  ;;  %v870_v22 = vsel %vm592_vm0, %v782_v20, 0.0  ;;  %v873_v44 = vsel %vm592_vm0, %v783_v56, 0.0  ;;  %v14495_v61 = vld [vmem:[%s20051_s5 + $0x10] sm:$0xff]  }
  0xe5   : > { %868 = vadd.xlane.f32.xlu1 %v867_v63  ;;  %871 = vadd.xlane.f32.xlu0 %v870_v22 }
  0xe6   : > { %v784_v45 = vmul.f32 %v14479_v28, %v14479_v28  ;;  %v785_v23 = vmul.f32 %v14482_v57, %v14482_v57  ;;  %11995 = vmatprep.subr.bf16.mxu0 %v14495_v61 }
  0xe8   : > { %v876_v24 = vsel %vm592_vm0, %v784_v45, 0.0  ;;  %v879_v60 = vsel %vm592_vm0, %v785_v23, 0.0 }
  0xe9   : > { %874 = vadd.xlane.f32.xlu1 %v873_v44  ;;  %877 = vadd.xlane.f32.xlu0 %v876_v24  ;;  %v14508_v44 = vld [vmem:[%s20373_s20] ss:$0 sm:$0xff] }
  0xed   : > { %880 = vadd.xlane.f32.xlu1 %v879_v60 }
 0x13a   : > { %v788_v30 = vpop.xlane.xlu0 %787 }
 0x13b   : > { %v882_v32 = vmul.f32 0.03125, %v788_v30 }
 0x13d   : > { %v914_v34 = vadd.f32 1e-05, %v882_v32 }
 0x13e   : > { %v791_v35 = vpop.xlane.xlu1 %790  ;;  %v794_v38 = vpop.xlane.xlu0 %793 }
 0x13f   : > { %13210 = vrsqrt.f32 %v914_v34  ;;  %v883_v39 = vmul.f32 0.03125, %v791_v35  ;;  %v884_v42 = vmul.f32 0.03125, %v794_v38 }
 0x141   : > { %v915_v48 = vadd.f32 1e-05, %v883_v39  ;;  %v916_v46 = vadd.f32 1e-05, %v884_v42  ;;  %v14515_v39 = vld [vmem:[%s20048_s2] ss:$0 sm:$0xff] }
 0x142   : > { %v797_v36 = vpop.xlane.xlu1 %796  ;;  %v800_v50 = vpop.xlane.xlu0 %799 }
 0x143   : > { %13212 = vrsqrt.f32 %v915_v48  ;;  %v885_v51 = vmul.f32 0.03125, %v797_v36  ;;  %v886_v54 = vmul.f32 0.03125, %v800_v50 }
 0x144   : > { %13214 = vrsqrt.f32 %v916_v46 }
 0x145   : > { %v917_v8 = vadd.f32 1e-05, %v885_v51  ;;  %v918_v58 = vadd.f32 1e-05, %v886_v54 }
 0x146   : > { %v803_v52 = vpop.xlane.xlu1 %802  ;;  %v806_v18 = vpop.xlane.xlu0 %805 }
 0x147   : > { %13216 = vrsqrt.f32 %v917_v8  ;;  %v887_v62 = vmul.f32 0.03125, %v803_v52  ;;  %v888_v41 = vmul.f32 0.03125, %v806_v18 }
 0x148   : > { %13218 = vrsqrt.f32 %v918_v58 }
 0x149   : > { %v13211_v63 = vpop.eup %13210  ;;  %v919_v6 = vadd.f32 1e-05, %v887_v62  ;;  %v920_v10 = vadd.f32 1e-05, %v888_v41 }
 0x14a   : > { %v978_v20 = vmul.f32 %v13211_v63, %v14289_v13  ;;  %v809_v56 = vpop.xlane.xlu1 %808  ;;  %v812_v22 = vpop.xlane.xlu0 %811 }
 0x14b   : > { %13220 = vrsqrt.f32 %v919_v6  ;;  %v889_v45 = vmul.f32 0.03125, %v809_v56  ;;  %v890_v23 = vmul.f32 0.03125, %v812_v22 }
 0x14c   : > { %13222 = vrsqrt.f32 %v920_v10  ;;  %v1016_v34 = vmul.f32 %v14508_v44, %v978_v20 }
 0x14d   : > { %v13213_v24 = vpop.eup %13212  ;;  %v921_v60 = vadd.f32 1e-05, %v889_v45  ;;  %v922_v30 = vadd.f32 1e-05, %v890_v23 }
 0x14e   : > { %v13215_v32 = vpop.eup %13214  ;;  %v979_v35 = vmul.f32 %v13213_v24, %v14299_v26  ;;  %v815_v13 = vpop.xlane.xlu1 %814  ;;  %v1054_v26 = vadd.f32 %v14515_v39, %v1016_v34 }
 0x14f   : > { %v818_v38 = vpop.xlane.xlu0 %817  ;;  %v980_v42 = vmul.f32 %v13215_v32, %v14292_v14  ;;  %13224 = vrsqrt.f32 %v921_v60  ;;  %v891_v48 = vmul.f32 0.03125, %v815_v13 }
 0x150   : > { %v892_v46 = vmul.f32 0.03125, %v818_v38  ;;  %v1017_v36 = vmul.f32 %v14508_v44, %v979_v35  ;;  %13226 = vrsqrt.f32 %v922_v30 }
 0x151   : > { %v13217_v50 = vpop.eup %13216  ;;  %v923_v51 = vadd.f32 1e-05, %v891_v48  ;;  %v1018_v52 = vmul.f32 %v14508_v44, %v980_v42  ;;  %v13187_v48 = vld [vmem:[%s20051_s5 + $0x8] sm:$0xff]  }
 0x152   : > { %v924_v54 = vadd.f32 1e-05, %v892_v46  ;;  %v13219_v8 = vpop.eup %13218  ;;  %v1055_v58 = vadd.f32 %v14515_v39, %v1017_v36  ;;  %v981_v18 = vmul.f32 %v13217_v50, %v14302_v27  ;;  %v821_v62 = vpop.xlane.xlu1 %820 }
 0x153   : > { %v824_v14 = vpop.xlane.xlu0 %823  ;;  %v982_v41 = vmul.f32 %v13219_v8, %v14311_v2  ;;  %13228 = vrsqrt.f32 %v923_v51  ;;  %v893_v63 = vmul.f32 0.03125, %v821_v62  ;;  %v1056_v24 = vadd.f32 %v14515_v39, %v1018_v52 }
 0x154   : > { %v14524_v6 = vpack.c.bf16 %v1055_v58, %v1054_v26  ;;  %v1019_v10 = vmul.f32 %v14508_v44, %v981_v18  ;;  %13230 = vrsqrt.f32 %v924_v54  ;;  %v894_v20 = vmul.f32 0.03125, %v824_v14 }
 0x155   : > { %v13221_v56 = vpop.eup %13220  ;;  %v1020_v22 = vmul.f32 %v14508_v44, %v982_v41  ;;  %v925_v45 = vadd.f32 1e-05, %v893_v63  ;;  %v14562_v63 = vld [vmem:[%s20049_s3 + $0x20] sm:$0xff]  }
 0x156   : > { %v13223_v23 = vpop.eup %13222  ;;  %v1057_v27 = vadd.f32 %v14515_v39, %v1019_v10  ;;  %v983_v60 = vmul.f32 %v13221_v56, %v14314_v5  ;;  %v926_v2 = vadd.f32 1e-05, %v894_v20  ;;  %v827_v30 = vpop.xlane.xlu1 %826  ;;  %11855 = vmatprep.mubr.msk.bf16.mxu1 %vm592_vm0, %v14524_v6  ;;  %11927 = vmatprep.mubr.msk.bf16.mxu0 %vm592_vm0, %v14524_v6  ;;  %v13186_v5 = vld [vmem:[%s20051_s5 + $0x18] sm:$0xff]  }
 0x157   : > { %v830_v32 = vpop.xlane.xlu0 %829  ;;  %v984_v34 = vmul.f32 %v13223_v23, %v14323_v55  ;;  %13232 = vrsqrt.f32 %v925_v45  ;;  %v895_v35 = vmul.f32 0.03125, %v827_v30  ;;  %v1058_v36 = vadd.f32 %v14515_v39, %v1020_v22 }
 0x158   : > { %v14536_v13 = vpack.c.bf16 %v1057_v27, %v1056_v24  ;;  %v1021_v38 = vmul.f32 %v14508_v44, %v983_v60  ;;  %13234 = vrsqrt.f32 %v926_v2  ;;  %v896_v42 = vmul.f32 0.03125, %v830_v32 }
 0x159   : > { %v13225_v46 = vpop.eup %13224  ;;  %v927_v55 = vadd.f32 1e-05, %v895_v35  ;;  %v1022_v54 = vmul.f32 %v14508_v44, %v984_v34 }
 0x15a   : > { %v13227_v50 = vpop.eup %13226  ;;  %v1059_v51 = vadd.f32 %v14515_v39, %v1021_v38  ;;  %v985_v8 = vmul.f32 %v13225_v46, %v14326_v9  ;;  %v928_v26 = vadd.f32 1e-05, %v896_v42  ;;  %v833_v58 = vpop.xlane.xlu1 %832  ;;  %11856 = vmatmul.mubr.msk.bf16.vlgmr.msra.gmra.mrb[0].mxu1 %vm592_vm0, %v14536_v13  ;;  %11928 = vmatmul.mubr.msk.bf16.vlgmr.msra.gmra.mrb[0].mxu0 %vm592_vm0, %v14536_v13 }
 0x15b   : > { %v836_v52 = vpop.xlane.xlu0 %835  ;;  %v986_v18 = vmul.f32 %v13227_v50, %v14335_v7  ;;  %13236 = vrsqrt.f32 %v927_v55  ;;  %v897_v62 = vmul.f32 0.03125, %v833_v58  ;;  %11996 = vmatpush3.bf16.msra.mxu0 %v14495_v61  ;;  %11888 = vmatpush3.bf16.msra.mxu1 %v14501_v25  ;;  %v14567_v7 = vld [vmem:[%s20049_s3 + $0x10] sm:$0xff]   ;;  %v1060_v56 = vadd.f32 %v14515_v39, %v1022_v54 }
 0x15c   : > { %v14556_v14 = vpack.c.bf16 %v1059_v51, %v1058_v36  ;;  %v1023_v9 = vmul.f32 %v14508_v44, %v985_v8  ;;  %13238 = vrsqrt.f32 %v928_v26  ;;  %v898_v41 = vmul.f32 0.03125, %v836_v52  ;;  %11997 = vmatprep.subr.bf16.mxu0 %v13186_v5  ;;  %11889 = vmatprep.subr.bf16.mxu1 %v13187_v48 }
 0x15d   : > { %v13229_v61 = vpop.eup %13228  ;;  %v1024_v25 = vmul.f32 %v14508_v44, %v986_v18  ;;  %v929_v10 = vadd.f32 1e-05, %v897_v62 }
 0x15e   : > { %v13231_v20 = vpop.eup %13230  ;;  %v1061_v22 = vadd.f32 %v14515_v39, %v1023_v9  ;;  %v987_v45 = vmul.f32 %v13229_v61, %v14338_v11  ;;  %v930_v23 = vadd.f32 1e-05, %v898_v41  ;;  %v839_v24 = vpop.xlane.xlu1 %838  ;;  %11859 = vmatprep.mubr.msk.bf16.mxu1 %vm592_vm0, %v14556_v14  ;;  %11931 = vmatprep.mubr.msk.bf16.mxu0 %vm592_vm0, %v14556_v14 }
 0x15f   : > { %v842_v27 = vpop.xlane.xlu0 %841  ;;  %v988_v60 = vmul.f32 %v13231_v20, %v14347_v1  ;;  %13240 = vrsqrt.f32 %v929_v10  ;;  %v899_v2 = vmul.f32 0.03125, %v839_v24  ;;  %11998 = vmatpush3.bf16.msra.mxu0 %v13186_v5  ;;  %11890 = vmatpush3.bf16.msra.mxu1 %v13187_v48  ;;  %v1062_v35 = vadd.f32 %v14515_v39, %v1024_v25 }
 0x160   : > { %v14578_v30 = vpack.c.bf16 %v1061_v22, %v1060_v56  ;;  %v1025_v32 = vmul.f32 %v14508_v44, %v987_v45  ;;  %13242 = vrsqrt.f32 %v930_v23  ;;  %v900_v11 = vmul.f32 0.03125, %v842_v27  ;;  %12067 = vmatprep.subr.bf16.mxu0 %v14562_v63  ;;  %11959 = vmatprep.subr.bf16.mxu1 %v14567_v7 }
 0x161   : > { %v13233_v34 = vpop.eup %13232  ;;  %v931_v38 = vadd.f32 1e-05, %v899_v2  ;;  %v1026_v5 = vmul.f32 %v14508_v44, %v988_v60 }
 0x162   : > { %v13235_v42 = vpop.eup %13234  ;;  %v1063_v1 = vadd.f32 %v14515_v39, %v1025_v32  ;;  %v989_v48 = vmul.f32 %v13233_v34, %v14350_v15  ;;  %v932_v46 = vadd.f32 1e-05, %v900_v11  ;;  %v845_v36 = vpop.xlane.xlu1 %844  ;;  %11860 = vmatmul.mubr.msk.bf16.gmra.mrb[4].mxu1 %vm592_vm0, %v14578_v30  ;;  %11932 = vmatmul.mubr.msk.bf16.gmra.mrb[4].mxu0 %vm592_vm0, %v14578_v30 }
 0x163   : > { %v848_v55 = vpop.xlane.xlu0 %847  ;;  %v990_v50 = vmul.f32 %v13235_v42, %v14359_v43  ;;  %13244 = vrsqrt.f32 %v931_v38  ;;  %v901_v51 = vmul.f32 0.03125, %v845_v36  ;;  %v1064_v62 = vadd.f32 %v14515_v39, %v1026_v5 }
 0x164   : > { %v14592_v54 = vpack.c.bf16 %v1063_v1, %v1062_v35  ;;  %v1027_v8 = vmul.f32 %v14508_v44, %v989_v48  ;;  %13246 = vrsqrt.f32 %v932_v46  ;;  %v902_v26 = vmul.f32 0.03125, %v848_v55 }
 0x165   : > { %v13237_v15 = vpop.eup %13236  ;;  %v1028_v58 = vmul.f32 %v14508_v44, %v990_v50  ;;  %v933_v52 = vadd.f32 1e-05, %v901_v51 }
 0x166   : > { %v13239_v18 = vpop.eup %13238  ;;  %v1065_v9 = vadd.f32 %v14515_v39, %v1027_v8  ;;  %v991_v41 = vmul.f32 %v13237_v15, %v14362_v17  ;;  %v934_v43 = vadd.f32 1e-05, %v902_v26  ;;  %v851_v61 = vpop.xlane.xlu1 %850  ;;  %11863 = vmatprep.mubr.msk.bf16.mxu1 %vm592_vm0, %v14592_v54  ;;  %11935 = vmatprep.mubr.msk.bf16.mxu0 %vm592_vm0, %v14592_v54 }
 0x167   : > { %v854_v25 = vpop.xlane.xlu0 %853  ;;  %v992_v10 = vmul.f32 %v13239_v18, %v14371_v59  ;;  %13248 = vrsqrt.f32 %v933_v52  ;;  %v903_v20 = vmul.f32 0.03125, %v851_v61  ;;  %v1066_v23 = vadd.f32 %v14515_v39, %v1028_v58 }
 0x168   : > { %v14604_v56 = vpack.c.bf16 %v1065_v9, %v1064_v62  ;;  %v1029_v22 = vmul.f32 %v14508_v44, %v991_v41  ;;  %13250 = vrsqrt.f32 %v934_v43  ;;  %v904_v45 = vmul.f32 0.03125, %v854_v25 }
 0x169   : > { %v13241_v17 = vpop.eup %13240  ;;  %v935_v24 = vadd.f32 1e-05, %v903_v20  ;;  %v1030_v2 = vmul.f32 %v14508_v44, %v992_v10 }
 0x16a   : > { %v13243_v27 = vpop.eup %13242  ;;  %v1067_v60 = vadd.f32 %v14515_v39, %v1029_v22  ;;  %v993_v32 = vmul.f32 %v13241_v17, %v14374_v19  ;;  %v936_v59 = vadd.f32 1e-05, %v904_v45  ;;  %v857_v11 = vpop.xlane.xlu1 %856  ;;  %11864 = vmatmul.mubr.msk.bf16.gmra.mrb[8].mxu1 %vm592_vm0, %v14604_v56  ;;  %11936 = vmatmul.mubr.msk.bf16.gmra.mrb[8].mxu0 %vm592_vm0, %v14604_v56 }
 0x16b   : > { %v860_v34 = vpop.xlane.xlu0 %859  ;;  %v994_v35 = vmul.f32 %v13243_v27, %v14383_v21  ;;  %13252 = vrsqrt.f32 %v935_v24  ;;  %v905_v38 = vmul.f32 0.03125, %v857_v11  ;;  %v1068_v55 = vadd.f32 %v14515_v39, %v1030_v2 }
 0x16c   : > { %v14616_v42 = vpack.c.bf16 %v1067_v60, %v1066_v23  ;;  %v1031_v1 = vmul.f32 %v14508_v44, %v993_v32  ;;  %13254 = vrsqrt.f32 %v936_v59  ;;  %v906_v5 = vmul.f32 0.03125, %v860_v34 }
 0x16d   : > { %v13245_v19 = vpop.eup %13244  ;;  %v1032_v48 = vmul.f32 %v14508_v44, %v994_v35  ;;  %v937_v46 = vadd.f32 1e-05, %v905_v38 }
 0x16e   : > { %v13247_v36 = vpop.eup %13246  ;;  %v1069_v50 = vadd.f32 %v14515_v39, %v1031_v1  ;;  %v995_v51 = vmul.f32 %v13245_v19, %v14386_v29  ;;  %v938_v21 = vadd.f32 1e-05, %v906_v5  ;;  %v863_v8 = vpop.xlane.xlu1 %862  ;;  %11867 = vmatprep.mubr.msk.bf16.mxu1 %vm592_vm0, %v14616_v42  ;;  %11939 = vmatprep.mubr.msk.bf16.mxu0 %vm592_vm0, %v14616_v42 }
 0x16f   : > { %v866_v26 = vpop.xlane.xlu0 %865  ;;  %v996_v15 = vmul.f32 %v13247_v36, %v14395_v31  ;;  %13256 = vrsqrt.f32 %v937_v46  ;;  %v907_v58 = vmul.f32 0.03125, %v863_v8  ;;  %v1070_v9 = vadd.f32 %v14515_v39, %v1032_v48 }
 0x170   : > { %v14628_v52 = vpack.c.bf16 %v1069_v50, %v1068_v55  ;;  %v1033_v18 = vmul.f32 %v14508_v44, %v995_v51  ;;  %13258 = vrsqrt.f32 %v938_v21  ;;  %v908_v62 = vmul.f32 0.03125, %v866_v26 }
 0x171   : > { %v13249_v29 = vpop.eup %13248  ;;  %v939_v41 = vadd.f32 1e-05, %v907_v58  ;;  %v1034_v25 = vmul.f32 %v14508_v44, %v996_v15 }
 0x172   : > { %v13251_v43 = vpop.eup %13250  ;;  %v1071_v61 = vadd.f32 %v14515_v39, %v1033_v18  ;;  %v997_v10 = vmul.f32 %v13249_v29, %v14398_v33  ;;  %v940_v31 = vadd.f32 1e-05, %v908_v62  ;;  %v869_v20 = vpop.xlane.xlu1 %868  ;;  %11868 = vmatmul.mubr.msk.bf16.gmra.mrb[12].mxu1 %vm592_vm0, %v14628_v52  ;;  %11940 = vmatmul.mubr.msk.bf16.gmra.mrb[12].mxu0 %vm592_vm0, %v14628_v52 }
 0x173   : > { %v872_v22 = vpop.xlane.xlu0 %871  ;;  %v998_v45 = vmul.f32 %v13251_v43, %v14407_v47  ;;  %13260 = vrsqrt.f32 %v939_v41  ;;  %v909_v17 = vmul.f32 0.03125, %v869_v20  ;;  %v1072_v59 = vadd.f32 %v14515_v39, %v1034_v25 }
 0x174   : > { %v14640_v23 = vpack.c.bf16 %v1071_v61, %v1070_v9  ;;  %v1035_v24 = vmul.f32 %v14508_v44, %v997_v10  ;;  %13262 = vrsqrt.f32 %v940_v31  ;;  %v910_v27 = vmul.f32 0.03125, %v872_v22 }
 0x175   : > { %v13253_v33 = vpop.eup %13252  ;;  %v1036_v60 = vmul.f32 %v14508_v44, %v998_v45  ;;  %v941_v2 = vadd.f32 1e-05, %v909_v17 }
 0x176   : > { %v13255_v32 = vpop.eup %13254  ;;  %v1073_v11 = vadd.f32 %v14515_v39, %v1035_v24  ;;  %v999_v34 = vmul.f32 %v13253_v33, %v14410_v37  ;;  %v942_v47 = vadd.f32 1e-05, %v910_v27  ;;  %v875_v35 = vpop.xlane.xlu1 %874  ;;  %11871 = vmatprep.mubr.msk.bf16.mxu1 %vm592_vm0, %v14640_v23  ;;  %11943 = vmatprep.mubr.msk.bf16.mxu0 %vm592_vm0, %v14640_v23 }
 0x177   : > { %v878_v38 = vpop.xlane.xlu0 %877  ;;  %v1000_v1 = vmul.f32 %v13255_v32, %v14425_v3  ;;  %13264 = vrsqrt.f32 %v941_v2  ;;  %v911_v5 = vmul.f32 0.03125, %v875_v35  ;;  %v1074_v36 = vadd.f32 %v14515_v39, %v1036_v60 }
 0x178   : > { %v14652_v19 = vpack.c.bf16 %v1073_v11, %v1072_v59  ;;  %v1037_v48 = vmul.f32 %v14508_v44, %v999_v34  ;;  %13266 = vrsqrt.f32 %v942_v47  ;;  %v912_v46 = vmul.f32 0.03125, %v878_v38 }
 0x179   : > { %v13257_v37 = vpop.eup %13256  ;;  %v943_v55 = vadd.f32 1e-05, %v911_v5  ;;  %v1038_v21 = vmul.f32 %v14508_v44, %v1000_v1 }
 0x17a   : > { %v13259_v50 = vpop.eup %13258  ;;  %v1075_v51 = vadd.f32 %v14515_v39, %v1037_v48  ;;  %v1001_v8 = vmul.f32 %v13257_v37, %v14428_v4  ;;  %v944_v3 = vadd.f32 1e-05, %v912_v46  ;;  %v881_v26 = vpop.xlane.xlu1 %880  ;;  %11872 = vmatmul.mubr.msk.bf16.gmra.mrb[16].mxu1 %vm592_vm0, %v14652_v19  ;;  %11944 = vmatmul.mubr.msk.bf16.gmra.mrb[16].mxu0 %vm592_vm0, %v14652_v19 }
 0x17b   : > { %v1002_v15 = vmul.f32 %v13259_v50, %v14443_v0  ;;  %13268 = vrsqrt.f32 %v943_v55  ;;  %v913_v58 = vmul.f32 0.03125, %v881_v26  ;;  %v1076_v43 = vadd.f32 %v14515_v39, %v1038_v21  ;;  %v13193_v55 = vld [vmem:[%s20053_s7 + $0x10] sm:$0xff]   ;;  %v13198_v21 = vld [vmem:[%s20051_s5 + $0x38] sm:$0xff]  }
 0x17c   : > { %v14664_v18 = vpack.c.bf16 %v1075_v51, %v1074_v36  ;;  %v1039_v62 = vmul.f32 %v14508_v44, %v1001_v8  ;;  %13270 = vrsqrt.f32 %v944_v3  ;;  %v13192_v36 = vld [vmem:[%s20053_s7 + $0x20] sm:$0xff]   ;;  %v13196_v50 = vld [vmem:[%s20051_s5 + $0x30] sm:$0xff]   ;;  %v13199_v8 = vld [vmem:[%s20051_s5 + $0x28] sm:$0xff]  }
 0x17d   : > { %v13261_v29 = vpop.eup %13260  ;;  %v1040_v4 = vmul.f32 %v14508_v44, %v1002_v15  ;;  %v945_v9 = vadd.f32 1e-05, %v913_v58  ;;  %v13197_v51 = vld [vmem:[%s20051_s5 + $0x20] sm:$0xff]   ;;  %v14901_v3 = vld [vmem:[%s20049_s3 + $0x30] sm:$0xff]  }
 0x17e   : > { %v13263_v41 = vpop.eup %13262  ;;  %v1077_v61 = vadd.f32 %v14515_v39, %v1039_v62  ;;  %v1003_v25 = vmul.f32 %v13261_v29, %v14446_v12  ;;  %11875 = vmatprep.mubr.msk.bf16.mxu1 %vm592_vm0, %v14664_v18  ;;  %11947 = vmatprep.mubr.msk.bf16.mxu0 %vm592_vm0, %v14664_v18  ;;  %v14923_v15 = vld [vmem:[%s20050_s4] ss:$0 sm:$0xff] }
 0x17f   : > { %v1004_v0 = vmul.f32 %v13263_v41, %v14455_v49  ;;  %13272 = vrsqrt.f32 %v945_v9  ;;  %v1078_v22 = vadd.f32 %v14515_v39, %v1040_v4  ;;  %v14928_v62 = vld [vmem:[%s20054_s8] ss:$0 sm:$0xff] }
 0x180   : > { %v14676_v10 = vpack.c.bf16 %v1077_v61, %v1076_v43  ;;  %v1041_v31 = vmul.f32 %v14508_v44, %v1003_v25 }
 0x181   : > { %v13265_v20 = vpop.eup %13264  ;;  %v1042_v12 = vmul.f32 %v14508_v44, %v1004_v0 }
 0x182   : > { %v13267_v45 = vpop.eup %13266  ;;  %v1079_v17 = vadd.f32 %v14515_v39, %v1041_v31  ;;  %v1005_v24 = vmul.f32 %v13265_v20, %v14458_v16  ;;  %11876 = vmatmul.mubr.msk.bf16.gmra.mrb[20].mxu1 %vm592_vm0, %v14676_v10  ;;  %11948 = vmatmul.mubr.msk.bf16.gmra.mrb[20].mxu0 %vm592_vm0, %v14676_v10 }
 0x183   : > { %v1006_v49 = vmul.f32 %v13267_v45, %v14467_v40  ;;  %v1080_v59 = vadd.f32 %v14515_v39, %v1042_v12 }
 0x184   : > { %v14688_v27 = vpack.c.bf16 %v1079_v17, %v1078_v22  ;;  %v1043_v33 = vmul.f32 %v14508_v44, %v1005_v24 }
 0x185   : > { %v13269_v60 = vpop.eup %13268  ;;  %v1044_v2 = vmul.f32 %v14508_v44, %v1006_v49 }
 0x186   : > { %v13271_v32 = vpop.eup %13270  ;;  %v1081_v16 = vadd.f32 %v14515_v39, %v1043_v33  ;;  %v1007_v11 = vmul.f32 %v13269_v60, %v14470_v53  ;;  %11879 = vmatprep.mubr.msk.bf16.mxu1 %vm592_vm0, %v14688_v27  ;;  %11951 = vmatprep.mubr.msk.bf16.mxu0 %vm592_vm0, %v14688_v27 }
 0x187   : > { %v1008_v40 = vmul.f32 %v13271_v32, %v14479_v28  ;;  %v1082_v38 = vadd.f32 %v14515_v39, %v1044_v2 }
 0x188   : > { %v14700_v34 = vpack.c.bf16 %v1081_v16, %v1080_v59  ;;  %v1045_v47 = vmul.f32 %v14508_v44, %v1007_v11 }
 0x189   : > { %v13273_v35 = vpop.eup %13272  ;;  %v1046_v5 = vmul.f32 %v14508_v44, %v1008_v40 }
 0x18a   : > { %v1083_v1 = vadd.f32 %v14515_v39, %v1045_v47  ;;  %v1009_v53 = vmul.f32 %v13273_v35, %v14482_v57  ;;  %11880 = vmatmul.mubr.msk.bf16.gmra.mrb[24].mxu1 %vm592_vm0, %v14700_v34  ;;  %11952 = vmatmul.mubr.msk.bf16.gmra.mrb[24].mxu0 %vm592_vm0, %v14700_v34 }
 0x18b   : > { %v1084_v46 = vadd.f32 %v14515_v39, %v1046_v5 }
 0x18c   : > { %v14711_v28 = vpack.c.bf16 %v1083_v1, %v1082_v38  ;;  %v1047_v48 = vmul.f32 %v14508_v44, %v1009_v53  ;;  %v13190_v44 = vld [vmem:[%s20049_s3 + $0x28] sm:$0xff]  }
 0x18e   : > { %v1085_v37 = vadd.f32 %v14515_v39, %v1047_v48  ;;  %11883 = vmatprep.mubr.msk.bf16.mxu1 %vm592_vm0, %v14711_v28  ;;  %11955 = vmatprep.mubr.msk.bf16.mxu0 %vm592_vm0, %v14711_v28  ;;  %v13191_v39 = vld [vmem:[%s20049_s3 + $0x18] sm:$0xff]  }
 0x190   : > { %v14720_v57 = vpack.c.bf16 %v1085_v37, %v1084_v46 }
 0x192   : > { %11884 = vmatmul.mubr.msk.bf16.gmra.mrb[28].mxu1 %vm592_vm0, %v14720_v57  ;;  %11956 = vmatmul.mubr.msk.bf16.gmra.mrb[28].mxu0 %vm592_vm0, %v14720_v57 }
 0x193   : > { %11891 = vmatprep.mubr.msk.bf16.mxu1 %vm592_vm0, %v14524_v6  ;;  %11999 = vmatprep.mubr.msk.bf16.mxu0 %vm592_vm0, %v14524_v6 }
 0x19a   : > { %11892 = vmatmul.mubr.msk.bf16.vlgmr.msra.gmra.mrb[32].mxu1 %vm592_vm0, %v14536_v13  ;;  %12000 = vmatmul.mubr.msk.bf16.vlgmr.msra.gmra.mrb[32].mxu0 %vm592_vm0, %v14536_v13 }
 0x19b   : > { %11895 = vmatprep.mubr.msk.bf16.mxu1 %vm592_vm0, %v14556_v14  ;;  %12003 = vmatprep.mubr.msk.bf16.mxu0 %vm592_vm0, %v14556_v14 }
 0x19c   : > { %12068 = vmatpush3.bf16.msra.mxu0 %v14562_v63  ;;  %11960 = vmatpush3.bf16.msra.mxu1 %v14567_v7  ;;  %v13194_v63 = vld [vmem:[%s20053_s7 + $0x28] sm:$0xff]   ;;  %v13195_v7 = vld [vmem:[%s20053_s7 + $0x18] sm:$0xff]  }
 0x19d   : > { %12069 = vmatprep.subr.bf16.mxu0 %v13190_v44  ;;  %11961 = vmatprep.subr.bf16.mxu1 %v13191_v39 }
 0x1a0   : > { %12070 = vmatpush3.bf16.msra.mxu0 %v13190_v44  ;;  %11962 = vmatpush3.bf16.msra.mxu1 %v13191_v39 }
 0x1a1   : > { %12139 = vmatprep.subr.bf16.mxu0 %v13192_v36  ;;  %12031 = vmatprep.subr.bf16.mxu1 %v13193_v55 }
 0x1a2   : > { %11896 = vmatmul.mubr.msk.bf16.gmra.mrb[36].mxu1 %vm592_vm0, %v14578_v30  ;;  %12004 = vmatmul.mubr.msk.bf16.gmra.mrb[36].mxu0 %vm592_vm0, %v14578_v30 }
 0x1a3   : > { %11899 = vmatprep.mubr.msk.bf16.mxu1 %vm592_vm0, %v14592_v54  ;;  %12007 = vmatprep.mubr.msk.bf16.mxu0 %vm592_vm0, %v14592_v54 }
 0x1aa   : > { %11900 = vmatmul.mubr.msk.bf16.gmra.mrb[40].mxu1 %vm592_vm0, %v14604_v56  ;;  %12008 = vmatmul.mubr.msk.bf16.gmra.mrb[40].mxu0 %vm592_vm0, %v14604_v56 }
 0x1ab   : > { %11903 = vmatprep.mubr.msk.bf16.mxu1 %vm592_vm0, %v14616_v42  ;;  %12011 = vmatprep.mubr.msk.bf16.mxu0 %vm592_vm0, %v14616_v42 }
 0x1b2   : > { %11904 = vmatmul.mubr.msk.bf16.gmra.mrb[44].mxu1 %vm592_vm0, %v14628_v52  ;;  %12012 = vmatmul.mubr.msk.bf16.gmra.mrb[44].mxu0 %vm592_vm0, %v14628_v52 }
 0x1b3   : > { %11907 = vmatprep.mubr.msk.bf16.mxu1 %vm592_vm0, %v14640_v23  ;;  %12015 = vmatprep.mubr.msk.bf16.mxu0 %vm592_vm0, %v14640_v23 }
 0x1ba   : > { %11908 = vmatmul.mubr.msk.bf16.gmra.mrb[48].mxu1 %vm592_vm0, %v14652_v19  ;;  %12016 = vmatmul.mubr.msk.bf16.gmra.mrb[48].mxu0 %vm592_vm0, %v14652_v19 }
 0x1bb   : > { %11911 = vmatprep.mubr.msk.bf16.mxu1 %vm592_vm0, %v14664_v18  ;;  %12019 = vmatprep.mubr.msk.bf16.mxu0 %vm592_vm0, %v14664_v18 }
 0x1c2   : > { %11912 = vmatmul.mubr.msk.bf16.gmra.mrb[52].mxu1 %vm592_vm0, %v14676_v10  ;;  %12020 = vmatmul.mubr.msk.bf16.gmra.mrb[52].mxu0 %vm592_vm0, %v14676_v10 }
 0x1c3   : > { %11915 = vmatprep.mubr.msk.bf16.mxu1 %vm592_vm0, %v14688_v27  ;;  %12023 = vmatprep.mubr.msk.bf16.mxu0 %vm592_vm0, %v14688_v27 }
 0x1ca   : > { %11916 = vmatmul.mubr.msk.bf16.gmra.mrb[56].mxu1 %vm592_vm0, %v14700_v34  ;;  %12024 = vmatmul.mubr.msk.bf16.gmra.mrb[56].mxu0 %vm592_vm0, %v14700_v34 }
 0x1cb   : > { %11919 = vmatprep.mubr.msk.bf16.mxu1 %vm592_vm0, %v14711_v28  ;;  %12027 = vmatprep.mubr.msk.bf16.mxu0 %vm592_vm0, %v14711_v28 }
 0x1d2   : > { %11920 = vmatmul.mubr.msk.bf16.gmra.mrb[60].mxu1 %vm592_vm0, %v14720_v57  ;;  %12028 = vmatmul.mubr.msk.bf16.gmra.mrb[60].mxu0 %vm592_vm0, %v14720_v57 }
 0x1d3   : > { %11963 = vmatprep.mubr.msk.bf16.mxu1 %vm592_vm0, %v14524_v6  ;;  %12071 = vmatprep.mubr.msk.bf16.mxu0 %vm592_vm0, %v14524_v6 }
 0x1da   : > { %11964 = vmatmul.mubr.msk.bf16.vlgmr.msra.gmra.mrb[64].mxu1 %vm592_vm0, %v14536_v13  ;;  %12072 = vmatmul.mubr.msk.bf16.vlgmr.msra.gmra.mrb[64].mxu0 %vm592_vm0, %v14536_v13 }
 0x1db   : > { %11967 = vmatprep.mubr.msk.bf16.mxu1 %vm592_vm0, %v14556_v14  ;;  %12075 = vmatprep.mubr.msk.bf16.mxu0 %vm592_vm0, %v14556_v14 }
 0x1dc   : > { %12140 = vmatpush3.bf16.msra.mxu0 %v13192_v36  ;;  %12032 = vmatpush3.bf16.msra.mxu1 %v13193_v55 }
 0x1dd   : > { %12141 = vmatprep.subr.bf16.mxu0 %v13194_v63  ;;  %12033 = vmatprep.subr.bf16.mxu1 %v13195_v7 }
 0x1e0   : > { %12142 = vmatpush3.bf16.msra.mxu0 %v13194_v63  ;;  %12034 = vmatpush3.bf16.msra.mxu1 %v13195_v7 }
 0x1e1   : > { %12211 = vmatprep.subr.bf16.mxu0 %v13196_v50  ;;  %12103 = vmatprep.subr.bf16.mxu1 %v13197_v51 }
 0x1e2   : > { %11968 = vmatmul.mubr.msk.bf16.gmra.mrb[68].mxu1 %vm592_vm0, %v14578_v30  ;;  %12076 = vmatmul.mubr.msk.bf16.gmra.mrb[68].mxu0 %vm592_vm0, %v14578_v30 }
 0x1e3   : > { %11971 = vmatprep.mubr.msk.bf16.mxu1 %vm592_vm0, %v14592_v54  ;;  %12079 = vmatprep.mubr.msk.bf16.mxu0 %vm592_vm0, %v14592_v54 }
 0x1ea   : > { %11972 = vmatmul.mubr.msk.bf16.gmra.mrb[72].mxu1 %vm592_vm0, %v14604_v56  ;;  %12080 = vmatmul.mubr.msk.bf16.gmra.mrb[72].mxu0 %vm592_vm0, %v14604_v56 }
 0x1eb   : > { %11975 = vmatprep.mubr.msk.bf16.mxu1 %vm592_vm0, %v14616_v42  ;;  %12083 = vmatprep.mubr.msk.bf16.mxu0 %vm592_vm0, %v14616_v42 }
 0x1f2   : > { %11976 = vmatmul.mubr.msk.bf16.gmra.mrb[76].mxu1 %vm592_vm0, %v14628_v52  ;;  %12084 = vmatmul.mubr.msk.bf16.gmra.mrb[76].mxu0 %vm592_vm0, %v14628_v52 }
 0x1f3   : > { %11979 = vmatprep.mubr.msk.bf16.mxu1 %vm592_vm0, %v14640_v23  ;;  %12087 = vmatprep.mubr.msk.bf16.mxu0 %vm592_vm0, %v14640_v23 }
 0x1fa   : > { %11980 = vmatmul.mubr.msk.bf16.gmra.mrb[80].mxu1 %vm592_vm0, %v14652_v19  ;;  %12088 = vmatmul.mubr.msk.bf16.gmra.mrb[80].mxu0 %vm592_vm0, %v14652_v19 }
 0x1fb   : > { %11983 = vmatprep.mubr.msk.bf16.mxu1 %vm592_vm0, %v14664_v18  ;;  %12091 = vmatprep.mubr.msk.bf16.mxu0 %vm592_vm0, %v14664_v18 }
 0x202   : > { %11984 = vmatmul.mubr.msk.bf16.gmra.mrb[84].mxu1 %vm592_vm0, %v14676_v10  ;;  %12092 = vmatmul.mubr.msk.bf16.gmra.mrb[84].mxu0 %vm592_vm0, %v14676_v10 }
 0x203   : > { %11987 = vmatprep.mubr.msk.bf16.mxu1 %vm592_vm0, %v14688_v27  ;;  %12095 = vmatprep.mubr.msk.bf16.mxu0 %vm592_vm0, %v14688_v27 }
 0x20a   : > { %11988 = vmatmul.mubr.msk.bf16.gmra.mrb[88].mxu1 %vm592_vm0, %v14700_v34  ;;  %12096 = vmatmul.mubr.msk.bf16.gmra.mrb[88].mxu0 %vm592_vm0, %v14700_v34 }
 0x20b   : > { %11991 = vmatprep.mubr.msk.bf16.mxu1 %vm592_vm0, %v14711_v28  ;;  %12099 = vmatprep.mubr.msk.bf16.mxu0 %vm592_vm0, %v14711_v28 }
 0x212   : > { %11992 = vmatmul.mubr.msk.bf16.gmra.mrb[92].mxu1 %vm592_vm0, %v14720_v57  ;;  %12100 = vmatmul.mubr.msk.bf16.gmra.mrb[92].mxu0 %vm592_vm0, %v14720_v57 }
 0x213   : > { %12035 = vmatprep.mubr.msk.bf16.mxu1 %vm592_vm0, %v14524_v6  ;;  %12143 = vmatprep.mubr.msk.bf16.mxu0 %vm592_vm0, %v14524_v6 }
 0x21a   : > { %12036 = vmatmul.mubr.msk.bf16.vlgmr.msra.gmra.mrb[96].mxu1 %vm592_vm0, %v14536_v13  ;;  %12144 = vmatmul.mubr.msk.bf16.vlgmr.msra.gmra.mrb[96].mxu0 %vm592_vm0, %v14536_v13 }
 0x21b   : > { %12039 = vmatprep.mubr.msk.bf16.mxu1 %vm592_vm0, %v14556_v14  ;;  %12147 = vmatprep.mubr.msk.bf16.mxu0 %vm592_vm0, %v14556_v14 }
 0x21c   : > { %12212 = vmatpush3.bf16.msra.mxu0 %v13196_v50  ;;  %12104 = vmatpush3.bf16.msra.mxu1 %v13197_v51 }
 0x21d   : > { %12213 = vmatprep.subr.bf16.mxu0 %v13198_v21  ;;  %12105 = vmatprep.subr.bf16.mxu1 %v13199_v8 }
 0x220   : > { %12214 = vmatpush3.bf16.msra.mxu0 %v13198_v21  ;;  %12106 = vmatpush3.bf16.msra.mxu1 %v13199_v8 }
 0x221   : > { %12175 = vmatprep.subr.bf16.mxu1 %v14901_v3 }
 0x222   : > { %12040 = vmatmul.mubr.msk.bf16.gmra.mrb[100].mxu1 %vm592_vm0, %v14578_v30  ;;  %12148 = vmatmul.mubr.msk.bf16.gmra.mrb[100].mxu0 %vm592_vm0, %v14578_v30 }
 0x223   : > { %12043 = vmatprep.mubr.msk.bf16.mxu1 %vm592_vm0, %v14592_v54  ;;  %12151 = vmatprep.mubr.msk.bf16.mxu0 %vm592_vm0, %v14592_v54 }
 0x22a   : > { %12044 = vmatmul.mubr.msk.bf16.gmra.mrb[104].mxu1 %vm592_vm0, %v14604_v56  ;;  %12152 = vmatmul.mubr.msk.bf16.gmra.mrb[104].mxu0 %vm592_vm0, %v14604_v56 }
 0x22b   : > { %12047 = vmatprep.mubr.msk.bf16.mxu1 %vm592_vm0, %v14616_v42  ;;  %12155 = vmatprep.mubr.msk.bf16.mxu0 %vm592_vm0, %v14616_v42 }
 0x22d   : > { %v11857_v26 = vpop.f32.mrb[0].mxu1  ;;  %v11929_v58 = vpop.f32.mrb[0].mxu0 }
 0x22e   : > { %v1207_v29 = vpop.f32.mrb[1].mxu1  ;;  %v1607_v4 = vpop.f32.mrb[1].mxu0  ;;  %v14931_v43 = vadd.f32 %v11857_v26, %v14923_v15  ;;  %v1616_v61 = vadd.f32 %v11929_v58, %v14928_v62 }
 0x22f   : > { %v11858_v9 = vpop.f32.mrb[2].mxu1  ;;  %v11930_v41 = vpop.f32.mrb[2].mxu0  ;;  %v14939_v22 = vadd.f32 %v14923_v15, %v1207_v29  ;;  %v1608_v45 = vadd.f32 %v14928_v62, %v1607_v4 }
 0x230   : > { %v14935_v25 = vadd.f32 %v11858_v9, %v14923_v15  ;;  %v1619_v0 = vadd.f32 %v11930_v41, %v14928_v62  ;;  %v1210_v31 = vpop.f32.mrb[3].mxu1  ;;  %v1610_v20 = vpop.f32.mrb[3].mxu0 }
 0x231   : > { %v14943_v17 = vadd.f32 %v14923_v15, %v1210_v31  ;;  %v1611_v12 = vadd.f32 %v14928_v62, %v1610_v20 }
 0x232   : > { %12048 = vmatmul.mubr.msk.bf16.gmra.mrb[108].mxu1 %vm592_vm0, %v14628_v52  ;;  %12156 = vmatmul.mubr.msk.bf16.gmra.mrb[108].mxu0 %vm592_vm0, %v14628_v52  ;;  %v14952_v49 = vpack.c.bf16 %v1619_v0, %v1616_v61 }
 0x233   : > { %12051 = vmatprep.mubr.msk.bf16.mxu1 %vm592_vm0, %v14640_v23  ;;  %12159 = vmatprep.mubr.msk.bf16.mxu0 %vm592_vm0, %v14640_v23  ;;  %v14960_v60 = vpack.c.bf16 %v1611_v12, %v1608_v45 }
 0x234   : > { %20374 = vst [vmem:[#allocation2_spill] sm:$0xff] %v14952_v49 }
 0x235   : > { %20375 = vst [vmem:[#allocation3_spill] sm:$0xff] %v14960_v60  ;;  %v11861_v2 = vpop.f32.mrb[4].mxu1  ;;  %v11933_v32 = vpop.f32.mrb[4].mxu0 }
 0x236   : > { %v1223_v59 = vpop.f32.mrb[5].mxu1  ;;  %v1623_v16 = vpop.f32.mrb[5].mxu0  ;;  %v14963_v47 = vadd.f32 %v11861_v2, %v14923_v15  ;;  %v1632_v35 = vadd.f32 %v11933_v32, %v14928_v62 }
 0x237   : > { %v11862_v11 = vpop.f32.mrb[6].mxu1  ;;  %v11934_v40 = vpop.f32.mrb[6].mxu0  ;;  %v14971_v48 = vadd.f32 %v14923_v15, %v1223_v59  ;;  %v1624_v46 = vadd.f32 %v14928_v62, %v1623_v16 }
 0x238   : > { %v14967_v38 = vadd.f32 %v11862_v11, %v14923_v15  ;;  %v1635_v1 = vadd.f32 %v11934_v40, %v14928_v62  ;;  %v1226_v5 = vpop.f32.mrb[7].mxu1  ;;  %v1626_v53 = vpop.f32.mrb[7].mxu0 }
 0x239   : > { %v14975_v37 = vadd.f32 %v14923_v15, %v1226_v5  ;;  %v1627_v44 = vadd.f32 %v14928_v62, %v1626_v53 }
 0x23a   : > { %12052 = vmatmul.mubr.msk.bf16.gmra.mrb[112].mxu1 %vm592_vm0, %v14652_v19  ;;  %12160 = vmatmul.mubr.msk.bf16.gmra.mrb[112].mxu0 %vm592_vm0, %v14652_v19  ;;  %v14984_v36 = vpack.c.bf16 %v1635_v1, %v1632_v35 }
 0x23b   : > { %12055 = vmatprep.mubr.msk.bf16.mxu1 %vm592_vm0, %v14664_v18  ;;  %12163 = vmatprep.mubr.msk.bf16.mxu0 %vm592_vm0, %v14664_v18  ;;  %v14992_v63 = vpack.c.bf16 %v1627_v44, %v1624_v46 }
 0x23c   : > { %20376 = vst [vmem:[#allocation4_spill] sm:$0xff] %v14984_v36 }
 0x23d   : > { %20377 = vst [vmem:[#allocation5_spill] sm:$0xff] %v14992_v63  ;;  %v11865_v7 = vpop.f32.mrb[8].mxu1  ;;  %v11937_v50 = vpop.f32.mrb[8].mxu0 }
 0x23e   : > { %v14995_v51 = vadd.f32 %v11865_v7, %v14923_v15  ;;  %v1648_v21 = vadd.f32 %v11937_v50, %v14928_v62  ;;  %v1239_v8 = vpop.f32.mrb[9].mxu1  ;;  %v1639_v26 = vpop.f32.mrb[9].mxu0 }
 0x23f   : > { %v14999_v58 = vadd.f32 %v14923_v15, %v1239_v8  ;;  %v1640_v29 = vadd.f32 %v14928_v62, %v1639_v26  ;;  %v11866_v4 = vpop.f32.mrb[10].mxu1  ;;  %v11938_v9 = vpop.f32.mrb[10].mxu0 }
 0x240   : > { %20378 = vst [vmem:[#allocation6_spill] sm:$0xff] %v14995_v51  ;;  %v15003_v41 = vadd.f32 %v11866_v4, %v14923_v15  ;;  %v1651_v61 = vadd.f32 %v11938_v9, %v14928_v62  ;;  %v1242_v0 = vpop.f32.mrb[11].mxu1  ;;  %v1642_v31 = vpop.f32.mrb[11].mxu0 }
 0x241   : > { %v15007_v20 = vadd.f32 %v14923_v15, %v1242_v0  ;;  %v1643_v45 = vadd.f32 %v14928_v62, %v1642_v31 }
 0x242   : > { %20379 = vst [vmem:[#allocation7_spill] sm:$0xff] %v15003_v41  ;;  %12056 = vmatmul.mubr.msk.bf16.gmra.mrb[116].mxu1 %vm592_vm0, %v14676_v10  ;;  %12164 = vmatmul.mubr.msk.bf16.gmra.mrb[116].mxu0 %vm592_vm0, %v14676_v10  ;;  %v15016_v2 = vpack.c.bf16 %v1651_v61, %v1648_v21 }
 0x243   : > { %12059 = vmatprep.mubr.msk.bf16.mxu1 %vm592_vm0, %v14688_v27  ;;  %12167 = vmatprep.mubr.msk.bf16.mxu0 %vm592_vm0, %v14688_v27  ;;  %v15024_v59 = vpack.c.bf16 %v1643_v45, %v1640_v29 }
 0x244   : > { %20380 = vst [vmem:[#allocation8_spill] sm:$0xff] %v15016_v2 }
 0x245   : > { %20381 = vst [vmem:[#allocation9_spill] sm:$0xff] %v15024_v59  ;;  %v11869_v16 = vpop.f32.mrb[12].mxu1  ;;  %v11941_v11 = vpop.f32.mrb[12].mxu0 }
 0x246   : > { %v15027_v40 = vadd.f32 %v11869_v16, %v14923_v15  ;;  %v1664_v35 = vadd.f32 %v11941_v11, %v14928_v62  ;;  %v1255_v1 = vpop.f32.mrb[13].mxu1  ;;  %v1655_v5 = vpop.f32.mrb[13].mxu0 }
 0x247   : > { %v15031_v53 = vadd.f32 %v14923_v15, %v1255_v1  ;;  %v1656_v46 = vadd.f32 %v14928_v62, %v1655_v5  ;;  %v11870_v44 = vpop.f32.mrb[14].mxu1  ;;  %v11942_v7 = vpop.f32.mrb[14].mxu0 }
 0x248   : > { %20382 = vst [vmem:[#allocation10_spill] sm:$0xff] %v15027_v40  ;;  %v15035_v50 = vadd.f32 %v11870_v44, %v14923_v15  ;;  %v1667_v21 = vadd.f32 %v11942_v7, %v14928_v62  ;;  %v1258_v8 = vpop.f32.mrb[15].mxu1  ;;  %v1658_v26 = vpop.f32.mrb[15].mxu0 }
 0x249   : > { %20383 = vst [vmem:[#allocation11_spill] sm:$0xff] %v15031_v53  ;;  %v15039_v29 = vadd.f32 %v14923_v15, %v1258_v8  ;;  %v1659_v4 = vadd.f32 %v14928_v62, %v1658_v26 }
 0x24a   : > { %20384 = vst [vmem:[#allocation12_spill] sm:$0xff] %v15035_v50  ;;  %12060 = vmatmul.mubr.msk.bf16.gmra.mrb[120].mxu1 %vm592_vm0, %v14700_v34  ;;  %12168 = vmatmul.mubr.msk.bf16.gmra.mrb[120].mxu0 %vm592_vm0, %v14700_v34  ;;  %v15048_v61 = vpack.c.bf16 %v1667_v21, %v1664_v35 }
 0x24b   : > { %20385 = vst [vmem:[#allocation13_spill] sm:$0xff] %v15039_v29  ;;  %12063 = vmatprep.mubr.msk.bf16.mxu1 %vm592_vm0, %v14711_v28  ;;  %12171 = vmatprep.mubr.msk.bf16.mxu0 %vm592_vm0, %v14711_v28  ;;  %v15056_v31 = vpack.c.bf16 %v1659_v4, %v1656_v46 }
 0x24c   : > { %20386 = vst [vmem:[#allocation14_spill] sm:$0xff] %v15048_v61 }
 0x24d   : > { %20387 = vst [vmem:[#allocation15_spill] sm:$0xff] %v15056_v31  ;;  %v11873_v45 = vpop.f32.mrb[16].mxu1  ;;  %v11945_v16 = vpop.f32.mrb[16].mxu0 }
 0x24e   : > { %v1680_v11 = vadd.f32 %v11945_v16, %v14928_v62  ;;  %v1271_v1 = vpop.f32.mrb[17].mxu1  ;;  %v1671_v5 = vpop.f32.mrb[17].mxu0  ;;  %v15060_v7 = vadd.f32 %v11873_v45, %v14923_v15 }
 0x24f   : > { %v11874_v44 = vpop.f32.mrb[18].mxu1  ;;  %v11946_v35 = vpop.f32.mrb[18].mxu0  ;;  %v15067_v46 = vadd.f32 %v14923_v15, %v1271_v1  ;;  %v1672_v4 = vadd.f32 %v14928_v62, %v1671_v5 }
 0x250   : > { %v15063_v21 = vadd.f32 %v11874_v44, %v14923_v15  ;;  %v1683_v8 = vadd.f32 %v11946_v35, %v14928_v62  ;;  %v1274_v26 = vpop.f32.mrb[19].mxu1  ;;  %v1674_v9 = vpop.f32.mrb[19].mxu0 }
 0x251   : > { %v15071_v16 = vadd.f32 %v14923_v15, %v1274_v26  ;;  %v1675_v0 = vadd.f32 %v14928_v62, %v1674_v9 }
 0x252   : > { %12064 = vmatmul.mubr.msk.bf16.gmra.mrb[124].mxu1 %vm592_vm0, %v14720_v57  ;;  %12172 = vmatmul.mubr.msk.bf16.gmra.mrb[124].mxu0 %vm592_vm0, %v14720_v57  ;;  %v15080_v44 = vpack.c.bf16 %v1683_v8, %v1680_v11 }
 0x253   : > { %12107 = vmatprep.mubr.msk.bf16.mxu1 %vm592_vm0, %v14524_v6  ;;  %12215 = vmatprep.mubr.msk.bf16.mxu0 %vm592_vm0, %v14524_v6  ;;  %v15088_v9 = vpack.c.bf16 %v1675_v0, %v1672_v4 }
 0x254   : > { %20388 = vst [vmem:[#allocation16_spill] sm:$0xff] %v15080_v44 }
 0x255   : > { %20389 = vst [vmem:[#allocation17_spill] sm:$0xff] %v15088_v9  ;;  %v11877_v5 = vpop.f32.mrb[20].mxu1  ;;  %v11949_v35 = vpop.f32.mrb[20].mxu0 }
 0x256   : > { %v1696_v26 = vadd.f32 %v11949_v35, %v14928_v62  ;;  %v1287_v12 = vpop.f32.mrb[21].mxu1  ;;  %v1687_v32 = vpop.f32.mrb[21].mxu0  ;;  %v15093_v1 = vadd.f32 %v11877_v5, %v14923_v15  ;;  %v13201_v5 = vld [vmem:[%s20049_s3 + $0x38] sm:$0xff]  }
 0x257   : > { %v1688_v11 = vadd.f32 %v14928_v62, %v1687_v32  ;;  %v11878_v8 = vpop.f32.mrb[22].mxu1  ;;  %v11950_v45 = vpop.f32.mrb[22].mxu0  ;;  %v15100_v24 = vadd.f32 %v14923_v15, %v1287_v12 }
 0x258   : > { %v15096_v39 = vadd.f32 %v11878_v8, %v14923_v15  ;;  %v1699_v55 = vadd.f32 %v11950_v45, %v14928_v62  ;;  %v1290_v0 = vpop.f32.mrb[23].mxu1  ;;  %v1690_v4 = vpop.f32.mrb[23].mxu0 }
 0x259   : > { %v15103_v35 = vadd.f32 %v14923_v15, %v1290_v0  ;;  %v1691_v32 = vadd.f32 %v14928_v62, %v1690_v4 }
 0x25a   : > { %12108 = vmatmul.mubr.msk.bf16.vlgmr.msra.gmra.mrb[128].mxu1 %vm592_vm0, %v14536_v13  ;;  %12216 = vmatmul.mubr.msk.bf16.vlgmr.msra.gmra.mrb[128].mxu0 %vm592_vm0, %v14536_v13  ;;  %v15115_v12 = vpack.c.bf16 %v1699_v55, %v1696_v26  ;;  %v15129_v55 = vld [vmem:[%s20053_s7 + $0x30] sm:$0xff]  }
 0x25b   : > { %12111 = vmatprep.mubr.msk.bf16.mxu1 %vm592_vm0, %v14556_v14  ;;  %12219 = vmatprep.mubr.msk.bf16.mxu0 %vm592_vm0, %v14556_v14  ;;  %v15123_v0 = vpack.c.bf16 %v1691_v32, %v1688_v11 }
 0x25c   : > { %20390 = vst [vmem:[#allocation18_spill] sm:$0xff] %v15115_v12  ;;  %12176 = vmatpush3.bf16.msra.mxu1 %v14901_v3 }
 0x25d   : > { %20391 = vst [vmem:[#allocation19_spill] sm:$0xff] %v15123_v0  ;;  %v11881_v4 = vpop.f32.mrb[24].mxu1  ;;  %v11953_v8 = vpop.f32.mrb[24].mxu0  ;;  %12177 = vmatprep.subr.bf16.mxu1 %v13201_v5 }
 0x25e   : > { %v15132_v26 = vadd.f32 %v11881_v4, %v14923_v15  ;;  %v1712_v45 = vadd.f32 %v11953_v8, %v14928_v62  ;;  %v1303_v33 = vpop.f32.mrb[25].mxu1  ;;  %v1703_v12 = vpop.f32.mrb[25].mxu0 }
 0x25f   : > { %v15136_v11 = vadd.f32 %v14923_v15, %v1303_v33  ;;  %v1704_v3 = vadd.f32 %v14928_v62, %v1703_v12  ;;  %v11882_v32 = vpop.f32.mrb[26].mxu1  ;;  %v11954_v0 = vpop.f32.mrb[26].mxu0 }
 0x260   : > { %20392 = vst [vmem:[#allocation20_spill] sm:$0xff] %v15132_v26  ;;  %v15140_v44 = vadd.f32 %v11882_v32, %v14923_v15  ;;  %v1715_v61 = vadd.f32 %v11954_v0, %v14928_v62  ;;  %v1306_v31 = vpop.f32.mrb[27].mxu1  ;;  %v1706_v2 = vpop.f32.mrb[27].mxu0  ;;  %12178 = vmatpush3.bf16.msra.mxu1 %v13201_v5 }
 0x261   : > { %20393 = vst [vmem:[#allocation21_spill] sm:$0xff] %v15136_v11  ;;  %v15144_v4 = vadd.f32 %v14923_v15, %v1306_v31  ;;  %v1707_v8 = vadd.f32 %v14928_v62, %v1706_v2  ;;  %12247 = vmatprep.subr.bf16.mxu1 %v15129_v55 }
 0x262   : > { %20394 = vst [vmem:[#allocation22_spill] sm:$0xff] %v15140_v44  ;;  %12112 = vmatmul.mubr.msk.bf16.gmra.mrb[132].mxu1 %vm592_vm0, %v14578_v30  ;;  %12220 = vmatmul.mubr.msk.bf16.gmra.mrb[132].mxu0 %vm592_vm0, %v14578_v30  ;;  %v15154_v12 = vpack.c.bf16 %v1715_v61, %v1712_v45 }
 0x263   : > { %20395 = vst [vmem:[#allocation23_spill] sm:$0xff] %v15144_v4  ;;  %12115 = vmatprep.mubr.msk.bf16.mxu1 %vm592_vm0, %v14592_v54  ;;  %12223 = vmatprep.mubr.msk.bf16.mxu0 %vm592_vm0, %v14592_v54  ;;  %v15162_v2 = vpack.c.bf16 %v1707_v8, %v1704_v3 }
 0x264   : > { %20396 = vst [vmem:[#allocation24_spill] sm:$0xff] %v15154_v12 }
 0x265   : > { %20397 = vst [vmem:[#allocation25_spill] sm:$0xff] %v15162_v2  ;;  %v11885_v31 = vpop.f32.mrb[28].mxu1  ;;  %v11957_v0 = vpop.f32.mrb[28].mxu0 }
 0x266   : > { %v15165_v32 = vadd.f32 %v11885_v31, %v14923_v15  ;;  %v1728_v33 = vadd.f32 %v11957_v0, %v14928_v62  ;;  %v1319_v61 = vpop.f32.mrb[29].mxu1  ;;  %v1719_v45 = vpop.f32.mrb[29].mxu0 }
 0x267   : > { %v15169_v12 = vadd.f32 %v14923_v15, %v1319_v61  ;;  %v1720_v5 = vadd.f32 %v14928_v62, %v1719_v45  ;;  %v11886_v59 = vpop.f32.mrb[30].mxu1  ;;  %v11958_v9 = vpop.f32.mrb[30].mxu0 }
 0x268   : > { %20398 = vst [vmem:[#allocation26_spill] sm:$0xff] %v15165_v32  ;;  %v15173_v36 = vadd.f32 %v11886_v59, %v14923_v15  ;;  %v1731_v3 = vadd.f32 %v11958_v9, %v14928_v62  ;;  %v1322_v8 = vpop.f32.mrb[31].mxu1  ;;  %v1722_v2 = vpop.f32.mrb[31].mxu0 }
 0x269   : > { %20399 = vst [vmem:[#allocation27_spill] sm:$0xff] %v15169_v12  ;;  %v15177_v31 = vadd.f32 %v14923_v15, %v1322_v8  ;;  %v1723_v0 = vadd.f32 %v14928_v62, %v1722_v2  ;;  %v15199_v2 = vld [vmem:[%s20052_s6] ss:$0 sm:$0xff] }
 0x26a   : > { %20400 = vst [vmem:[#allocation28_spill] sm:$0xff] %v15173_v36  ;;  %12116 = vmatmul.mubr.msk.bf16.gmra.mrb[136].mxu1 %vm592_vm0, %v14604_v56  ;;  %12224 = vmatmul.mubr.msk.bf16.gmra.mrb[136].mxu0 %vm592_vm0, %v14604_v56  ;;  %v15186_v59 = vpack.c.bf16 %v1731_v3, %v1728_v33  ;;  %v15204_v33 = vld [vmem:[%s20052_s6 + $0x1] ss:$0 sm:$0xff] }
 0x26b   : > { %20401 = vst [vmem:[#allocation29_spill] sm:$0xff] %v15177_v31  ;;  %12119 = vmatprep.mubr.msk.bf16.mxu1 %vm592_vm0, %v14616_v42  ;;  %12227 = vmatprep.mubr.msk.bf16.mxu0 %vm592_vm0, %v14616_v42  ;;  %v15194_v15 = vpack.c.bf16 %v1723_v0, %v1720_v5 }
 0x26c   : > { %20402 = vst [vmem:[#allocation30_spill] sm:$0xff] %v15186_v59 }
 0x26d   : > { %20403 = vst [vmem:[#allocation31_spill] sm:$0xff] %v15194_v15  ;;  %v11893_v62 = vpop.f32.mrb[32].mxu1  ;;  %v12001_v45 = vpop.f32.mrb[32].mxu0 }
 0x26e   : > { %v1407_v3 = vpop.f32.mrb[33].mxu1  ;;  %v2011_v8 = vpop.f32.mrb[33].mxu0  ;;  %v1416_v59 = vadd.f32 %v11893_v62, %v15199_v2  ;;  %v2020_v63 = vadd.f32 %v12001_v45, %v15204_v33 }
 0x26f   : > { %v11894_v61 = vpop.f32.mrb[34].mxu1  ;;  %v12002_v9 = vpop.f32.mrb[34].mxu0  ;;  %v1408_v60 = vadd.f32 %v15199_v2, %v1407_v3  ;;  %v2012_v36 = vadd.f32 %v15204_v33, %v2011_v8 }
 0x270   : > { %v1419_v5 = vadd.f32 %v11894_v61, %v15199_v2  ;;  %v1410_v0 = vpop.f32.mrb[35].mxu1  ;;  %v2014_v15 = vpop.f32.mrb[35].mxu0  ;;  %v2023_v49 = vadd.f32 %v12002_v9, %v15204_v33 }
 0x271   : > { %v1411_v32 = vadd.f32 %v15199_v2, %v1410_v0  ;;  %v2015_v12 = vadd.f32 %v15204_v33, %v2014_v15 }
 0x272   : > { %v1535_v31 = vpack.c.bf16 %v1419_v5, %v1416_v59  ;;  %12120 = vmatmul.mubr.msk.bf16.gmra.mrb[140].mxu1 %vm592_vm0, %v14628_v52  ;;  %12228 = vmatmul.mubr.msk.bf16.gmra.mrb[140].mxu0 %vm592_vm0, %v14628_v52  ;;  %v15218_v61 = vpack.c.bf16 %v2023_v49, %v2020_v63 }
 0x273   : > { %v1534_v62 = vpack.c.bf16 %v1411_v32, %v1408_v60  ;;  %12123 = vmatprep.mubr.msk.bf16.mxu1 %vm592_vm0, %v14640_v23  ;;  %12231 = vmatprep.mubr.msk.bf16.mxu0 %vm592_vm0, %v14640_v23  ;;  %v15224_v9 = vpack.c.bf16 %v2015_v12, %v2012_v36 }
 0x275   : > { %v11897_v15 = vpop.f32.mrb[36].mxu1  ;;  %v12005_v59 = vpop.f32.mrb[36].mxu0  ;;  %13103 = vmatprep.subr.msk.bf16.mxu0 %vm3568_vm1, %v1534_v62  ;;  %v3582_v45 = vsel %vm3568_vm1, %v1534_v62, 0 }
 0x276   : > { %v1423_v3 = vpop.f32.mrb[37].mxu1  ;;  %v2027_v8 = vpop.f32.mrb[37].mxu0  ;;  %12284 = vmatpush3.bf16.xpose.msra.mxu0 %v3582_v45  ;;  %v1432_v60 = vadd.f32 %v11897_v15, %v15199_v2  ;;  %v2036_v12 = vadd.f32 %v12005_v59, %v15204_v33 }
 0x277   : > { %v11898_v49 = vpop.f32.mrb[38].mxu1  ;;  %v12006_v63 = vpop.f32.mrb[38].mxu0  ;;  %13104 = vmatprep.subr.msk.bf16.mxu0 %vm3568_vm1, %v1535_v31  ;;  %v1424_v26 = vadd.f32 %v15199_v2, %v1423_v3  ;;  %v2028_v45 = vadd.f32 %v15204_v33, %v2027_v8 }
 0x278   : > { %v1435_v32 = vadd.f32 %v11898_v49, %v15199_v2  ;;  %v1426_v5 = vpop.f32.mrb[39].mxu1  ;;  %v2030_v36 = vpop.f32.mrb[39].mxu0  ;;  %v2039_v0 = vadd.f32 %v12006_v63, %v15204_v33  ;;  %v3585_v63 = vsel %vm3568_vm1, %v1535_v31, 0 }
 0x279   : > { %v1427_v62 = vadd.f32 %v15199_v2, %v1426_v5  ;;  %v2031_v44 = vadd.f32 %v15204_v33, %v2030_v36 }
 0x27a   : > { %v15237_v11 = vpack.c.bf16 %v1435_v32, %v1432_v60  ;;  %12124 = vmatmul.mubr.msk.bf16.gmra.mrb[144].mxu1 %vm592_vm0, %v14652_v19  ;;  %12232 = vmatmul.mubr.msk.bf16.gmra.mrb[144].mxu0 %vm592_vm0, %v14652_v19  ;;  %v15243_v15 = vpack.c.bf16 %v2039_v0, %v2036_v12 }
 0x27b   : > { %v1536_v59 = vpack.c.bf16 %v1427_v62, %v1424_v26  ;;  %12127 = vmatprep.mubr.msk.bf16.mxu1 %vm592_vm0, %v14664_v18  ;;  %12235 = vmatprep.mubr.msk.bf16.mxu0 %vm592_vm0, %v14664_v18  ;;  %v15249_v3 = vpack.c.bf16 %v2031_v44, %v2028_v45 }
 0x27d   : > { %v11901_v8 = vpop.f32.mrb[40].mxu1  ;;  %v12009_v49 = vpop.f32.mrb[40].mxu0 }
 0x27e   : > { %v1448_v60 = vadd.f32 %v11901_v8, %v15199_v2  ;;  %v1439_v32 = vpop.f32.mrb[41].mxu1  ;;  %v2043_v5 = vpop.f32.mrb[41].mxu0  ;;  %12286 = vmatpush3.bf16.xpose.msra.mxu0 %v3585_v63  ;;  %v2052_v36 = vadd.f32 %v12009_v49, %v15204_v33 }
 0x27f   : > { %v11902_v26 = vpop.f32.mrb[42].mxu1  ;;  %v12010_v12 = vpop.f32.mrb[42].mxu0  ;;  %13105 = vmatprep.subr.msk.bf16.mxu0 %vm3568_vm1, %v1536_v59  ;;  %v2044_v0 = vadd.f32 %v15204_v33, %v2043_v5  ;;  %v1440_v31 = vadd.f32 %v15199_v2, %v1439_v32 }
 0x280   : > { %v1451_v44 = vadd.f32 %v11902_v26, %v15199_v2  ;;  %v1442_v62 = vpop.f32.mrb[43].mxu1  ;;  %v2046_v45 = vpop.f32.mrb[43].mxu0  ;;  %v2055_v4 = vadd.f32 %v12010_v12, %v15204_v33  ;;  %v3588_v12 = vsel %vm3568_vm1, %v1536_v59, 0 }
 0x281   : > { %v1443_v8 = vadd.f32 %v15199_v2, %v1442_v62  ;;  %v2047_v63 = vadd.f32 %v15204_v33, %v2046_v45 }
 0x282   : > { %v15261_v40 = vpack.c.bf16 %v1451_v44, %v1448_v60  ;;  %12128 = vmatmul.mubr.msk.bf16.gmra.mrb[148].mxu1 %vm592_vm0, %v14676_v10  ;;  %12236 = vmatmul.mubr.msk.bf16.gmra.mrb[148].mxu0 %vm592_vm0, %v14676_v10  ;;  %v15267_v49 = vpack.c.bf16 %v2055_v4, %v2052_v36 }
 0x283   : > { %v15269_v5 = vpack.c.bf16 %v1443_v8, %v1440_v31  ;;  %12131 = vmatprep.mubr.msk.bf16.mxu1 %vm592_vm0, %v14688_v27  ;;  %12239 = vmatprep.mubr.msk.bf16.mxu0 %vm592_vm0, %v14688_v27  ;;  %v15275_v32 = vpack.c.bf16 %v2047_v63, %v2044_v0 }
 0x284   : > { %20404 = vst [vmem:[#allocation32_spill] sm:$0xff] %v15267_v49 }
 0x285   : > { %20405 = vst [vmem:[#allocation33_spill] sm:$0xff] %v15275_v32  ;;  %v11905_v60 = vpop.f32.mrb[44].mxu1  ;;  %v12013_v26 = vpop.f32.mrb[44].mxu0 }
 0x286   : > { %v1464_v44 = vadd.f32 %v11905_v60, %v15199_v2  ;;  %v1455_v62 = vpop.f32.mrb[45].mxu1  ;;  %v2059_v45 = vpop.f32.mrb[45].mxu0  ;;  %12288 = vmatpush3.bf16.xpose.msra.mxu0 %v3588_v12  ;;  %v2068_v4 = vadd.f32 %v12013_v26, %v15204_v33 }
 0x287   : > { %v1456_v36 = vadd.f32 %v15199_v2, %v1455_v62  ;;  %v11906_v31 = vpop.f32.mrb[46].mxu1  ;;  %v12014_v8 = vpop.f32.mrb[46].mxu0  ;;  %13106 = vmatprep.subr.msk.bf16.mxu0 %vm3568_vm1, %v15237_v11  ;;  %v2060_v0 = vadd.f32 %v15204_v33, %v2059_v45 }
 0x288   : > { %v1467_v63 = vadd.f32 %v11906_v31, %v15199_v2  ;;  %v1458_v49 = vpop.f32.mrb[47].mxu1  ;;  %v2062_v59 = vpop.f32.mrb[47].mxu0  ;;  %v2071_v60 = vadd.f32 %v12014_v8, %v15204_v33  ;;  %v3591_v8 = vsel %vm3568_vm1, %v15237_v11, 0 }
 0x289   : > { %v1459_v32 = vadd.f32 %v15199_v2, %v1458_v49  ;;  %v2063_v12 = vadd.f32 %v15204_v33, %v2062_v59 }
 0x28a   : > { %v15288_v26 = vpack.c.bf16 %v1467_v63, %v1464_v44  ;;  %12132 = vmatmul.mubr.msk.bf16.gmra.mrb[152].mxu1 %vm592_vm0, %v14700_v34  ;;  %12240 = vmatmul.mubr.msk.bf16.gmra.mrb[152].mxu0 %vm592_vm0, %v14700_v34  ;;  %v15294_v62 = vpack.c.bf16 %v2071_v60, %v2068_v4 }
 0x28b   : > { %v15296_v45 = vpack.c.bf16 %v1459_v32, %v1456_v36  ;;  %12135 = vmatprep.mubr.msk.bf16.mxu1 %vm592_vm0, %v14711_v28  ;;  %12243 = vmatprep.mubr.msk.bf16.mxu0 %vm592_vm0, %v14711_v28  ;;  %v15302_v49 = vpack.c.bf16 %v2063_v12, %v2060_v0 }
 0x28c   : > { %20406 = vst [vmem:[#allocation34_spill] sm:$0xff] %v15294_v62 }
 0x28d   : > { %20407 = vst [vmem:[#allocation35_spill] sm:$0xff] %v15302_v49  ;;  %v11909_v44 = vpop.f32.mrb[48].mxu1  ;;  %v12017_v31 = vpop.f32.mrb[48].mxu0 }
 0x28e   : > { %v1471_v63 = vpop.f32.mrb[49].mxu1  ;;  %v2075_v59 = vpop.f32.mrb[49].mxu0  ;;  %12290 = vmatpush3.bf16.xpose.msra.mxu0 %v3591_v8  ;;  %v1480_v32 = vadd.f32 %v11909_v44, %v15199_v2  ;;  %v2084_v53 = vadd.f32 %v12017_v31, %v15204_v33 }
 0x28f   : > { %v11910_v4 = vpop.f32.mrb[50].mxu1  ;;  %v12018_v60 = vpop.f32.mrb[50].mxu0  ;;  %v1472_v12 = vadd.f32 %v15199_v2, %v1471_v63  ;;  %v2076_v11 = vadd.f32 %v15204_v33, %v2075_v59 }
 0x290   : > { %v1483_v36 = vadd.f32 %v11910_v4, %v15199_v2  ;;  %v1474_v62 = vpop.f32.mrb[51].mxu1  ;;  %v2078_v50 = vpop.f32.mrb[51].mxu0  ;;  %v2087_v0 = vadd.f32 %v12018_v60, %v15204_v33 }
 0x291   : > { %v1475_v49 = vadd.f32 %v15199_v2, %v1474_v62  ;;  %v2079_v8 = vadd.f32 %v15204_v33, %v2078_v50  ;;  %v20408_v62 = vpack.c.bf16 %v14943_v17, %v14939_v22 }
 0x292   : > { %v1543_v29 = vpack.c.bf16 %v1483_v36, %v1480_v32  ;;  %12136 = vmatmul.mubr.msk.bf16.gmra.mrb[156].mxu1 %vm592_vm0, %v14720_v57  ;;  %12244 = vmatmul.mubr.msk.bf16.gmra.mrb[156].mxu0 %vm592_vm0, %v14720_v57  ;;  %v15318_v44 = vpack.c.bf16 %v2087_v0, %v2084_v53 }
 0x293   : > { %v1542_v31 = vpack.c.bf16 %v1475_v49, %v1472_v12  ;;  %12179 = vmatprep.mubr.msk.bf16.mxu1 %vm592_vm0, %v14524_v6  ;;  %12291 = vmatprep.mubr.msk.bf16.mxu0 %vm3568_vm1, %v20408_v62  ;;  %v15326_v63 = vpack.c.bf16 %v2079_v8, %v2076_v11  ;;  %v13203_v62 = vld [vmem:[%s20053_s7 + $0x38] sm:$0xff]  }
 0x295   : > { %v11913_v50 = vpop.f32.mrb[52].mxu1  ;;  %v12021_v59 = vpop.f32.mrb[52].mxu0  ;;  %13111 = vmatprep.subr.msk.bf16.mxu0 %vm3568_vm1, %v1542_v31 }
 0x296   : > { %v1487_v4 = vpop.f32.mrb[53].mxu1  ;;  %v2091_v60 = vpop.f32.mrb[53].mxu0  ;;  %v1496_v49 = vadd.f32 %v11913_v50, %v15199_v2  ;;  %v2100_v22 = vadd.f32 %v12021_v59, %v15204_v33  ;;  %v20409_v59 = vpack.c.bf16 %v14935_v25, %v14931_v43 }
 0x297   : > { %v11914_v32 = vpop.f32.mrb[54].mxu1  ;;  %v12022_v53 = vpop.f32.mrb[54].mxu0  ;;  %v1488_v11 = vadd.f32 %v15199_v2, %v1487_v4  ;;  %v2092_v51 = vadd.f32 %v15204_v33, %v2091_v60  ;;  %v3760_v4 = vsel %vm3568_vm1, %v1542_v31, 0 }
 0x298   : > { %v1499_v36 = vadd.f32 %v11914_v32, %v15199_v2  ;;  %v1490_v0 = vpop.f32.mrb[55].mxu1  ;;  %v2094_v12 = vpop.f32.mrb[55].mxu0  ;;  %v2103_v17 = vadd.f32 %v12022_v53, %v15204_v33 }
 0x299   : > { %v1491_v8 = vadd.f32 %v15199_v2, %v1490_v0  ;;  %v2095_v50 = vadd.f32 %v15204_v33, %v2094_v12 }
 0x29a   : > { %v15340_v41 = vpack.c.bf16 %v1499_v36, %v1496_v49  ;;  %12180 = vmatmul.mubr.msk.bf16.vlgmr.msra.gmra.mrb[160].mxu1 %vm592_vm0, %v14536_v13  ;;  %12292 = vmatmul.mubr.msk.bf16.vlgmr.msra.gmra.mrb[160].mxu0 %vm3568_vm1, %v20409_v59  ;;  %v15349_v32 = vpack.c.bf16 %v2103_v17, %v2100_v22  ;;  %v20410_v49 = vpack.c.bf16 %v14975_v37, %v14971_v48 }
 0x29b   : > { %v1544_v53 = vpack.c.bf16 %v1491_v8, %v1488_v11  ;;  %12248 = vmatpush3.bf16.msra.mxu1 %v15129_v55  ;;  %12316 = vmatpush3.bf16.xpose.msra.mxu0 %v3760_v4  ;;  %v15352_v60 = vpack.c.bf16 %v2095_v50, %v2092_v51 }
 0x29c   : > { %12183 = vmatprep.mubr.msk.bf16.mxu1 %vm592_vm0, %v14556_v14  ;;  %12295 = vmatprep.mubr.msk.bf16.mxu0 %vm3568_vm1, %v20410_v49  ;;  %v3763_v49 = vsel %vm3568_vm1, %v1543_v29, 0 }
 0x29d   : > { %13112 = vmatprep.subr.msk.bf16.mxu0 %vm3568_vm1, %v1543_v29  ;;  %v11917_v43 = vpop.f32.mrb[56].mxu1  ;;  %v12025_v25 = vpop.f32.mrb[56].mxu0  ;;  %12249 = vmatprep.subr.bf16.mxu1 %v13203_v62 }
 0x29e   : > { %v1512_v31 = vadd.f32 %v11917_v43, %v15199_v2  ;;  %v1503_v36 = vpop.f32.mrb[57].mxu1  ;;  %v2107_v55 = vpop.f32.mrb[57].mxu0  ;;  %v2116_v51 = vadd.f32 %v12025_v25, %v15204_v33 }
 0x29f   : > { %v1504_v0 = vadd.f32 %v15199_v2, %v1503_v36  ;;  %12250 = vmatpush3.bf16.msra.mxu1 %v13203_v62  ;;  %v11918_v12 = vpop.f32.mrb[58].mxu1  ;;  %v12026_v22 = vpop.f32.mrb[58].mxu0  ;;  %v2108_v48 = vadd.f32 %v15204_v33, %v2107_v55  ;;  %v20411_v62 = vpack.c.bf16 %v14967_v38, %v14963_v47  ;;  %v20413_v36 = vpack.c.bf16 %v15071_v16, %v15067_v46 }
 0x2a0   : > { %v1515_v37 = vadd.f32 %v11918_v12, %v15199_v2  ;;  %13107 = vmatprep.subr.msk.bf16.mxu1 %vm3568_vm1, %v15269_v5  ;;  %v1506_v17 = vpop.f32.mrb[59].mxu1  ;;  %v2110_v11 = vpop.f32.mrb[59].mxu0  ;;  %v2119_v8 = vadd.f32 %v12026_v22, %v15204_v33 }
 0x2a1   : > { %v1507_v50 = vadd.f32 %v15199_v2, %v1506_v17  ;;  %v2111_v59 = vadd.f32 %v15204_v33, %v2110_v11 }
 0x2a2   : > { %v15371_v4 = vpack.c.bf16 %v1515_v37, %v1512_v31  ;;  %12184 = vmatmul.mubr.msk.bf16.gmra.mrb[164].mxu1 %vm592_vm0, %v14578_v30  ;;  %12296 = vmatmul.mubr.msk.bf16.gmra.mrb[164].mxu0 %vm3568_vm1, %v20411_v62  ;;  %v15380_v43 = vpack.c.bf16 %v2119_v8, %v2116_v51  ;;  %v3766_v62 = vsel %vm3568_vm1, %v1544_v53, 0 }
 0x2a3   : > { %v15382_v25 = vpack.c.bf16 %v1507_v50, %v1504_v0  ;;  %12318 = vmatpush3.bf16.xpose.msra.mxu0 %v3763_v49  ;;  %12187 = vmatprep.mubr.msk.bf16.mxu1 %vm592_vm0, %v14592_v54  ;;  %v15386_v31 = vpack.c.bf16 %v2111_v59, %v2108_v48 }
 0x2a4   : > { %20412 = vst [vmem:[#allocation36_spill] sm:$0xff] %v15380_v43  ;;  %13113 = vmatprep.subr.msk.bf16.mxu0 %vm3568_vm1, %v1544_v53  ;;  %12323 = vmatprep.mubr.msk.bf16.mxu0 %vm3568_vm1, %v20413_v36  ;;  %v15424_v53 = vld [vmem:[%s20050_s4 + $0x1] ss:$0 sm:$0xff] }
 0x2a5   : > { %v11921_v47 = vpop.f32.mrb[60].mxu1  ;;  %v12029_v38 = vpop.f32.mrb[60].mxu0 }
 0x2a6   : > { %v1528_v29 = vadd.f32 %v11921_v47, %v15199_v2  ;;  %v1519_v55 = vpop.f32.mrb[61].mxu1  ;;  %v2123_v51 = vpop.f32.mrb[61].mxu0  ;;  %v2132_v0 = vadd.f32 %v12029_v38, %v15204_v33 }
 0x2a7   : > { %v1520_v12 = vadd.f32 %v15199_v2, %v1519_v55  ;;  %v11922_v22 = vpop.f32.mrb[62].mxu1  ;;  %v12030_v48 = vpop.f32.mrb[62].mxu0  ;;  %v2124_v37 = vadd.f32 %v15204_v33, %v2123_v51 }
 0x2a8   : > { %v1531_v17 = vadd.f32 %v11922_v22, %v15199_v2  ;;  %v1522_v11 = vpop.f32.mrb[63].mxu1  ;;  %v2126_v46 = vpop.f32.mrb[63].mxu0  ;;  %v2135_v16 = vadd.f32 %v12030_v48, %v15204_v33 }
 0x2a9   : > { %v1523_v8 = vadd.f32 %v15199_v2, %v1522_v11  ;;  %v2127_v50 = vadd.f32 %v15204_v33, %v2126_v46  ;;  %v15415_v2 = vld [vmem:[%s20050_s4 + $0x2] ss:$0 sm:$0xff] }
 0x2aa   : > { %v15401_v59 = vpack.c.bf16 %v1531_v17, %v1528_v29  ;;  %12188 = vmatmul.mubr.msk.bf16.gmra.mrb[168].mxu1 %vm592_vm0, %v14604_v56  ;;  %v15406_v49 = vpack.c.bf16 %v2135_v16, %v2132_v0 }
 0x2ab   : > { %v15408_v36 = vpack.c.bf16 %v1523_v8, %v1520_v12  ;;  %12320 = vmatpush3.bf16.xpose.msra.mxu0 %v3766_v62  ;;  %12191 = vmatprep.mubr.msk.bf16.mxu1 %vm592_vm0, %v14616_v42  ;;  %v15417_v33 = vpack.c.bf16 %v2127_v50, %v2124_v37 }
 0x2ac   : > { %20414 = vst [vmem:[#allocation37_spill] sm:$0xff] %v15406_v49  ;;  %13114 = vmatprep.subr.msk.bf16.mxu0 %vm3568_vm1, %v15340_v41 }
 0x2ad   : > { %20415 = vst [vmem:[#allocation38_spill] sm:$0xff] %v15417_v33  ;;  %v11965_v47 = vpop.f32.mrb[64].mxu1  ;;  %v12073_v38 = vpop.f32.mrb[64].mxu0 }
 0x2ae   : > { %v15427_v29 = vadd.f32 %v12073_v38, %v15415_v2  ;;  %v1809_v55 = vpop.f32.mrb[65].mxu1  ;;  %v2415_v51 = vpop.f32.mrb[65].mxu0  ;;  %v15430_v22 = vadd.f32 %v11965_v47, %v15424_v53  ;;  %v3769_v38 = vsel %vm3568_vm1, %v15340_v41, 0 }
 0x2af   : > { %v11966_v0 = vpop.f32.mrb[66].mxu1  ;;  %v12074_v12 = vpop.f32.mrb[66].mxu0  ;;  %v15439_v46 = vadd.f32 %v15424_v53, %v1809_v55  ;;  %v15442_v16 = vadd.f32 %v15415_v2, %v2415_v51 }
 0x2b0   : > { %v15433_v48 = vadd.f32 %v11966_v0, %v15424_v53  ;;  %v15436_v37 = vadd.f32 %v12074_v12, %v15415_v2  ;;  %v1812_v17 = vpop.f32.mrb[67].mxu1  ;;  %v2418_v11 = vpop.f32.mrb[67].mxu0 }
 0x2b1   : > { %v15445_v8 = vadd.f32 %v15424_v53, %v1812_v17  ;;  %v15448_v50 = vadd.f32 %v15415_v2, %v2418_v11 }
 0x2b2   : > { %12192 = vmatmul.mubr.msk.bf16.gmra.mrb[172].mxu1 %vm592_vm0, %v14628_v52 }
 0x2b3   : > { %v1936_v55 = vpack.c.bf16 %v15445_v8, %v15439_v46  ;;  %12322 = vmatpush3.bf16.xpose.msra.mxu0 %v3769_v38  ;;  %12195 = vmatprep.mubr.msk.bf16.mxu1 %vm592_vm0, %v14640_v23 }
 0x2b4   : > { %13119 = vmatprep.subr.msk.bf16.mxu0 %vm3568_vm1, %v15224_v9 }
 0x2b5   : > { %v11969_v0 = vpop.f32.mrb[68].mxu1  ;;  %v12077_v12 = vpop.f32.mrb[68].mxu0 }
 0x2b6   : > { %v15467_v17 = vadd.f32 %v12077_v12, %v15415_v2  ;;  %v1825_v11 = vpop.f32.mrb[69].mxu1  ;;  %v2431_v41 = vpop.f32.mrb[69].mxu0  ;;  %v15473_v38 = vadd.f32 %v11969_v0, %v15424_v53 }
 0x2b7   : > { %v15470_v47 = vadd.f32 %v15415_v2, %v2431_v41  ;;  %v11970_v46 = vpop.f32.mrb[70].mxu1  ;;  %v12078_v8 = vpop.f32.mrb[70].mxu0  ;;  %v15482_v12 = vadd.f32 %v15424_v53, %v1825_v11 }
 0x2b8   : > { %20416 = vst [vmem:[#allocation39_spill] sm:$0xff] %v15467_v17  ;;  %v15476_v51 = vadd.f32 %v11970_v46, %v15424_v53  ;;  %v15479_v62 = vadd.f32 %v12078_v8, %v15415_v2  ;;  %v1828_v49 = vpop.f32.mrb[71].mxu1  ;;  %v2434_v33 = vpop.f32.mrb[71].mxu0  ;;  %v20419_v8 = vpack.c.bf16 %v15063_v21, %v15060_v7  ;;  %v20420_v46 = vpack.c.bf16 %v15103_v35, %v15100_v24 }
 0x2b9   : > { %20417 = vst [vmem:[#allocation40_spill] sm:$0xff] %v15470_v47  ;;  %v15485_v43 = vadd.f32 %v15424_v53, %v1828_v49  ;;  %v15488_v41 = vadd.f32 %v15415_v2, %v2434_v33  ;;  %v3938_v49 = vsel %vm3568_vm1, %v15224_v9, 0 }
 0x2ba   : > { %20418 = vst [vmem:[#allocation41_spill] sm:$0xff] %v15479_v62  ;;  %12324 = vmatmul.mubr.msk.bf16.vlgmr.msra.gmra.mrb[168].mxu0 %vm3568_vm1, %v20419_v8  ;;  %12196 = vmatmul.mubr.msk.bf16.gmra.mrb[176].mxu1 %vm592_vm0, %v14652_v19 }
 0x2bb   : > { %12327 = vmatprep.mubr.msk.bf16.mxu0 %vm3568_vm1, %v20420_v46  ;;  %12348 = vmatpush3.bf16.xpose.msra.mxu0 %v3938_v49 }
 0x2bc   : > { %12199 = vmatprep.mubr.msk.bf16.mxu1 %vm592_vm0, %v14664_v18  ;;  %13120 = vmatprep.subr.msk.bf16.mxu0 %vm3568_vm1, %v15218_v61 }
 0x2bd   : > { %v11973_v7 = vpop.f32.mrb[72].mxu1  ;;  %v12081_v21 = vpop.f32.mrb[72].mxu0 }
 0x2be   : > { %v15515_v9 = vadd.f32 %v11973_v7, %v15424_v53  ;;  %v15518_v8 = vadd.f32 %v12081_v21, %v15415_v2  ;;  %v1841_v11 = vpop.f32.mrb[73].mxu1  ;;  %v2447_v0 = vpop.f32.mrb[73].mxu0 }
 0x2bf   : > { %v15521_v24 = vadd.f32 %v15424_v53, %v1841_v11  ;;  %v15524_v35 = vadd.f32 %v15415_v2, %v2447_v0  ;;  %v11974_v46 = vpop.f32.mrb[74].mxu1  ;;  %v12082_v49 = vpop.f32.mrb[74].mxu0 }
 0x2c0   : > { %20421 = vst [vmem:[#allocation42_spill] sm:$0xff] %v15518_v8  ;;  %v15527_v33 = vadd.f32 %v11974_v46, %v15424_v53  ;;  %v15530_v17 = vadd.f32 %v12082_v49, %v15415_v2  ;;  %v1844_v7 = vpop.f32.mrb[75].mxu1  ;;  %v2450_v62 = vpop.f32.mrb[75].mxu0  ;;  %v20425_v46 = vpack.c.bf16 %v15096_v39, %v15093_v1  ;;  %v3941_v49 = vsel %vm3568_vm1, %v15218_v61, 0 }
 0x2c1   : > { %20422 = vst [vmem:[#allocation43_spill] sm:$0xff] %v15524_v35  ;;  %v15533_v21 = vadd.f32 %v15424_v53, %v1844_v7  ;;  %v15536_v47 = vadd.f32 %v15415_v2, %v2450_v62 }
 0x2c2   : > { %20423 = vst [vmem:[#allocation44_spill] sm:$0xff] %v15530_v17  ;;  %12328 = vmatmul.mubr.msk.bf16.gmra.mrb[172].mxu0 %vm3568_vm1, %v20425_v46  ;;  %12200 = vmatmul.mubr.msk.bf16.gmra.mrb[180].mxu1 %vm592_vm0, %v14676_v10 }
 0x2c3   : > { %20424 = vst [vmem:[#allocation45_spill] sm:$0xff] %v15536_v47  ;;  %12350 = vmatpush3.bf16.xpose.msra.mxu0 %v3941_v49  ;;  %12355 = vmatprep.mubr.msk.bf16.mxu0 %vm3568_vm1, %v1936_v55 }
 0x2c4   : > { %12203 = vmatprep.mubr.msk.bf16.mxu1 %vm592_vm0, %v14688_v27  ;;  %13121 = vmatprep.subr.msk.bf16.mxu0 %vm3568_vm1, %v15249_v3 }
 0x2c5   : > { %v11977_v39 = vpop.f32.mrb[76].mxu1  ;;  %v12085_v1 = vpop.f32.mrb[76].mxu0 }
 0x2c6   : > { %v15560_v46 = vadd.f32 %v11977_v39, %v15424_v53  ;;  %v15563_v61 = vadd.f32 %v12085_v1, %v15415_v2  ;;  %v1857_v11 = vpop.f32.mrb[77].mxu1  ;;  %v2463_v0 = vpop.f32.mrb[77].mxu0 }
 0x2c7   : > { %v15566_v49 = vadd.f32 %v15424_v53, %v1857_v11  ;;  %v15569_v55 = vadd.f32 %v15415_v2, %v2463_v0  ;;  %v11978_v7 = vpop.f32.mrb[78].mxu1  ;;  %v12086_v62 = vpop.f32.mrb[78].mxu0 }
 0x2c8   : > { %20426 = vst [vmem:[#allocation46_spill] sm:$0xff] %v15560_v46  ;;  %20427 = vst [vmem:[#allocation47_spill] sm:$0xff] %v15563_v61  ;;  %v15572_v8 = vadd.f32 %v11978_v7, %v15424_v53  ;;  %v15575_v17 = vadd.f32 %v12086_v62, %v15415_v2  ;;  %v1860_v39 = vpop.f32.mrb[79].mxu1  ;;  %v2466_v35 = vpop.f32.mrb[79].mxu0  ;;  %v3944_v62 = vsel %vm3568_vm1, %v15249_v3, 0 }
 0x2c9   : > { %20428 = vst [vmem:[#allocation48_spill] sm:$0xff] %v15566_v49  ;;  %20429 = vst [vmem:[#allocation49_spill] sm:$0xff] %v15569_v55  ;;  %v15578_v1 = vadd.f32 %v15424_v53, %v1860_v39  ;;  %v15581_v47 = vadd.f32 %v15415_v2, %v2466_v35 }
 0x2ca   : > { %20430 = vst [vmem:[#allocation50_spill] sm:$0xff] %v15572_v8  ;;  %20431 = vst [vmem:[#allocation51_spill] sm:$0xff] %v15575_v17  ;;  %12204 = vmatmul.mubr.msk.bf16.gmra.mrb[184].mxu1 %vm592_vm0, %v14700_v34 }
 0x2cb   : > { %20432 = vst [vmem:[#allocation52_spill] sm:$0xff] %v15578_v1  ;;  %20433 = vst [vmem:[#allocation53_spill] sm:$0xff] %v15581_v47  ;;  %12352 = vmatpush3.bf16.xpose.msra.mxu0 %v3944_v62  ;;  %12207 = vmatprep.mubr.msk.bf16.mxu1 %vm592_vm0, %v14711_v28 }
 0x2cc   : > { %13122 = vmatprep.subr.msk.bf16.mxu0 %vm3568_vm1, %v15243_v15 }
 0x2cd   : > { %v11981_v35 = vpop.f32.mrb[80].mxu1  ;;  %v12089_v11 = vpop.f32.mrb[80].mxu0 }
 0x2ce   : > { %v15600_v0 = vadd.f32 %v12089_v11, %v15415_v2  ;;  %v1873_v61 = vpop.f32.mrb[81].mxu1  ;;  %v2479_v3 = vpop.f32.mrb[81].mxu0  ;;  %v15606_v62 = vadd.f32 %v11981_v35, %v15424_v53 }
 0x2cf   : > { %v15603_v17 = vadd.f32 %v15415_v2, %v2479_v3  ;;  %v11982_v7 = vpop.f32.mrb[82].mxu1  ;;  %v12090_v46 = vpop.f32.mrb[82].mxu0  ;;  %v15615_v11 = vadd.f32 %v15424_v53, %v1873_v61 }
 0x2d0   : > { %20434 = vst [vmem:[#allocation54_spill] sm:$0xff] %v15600_v0  ;;  %v15609_v39 = vadd.f32 %v11982_v7, %v15424_v53  ;;  %v15612_v55 = vadd.f32 %v12090_v46, %v15415_v2  ;;  %v1876_v47 = vpop.f32.mrb[83].mxu1  ;;  %v2482_v8 = vpop.f32.mrb[83].mxu0  ;;  %v3947_v46 = vsel %vm3568_vm1, %v15243_v15, 0 }
 0x2d1   : > { %20435 = vst [vmem:[#allocation55_spill] sm:$0xff] %v15603_v17  ;;  %v15618_v49 = vadd.f32 %v15424_v53, %v1876_v47  ;;  %v15621_v3 = vadd.f32 %v15415_v2, %v2482_v8 }
 0x2d2   : > { %20436 = vst [vmem:[#allocation56_spill] sm:$0xff] %v15612_v55  ;;  %12208 = vmatmul.mubr.msk.bf16.gmra.mrb[188].mxu1 %vm592_vm0, %v14720_v57 }
 0x2d3   : > { %20437 = vst [vmem:[#allocation57_spill] sm:$0xff] %v15621_v3  ;;  %v1944_v61 = vpack.c.bf16 %v15618_v49, %v15615_v11  ;;  %12354 = vmatpush3.bf16.xpose.msra.mxu0 %v3947_v46  ;;  %12251 = vmatprep.mubr.msk.bf16.mxu1 %vm592_vm0, %v14524_v6 }
 0x2d4   : > { %13127 = vmatprep.subr.msk.bf16.mxu0 %vm3568_vm1, %v15326_v63 }
 0x2d5   : > { %v11985_v8 = vpop.f32.mrb[84].mxu1  ;;  %v12093_v7 = vpop.f32.mrb[84].mxu0 }
 0x2d6   : > { %v15640_v35 = vadd.f32 %v11985_v8, %v15424_v53  ;;  %v15643_v15 = vadd.f32 %v12093_v7, %v15415_v2  ;;  %v1889_v0 = vpop.f32.mrb[85].mxu1  ;;  %v2495_v49 = vpop.f32.mrb[85].mxu0 }
 0x2d7   : > { %v15646_v11 = vadd.f32 %v15415_v2, %v2495_v49  ;;  %v11986_v46 = vpop.f32.mrb[86].mxu1  ;;  %v12094_v47 = vpop.f32.mrb[86].mxu0  ;;  %v15655_v8 = vadd.f32 %v15424_v53, %v1889_v0 }
 0x2d8   : > { %v15649_v6 = vadd.f32 %v11986_v46, %v15424_v53  ;;  %v15652_v55 = vadd.f32 %v12094_v47, %v15415_v2  ;;  %v1892_v17 = vpop.f32.mrb[87].mxu1  ;;  %v2498_v3 = vpop.f32.mrb[87].mxu0  ;;  %v20438_v47 = vpack.c.bf16 %v15433_v48, %v15430_v22  ;;  %v20439_v46 = vpack.c.bf16 %v15485_v43, %v15482_v12 }
 0x2d9   : > { %v15658_v7 = vadd.f32 %v15424_v53, %v1892_v17  ;;  %v15661_v1 = vadd.f32 %v15415_v2, %v2498_v3  ;;  %v3671_v17 = vsel %vm3568_vm1, %v15269_v5, 0  ;;  %v4116_v22 = vsel %vm3568_vm1, %v15326_v63, 0 }
 0x2da   : > { %12356 = vmatmul.mubr.msk.bf16.vlgmr.msra.gmra.mrb[176].mxu0 %vm3568_vm1, %v20438_v47  ;;  %12252 = vmatmul.mubr.msk.bf16.vlgmr.msra.gmra.mrb[192].mxu1 %vm592_vm0, %v14536_v13 }
 0x2db   : > { %12300 = vmatpush3.bf16.xpose.msra.mxu1 %v3671_v17  ;;  %12359 = vmatprep.mubr.msk.bf16.mxu0 %vm3568_vm1, %v20439_v46 }
 0x2dc   : > { %12380 = vmatpush3.bf16.xpose.msra.mxu0 %v4116_v22  ;;  %12255 = vmatprep.mubr.msk.bf16.mxu1 %vm592_vm0, %v14556_v14 }
 0x2dd   : > { %13108 = vmatprep.subr.msk.bf16.mxu1 %vm3568_vm1, %v15261_v40  ;;  %13128 = vmatprep.subr.msk.bf16.mxu0 %vm3568_vm1, %v15318_v44  ;;  %v11989_v13 = vpop.f32.mrb[88].mxu1  ;;  %v12097_v5 = vpop.f32.mrb[88].mxu0 }
 0x2de   : > { %v15692_v48 = vadd.f32 %v11989_v13, %v15424_v53  ;;  %v15695_v43 = vadd.f32 %v12097_v5, %v15415_v2  ;;  %v1905_v12 = vpop.f32.mrb[89].mxu1  ;;  %v2511_v63 = vpop.f32.mrb[89].mxu0 }
 0x2df   : > { %v15698_v46 = vadd.f32 %v15424_v53, %v1905_v12  ;;  %v15701_v14 = vadd.f32 %v15415_v2, %v2511_v63  ;;  %v11990_v47 = vpop.f32.mrb[90].mxu1  ;;  %v12098_v17 = vpop.f32.mrb[90].mxu0  ;;  %v4119_v63 = vsel %vm3568_vm1, %v15318_v44, 0 }
 0x2e0   : > { %20440 = vst [vmem:[#allocation58_spill] sm:$0xff] %v15695_v43  ;;  %v15704_v22 = vadd.f32 %v11990_v47, %v15424_v53  ;;  %v15707_v3 = vadd.f32 %v12098_v17, %v15415_v2  ;;  %v1908_v13 = vpop.f32.mrb[91].mxu1  ;;  %v2514_v49 = vpop.f32.mrb[91].mxu0  ;;  %v20444_v47 = vpack.c.bf16 %v15476_v51, %v15473_v38  ;;  %v3674_v17 = vsel %vm3568_vm1, %v15261_v40, 0 }
 0x2e1   : > { %20441 = vst [vmem:[#allocation59_spill] sm:$0xff] %v15701_v14  ;;  %v15710_v5 = vadd.f32 %v15424_v53, %v1908_v13  ;;  %v15713_v0 = vadd.f32 %v15415_v2, %v2514_v49 }
 0x2e2   : > { %20442 = vst [vmem:[#allocation60_spill] sm:$0xff] %v15707_v3  ;;  %12360 = vmatmul.mubr.msk.bf16.gmra.mrb[180].mxu0 %vm3568_vm1, %v20444_v47  ;;  %12256 = vmatmul.mubr.msk.bf16.gmra.mrb[196].mxu1 %vm592_vm0, %v14578_v30 }
 0x2e3   : > { %20443 = vst [vmem:[#allocation61_spill] sm:$0xff] %v15713_v0  ;;  %12302 = vmatpush3.bf16.xpose.msra.mxu1 %v3674_v17  ;;  %12387 = vmatprep.mubr.msk.bf16.mxu0 %vm3568_vm1, %v1944_v61 }
 0x2e4   : > { %12382 = vmatpush3.bf16.xpose.msra.mxu0 %v4119_v63  ;;  %12259 = vmatprep.mubr.msk.bf16.mxu1 %vm592_vm0, %v14592_v54 }
 0x2e5   : > { %13109 = vmatprep.subr.msk.bf16.mxu1 %vm3568_vm1, %v15296_v45  ;;  %13129 = vmatprep.subr.msk.bf16.mxu0 %vm3568_vm1, %v15352_v60  ;;  %v11993_v30 = vpop.f32.mrb[92].mxu1  ;;  %v12101_v40 = vpop.f32.mrb[92].mxu0 }
 0x2e6   : > { %v15741_v51 = vadd.f32 %v11993_v30, %v15424_v53  ;;  %v15744_v38 = vadd.f32 %v12101_v40, %v15415_v2  ;;  %v1921_v44 = vpop.f32.mrb[93].mxu1  ;;  %v2527_v61 = vpop.f32.mrb[93].mxu0 }
 0x2e7   : > { %v15747_v63 = vadd.f32 %v15424_v53, %v1921_v44  ;;  %v15750_v54 = vadd.f32 %v15415_v2, %v2527_v61  ;;  %v11994_v47 = vpop.f32.mrb[94].mxu1  ;;  %v12102_v17 = vpop.f32.mrb[94].mxu0 }
 0x2e8   : > { %20445 = vst [vmem:[#allocation62_spill] sm:$0xff] %v15744_v38  ;;  %v15753_v13 = vadd.f32 %v11994_v47, %v15424_v53  ;;  %v15756_v12 = vadd.f32 %v12102_v17, %v15415_v2  ;;  %v1924_v30 = vpop.f32.mrb[95].mxu1  ;;  %v2530_v49 = vpop.f32.mrb[95].mxu0  ;;  %v3677_v47 = vsel %vm3568_vm1, %v15296_v45, 0  ;;  %v15787_v45 = vld [vmem:[%s20054_s8 + $0x1] ss:$0 sm:$0xff] }
 0x2e9   : > { %20446 = vst [vmem:[#allocation63_spill] sm:$0xff] %v15750_v54  ;;  %v15759_v40 = vadd.f32 %v15424_v53, %v1924_v30  ;;  %v15762_v43 = vadd.f32 %v15415_v2, %v2530_v49  ;;  %v4122_v2 = vsel %vm3568_vm1, %v15352_v60, 0  ;;  %v15792_v60 = vld [vmem:[%s20054_s8 + $0x2] ss:$0 sm:$0xff] }
 0x2ea   : > { %20447 = vst [vmem:[#allocation64_spill] sm:$0xff] %v15756_v12  ;;  %12260 = vmatmul.mubr.msk.bf16.gmra.mrb[200].mxu1 %vm592_vm0, %v14604_v56 }
 0x2eb   : > { %20448 = vst [vmem:[#allocation65_spill] sm:$0xff] %v15762_v43  ;;  %12304 = vmatpush3.bf16.xpose.msra.mxu1 %v3677_v47  ;;  %12263 = vmatprep.mubr.msk.bf16.mxu1 %vm592_vm0, %v14616_v42 }
 0x2ec   : > { %12384 = vmatpush3.bf16.xpose.msra.mxu0 %v4122_v2  ;;  %13110 = vmatprep.subr.msk.bf16.mxu1 %vm3568_vm1, %v15288_v26 }
 0x2ed   : > { %13130 = vmatprep.subr.msk.bf16.mxu0 %vm3568_vm1, %v15349_v32  ;;  %v12037_v56 = vpop.f32.mrb[96].mxu1  ;;  %v12145_v49 = vpop.f32.mrb[96].mxu0 }
 0x2ee   : > { %v2213_v42 = vpop.f32.mrb[97].mxu1  ;;  %v2819_v30 = vpop.f32.mrb[97].mxu0  ;;  %v2222_v61 = vadd.f32 %v12037_v56, %v15787_v45  ;;  %v2828_v53 = vadd.f32 %v12145_v49, %v15792_v60  ;;  %v3680_v56 = vsel %vm3568_vm1, %v15288_v26, 0 }
 0x2ef   : > { %v12038_v47 = vpop.f32.mrb[98].mxu1  ;;  %v12146_v2 = vpop.f32.mrb[98].mxu0  ;;  %v2214_v54 = vadd.f32 %v15787_v45, %v2213_v42  ;;  %v2820_v43 = vadd.f32 %v15792_v60, %v2819_v30  ;;  %v4125_v42 = vsel %vm3568_vm1, %v15349_v32, 0 }
 0x2f0   : > { %v2225_v44 = vadd.f32 %v12038_v47, %v15787_v45  ;;  %v2831_v17 = vadd.f32 %v12146_v2, %v15792_v60  ;;  %v2216_v38 = vpop.f32.mrb[99].mxu1  ;;  %v2822_v12 = vpop.f32.mrb[99].mxu0 }
 0x2f1   : > { %v2217_v3 = vadd.f32 %v15787_v45, %v2216_v38  ;;  %v2823_v14 = vadd.f32 %v15792_v60, %v2822_v12 }
 0x2f2   : > { %v15802_v0 = vpack.c.bf16 %v2831_v17, %v2828_v53  ;;  %12264 = vmatmul.mubr.msk.bf16.gmra.mrb[204].mxu1 %vm592_vm0, %v14628_v52  ;;  %v15808_v49 = vpack.c.bf16 %v2225_v44, %v2222_v61 }
 0x2f3   : > { %v15810_v47 = vpack.c.bf16 %v2823_v14, %v2820_v43  ;;  %12306 = vmatpush3.bf16.xpose.msra.mxu1 %v3680_v56  ;;  %12267 = vmatprep.mubr.msk.bf16.mxu1 %vm592_vm0, %v14640_v23  ;;  %v15816_v12 = vpack.c.bf16 %v2217_v3, %v2214_v54 }
 0x2f4   : > { %20449 = vst [vmem:[#allocation66_spill] sm:$0xff] %v15802_v0  ;;  %20450 = vst [vmem:[#allocation67_spill] sm:$0xff] %v15808_v49  ;;  %12386 = vmatpush3.bf16.xpose.msra.mxu0 %v4125_v42  ;;  %13115 = vmatprep.subr.msk.bf16.mxu1 %vm3568_vm1, %v15382_v25 }
 0x2f5   : > { %20451 = vst [vmem:[#allocation68_spill] sm:$0xff] %v15810_v47  ;;  %20452 = vst [vmem:[#allocation69_spill] sm:$0xff] %v15816_v12  ;;  %v12041_v52 = vpop.f32.mrb[100].mxu1  ;;  %v12149_v38 = vpop.f32.mrb[100].mxu0  ;;  %v20546_v47 = vld [vmem:[#allocation42_spill] sm:$0xff] }
 0x2f6   : > { %v2229_v26 = vpop.f32.mrb[101].mxu1  ;;  %v2835_v44 = vpop.f32.mrb[101].mxu0  ;;  %v2238_v14 = vadd.f32 %v12041_v52, %v15787_v45  ;;  %v2844_v17 = vadd.f32 %v12149_v38, %v15792_v60 }
 0x2f7   : > { %v12042_v61 = vpop.f32.mrb[102].mxu1  ;;  %v12150_v43 = vpop.f32.mrb[102].mxu0  ;;  %v2230_v53 = vadd.f32 %v15787_v45, %v2229_v26  ;;  %v2836_v30 = vadd.f32 %v15792_v60, %v2835_v44  ;;  %v20458_v44 = vpack.c.bf16 %v15658_v7, %v15655_v8 }
 0x2f8   : > { %v2241_v32 = vadd.f32 %v12042_v61, %v15787_v45  ;;  %v2847_v23 = vadd.f32 %v12150_v43, %v15792_v60  ;;  %v2232_v3 = vpop.f32.mrb[103].mxu1  ;;  %v2838_v54 = vpop.f32.mrb[103].mxu0  ;;  %v20456_v61 = vpack.c.bf16 %v15609_v39, %v15606_v62 }
 0x2f9   : > { %v2233_v2 = vadd.f32 %v15787_v45, %v2232_v3  ;;  %v2839_v56 = vadd.f32 %v15792_v60, %v2838_v54 }
 0x2fa   : > { %v15828_v42 = vpack.c.bf16 %v2847_v23, %v2844_v17  ;;  %12268 = vmatmul.mubr.msk.bf16.gmra.mrb[208].mxu1 %vm592_vm0, %v14652_v19  ;;  %v15832_v52 = vpack.c.bf16 %v2241_v32, %v2238_v14 }
 0x2fb   : > { %v15834_v38 = vpack.c.bf16 %v2839_v56, %v2836_v30  ;;  %12388 = vmatmul.mubr.msk.bf16.vlgmr.msra.gmra.mrb[184].mxu0 %vm3568_vm1, %v20456_v61  ;;  %12271 = vmatprep.mubr.msk.bf16.mxu1 %vm592_vm0, %v14664_v18  ;;  %v15842_v26 = vpack.c.bf16 %v2233_v2, %v2230_v53 }
 0x2fc   : > { %20453 = vst [vmem:[#allocation70_spill] sm:$0xff] %v15828_v42  ;;  %20454 = vst [vmem:[#allocation71_spill] sm:$0xff] %v15832_v52  ;;  %12391 = vmatprep.mubr.msk.bf16.mxu0 %vm3568_vm1, %v20458_v44  ;;  %v20559_v52 = vld [vmem:[#allocation3_spill] sm:$0xff] }
 0x2fd   : > { %20455 = vst [vmem:[#allocation72_spill] sm:$0xff] %v15834_v38  ;;  %20457 = vst [vmem:[#allocation73_spill] sm:$0xff] %v15842_v26  ;;  %v12045_v19 = vpop.f32.mrb[104].mxu1  ;;  %v12153_v43 = vpop.f32.mrb[104].mxu0 }
 0x2fe   : > { %v2254_v14 = vadd.f32 %v12045_v19, %v15787_v45  ;;  %v2860_v17 = vadd.f32 %v12153_v43, %v15792_v60  ;;  %v2245_v32 = vpop.f32.mrb[105].mxu1  ;;  %v2851_v39 = vpop.f32.mrb[105].mxu0  ;;  %v20462_v19 = vpack.c.bf16 %v15649_v6, %v15640_v35 }
 0x2ff   : > { %v2246_v62 = vadd.f32 %v15787_v45, %v2245_v32  ;;  %v2852_v23 = vadd.f32 %v15792_v60, %v2851_v39  ;;  %v12046_v18 = vpop.f32.mrb[106].mxu1  ;;  %v12154_v3 = vpop.f32.mrb[106].mxu0 }
 0x300   : > { %v2257_v54 = vadd.f32 %v12046_v18, %v15787_v45  ;;  %v2863_v8 = vadd.f32 %v12154_v3, %v15792_v60  ;;  %v2248_v7 = vpop.f32.mrb[107].mxu1  ;;  %v2854_v53 = vpop.f32.mrb[107].mxu0 }
 0x301   : > { %v2249_v30 = vadd.f32 %v15787_v45, %v2248_v7  ;;  %v2855_v2 = vadd.f32 %v15792_v60, %v2854_v53 }
 0x302   : > { %v15856_v56 = vpack.c.bf16 %v2863_v8, %v2860_v17  ;;  %12272 = vmatmul.mubr.msk.bf16.gmra.mrb[212].mxu1 %vm592_vm0, %v14676_v10  ;;  %v15860_v61 = vpack.c.bf16 %v2257_v54, %v2254_v14  ;;  %v20464_v17 = vpack.c.bf16 %v15448_v50, %v15442_v16 }
 0x303   : > { %v15862_v44 = vpack.c.bf16 %v2855_v2, %v2852_v23  ;;  %12392 = vmatmul.mubr.msk.bf16.gmra.mrb[188].mxu0 %vm3568_vm1, %v20462_v19  ;;  %12275 = vmatprep.mubr.msk.bf16.mxu1 %vm592_vm0, %v14688_v27  ;;  %v15870_v43 = vpack.c.bf16 %v2249_v30, %v2246_v62 }
 0x304   : > { %20459 = vst [vmem:[#allocation74_spill] sm:$0xff] %v15856_v56  ;;  %20460 = vst [vmem:[#allocation75_spill] sm:$0xff] %v15860_v61  ;;  %12419 = vmatprep.mubr.msk.bf16.mxu0 %vm3568_vm1, %v20464_v17 }
 0x305   : > { %20461 = vst [vmem:[#allocation76_spill] sm:$0xff] %v15862_v44  ;;  %20463 = vst [vmem:[#allocation77_spill] sm:$0xff] %v15870_v43  ;;  %v12049_v10 = vpop.f32.mrb[108].mxu1  ;;  %v12157_v14 = vpop.f32.mrb[108].mxu0 }
 0x306   : > { %v2270_v32 = vadd.f32 %v12049_v10, %v15787_v45  ;;  %v2876_v39 = vadd.f32 %v12157_v14, %v15792_v60  ;;  %v2261_v23 = vpop.f32.mrb[109].mxu1  ;;  %v2867_v35 = vpop.f32.mrb[109].mxu0 }
 0x307   : > { %v2262_v6 = vadd.f32 %v15787_v45, %v2261_v23  ;;  %v2868_v18 = vadd.f32 %v15792_v60, %v2867_v35  ;;  %v12050_v27 = vpop.f32.mrb[110].mxu1  ;;  %v12158_v62 = vpop.f32.mrb[110].mxu0 }
 0x308   : > { %v2273_v3 = vadd.f32 %v12050_v27, %v15787_v45  ;;  %v2879_v16 = vadd.f32 %v12158_v62, %v15792_v60  ;;  %v2264_v50 = vpop.f32.mrb[111].mxu1  ;;  %v2870_v54 = vpop.f32.mrb[111].mxu0 }
 0x309   : > { %v2265_v8 = vadd.f32 %v15787_v45, %v2264_v50  ;;  %v2871_v7 = vadd.f32 %v15792_v60, %v2870_v54 }
 0x30a   : > { %v15884_v53 = vpack.c.bf16 %v2879_v16, %v2876_v39  ;;  %12276 = vmatmul.mubr.msk.bf16.gmra.mrb[216].mxu1 %vm592_vm0, %v14700_v34  ;;  %v15888_v30 = vpack.c.bf16 %v2273_v3, %v2270_v32 }
 0x30b   : > { %v15890_v2 = vpack.c.bf16 %v2871_v7, %v2868_v18  ;;  %12279 = vmatprep.mubr.msk.bf16.mxu1 %vm592_vm0, %v14711_v28  ;;  %v15894_v19 = vpack.c.bf16 %v2265_v8, %v2262_v6 }
 0x30c   : > { %20465 = vst [vmem:[#allocation78_spill] sm:$0xff] %v15884_v53  ;;  %20466 = vst [vmem:[#allocation79_spill] sm:$0xff] %v15888_v30  ;;  %v20491_v53 = vld [vmem:[#allocation21_spill] sm:$0xff] }
 0x30d   : > { %20467 = vst [vmem:[#allocation80_spill] sm:$0xff] %v15890_v2  ;;  %20468 = vst [vmem:[#allocation81_spill] sm:$0xff] %v15894_v19  ;;  %v12053_v17 = vpop.f32.mrb[112].mxu1  ;;  %v12161_v10 = vpop.f32.mrb[112].mxu0 }
 0x30e   : > { %v2286_v14 = vadd.f32 %v12053_v17, %v15787_v45  ;;  %v2892_v23 = vadd.f32 %v12161_v10, %v15792_v60  ;;  %v2277_v39 = vpop.f32.mrb[113].mxu1  ;;  %v2883_v35 = vpop.f32.mrb[113].mxu0  ;;  %v20472_v17 = vpack.c.bf16 %v15007_v20, %v14999_v58 }
 0x30f   : > { %v12054_v27 = vpop.f32.mrb[114].mxu1  ;;  %v12162_v62 = vpop.f32.mrb[114].mxu0  ;;  %v2278_v28 = vadd.f32 %v15787_v45, %v2277_v39  ;;  %v2884_v6 = vadd.f32 %v15792_v60, %v2883_v35 }
 0x310   : > { %v2289_v34 = vadd.f32 %v12054_v27, %v15787_v45  ;;  %v2895_v32 = vadd.f32 %v12162_v62, %v15792_v60  ;;  %v2280_v18 = vpop.f32.mrb[115].mxu1  ;;  %v2886_v3 = vpop.f32.mrb[115].mxu0 }
 0x311   : > { %v2281_v16 = vadd.f32 %v15787_v45, %v2280_v18  ;;  %v2887_v50 = vadd.f32 %v15792_v60, %v2886_v3 }
 0x312   : > { %v15904_v54 = vpack.c.bf16 %v2895_v32, %v2892_v23  ;;  %12280 = vmatmul.mubr.msk.bf16.gmra.mrb[220].mxu1 %vm592_vm0, %v14720_v57  ;;  %v15908_v8 = vpack.c.bf16 %v2289_v34, %v2286_v14 }
 0x313   : > { %v15910_v7 = vpack.c.bf16 %v2887_v50, %v2884_v6  ;;  %12307 = vmatprep.mubr.msk.bf16.mxu1 %vm3568_vm1, %v20472_v17  ;;  %v15916_v10 = vpack.c.bf16 %v2281_v16, %v2278_v28  ;;  %v20475_v17 = vld [vmem:[#allocation7_spill] sm:$0xff] }
 0x314   : > { %20469 = vst [vmem:[#allocation82_spill] sm:$0xff] %v15904_v54  ;;  %20470 = vst [vmem:[#allocation83_spill] sm:$0xff] %v15908_v8  ;;  %v20481_v54 = vld [vmem:[#allocation11_spill] sm:$0xff]  ;;  %v20549_v8 = vld [vmem:[#allocation49_spill] sm:$0xff] }
 0x315   : > { %20471 = vst [vmem:[#allocation84_spill] sm:$0xff] %v15910_v7  ;;  %20473 = vst [vmem:[#allocation85_spill] sm:$0xff] %v15916_v10  ;;  %v12057_v39 = vpop.f32.mrb[116].mxu1  ;;  %v12165_v35 = vpop.f32.mrb[116].mxu0  ;;  %v20533_v7 = vld [vmem:[#allocation54_spill] sm:$0xff] }
 0x316   : > { %v2302_v27 = vadd.f32 %v12057_v39, %v15787_v45  ;;  %v2908_v23 = vadd.f32 %v12165_v35, %v15792_v60  ;;  %v2293_v62 = vpop.f32.mrb[117].mxu1  ;;  %v2899_v32 = vpop.f32.mrb[117].mxu0  ;;  %v20476_v39 = vld [vmem:[#allocation6_spill] sm:$0xff] }
 0x317   : > { %v2294_v57 = vadd.f32 %v15787_v45, %v2293_v62  ;;  %v2900_v14 = vadd.f32 %v15792_v60, %v2899_v32  ;;  %v12058_v34 = vpop.f32.mrb[118].mxu1  ;;  %v12166_v18 = vpop.f32.mrb[118].mxu0  ;;  %v20477_v35 = vpack.c.bf16 %v20475_v17, %v20476_v39  ;;  %v3849_v62 = vsel %vm3568_vm1, %v15382_v25, 0 }
 0x318   : > { %v2305_v58 = vadd.f32 %v12058_v34, %v15787_v45  ;;  %v2911_v20 = vadd.f32 %v12166_v18, %v15792_v60  ;;  %v2296_v3 = vpop.f32.mrb[119].mxu1  ;;  %v2902_v28 = vpop.f32.mrb[119].mxu0  ;;  %v20480_v18 = vld [vmem:[#allocation13_spill] sm:$0xff] }
 0x319   : > { %v2297_v6 = vadd.f32 %v15787_v45, %v2296_v3  ;;  %v2903_v16 = vadd.f32 %v15792_v60, %v2902_v28  ;;  %v20482_v3 = vpack.c.bf16 %v20480_v18, %v20481_v54 }
 0x31a   : > { %v15926_v50 = vpack.c.bf16 %v2911_v20, %v2908_v23  ;;  %12308 = vmatmul.mubr.msk.bf16.vlgmr.msra.gmra.mrb[224].mxu1 %vm3568_vm1, %v20477_v35  ;;  %v15934_v32 = vpack.c.bf16 %v2305_v58, %v2302_v27 }
 0x31b   : > { %v15936_v34 = vpack.c.bf16 %v2903_v16, %v2900_v14  ;;  %12332 = vmatpush3.bf16.xpose.msra.mxu1 %v3849_v62  ;;  %12311 = vmatprep.mubr.msk.bf16.mxu1 %vm3568_vm1, %v20482_v3  ;;  %v15942_v23 = vpack.c.bf16 %v2297_v6, %v2294_v57 }
 0x31c   : > { %20474 = vst [vmem:[#allocation86_spill] sm:$0xff] %v15926_v50  ;;  %20478 = vst [vmem:[#allocation7_spill] sm:$0xff] %v15934_v32  ;;  %13116 = vmatprep.subr.msk.bf16.mxu1 %vm3568_vm1, %v15371_v4  ;;  %v20486_v50 = vld [vmem:[#allocation10_spill] sm:$0xff] }
 0x31d   : > { %20479 = vst [vmem:[#allocation6_spill] sm:$0xff] %v15936_v34  ;;  %20483 = vst [vmem:[#allocation13_spill] sm:$0xff] %v15942_v23  ;;  %v12061_v20 = vpop.f32.mrb[120].mxu1  ;;  %v12169_v28 = vpop.f32.mrb[120].mxu0 }
 0x31e   : > { %v2318_v17 = vadd.f32 %v12061_v20, %v15787_v45  ;;  %v2924_v25 = vadd.f32 %v12169_v28, %v15792_v60  ;;  %v2309_v27 = vpop.f32.mrb[121].mxu1  ;;  %v2915_v14 = vpop.f32.mrb[121].mxu0  ;;  %v20485_v28 = vld [vmem:[#allocation12_spill] sm:$0xff] }
 0x31f   : > { %v2310_v58 = vadd.f32 %v15787_v45, %v2309_v27  ;;  %v2916_v16 = vadd.f32 %v15792_v60, %v2915_v14  ;;  %v12062_v54 = vpop.f32.mrb[122].mxu1  ;;  %v12170_v39 = vpop.f32.mrb[122].mxu0  ;;  %v20487_v34 = vpack.c.bf16 %v20485_v28, %v20486_v50  ;;  %v3852_v27 = vsel %vm3568_vm1, %v15371_v4, 0 }
 0x320   : > { %v2321_v57 = vadd.f32 %v12062_v54, %v15787_v45  ;;  %v2927_v6 = vadd.f32 %v12170_v39, %v15792_v60  ;;  %v2312_v35 = vpop.f32.mrb[123].mxu1  ;;  %v2918_v62 = vpop.f32.mrb[123].mxu0  ;;  %v20490_v39 = vld [vmem:[#allocation23_spill] sm:$0xff] }
 0x321   : > { %v2313_v18 = vadd.f32 %v15787_v45, %v2312_v35  ;;  %v2919_v3 = vadd.f32 %v15792_v60, %v2918_v62  ;;  %v20492_v35 = vpack.c.bf16 %v20490_v39, %v20491_v53 }
 0x322   : > { %v15954_v20 = vpack.c.bf16 %v2927_v6, %v2924_v25  ;;  %12312 = vmatmul.mubr.msk.bf16.gmra.mrb[228].mxu1 %vm3568_vm1, %v20487_v34  ;;  %v15962_v14 = vpack.c.bf16 %v2321_v57, %v2318_v17 }
 0x323   : > { %v15964_v54 = vpack.c.bf16 %v2919_v3, %v2916_v16  ;;  %12334 = vmatpush3.bf16.xpose.msra.mxu1 %v3852_v27  ;;  %12339 = vmatprep.mubr.msk.bf16.mxu1 %vm3568_vm1, %v20492_v35  ;;  %v15970_v25 = vpack.c.bf16 %v2313_v18, %v2310_v58 }
 0x324   : > { %20484 = vst [vmem:[#allocation11_spill] sm:$0xff] %v15954_v20  ;;  %20488 = vst [vmem:[#allocation12_spill] sm:$0xff] %v15962_v14  ;;  %13117 = vmatprep.subr.msk.bf16.mxu1 %vm3568_vm1, %v15408_v36  ;;  %v20503_v14 = vld [vmem:[#allocation27_spill] sm:$0xff] }
 0x325   : > { %20489 = vst [vmem:[#allocation10_spill] sm:$0xff] %v15964_v54  ;;  %20493 = vst [vmem:[#allocation23_spill] sm:$0xff] %v15970_v25  ;;  %v12065_v50 = vpop.f32.mrb[124].mxu1  ;;  %v12173_v34 = vpop.f32.mrb[124].mxu0 }
 0x326   : > { %v2334_v6 = vadd.f32 %v12065_v50, %v15787_v45  ;;  %v2940_v4 = vadd.f32 %v12173_v34, %v15792_v60  ;;  %v2325_v17 = vpop.f32.mrb[125].mxu1  ;;  %v2931_v16 = vpop.f32.mrb[125].mxu0  ;;  %v3855_v34 = vsel %vm3568_vm1, %v15408_v36, 0  ;;  %v16002_v36 = vld [vmem:[%s20052_s6 + $0x3] ss:$0 sm:$0xff] }
 0x327   : > { %v2326_v57 = vadd.f32 %v15787_v45, %v2325_v17  ;;  %v2932_v62 = vadd.f32 %v15792_v60, %v2931_v16  ;;  %v12066_v53 = vpop.f32.mrb[126].mxu1  ;;  %v12174_v3 = vpop.f32.mrb[126].mxu0 }
 0x328   : > { %v2337_v58 = vadd.f32 %v12066_v53, %v15787_v45  ;;  %v2943_v18 = vadd.f32 %v12174_v3, %v15792_v60  ;;  %v2328_v28 = vpop.f32.mrb[127].mxu1  ;;  %v2934_v27 = vpop.f32.mrb[127].mxu0 }
 0x329   : > { %v2329_v39 = vadd.f32 %v15787_v45, %v2328_v28  ;;  %v2935_v35 = vadd.f32 %v15792_v60, %v2934_v27  ;;  %v15997_v45 = vld [vmem:[%s20052_s6 + $0x2] ss:$0 sm:$0xff] }
 0x32a   : > { %v15982_v50 = vpack.c.bf16 %v2943_v18, %v2940_v4  ;;  %v15986_v17 = vpack.c.bf16 %v2337_v58, %v2334_v6 }
 0x32b   : > { %v15988_v16 = vpack.c.bf16 %v2935_v35, %v2932_v62  ;;  %12336 = vmatpush3.bf16.xpose.msra.mxu1 %v3855_v34  ;;  %v15990_v20 = vpack.c.bf16 %v2329_v39, %v2326_v57 }
 0x32c   : > { %20494 = vst [vmem:[#allocation21_spill] sm:$0xff] %v15982_v50  ;;  %20495 = vst [vmem:[#allocation87_spill] sm:$0xff] %v15986_v17  ;;  %13118 = vmatprep.subr.msk.bf16.mxu1 %vm3568_vm1, %v15401_v59 }
 0x32d   : > { %20496 = vst [vmem:[#allocation88_spill] sm:$0xff] %v15988_v16  ;;  %20497 = vst [vmem:[#allocation89_spill] sm:$0xff] %v15990_v20  ;;  %v12109_v53 = vpop.f32.mrb[128].mxu1  ;;  %v12217_v60 = vpop.f32.mrb[128].mxu0 }
 0x32e   : > { %v2617_v6 = vpop.f32.mrb[129].mxu1  ;;  %v3223_v4 = vpop.f32.mrb[129].mxu0  ;;  %v2626_v3 = vadd.f32 %v12109_v53, %v15997_v45  ;;  %v3232_v58 = vadd.f32 %v12217_v60, %v16002_v36  ;;  %v3858_v53 = vsel %vm3568_vm1, %v15401_v59, 0 }
 0x32f   : > { %v12110_v62 = vpop.f32.mrb[130].mxu1  ;;  %v12218_v57 = vpop.f32.mrb[130].mxu0  ;;  %v2618_v35 = vadd.f32 %v15997_v45, %v2617_v6  ;;  %v3224_v34 = vadd.f32 %v16002_v36, %v3223_v4 }
 0x330   : > { %v2629_v18 = vadd.f32 %v12110_v62, %v15997_v45  ;;  %v3235_v28 = vadd.f32 %v12218_v57, %v16002_v36  ;;  %v2620_v27 = vpop.f32.mrb[131].mxu1  ;;  %v3226_v39 = vpop.f32.mrb[131].mxu0  ;;  %v20498_v57 = vld [vmem:[#allocation33_spill] sm:$0xff] }
 0x331   : > { %v2621_v50 = vadd.f32 %v15997_v45, %v2620_v27  ;;  %v3227_v16 = vadd.f32 %v16002_v36, %v3226_v39 }
 0x332   : > { %v2745_v54 = vpack.c.bf16 %v2629_v18, %v2626_v3  ;;  %v16012_v2 = vpack.c.bf16 %v3235_v28, %v3232_v58 }
 0x333   : > { %v2744_v60 = vpack.c.bf16 %v2621_v50, %v2618_v35  ;;  %v16016_v62 = vpack.c.bf16 %v3227_v16, %v3224_v34  ;;  %12338 = vmatpush3.bf16.xpose.msra.mxu1 %v3858_v53 }
 0x334   : > { %13123 = vmatprep.subr.msk.bf16.mxu1 %vm3568_vm1, %v20498_v57 }
 0x335   : > { %v12113_v6 = vpop.f32.mrb[132].mxu1  ;;  %v12221_v56 = vpop.f32.mrb[132].mxu0  ;;  %13135 = vmatprep.subr.msk.bf16.mxu0 %vm3568_vm1, %v2744_v60  ;;  %v4294_v4 = vsel %vm3568_vm1, %v2744_v60, 0 }
 0x336   : > { %v2633_v27 = vpop.f32.mrb[133].mxu1  ;;  %v3239_v3 = vpop.f32.mrb[133].mxu0  ;;  %12412 = vmatpush3.bf16.xpose.msra.mxu0 %v4294_v4  ;;  %v2642_v59 = vadd.f32 %v12113_v6, %v15997_v45  ;;  %v3248_v50 = vadd.f32 %v12221_v56, %v16002_v36  ;;  %v20499_v6 = vld [vmem:[#allocation22_spill] sm:$0xff]  ;;  %v20500_v56 = vld [vmem:[#allocation20_spill] sm:$0xff] }
 0x337   : > { %v12114_v58 = vpop.f32.mrb[134].mxu1  ;;  %v12222_v18 = vpop.f32.mrb[134].mxu0  ;;  %13136 = vmatprep.subr.msk.bf16.mxu0 %vm3568_vm1, %v2745_v54  ;;  %v2634_v34 = vadd.f32 %v15997_v45, %v2633_v27  ;;  %v3240_v53 = vadd.f32 %v16002_v36, %v3239_v3  ;;  %v20501_v20 = vpack.c.bf16 %v20499_v6, %v20500_v56  ;;  %v20502_v3 = vld [vmem:[#allocation29_spill] sm:$0xff] }
 0x338   : > { %v2645_v16 = vadd.f32 %v12114_v58, %v15997_v45  ;;  %v3251_v28 = vadd.f32 %v12222_v18, %v16002_v36  ;;  %v2636_v39 = vpop.f32.mrb[135].mxu1  ;;  %v3242_v35 = vpop.f32.mrb[135].mxu0  ;;  %v4027_v58 = vsel %vm3568_vm1, %v20498_v57, 0 }
 0x339   : > { %v2637_v60 = vadd.f32 %v15997_v45, %v2636_v39  ;;  %v3243_v4 = vadd.f32 %v16002_v36, %v3242_v35  ;;  %v20504_v39 = vpack.c.bf16 %v20502_v3, %v20503_v14 }
 0x33a   : > { %v16031_v44 = vpack.c.bf16 %v2645_v16, %v2642_v59  ;;  %v16033_v17 = vpack.c.bf16 %v3251_v28, %v3248_v50  ;;  %12340 = vmatmul.mubr.msk.bf16.vlgmr.msra.gmra.mrb[232].mxu1 %vm3568_vm1, %v20501_v20  ;;  %v20505_v59 = vld [vmem:[#allocation32_spill] sm:$0xff]  ;;  %v4297_v28 = vsel %vm3568_vm1, %v2745_v54, 0 }
 0x33b   : > { %v2746_v18 = vpack.c.bf16 %v2637_v60, %v2634_v34  ;;  %v16041_v27 = vpack.c.bf16 %v3243_v4, %v3240_v53  ;;  %12343 = vmatprep.mubr.msk.bf16.mxu1 %vm3568_vm1, %v20504_v39  ;;  %12364 = vmatpush3.bf16.xpose.msra.mxu1 %v4027_v58 }
 0x33c   : > { %13124 = vmatprep.subr.msk.bf16.mxu1 %vm3568_vm1, %v20505_v59 }
 0x33d   : > { %v12117_v50 = vpop.f32.mrb[136].mxu1  ;;  %v12225_v16 = vpop.f32.mrb[136].mxu0 }
 0x33e   : > { %v2658_v20 = vadd.f32 %v12117_v50, %v15997_v45  ;;  %v3264_v57 = vadd.f32 %v12225_v16, %v16002_v36  ;;  %v2649_v35 = vpop.f32.mrb[137].mxu1  ;;  %v3255_v34 = vpop.f32.mrb[137].mxu0  ;;  %12414 = vmatpush3.bf16.xpose.msra.mxu0 %v4297_v28  ;;  %v20506_v28 = vld [vmem:[#allocation28_spill] sm:$0xff] }
 0x33f   : > { %v3256_v53 = vadd.f32 %v16002_v36, %v3255_v34  ;;  %v12118_v14 = vpop.f32.mrb[138].mxu1  ;;  %v12226_v60 = vpop.f32.mrb[138].mxu0  ;;  %13137 = vmatprep.subr.msk.bf16.mxu0 %vm3568_vm1, %v2746_v18  ;;  %v2650_v54 = vadd.f32 %v15997_v45, %v2649_v35  ;;  %v20507_v34 = vld [vmem:[#allocation26_spill] sm:$0xff]  ;;  %v20509_v35 = vpack.c.bf16 %v15533_v21, %v15521_v24 }
 0x340   : > { %v2661_v4 = vadd.f32 %v12118_v14, %v15997_v45  ;;  %v3267_v6 = vadd.f32 %v12226_v60, %v16002_v36  ;;  %v2652_v56 = vpop.f32.mrb[139].mxu1  ;;  %v3258_v58 = vpop.f32.mrb[139].mxu0  ;;  %v20508_v25 = vpack.c.bf16 %v20506_v28, %v20507_v34  ;;  %v4030_v14 = vsel %vm3568_vm1, %v20505_v59, 0 }
 0x341   : > { %v2653_v3 = vadd.f32 %v15997_v45, %v2652_v56  ;;  %v3259_v39 = vadd.f32 %v16002_v36, %v3258_v58 }
 0x342   : > { %v16059_v50 = vpack.c.bf16 %v2661_v4, %v2658_v20  ;;  %v16061_v16 = vpack.c.bf16 %v3267_v6, %v3264_v57  ;;  %12344 = vmatmul.mubr.msk.bf16.gmra.mrb[236].mxu1 %vm3568_vm1, %v20508_v25  ;;  %v20510_v20 = vld [vmem:[#allocation35_spill] sm:$0xff]  ;;  %v4300_v25 = vsel %vm3568_vm1, %v2746_v18, 0 }
 0x343   : > { %v16069_v60 = vpack.c.bf16 %v2653_v3, %v2650_v54  ;;  %v16071_v30 = vpack.c.bf16 %v3259_v39, %v3256_v53  ;;  %12366 = vmatpush3.bf16.xpose.msra.mxu1 %v4030_v14  ;;  %12371 = vmatprep.mubr.msk.bf16.mxu1 %vm3568_vm1, %v20509_v35 }
 0x344   : > { %13125 = vmatprep.subr.msk.bf16.mxu1 %vm3568_vm1, %v20510_v20 }
 0x345   : > { %v12121_v57 = vpop.f32.mrb[140].mxu1  ;;  %v12229_v4 = vpop.f32.mrb[140].mxu0 }
 0x346   : > { %v2674_v6 = vadd.f32 %v12121_v57, %v15997_v45  ;;  %v3280_v59 = vadd.f32 %v12229_v4, %v16002_v36  ;;  %v2665_v56 = vpop.f32.mrb[141].mxu1  ;;  %v3271_v53 = vpop.f32.mrb[141].mxu0  ;;  %12416 = vmatpush3.bf16.xpose.msra.mxu0 %v4300_v25  ;;  %v4033_v4 = vsel %vm3568_vm1, %v20510_v20, 0 }
 0x347   : > { %v2666_v58 = vadd.f32 %v15997_v45, %v2665_v56  ;;  %v3272_v24 = vadd.f32 %v16002_v36, %v3271_v53  ;;  %v12122_v21 = vpop.f32.mrb[142].mxu1  ;;  %v12230_v54 = vpop.f32.mrb[142].mxu0  ;;  %13138 = vmatprep.subr.msk.bf16.mxu0 %vm3568_vm1, %v16031_v44  ;;  %v20511_v53 = vld [vmem:[#allocation34_spill] sm:$0xff] }
 0x348   : > { %v2677_v3 = vadd.f32 %v12122_v21, %v15997_v45  ;;  %v3283_v18 = vadd.f32 %v12230_v54, %v16002_v36  ;;  %v2668_v39 = vpop.f32.mrb[143].mxu1  ;;  %v3274_v28 = vpop.f32.mrb[143].mxu0 }
 0x349   : > { %v2669_v34 = vadd.f32 %v15997_v45, %v2668_v39  ;;  %v3275_v14 = vadd.f32 %v16002_v36, %v3274_v28  ;;  %v4303_v39 = vsel %vm3568_vm1, %v16031_v44, 0 }
 0x34a   : > { %v16090_v35 = vpack.c.bf16 %v2677_v3, %v2674_v6  ;;  %v16092_v57 = vpack.c.bf16 %v3283_v18, %v3280_v59 }
 0x34b   : > { %v16096_v25 = vpack.c.bf16 %v2669_v34, %v2666_v58  ;;  %v16098_v56 = vpack.c.bf16 %v3275_v14, %v3272_v24  ;;  %12368 = vmatpush3.bf16.xpose.msra.mxu1 %v4033_v4 }
 0x34c   : > { %13126 = vmatprep.subr.msk.bf16.mxu1 %vm3568_vm1, %v20511_v53 }
 0x34d   : > { %v12125_v21 = vpop.f32.mrb[144].mxu1  ;;  %v12233_v54 = vpop.f32.mrb[144].mxu0 }
 0x34e   : > { %v2681_v6 = vpop.f32.mrb[145].mxu1  ;;  %v3287_v3 = vpop.f32.mrb[145].mxu0  ;;  %12418 = vmatpush3.bf16.xpose.msra.mxu0 %v4303_v39  ;;  %v2690_v20 = vadd.f32 %v12125_v21, %v15997_v45  ;;  %v3296_v58 = vadd.f32 %v12233_v54, %v16002_v36  ;;  %v4036_v21 = vsel %vm3568_vm1, %v20511_v53, 0 }
 0x34f   : > { %v12126_v59 = vpop.f32.mrb[146].mxu1  ;;  %v12234_v18 = vpop.f32.mrb[146].mxu0  ;;  %v2682_v4 = vadd.f32 %v15997_v45, %v2681_v6  ;;  %v3288_v19 = vadd.f32 %v16002_v36, %v3287_v3  ;;  %v20512_v3 = vpack.c.bf16 %v15436_v37, %v15427_v29 }
 0x350   : > { %v2693_v24 = vadd.f32 %v12126_v59, %v15997_v45  ;;  %v3299_v28 = vadd.f32 %v12234_v18, %v16002_v36  ;;  %v2684_v34 = vpop.f32.mrb[147].mxu1  ;;  %v3290_v14 = vpop.f32.mrb[147].mxu0 }
 0x351   : > { %v2685_v44 = vadd.f32 %v15997_v45, %v2684_v34  ;;  %v3291_v39 = vadd.f32 %v16002_v36, %v3290_v14 }
 0x352   : > { %v2753_v61 = vpack.c.bf16 %v2693_v24, %v2690_v20  ;;  %v16112_v43 = vpack.c.bf16 %v3299_v28, %v3296_v58 }
 0x353   : > { %v2752_v54 = vpack.c.bf16 %v2685_v44, %v2682_v4  ;;  %v16116_v59 = vpack.c.bf16 %v3291_v39, %v3288_v19  ;;  %12370 = vmatpush3.bf16.xpose.msra.mxu1 %v4036_v21  ;;  %v20513_v19 = vld [vmem:[#allocation40_spill] sm:$0xff] }
 0x354   : > { %13131 = vmatprep.subr.msk.bf16.mxu1 %vm3568_vm1, %v15386_v31  ;;  %v20514_v24 = vpack.c.bf16 %v15488_v41, %v20513_v19 }
 0x355   : > { %v12129_v6 = vpop.f32.mrb[148].mxu1  ;;  %v12237_v18 = vpop.f32.mrb[148].mxu0  ;;  %12420 = vmatmul.mubr.msk.bf16.vlgmr.msra.gmra.mrb[192].mxu0 %vm3568_vm1, %v20512_v3  ;;  %13143 = vmatprep.subr.msk.bf16.mxu0 %vm3568_vm1, %v2752_v54  ;;  %v4472_v20 = vsel %vm3568_vm1, %v2752_v54, 0 }
 0x356   : > { %v2697_v58 = vpop.f32.mrb[149].mxu1  ;;  %v3303_v53 = vpop.f32.mrb[149].mxu0  ;;  %12423 = vmatprep.mubr.msk.bf16.mxu0 %vm3568_vm1, %v20514_v24  ;;  %12444 = vmatpush3.bf16.xpose.msra.mxu0 %v4472_v20  ;;  %v2706_v29 = vadd.f32 %v12129_v6, %v15997_v45  ;;  %v3312_v37 = vadd.f32 %v12237_v18, %v16002_v36  ;;  %v20515_v6 = vpack.c.bf16 %v15527_v33, %v15515_v9  ;;  %v4205_v18 = vsel %vm3568_vm1, %v15386_v31, 0  ;;  %v20520_v33 = vld [vmem:[#allocation41_spill] sm:$0xff]  ;;  %v20521_v9 = vld [vmem:[#allocation39_spill] sm:$0xff] }
 0x357   : > { %v12130_v28 = vpop.f32.mrb[150].mxu1  ;;  %v12238_v34 = vpop.f32.mrb[150].mxu0  ;;  %13144 = vmatprep.subr.msk.bf16.mxu0 %vm3568_vm1, %v2753_v61  ;;  %v2698_v21 = vadd.f32 %v15997_v45, %v2697_v58  ;;  %v3304_v41 = vadd.f32 %v16002_v36, %v3303_v53  ;;  %v20516_v53 = vld [vmem:[#allocation52_spill] sm:$0xff]  ;;  %v4475_v31 = vsel %vm3568_vm1, %v2753_v61, 0 }
 0x358   : > { %v2709_v14 = vadd.f32 %v12130_v28, %v15997_v45  ;;  %v3315_v4 = vadd.f32 %v12238_v34, %v16002_v36  ;;  %v2700_v44 = vpop.f32.mrb[151].mxu1  ;;  %v3306_v39 = vpop.f32.mrb[151].mxu0  ;;  %v20517_v28 = vld [vmem:[#allocation48_spill] sm:$0xff] }
 0x359   : > { %v2701_v54 = vadd.f32 %v15997_v45, %v2700_v44  ;;  %v3307_v3 = vadd.f32 %v16002_v36, %v3306_v39  ;;  %v20518_v34 = vpack.c.bf16 %v20516_v53, %v20517_v28 }
 0x35a   : > { %v16139_v20 = vpack.c.bf16 %v2709_v14, %v2706_v29  ;;  %v16141_v19 = vpack.c.bf16 %v3315_v4, %v3312_v37  ;;  %12372 = vmatmul.mubr.msk.bf16.vlgmr.msra.gmra.mrb[240].mxu1 %vm3568_vm1, %v20515_v6  ;;  %v20519_v29 = vld [vmem:[#allocation36_spill] sm:$0xff]  ;;  %v20522_v4 = vpack.c.bf16 %v20520_v33, %v20521_v9 }
 0x35b   : > { %v2754_v24 = vpack.c.bf16 %v2701_v54, %v2698_v21  ;;  %v16149_v58 = vpack.c.bf16 %v3307_v3, %v3304_v41  ;;  %12375 = vmatprep.mubr.msk.bf16.mxu1 %vm3568_vm1, %v20518_v34  ;;  %12396 = vmatpush3.bf16.xpose.msra.mxu1 %v4205_v18  ;;  %v20523_v54 = vld [vmem:[#allocation57_spill] sm:$0xff]  ;;  %v20524_v3 = vld [vmem:[#allocation55_spill] sm:$0xff] }
 0x35c   : > { %13132 = vmatprep.subr.msk.bf16.mxu1 %vm3568_vm1, %v20519_v29  ;;  %v20525_v6 = vpack.c.bf16 %v20523_v54, %v20524_v3 }
 0x35d   : > { %v12133_v37 = vpop.f32.mrb[152].mxu1  ;;  %v12241_v14 = vpop.f32.mrb[152].mxu0  ;;  %12424 = vmatmul.mubr.msk.bf16.gmra.mrb[196].mxu0 %vm3568_vm1, %v20522_v4 }
 0x35e   : > { %v2722_v44 = vadd.f32 %v12133_v37, %v15997_v45  ;;  %v3328_v39 = vadd.f32 %v12241_v14, %v16002_v36  ;;  %v2713_v21 = vpop.f32.mrb[153].mxu1  ;;  %v3319_v41 = vpop.f32.mrb[153].mxu0  ;;  %12446 = vmatpush3.bf16.xpose.msra.mxu0 %v4475_v31  ;;  %12451 = vmatprep.mubr.msk.bf16.mxu0 %vm3568_vm1, %v20525_v6  ;;  %v4208_v6 = vsel %vm3568_vm1, %v20519_v29, 0 }
 0x35f   : > { %v2714_v18 = vadd.f32 %v15997_v45, %v2713_v21  ;;  %v3320_v53 = vadd.f32 %v16002_v36, %v3319_v41  ;;  %v12134_v28 = vpop.f32.mrb[154].mxu1  ;;  %v12242_v34 = vpop.f32.mrb[154].mxu0  ;;  %13145 = vmatprep.subr.msk.bf16.mxu0 %vm3568_vm1, %v2754_v24  ;;  %v20526_v21 = vld [vmem:[#allocation50_spill] sm:$0xff] }
 0x360   : > { %v2725_v61 = vadd.f32 %v12134_v28, %v15997_v45  ;;  %v3331_v37 = vadd.f32 %v12242_v34, %v16002_v36  ;;  %v2716_v14 = vpop.f32.mrb[155].mxu1  ;;  %v3322_v33 = vpop.f32.mrb[155].mxu0  ;;  %v20527_v41 = vld [vmem:[#allocation46_spill] sm:$0xff] }
 0x361   : > { %v2717_v9 = vadd.f32 %v15997_v45, %v2716_v14  ;;  %v3323_v4 = vadd.f32 %v16002_v36, %v3322_v33  ;;  %v20528_v3 = vpack.c.bf16 %v20526_v21, %v20527_v41  ;;  %v20529_v14 = vpack.c.bf16 %v15710_v5, %v15698_v46 }
 0x362   : > { %v16175_v31 = vpack.c.bf16 %v2725_v61, %v2722_v44  ;;  %v16177_v54 = vpack.c.bf16 %v3331_v37, %v3328_v39  ;;  %v20530_v44 = vld [vmem:[#allocation38_spill] sm:$0xff]  ;;  %v4478_v37 = vsel %vm3568_vm1, %v2754_v24, 0 }
 0x363   : > { %12376 = vmatmul.mubr.msk.bf16.gmra.mrb[244].mxu1 %vm3568_vm1, %v20528_v3  ;;  %v16185_v28 = vpack.c.bf16 %v2717_v9, %v2714_v18  ;;  %v16187_v34 = vpack.c.bf16 %v3323_v4, %v3320_v53 }
 0x364   : > { %12398 = vmatpush3.bf16.xpose.msra.mxu1 %v4208_v6  ;;  %12403 = vmatprep.mubr.msk.bf16.mxu1 %vm3568_vm1, %v20529_v14 }
 0x365   : > { %13133 = vmatprep.subr.msk.bf16.mxu1 %vm3568_vm1, %v20530_v44  ;;  %v12137_v39 = vpop.f32.mrb[156].mxu1  ;;  %v12245_v61 = vpop.f32.mrb[156].mxu0 }
 0x366   : > { %v2738_v33 = vadd.f32 %v12137_v39, %v15997_v45  ;;  %v3344_v29 = vadd.f32 %v12245_v61, %v16002_v36  ;;  %v2729_v18 = vpop.f32.mrb[157].mxu1  ;;  %v3335_v53 = vpop.f32.mrb[157].mxu0  ;;  %12448 = vmatpush3.bf16.xpose.msra.mxu0 %v4478_v37  ;;  %v4211_v37 = vsel %vm3568_vm1, %v20530_v44, 0  ;;  %v4481_v44 = vsel %vm3568_vm1, %v16139_v20, 0 }
 0x367   : > { %v2730_v9 = vadd.f32 %v15997_v45, %v2729_v18  ;;  %v3336_v46 = vadd.f32 %v16002_v36, %v3335_v53  ;;  %v12138_v5 = vpop.f32.mrb[158].mxu1  ;;  %v12246_v4 = vpop.f32.mrb[158].mxu0  ;;  %13146 = vmatprep.subr.msk.bf16.mxu0 %vm3568_vm1, %v16139_v20 }
 0x368   : > { %v2741_v21 = vadd.f32 %v12138_v5, %v15997_v45  ;;  %v3347_v24 = vadd.f32 %v12246_v4, %v16002_v36  ;;  %v2732_v41 = vpop.f32.mrb[159].mxu1  ;;  %v3338_v3 = vpop.f32.mrb[159].mxu0  ;;  %v20531_v5 = vld [vmem:[#allocation37_spill] sm:$0xff] }
 0x369   : > { %v2733_v6 = vadd.f32 %v15997_v45, %v2732_v41  ;;  %v3339_v14 = vadd.f32 %v16002_v36, %v3338_v3  ;;  %v16221_v45 = vld [vmem:[%s20050_s4 + $0x3] ss:$0 sm:$0xff] }
 0x36a   : > { %v16206_v39 = vpack.c.bf16 %v2741_v21, %v2738_v33  ;;  %v16208_v61 = vpack.c.bf16 %v3347_v24, %v3344_v29 }
 0x36b   : > { %v16212_v18 = vpack.c.bf16 %v2733_v6, %v2730_v9  ;;  %v16214_v53 = vpack.c.bf16 %v3339_v14, %v3336_v46 }
 0x36c   : > { %12400 = vmatpush3.bf16.xpose.msra.mxu1 %v4211_v37 }
 0x36d   : > { %13134 = vmatprep.subr.msk.bf16.mxu1 %vm3568_vm1, %v20531_v5  ;;  %v12181_v4 = vpop.f32.mrb[160].mxu1  ;;  %v16223_v36 = vpop.f32.mrb[160].mxu0 }
 0x36e   : > { %v3021_v33 = vpop.f32.mrb[161].mxu1  ;;  %v16227_v29 = vpop.f32.mrb[161].mxu0  ;;  %12450 = vmatpush3.bf16.xpose.msra.mxu0 %v4481_v44  ;;  %v5000_v9 = vsel %vm4993_vm2, %v16223_v36, -inf  ;;  %v16236_v24 = vadd.f32 %v12181_v4, %v16221_v45  ;;  %v4214_v4 = vsel %vm3568_vm1, %v20531_v5, 0 }
 0x36f   : > { %v12182_v46 = vpop.f32.mrb[162].mxu1  ;;  %13151 = vmatprep.subr.msk.bf16.mxu0 %vm3568_vm1, %v16016_v62  ;;  %5001 = vmax.xlane.f32.xlu0 %v5000_v9  ;;  %v16233_v21 = vpop.f32.mrb[162].mxu0  ;;  %v3022_v14 = vadd.f32 %v16221_v45, %v3021_v33  ;;  %v4994_v9 = vsel %vm4993_vm2, %v16227_v29, -inf }
 0x370   : > { %v16239_v41 = vadd.f32 %v12182_v46, %v16221_v45  ;;  %v3024_v20 = vpop.f32.mrb[163].mxu1  ;;  %v16241_v3 = vpop.f32.mrb[163].mxu0  ;;  %v5003_v6 = vsel %vm4993_vm2, %v16233_v21, -inf }
 0x371   : > { %v3025_v37 = vadd.f32 %v16221_v45, %v3024_v20  ;;  %5004 = vmax.xlane.f32.xlu1 %v5003_v6  ;;  %v4997_v33 = vsel %vm4993_vm2, %v16241_v3, -inf  ;;  %v20532_v6 = vld [vmem:[#allocation56_spill] sm:$0xff] }
 0x372   : > { %v20534_v42 = vpack.c.bf16 %v20532_v6, %v20533_v7  ;;  %v20543_v38 = vpack.c.bf16 %v16239_v41, %v16236_v24 }
 0x373   : > { %v3148_v46 = vpack.c.bf16 %v3025_v37, %v3022_v14  ;;  %4995 = vmax.xlane.f32.xlu0 %v4994_v9  ;;  %v4650_v14 = vsel %vm3568_vm1, %v16016_v62, 0  ;;  %v20535_v9 = vpack.c.bf16 %v15661_v1, %v15646_v11 }
 0x374   : > { %12402 = vmatpush3.bf16.xpose.msra.mxu1 %v4214_v4 }
 0x375   : > { %13139 = vmatprep.subr.msk.bf16.mxu1 %vm3568_vm1, %v16069_v60  ;;  %v12185_v20 = vpop.f32.mrb[164].mxu1  ;;  %12452 = vmatmul.mubr.msk.bf16.vlgmr.msra.gmra.mrb[200].mxu0 %vm3568_vm1, %v20534_v42  ;;  %v16261_v5 = vpop.f32.mrb[164].mxu0 }
 0x376   : > { %4998 = vmax.xlane.f32.xlu1 %v4997_v33  ;;  %v3037_v37 = vpop.f32.mrb[165].mxu1  ;;  %v16265_v4 = vpop.f32.mrb[165].mxu0  ;;  %12455 = vmatprep.mubr.msk.bf16.mxu0 %vm3568_vm1, %v20535_v9  ;;  %v5012_v7 = vsel %vm4993_vm2, %v16261_v5, -inf  ;;  %v16278_v62 = vadd.f32 %v12185_v20, %v16221_v45 }
 0x377   : > { %12476 = vmatpush3.bf16.xpose.msra.mxu0 %v4650_v14  ;;  %v12186_v6 = vpop.f32.mrb[166].mxu1  ;;  %5013 = vmax.xlane.f32.xlu0 %v5012_v7  ;;  %v16275_v42 = vpop.f32.mrb[166].mxu0  ;;  %v16288_v9 = vadd.f32 %v16221_v45, %v3037_v37  ;;  %v20536_v7 = vpack.c.bf16 %v15704_v22, %v15692_v48  ;;  %v20537_v37 = vpack.c.bf16 %v15759_v40, %v15747_v63  ;;  %v4653_v63 = vsel %vm3568_vm1, %v16012_v2, 0 }
 0x378   : > { %13152 = vmatprep.subr.msk.bf16.mxu0 %vm3568_vm1, %v16012_v2  ;;  %v16281_v33 = vadd.f32 %v12186_v6, %v16221_v45  ;;  %v3040_v1 = vpop.f32.mrb[167].mxu1  ;;  %v16283_v11 = vpop.f32.mrb[167].mxu0  ;;  %v5015_v14 = vsel %vm4993_vm2, %v16275_v42, -inf  ;;  %v4383_v6 = vsel %vm3568_vm1, %v16069_v60, 0  ;;  %v20538_v60 = vpack.c.bf16 %v15652_v55, %v15643_v15 }
 0x379   : > { %v16291_v44 = vadd.f32 %v16221_v45, %v3040_v1  ;;  %v5006_v1 = vsel %vm4993_vm2, %v16265_v4, -inf  ;;  %v5009_v48 = vsel %vm4993_vm2, %v16283_v11, -inf }
 0x37a   : > { %5016 = vmax.xlane.f32.xlu1 %v5015_v14 }
 0x37b   : > { %12404 = vmatmul.mubr.msk.bf16.vlgmr.msra.gmra.mrb[248].mxu1 %vm3568_vm1, %v20536_v7  ;;  %5007 = vmax.xlane.f32.xlu0 %v5006_v1  ;;  %v4386_v1 = vsel %vm3568_vm1, %v16059_v50, 0 }
 0x37c   : > { %12407 = vmatprep.mubr.msk.bf16.mxu1 %vm3568_vm1, %v20537_v37  ;;  %12428 = vmatpush3.bf16.xpose.msra.mxu1 %v4383_v6 }
 0x37d   : > { %13140 = vmatprep.subr.msk.bf16.mxu1 %vm3568_vm1, %v16059_v50  ;;  %v12189_v22 = vpop.f32.mrb[168].mxu1  ;;  %12456 = vmatmul.mubr.msk.bf16.gmra.mrb[204].mxu0 %vm3568_vm1, %v20538_v60  ;;  %v20541_v60 = vld [vmem:[#allocation43_spill] sm:$0xff] }
 0x37e   : > { %5010 = vmax.xlane.f32.xlu1 %v5009_v48  ;;  %v16320_v40 = vadd.f32 %v12189_v22, %v16221_v45  ;;  %v3053_v14 = vpop.f32.mrb[169].mxu1  ;;  %12483 = vmatprep.mubr.msk.bf16.mxu0 %vm3568_vm1, %v3148_v46  ;;  %v20539_v46 = vpack.c.bf16 %v15753_v13, %v15741_v51  ;;  %v20540_v22 = vld [vmem:[#allocation45_spill] sm:$0xff]  ;;  %v4656_v13 = vsel %vm3568_vm1, %v16041_v27, 0 }
 0x37f   : > { %12478 = vmatpush3.bf16.xpose.msra.mxu0 %v4653_v63  ;;  %v16324_v7 = vadd.f32 %v16221_v45, %v3053_v14  ;;  %v12190_v6 = vpop.f32.mrb[170].mxu1  ;;  %v20542_v63 = vpack.c.bf16 %v20540_v22, %v20541_v60  ;;  %v4389_v60 = vsel %vm3568_vm1, %v16096_v25, 0 }
 0x380   : > { %13153 = vmatprep.subr.msk.bf16.mxu0 %vm3568_vm1, %v16041_v27  ;;  %v16329_v55 = vadd.f32 %v12190_v6, %v16221_v45  ;;  %v3056_v15 = vpop.f32.mrb[171].mxu1 }
 0x381   : > { %v16332_v2 = vadd.f32 %v16221_v45, %v3056_v15 }
 0x383   : > { %12408 = vmatmul.mubr.msk.bf16.gmra.mrb[252].mxu1 %vm3568_vm1, %v20539_v46 }
 0x384   : > { %12430 = vmatpush3.bf16.xpose.msra.mxu1 %v4386_v1  ;;  %12435 = vmatprep.mubr.msk.bf16.mxu1 %vm3568_vm1, %v20542_v63 }
 0x385   : > { %13141 = vmatprep.subr.msk.bf16.mxu1 %vm3568_vm1, %v16096_v25  ;;  %v12193_v14 = vpop.f32.mrb[172].mxu1 }
 0x386   : > { %v16353_v51 = vadd.f32 %v12193_v14, %v16221_v45  ;;  %v3069_v50 = vpop.f32.mrb[173].mxu1 }
 0x387   : > { %12480 = vmatpush3.bf16.xpose.msra.mxu0 %v4656_v13  ;;  %v16356_v6 = vadd.f32 %v16221_v45, %v3069_v50  ;;  %v12194_v15 = vpop.f32.mrb[174].mxu1  ;;  %v4659_v50 = vsel %vm3568_vm1, %v16033_v17, 0 }
 0x388   : > { %13154 = vmatprep.subr.msk.bf16.mxu0 %vm3568_vm1, %v16033_v17  ;;  %v16361_v46 = vadd.f32 %v12194_v15, %v16221_v45  ;;  %v3072_v1 = vpop.f32.mrb[175].mxu1 }
 0x389   : > { %v16364_v22 = vadd.f32 %v16221_v45, %v3072_v1 }
 0x38c   : > { %12432 = vmatpush3.bf16.xpose.msra.mxu1 %v4389_v60 }
 0x38d   : > { %13142 = vmatprep.subr.msk.bf16.mxu1 %vm3568_vm1, %v16090_v35  ;;  %v16374_v14 = vpop.f32.mrb[168].mxu0  ;;  %v12197_v13 = vpop.f32.mrb[176].mxu1 }
 0x38e   : > { %v16378_v15 = vpop.f32.mrb[169].mxu0  ;;  %v3085_v1 = vpop.f32.mrb[177].mxu1  ;;  %v5048_v25 = vsel %vm4993_vm2, %v16374_v14, -inf  ;;  %v16387_v63 = vadd.f32 %v12197_v13, %v16221_v45 }
 0x38f   : > { %12482 = vmatpush3.bf16.xpose.msra.mxu0 %v4659_v50  ;;  %5049 = vmax.xlane.f32.xlu0 %v5048_v25  ;;  %v16382_v27 = vpop.f32.mrb[170].mxu0  ;;  %v12198_v60 = vpop.f32.mrb[178].mxu1  ;;  %v3086_v25 = vadd.f32 %v16221_v45, %v3085_v1  ;;  %v5042_v13 = vsel %vm4993_vm2, %v16378_v15, -inf }
 0x390   : > { %13159 = vmatprep.subr.msk.bf16.mxu0 %vm3568_vm1, %v16116_v59  ;;  %v16390_v37 = vadd.f32 %v12198_v60, %v16221_v45  ;;  %v16392_v17 = vpop.f32.mrb[171].mxu0  ;;  %v3088_v48 = vpop.f32.mrb[179].mxu1  ;;  %v5051_v50 = vsel %vm4993_vm2, %v16382_v27, -inf  ;;  %v4392_v60 = vsel %vm3568_vm1, %v16090_v35, 0  ;;  %v4828_v35 = vsel %vm3568_vm1, %v16116_v59, 0 }
 0x391   : > { %v3089_v20 = vadd.f32 %v16221_v45, %v3088_v48  ;;  %5052 = vmax.xlane.f32.xlu1 %v5051_v50  ;;  %v5045_v1 = vsel %vm4993_vm2, %v16392_v17, -inf }
 0x393   : > { %v3156_v0 = vpack.c.bf16 %v3089_v20, %v3086_v25  ;;  %5043 = vmax.xlane.f32.xlu0 %v5042_v13 }
 0x394   : > { %12434 = vmatpush3.bf16.xpose.msra.mxu1 %v4392_v60  ;;  %v20544_v60 = vpack.c.bf16 %v16291_v44, %v16288_v9 }
 0x395   : > { %13147 = vmatprep.subr.msk.bf16.mxu1 %vm3568_vm1, %v16185_v28  ;;  %5046 = vmax.xlane.f32.xlu1 %v5045_v1  ;;  %v16408_v48 = vpop.f32.mrb[172].mxu0  ;;  %v12201_v50 = vpop.f32.mrb[180].mxu1 }
 0x396   : > { %12484 = vmatmul.mubr.msk.bf16.vlgmr.msra.gmra.mrb[208].mxu0 %vm3568_vm1, %v20543_v38  ;;  %v16417_v20 = vadd.f32 %v12201_v50, %v16221_v45  ;;  %v16419_v25 = vpop.f32.mrb[173].mxu0  ;;  %v3101_v13 = vpop.f32.mrb[181].mxu1  ;;  %v5060_v24 = vsel %vm4993_vm2, %v16408_v48, -inf }
 0x397   : > { %12487 = vmatprep.mubr.msk.bf16.mxu0 %vm3568_vm1, %v20544_v60  ;;  %12508 = vmatpush3.bf16.xpose.msra.mxu0 %v4828_v35  ;;  %v16427_v38 = vpop.f32.mrb[174].mxu0  ;;  %v12202_v41 = vpop.f32.mrb[182].mxu1  ;;  %v16439_v9 = vadd.f32 %v16221_v45, %v3101_v13  ;;  %v5054_v32 = vsel %vm4993_vm2, %v16419_v25, -inf  ;;  %v20548_v13 = vld [vmem:[#allocation53_spill] sm:$0xff] }
 0x398   : > { %5061 = vmax.xlane.f32.xlu0 %v5060_v24  ;;  %13160 = vmatprep.subr.msk.bf16.mxu0 %vm3568_vm1, %v16112_v43  ;;  %v16432_v59 = vadd.f32 %v12202_v41, %v16221_v45  ;;  %v16434_v1 = vpop.f32.mrb[175].mxu0  ;;  %v3104_v50 = vpop.f32.mrb[183].mxu1  ;;  %v5063_v44 = vsel %vm4993_vm2, %v16427_v38, -inf  ;;  %v20545_v24 = vld [vmem:[#allocation44_spill] sm:$0xff] }
 0x399   : > { %v16442_v35 = vadd.f32 %v16221_v45, %v3104_v50  ;;  %5064 = vmax.xlane.f32.xlu1 %v5063_v44  ;;  %v20547_v41 = vpack.c.bf16 %v20545_v24, %v20546_v47  ;;  %v20550_v50 = vpack.c.bf16 %v20548_v13, %v20549_v8  ;;  %v4561_v44 = vsel %vm3568_vm1, %v16185_v28, 0 }
 0x39a   : > { %v5057_v47 = vsel %vm4993_vm2, %v16434_v1, -inf  ;;  %v20551_v8 = vpack.c.bf16 %v16281_v33, %v16278_v62  ;;  %v4831_v28 = vsel %vm3568_vm1, %v16112_v43, 0 }
 0x39b   : > { %12436 = vmatmul.mubr.msk.bf16.vlgmr.msra.gmra.mrb[0].mxu1 %vm3568_vm1, %v20547_v41 }
 0x39c   : > { %5055 = vmax.xlane.f32.xlu0 %v5054_v32  ;;  %12439 = vmatprep.mubr.msk.bf16.mxu1 %vm3568_vm1, %v20550_v50 }
 0x39d   : > { %12460 = vmatpush3.bf16.xpose.msra.mxu1 %v4561_v44  ;;  %5058 = vmax.xlane.f32.xlu1 %v5057_v47  ;;  %v12205_v24 = vpop.f32.mrb[184].mxu1  ;;  %v20552_v47 = vld [vmem:[#allocation51_spill] sm:$0xff] }
 0x39e   : > { %13148 = vmatprep.subr.msk.bf16.mxu1 %vm3568_vm1, %v16175_v31  ;;  %v16465_v41 = vadd.f32 %v12205_v24, %v16221_v45  ;;  %12488 = vmatmul.mubr.msk.bf16.gmra.mrb[212].mxu0 %vm3568_vm1, %v20551_v8  ;;  %v3117_v32 = vpop.f32.mrb[185].mxu1  ;;  %v20553_v24 = vld [vmem:[#allocation47_spill] sm:$0xff] }
 0x39f   : > { %v16474_v13 = vadd.f32 %v16221_v45, %v3117_v32  ;;  %12510 = vmatpush3.bf16.xpose.msra.mxu0 %v4831_v28  ;;  %12515 = vmatprep.mubr.msk.bf16.mxu0 %vm3568_vm1, %v3156_v0  ;;  %v12206_v50 = vpop.f32.mrb[186].mxu1  ;;  %v20554_v8 = vpack.c.bf16 %v20552_v47, %v20553_v24  ;;  %v4564_v32 = vsel %vm3568_vm1, %v16175_v31, 0  ;;  %v20555_v28 = vld [vmem:[#allocation61_spill] sm:$0xff] }
 0x3a0   : > { %v16478_v44 = vadd.f32 %v12206_v50, %v16221_v45  ;;  %13161 = vmatprep.subr.msk.bf16.mxu0 %vm3568_vm1, %v16149_v58  ;;  %v3120_v62 = vpop.f32.mrb[187].mxu1  ;;  %v20556_v50 = vld [vmem:[#allocation59_spill] sm:$0xff] }
 0x3a1   : > { %v16483_v33 = vadd.f32 %v16221_v45, %v3120_v62  ;;  %v20557_v60 = vpack.c.bf16 %v20555_v28, %v20556_v50  ;;  %v4837_v50 = vsel %vm3568_vm1, %v16141_v19, 0 }
 0x3a3   : > { %12440 = vmatmul.mubr.msk.bf16.gmra.mrb[4].mxu1 %vm3568_vm1, %v20554_v8  ;;  %v4834_v8 = vsel %vm3568_vm1, %v16149_v58, 0 }
 0x3a4   : > { %12467 = vmatprep.mubr.msk.bf16.mxu1 %vm3568_vm1, %v20557_v60 }
 0x3a5   : > { %12462 = vmatpush3.bf16.xpose.msra.mxu1 %v4564_v32  ;;  %v12209_v62 = vpop.f32.mrb[188].mxu1 }
 0x3a6   : > { %13149 = vmatprep.subr.msk.bf16.mxu1 %vm3568_vm1, %v16212_v18  ;;  %v16502_v47 = vadd.f32 %v12209_v62, %v16221_v45  ;;  %v3133_v24 = vpop.f32.mrb[189].mxu1  ;;  %v4567_v62 = vsel %vm3568_vm1, %v16212_v18, 0 }
 0x3a7   : > { %v16507_v43 = vadd.f32 %v16221_v45, %v3133_v24  ;;  %12512 = vmatpush3.bf16.xpose.msra.mxu0 %v4834_v8  ;;  %v12210_v31 = vpop.f32.mrb[190].mxu1 }
 0x3a8   : > { %v16510_v28 = vadd.f32 %v12210_v31, %v16221_v45  ;;  %13162 = vmatprep.subr.msk.bf16.mxu0 %vm3568_vm1, %v16141_v19  ;;  %v3136_v60 = vpop.f32.mrb[191].mxu1 }
 0x3a9   : > { %v16515_v32 = vadd.f32 %v16221_v45, %v3136_v60  ;;  %v16530_v45 = vld [vmem:[%s20054_s8 + $0x3] ss:$0 sm:$0xff] }
 0x3ad   : > { %12464 = vmatpush3.bf16.xpose.msra.mxu1 %v4567_v62  ;;  %v16525_v24 = vpop.f32.mrb[176].mxu0  ;;  %v12253_v8 = vpop.f32.mrb[192].mxu1 }
 0x3ae   : > { %13150 = vmatprep.subr.msk.bf16.mxu1 %vm3568_vm1, %v16206_v39  ;;  %v16532_v31 = vpop.f32.mrb[177].mxu0  ;;  %v3425_v60 = vpop.f32.mrb[193].mxu1  ;;  %v5096_v18 = vsel %vm4993_vm2, %v16525_v24, -inf  ;;  %v3434_v0 = vadd.f32 %v12253_v8, %v16530_v45 }
 0x3af   : > { %12514 = vmatpush3.bf16.xpose.msra.mxu0 %v4837_v50  ;;  %5097 = vmax.xlane.f32.xlu0 %v5096_v18  ;;  %v16538_v62 = vpop.f32.mrb[178].mxu0  ;;  %v12254_v58 = vpop.f32.mrb[194].mxu1  ;;  %v3426_v49 = vadd.f32 %v16530_v45, %v3425_v60  ;;  %v5090_v8 = vsel %vm4993_vm2, %v16532_v31, -inf }
 0x3b0   : > { %20558 = vst [vmem:[#allocation33_spill] sm:$0xff] %v16538_v62  ;;  %v3437_v23 = vadd.f32 %v12254_v58, %v16530_v45  ;;  %v16542_v10 = vpop.f32.mrb[179].mxu0  ;;  %12539 = vmatprep.subr.bf16.mxu0 %v20559_v52  ;;  %v3428_v26 = vpop.f32.mrb[195].mxu1  ;;  %v5099_v19 = vsel %vm4993_vm2, %v16538_v62, -inf  ;;  %v4570_v58 = vsel %vm3568_vm1, %v16206_v39, 0 }
 0x3b1   : > { %v3429_v50 = vadd.f32 %v16530_v45, %v3428_v26  ;;  %5100 = vmax.xlane.f32.xlu1 %v5099_v19  ;;  %v5093_v62 = vsel %vm4993_vm2, %v16542_v10, -inf  ;;  %v20564_v19 = vpack.c.bf16 %v16442_v35, %v16439_v9 }
 0x3b2   : > { %v16549_v18 = vpack.c.bf16 %v3437_v23, %v3434_v0 }
 0x3b3   : > { %v16553_v12 = vpack.c.bf16 %v3429_v50, %v3426_v49  ;;  %5091 = vmax.xlane.f32.xlu0 %v5090_v8  ;;  %v20563_v49 = vpack.c.bf16 %v16390_v37, %v16387_v63 }
 0x3b4   : > { %20560 = vst [vmem:[#allocation22_spill] sm:$0xff] %v16549_v18 }
 0x3b5   : > { %20561 = vst [vmem:[#allocation20_spill] sm:$0xff] %v16553_v12  ;;  %12466 = vmatpush3.bf16.xpose.msra.mxu1 %v4570_v58  ;;  %5094 = vmax.xlane.f32.xlu1 %v5093_v62  ;;  %v16561_v26 = vpop.f32.mrb[180].mxu0  ;;  %v12257_v23 = vpop.f32.mrb[196].mxu1  ;;  %v20566_v58 = vld [vmem:[#allocation2_spill] sm:$0xff] }
 0x3b6   : > { %13155 = vmatprep.subr.msk.bf16.mxu1 %vm3568_vm1, %v16071_v30  ;;  %20562 = vst [vmem:[#allocation29_spill] sm:$0xff] %v16561_v26  ;;  %v16563_v0 = vpop.f32.mrb[181].mxu0  ;;  %12516 = vmatmul.mubr.msk.bf16.vlgmr.msra.gmra.mrb[216].mxu0 %vm3568_vm1, %v20563_v49  ;;  %v3441_v60 = vpop.f32.mrb[197].mxu1  ;;  %v5108_v39 = vsel %vm4993_vm2, %v16561_v26, -inf  ;;  %v3450_v8 = vadd.f32 %v12257_v23, %v16530_v45  ;;  %v20569_v23 = vld [vmem:[#allocation60_spill] sm:$0xff] }
 0x3b7   : > { %12519 = vmatprep.mubr.msk.bf16.mxu0 %vm3568_vm1, %v20564_v19  ;;  %12540 = vmatpush3.bf16.msra.mxu0 %v20559_v52  ;;  %v16576_v62 = vpop.f32.mrb[182].mxu0  ;;  %v12258_v50 = vpop.f32.mrb[198].mxu1  ;;  %v3442_v35 = vadd.f32 %v16530_v45, %v3441_v60  ;;  %v5102_v12 = vsel %vm4993_vm2, %v16563_v0, -inf  ;;  %v20573_v60 = vld [vmem:[#allocation63_spill] sm:$0xff] }
 0x3b8   : > { %20565 = vst [vmem:[#allocation27_spill] sm:$0xff] %v16576_v62  ;;  %5109 = vmax.xlane.f32.xlu0 %v5108_v39  ;;  %v3453_v37 = vadd.f32 %v12258_v50, %v16530_v45  ;;  %v16580_v63 = vpop.f32.mrb[183].mxu0  ;;  %12541 = vmatprep.subr.bf16.mxu0 %v20566_v58  ;;  %v3444_v49 = vpop.f32.mrb[199].mxu1  ;;  %v5111_v9 = vsel %vm4993_vm2, %v16576_v62, -inf  ;;  %v20570_v39 = vld [vmem:[#allocation58_spill] sm:$0xff]  ;;  %v20572_v62 = vld [vmem:[#allocation65_spill] sm:$0xff] }
 0x3b9   : > { %v3445_v52 = vadd.f32 %v16530_v45, %v3444_v49  ;;  %5112 = vmax.xlane.f32.xlu1 %v5111_v9  ;;  %v20571_v50 = vpack.c.bf16 %v20569_v23, %v20570_v39  ;;  %v20574_v26 = vpack.c.bf16 %v20572_v62, %v20573_v60  ;;  %v5105_v49 = vsel %vm4993_vm2, %v16580_v63, -inf  ;;  %v20577_v23 = vld [vmem:[#allocation4_spill] sm:$0xff] }
 0x3ba   : > { %v16587_v19 = vpack.c.bf16 %v3453_v37, %v3450_v8  ;;  %v4739_v8 = vsel %vm3568_vm1, %v16071_v30, 0  ;;  %v20575_v37 = vld [vmem:[#allocation5_spill] sm:$0xff] }
 0x3bb   : > { %v16589_v18 = vpack.c.bf16 %v3445_v52, %v3442_v35  ;;  %12542 = vmatpush3.bf16.msra.mxu0 %v20566_v58 }
 0x3bc   : > { %20567 = vst [vmem:[#allocation32_spill] sm:$0xff] %v16587_v19  ;;  %12468 = vmatmul.mubr.msk.bf16.vlgmr.msra.gmra.mrb[8].mxu1 %vm3568_vm1, %v20571_v50  ;;  %5103 = vmax.xlane.f32.xlu0 %v5102_v12 }
 0x3bd   : > { %20568 = vst [vmem:[#allocation28_spill] sm:$0xff] %v16589_v18  ;;  %12471 = vmatprep.mubr.msk.bf16.mxu1 %vm3568_vm1, %v20574_v26  ;;  %12492 = vmatpush3.bf16.xpose.msra.mxu1 %v4739_v8  ;;  %v12261_v9 = vpop.f32.mrb[200].mxu1  ;;  %v20576_v26 = vpack.c.bf16 %v16432_v59, %v16417_v20  ;;  %v20580_v8 = vld [vmem:[#allocation64_spill] sm:$0xff]  ;;  %v20581_v20 = vld [vmem:[#allocation62_spill] sm:$0xff] }
 0x3be   : > { %12543 = vmatprep.subr.bf16.mxu0 %v20575_v37  ;;  %13156 = vmatprep.subr.msk.bf16.mxu1 %vm3568_vm1, %v16061_v16  ;;  %v3466_v12 = vadd.f32 %v12261_v9, %v16530_v45  ;;  %v3457_v58 = vpop.f32.mrb[201].mxu1  ;;  %v20582_v59 = vpack.c.bf16 %v20580_v8, %v20581_v20  ;;  %v20584_v9 = vld [vmem:[#allocation17_spill] sm:$0xff] }
 0x3bf   : > { %5106 = vmax.xlane.f32.xlu1 %v5105_v49  ;;  %12520 = vmatmul.mubr.msk.bf16.gmra.mrb[220].mxu0 %vm3568_vm1, %v20576_v26  ;;  %v12262_v30 = vpop.f32.mrb[202].mxu1  ;;  %v3458_v52 = vadd.f32 %v16530_v45, %v3457_v58  ;;  %v20583_v49 = vpack.c.bf16 %v16332_v2, %v16324_v7 }
 0x3c0   : > { %12544 = vmatpush3.bf16.msra.mxu0 %v20575_v37  ;;  %v3469_v62 = vadd.f32 %v12262_v30, %v16530_v45  ;;  %v3460_v35 = vpop.f32.mrb[203].mxu1  ;;  %v4742_v37 = vsel %vm3568_vm1, %v16061_v16, 0 }
 0x3c1   : > { %12545 = vmatprep.subr.bf16.mxu0 %v20577_v23  ;;  %v3461_v39 = vadd.f32 %v16530_v45, %v3460_v35 }
 0x3c2   : > { %v16619_v50 = vpack.c.bf16 %v3469_v62, %v3466_v12 }
 0x3c3   : > { %v16621_v60 = vpack.c.bf16 %v3461_v39, %v3458_v52 }
 0x3c4   : > { %20578 = vst [vmem:[#allocation26_spill] sm:$0xff] %v16619_v50  ;;  %12472 = vmatmul.mubr.msk.bf16.gmra.mrb[12].mxu1 %vm3568_vm1, %v20582_v59  ;;  %12546 = vmatpush3.bf16.msra.mxu0 %v20577_v23  ;;  %v4745_v23 = vsel %vm3568_vm1, %v16098_v56, 0 }
 0x3c5   : > { %20579 = vst [vmem:[#allocation35_spill] sm:$0xff] %v16621_v60  ;;  %12499 = vmatprep.mubr.msk.bf16.mxu1 %vm3568_vm1, %v20583_v49  ;;  %12494 = vmatpush3.bf16.xpose.msra.mxu1 %v4742_v37  ;;  %v12265_v12 = vpop.f32.mrb[204].mxu1 }
 0x3c6   : > { %12571 = vmatprep.subr.bf16.mxu0 %v20584_v9  ;;  %13157 = vmatprep.subr.msk.bf16.mxu1 %vm3568_vm1, %v16098_v56  ;;  %v3482_v58 = vadd.f32 %v12265_v12, %v16530_v45  ;;  %v3473_v26 = vpop.f32.mrb[205].mxu1 }
 0x3c7   : > { %v3474_v30 = vadd.f32 %v16530_v45, %v3473_v26  ;;  %v12266_v16 = vpop.f32.mrb[206].mxu1 }
 0x3c8   : > { %v3485_v62 = vadd.f32 %v12266_v16, %v16530_v45  ;;  %v3476_v7 = vpop.f32.mrb[207].mxu1 }
 0x3c9   : > { %v3477_v2 = vadd.f32 %v16530_v45, %v3476_v7 }
 0x3ca   : > { %v16641_v35 = vpack.c.bf16 %v3485_v62, %v3482_v58 }
 0x3cb   : > { %v16643_v52 = vpack.c.bf16 %v3477_v2, %v3474_v30 }
 0x3cc   : > { %20585 = vst [vmem:[#allocation34_spill] sm:$0xff] %v16641_v35 }
 0x3cd   : > { %20586 = vst [vmem:[#allocation40_spill] sm:$0xff] %v16643_v52  ;;  %12496 = vmatpush3.bf16.xpose.msra.mxu1 %v4745_v23  ;;  %v12269_v39 = vpop.f32.mrb[208].mxu1 }
 0x3ce   : > { %13158 = vmatprep.subr.msk.bf16.mxu1 %vm3568_vm1, %v16092_v57  ;;  %v16649_v8 = vpop.f32.mrb[184].mxu0  ;;  %v3498_v20 = vadd.f32 %v12269_v39, %v16530_v45  ;;  %v3489_v59 = vpop.f32.mrb[209].mxu1 }
 0x3cf   : > { %v16652_v37 = vpop.f32.mrb[185].mxu0  ;;  %v5144_v49 = vsel %vm4993_vm2, %v16649_v8, -inf  ;;  %v12270_v12 = vpop.f32.mrb[210].mxu1  ;;  %v3490_v30 = vadd.f32 %v16530_v45, %v3489_v59 }
 0x3d0   : > { %5145 = vmax.xlane.f32.xlu0 %v5144_v49  ;;  %v16656_v58 = vpop.f32.mrb[186].mxu0  ;;  %v3501_v56 = vadd.f32 %v12270_v12, %v16530_v45  ;;  %v3492_v26 = vpop.f32.mrb[211].mxu1  ;;  %v5138_v39 = vsel %vm4993_vm2, %v16652_v37, -inf  ;;  %v4748_v49 = vsel %vm3568_vm1, %v16092_v57, 0 }
 0x3d1   : > { %v16660_v16 = vpop.f32.mrb[187].mxu0  ;;  %v3493_v62 = vadd.f32 %v16530_v45, %v3492_v26  ;;  %v5147_v7 = vsel %vm4993_vm2, %v16656_v58, -inf }
 0x3d2   : > { %v16665_v2 = vpack.c.bf16 %v3501_v56, %v3498_v20  ;;  %5148 = vmax.xlane.f32.xlu1 %v5147_v7  ;;  %v5141_v59 = vsel %vm4993_vm2, %v16660_v16, -inf }
 0x3d3   : > { %v16667_v23 = vpack.c.bf16 %v3493_v62, %v3490_v30 }
 0x3d4   : > { %20587 = vst [vmem:[#allocation52_spill] sm:$0xff] %v16665_v2  ;;  %5139 = vmax.xlane.f32.xlu0 %v5138_v39  ;;  %v20591_v2 = vpack.c.bf16 %v16329_v55, %v16320_v40 }
 0x3d5   : > { %20588 = vst [vmem:[#allocation48_spill] sm:$0xff] %v16667_v23  ;;  %12498 = vmatpush3.bf16.xpose.msra.mxu1 %v4748_v49  ;;  %v12273_v12 = vpop.f32.mrb[212].mxu1 }
 0x3d6   : > { %13163 = vmatprep.subr.msk.bf16.mxu1 %vm3568_vm1, %v16187_v34  ;;  %5142 = vmax.xlane.f32.xlu1 %v5141_v59  ;;  %v16677_v20 = vpop.f32.mrb[188].mxu0  ;;  %v3514_v56 = vadd.f32 %v12273_v12, %v16530_v45  ;;  %v3505_v26 = vpop.f32.mrb[213].mxu1 }
 0x3d7   : > { %v16680_v30 = vpop.f32.mrb[189].mxu0  ;;  %v3506_v62 = vadd.f32 %v16530_v45, %v3505_v26  ;;  %v5156_v57 = vsel %vm4993_vm2, %v16677_v20, -inf  ;;  %v12274_v7 = vpop.f32.mrb[214].mxu1 }
 0x3d8   : > { %5157 = vmax.xlane.f32.xlu0 %v5156_v57  ;;  %v16685_v39 = vpop.f32.mrb[190].mxu0  ;;  %v3517_v49 = vadd.f32 %v12274_v7, %v16530_v45  ;;  %v3508_v35 = vpop.f32.mrb[215].mxu1  ;;  %v5150_v57 = vsel %vm4993_vm2, %v16680_v30, -inf  ;;  %v20592_v7 = vpack.c.bf16 %v16364_v22, %v16356_v6 }
 0x3d9   : > { %v16688_v59 = vpop.f32.mrb[191].mxu0  ;;  %v3509_v52 = vadd.f32 %v16530_v45, %v3508_v35  ;;  %v5159_v12 = vsel %vm4993_vm2, %v16685_v39, -inf  ;;  %v4917_v35 = vsel %vm3568_vm1, %v16187_v34, 0 }
 0x3da   : > { %v16693_v50 = vpack.c.bf16 %v3517_v49, %v3514_v56  ;;  %5160 = vmax.xlane.f32.xlu1 %v5159_v12 }
 0x3db   : > { %v16695_v26 = vpack.c.bf16 %v3509_v52, %v3506_v62  ;;  %v5153_v52 = vsel %vm4993_vm2, %v16688_v59, -inf }
 0x3dc   : > { %20589 = vst [vmem:[#allocation36_spill] sm:$0xff] %v16693_v50  ;;  %12500 = vmatmul.mubr.msk.bf16.vlgmr.msra.gmra.mrb[16].mxu1 %vm3568_vm1, %v20591_v2  ;;  %5151 = vmax.xlane.f32.xlu0 %v5150_v57  ;;  %v20595_v57 = vpack.c.bf16 %v16361_v46, %v16353_v51 }
 0x3dd   : > { %20590 = vst [vmem:[#allocation41_spill] sm:$0xff] %v16695_v26  ;;  %12503 = vmatprep.mubr.msk.bf16.mxu1 %vm3568_vm1, %v20592_v7  ;;  %12524 = vmatpush3.bf16.xpose.msra.mxu1 %v4917_v35  ;;  %v12277_v56 = vpop.f32.mrb[216].mxu1  ;;  %v4920_v35 = vsel %vm3568_vm1, %v16177_v54, 0  ;;  %v20596_v7 = vpack.c.bf16 %v16483_v33, %v16474_v13  ;;  %v4923_v33 = vsel %vm3568_vm1, %v16214_v53, 0 }
 0x3de   : > { %13164 = vmatprep.subr.msk.bf16.mxu1 %vm3568_vm1, %v16177_v54  ;;  %5154 = vmax.xlane.f32.xlu1 %v5153_v52  ;;  %v3530_v40 = vadd.f32 %v12277_v56, %v16530_v45  ;;  %v3521_v55 = vpop.f32.mrb[217].mxu1 }
 0x3df   : > { %v3522_v2 = vadd.f32 %v16530_v45, %v3521_v55  ;;  %v12278_v34 = vpop.f32.mrb[218].mxu1 }
 0x3e0   : > { %v3533_v62 = vadd.f32 %v12278_v34, %v16530_v45  ;;  %v3524_v6 = vpop.f32.mrb[219].mxu1 }
 0x3e1   : > { %v3525_v22 = vadd.f32 %v16530_v45, %v3524_v6 }
 0x3e2   : > { %v16717_v49 = vpack.c.bf16 %v3533_v62, %v3530_v40 }
 0x3e3   : > { %v16719_v12 = vpack.c.bf16 %v3525_v22, %v3522_v2 }
 0x3e4   : > { %20593 = vst [vmem:[#allocation39_spill] sm:$0xff] %v16717_v49  ;;  %12504 = vmatmul.mubr.msk.bf16.gmra.mrb[20].mxu1 %vm3568_vm1, %v20595_v57 }
 0x3e5   : > { %20594 = vst [vmem:[#allocation57_spill] sm:$0xff] %v16719_v12  ;;  %12526 = vmatpush3.bf16.xpose.msra.mxu1 %v4920_v35  ;;  %12531 = vmatprep.mubr.msk.bf16.mxu1 %vm3568_vm1, %v20596_v7  ;;  %v12281_v52 = vpop.f32.mrb[220].mxu1  ;;  %v4926_v7 = vsel %vm3568_vm1, %v16208_v61, 0 }
 0x3e6   : > { %13165 = vmatprep.subr.msk.bf16.mxu1 %vm3568_vm1, %v16214_v53  ;;  %v3546_v56 = vadd.f32 %v12281_v52, %v16530_v45  ;;  %v3537_v40 = vpop.f32.mrb[221].mxu1 }
 0x3e7   : > { %v3538_v51 = vadd.f32 %v16530_v45, %v3537_v40  ;;  %v12282_v46 = vpop.f32.mrb[222].mxu1  ;;  %v20599_v40 = vld [vmem:[#allocation9_spill] sm:$0xff] }
 0x3e8   : > { %v3549_v55 = vadd.f32 %v12282_v46, %v16530_v45  ;;  %v3540_v2 = vpop.f32.mrb[223].mxu1 }
 0x3e9   : > { %v3541_v54 = vadd.f32 %v16530_v45, %v3540_v2 }
 0x3ea   : > { %v16737_v34 = vpack.c.bf16 %v3549_v55, %v3546_v56 }
 0x3eb   : > { %v16739_v13 = vpack.c.bf16 %v3541_v54, %v3538_v51 }
 0x3ec   : > { %20597 = vst [vmem:[#allocation55_spill] sm:$0xff] %v16737_v34 }
 0x3ed   : > { %20598 = vst [vmem:[#allocation50_spill] sm:$0xff] %v16739_v13  ;;  %12528 = vmatpush3.bf16.xpose.msra.mxu1 %v4923_v33  ;;  %v16743_v62 = vpop.f32.mrb[224].mxu1  ;;  %v20600_v33 = vpack.c.bf16 %v16478_v44, %v16465_v41 }
 0x3ee   : > { %13166 = vmatprep.subr.msk.bf16.mxu1 %vm3568_vm1, %v16208_v61  ;;  %v16747_v6 = vpop.f32.mrb[225].mxu1  ;;  %v5024_v22 = vsel %vm4993_vm2, %v16743_v62, -inf }
 0x3ef   : > { %v16751_v57 = vpop.f32.mrb[226].mxu1  ;;  %5025 = vmax.xlane.f32.xlu0 %v5024_v22  ;;  %v5018_v53 = vsel %vm4993_vm2, %v16747_v6, -inf }
 0x3f0   : > { %v16753_v45 = vpop.f32.mrb[227].mxu1  ;;  %v5027_v35 = vsel %vm4993_vm2, %v16751_v57, -inf }
 0x3f1   : > { %5028 = vmax.xlane.f32.xlu1 %v5027_v35  ;;  %v5021_v52 = vsel %vm4993_vm2, %v16753_v45, -inf  ;;  %v20601_v35 = vpack.c.bf16 %v16515_v32, %v16507_v43  ;;  %v20603_v32 = vld [vmem:[#allocation15_spill] sm:$0xff] }
 0x3f3   : > { %5019 = vmax.xlane.f32.xlu0 %v5018_v53 }
 0x3f5   : > { %12530 = vmatpush3.bf16.xpose.msra.mxu1 %v4926_v7  ;;  %v16763_v56 = vpop.f32.mrb[228].mxu1  ;;  %5022 = vmax.xlane.f32.xlu1 %v5021_v52  ;;  %v20602_v52 = vld [vmem:[#allocation8_spill] sm:$0xff] }
 0x3f6   : > { %12555 = vmatprep.subr.bf16.mxu1 %v20599_v40  ;;  %v16766_v51 = vpop.f32.mrb[229].mxu1  ;;  %v5036_v46 = vsel %vm4993_vm2, %v16763_v56, -inf }
 0x3f7   : > { %v16770_v55 = vpop.f32.mrb[230].mxu1  ;;  %5037 = vmax.xlane.f32.xlu0 %v5036_v46  ;;  %v5030_v54 = vsel %vm4993_vm2, %v16766_v51, -inf }
 0x3f8   : > { %v16772_v2 = vpop.f32.mrb[231].mxu1  ;;  %v5039_v61 = vsel %vm4993_vm2, %v16770_v55, -inf }
 0x3f9   : > { %5040 = vmax.xlane.f32.xlu1 %v5039_v61  ;;  %v5033_v7 = vsel %vm4993_vm2, %v16772_v2, -inf }
 0x3fb   : > { %5031 = vmax.xlane.f32.xlu0 %v5030_v54 }
 0x3fc   : > { %12532 = vmatmul.mubr.msk.bf16.vlgmr.msra.gmra.mrb[24].mxu1 %vm3568_vm1, %v20600_v33  ;;  %v5002_v22 = vpop.xlane.xlu0 %5001 }
 0x3fd   : > { %12535 = vmatprep.mubr.msk.bf16.mxu1 %vm3568_vm1, %v20601_v35  ;;  %12556 = vmatpush3.bf16.msra.mxu1 %v20599_v40  ;;  %v5380_v53 = vsub.f32 %v16223_v36, %v5002_v22  ;;  %v20604_v22 = vpack.c.bf16 %v16510_v28, %v16502_v47 }
 0x3fe   : > { %12557 = vmatprep.subr.bf16.mxu1 %v20602_v52  ;;  %5034 = vmax.xlane.f32.xlu1 %v5033_v7  ;;  %v5005_v46 = vpop.xlane.xlu1 %5004 }
 0x3ff   : > { %v5510_v41 = vmul.f32 1.442695, %v5380_v53  ;;  %v5381_v44 = vsub.f32 %v16233_v21, %v5005_v46  ;;  %v20605_v53 = vld [vmem:[#allocation14_spill] sm:$0xff] }
 0x400   : > { %v4996_v61 = vpop.xlane.xlu0 %4995 }
 0x401   : > { %13274 = vpow2.f32 %v5510_v41  ;;  %v5512_v54 = vmul.f32 1.442695, %v5381_v44  ;;  %12558 = vmatpush3.bf16.msra.mxu1 %v20602_v52  ;;  %v5378_v43 = vsub.f32 %v16227_v29, %v4996_v61 }
 0x402   : > { %12559 = vmatprep.subr.bf16.mxu1 %v20603_v32 }
 0x403   : > { %v4999_v36 = vpop.xlane.xlu1 %4998  ;;  %13276 = vpow2.f32 %v5512_v54  ;;  %v5506_v40 = vmul.f32 1.442695, %v5378_v43 }
 0x404   : > { %v5379_v33 = vsub.f32 %v16241_v3, %v4999_v36  ;;  %12536 = vmatmul.mubr.msk.bf16.gmra.mrb[28].mxu1 %vm3568_vm1, %v20604_v22  ;;  %v5014_v21 = vpop.xlane.xlu0 %5013  ;;  %v20606_v3 = vld [vmem:[#allocation25_spill] sm:$0xff] }
 0x405   : > { %12560 = vmatpush3.bf16.msra.mxu1 %v20603_v32  ;;  %13278 = vpow2.f32 %v5506_v40  ;;  %v5384_v29 = vsub.f32 %v16261_v5, %v5014_v21 }
 0x406   : > { %v5508_v35 = vmul.f32 1.442695, %v5379_v33  ;;  %12561 = vmatprep.subr.bf16.mxu1 %v20605_v53 }
 0x407   : > { %v5017_v7 = vpop.xlane.xlu1 %5016  ;;  %v5518_v28 = vmul.f32 1.442695, %v5384_v29 }
 0x408   : > { %13280 = vpow2.f32 %v5508_v35  ;;  %v5385_v52 = vsub.f32 %v16275_v42, %v5017_v7  ;;  %v5008_v46 = vpop.xlane.xlu0 %5007 }
 0x409   : > { %12562 = vmatpush3.bf16.msra.mxu1 %v20605_v53  ;;  %13282 = vpow2.f32 %v5518_v28  ;;  %v5382_v32 = vsub.f32 %v16265_v4, %v5008_v46 }
 0x40a   : > { %12587 = vmatprep.subr.bf16.mxu1 %v20606_v3  ;;  %v5520_v61 = vmul.f32 1.442695, %v5385_v52 }
 0x40b   : > { %v16806_v47 = vpop.eup %13274  ;;  %v5011_v5 = vpop.xlane.xlu1 %5010  ;;  %v5514_v4 = vmul.f32 1.442695, %v5382_v32 }
 0x40c   : > { %v5768_v41 = vsel %vm4993_vm2, %v16806_v47, 0.0  ;;  %13284 = vpow2.f32 %v5520_v61  ;;  %v5383_v21 = vsub.f32 %v16283_v11, %v5011_v5 }
 0x40d   : > { %v16810_v44 = vpop.eup %13276  ;;  %v16812_v54 = vpop.f32.mrb[232].mxu1  ;;  %5769 = vadd.xlane.f32.xlu0 %v5768_v41  ;;  %13286 = vpow2.f32 %v5514_v4 }
 0x40e   : > { %v16814_v43 = vpop.f32.mrb[233].mxu1  ;;  %v5771_v42 = vsel %vm4993_vm2, %v16810_v44, 0.0  ;;  %v5072_v33 = vsel %vm4993_vm2, %v16812_v54, -inf  ;;  %v5516_v29 = vmul.f32 1.442695, %v5383_v21 }
 0x40f   : > { %v16819_v36 = vpop.f32.mrb[234].mxu1  ;;  %5772 = vadd.xlane.f32.xlu1 %v5771_v42  ;;  %v16825_v22 = vpop.eup %13278  ;;  %v5066_v61 = vsel %vm4993_vm2, %v16814_v43, -inf }
 0x410   : > { %v16821_v40 = vpop.f32.mrb[235].mxu1  ;;  %v5075_v35 = vsel %vm4993_vm2, %v16819_v36, -inf  ;;  %v5762_v7 = vsel %vm4993_vm2, %v16825_v22, 0.0  ;;  %13288 = vpow2.f32 %v5516_v29 }
 0x411   : > { %5073 = vmax.xlane.f32.xlu0 %v5072_v33  ;;  %v5069_v42 = vsel %vm4993_vm2, %v16821_v40, -inf }
 0x412   : > { %v16830_v53 = vpop.eup %13280 }
 0x413   : > { %5076 = vmax.xlane.f32.xlu1 %v5075_v35  ;;  %v5765_v11 = vsel %vm4993_vm2, %v16830_v53, 0.0  ;;  %v16846_v5 = vpop.eup %13282 }
 0x414   : > { %20607 = vst [vmem:[#allocation46_spill] sm:$0xff] %v16846_v5  ;;  %v5780_v21 = vsel %vm4993_vm2, %v16846_v5, 0.0 }
 0x415   : > { %v16834_v52 = vpop.f32.mrb[236].mxu1  ;;  %5763 = vadd.xlane.f32.xlu0 %v5762_v7 }
 0x416   : > { %v16836_v28 = vpop.f32.mrb[237].mxu1  ;;  %v16850_v32 = vpop.eup %13284 }
 0x417   : > { %v16840_v46 = vpop.f32.mrb[238].mxu1  ;;  %5766 = vadd.xlane.f32.xlu1 %v5765_v11  ;;  %v5783_v4 = vsel %vm4993_vm2, %v16850_v32, 0.0  ;;  %v5084_v11 = vsel %vm4993_vm2, %v16834_v52, -inf }
 0x418   : > { %v16842_v41 = vpop.f32.mrb[239].mxu1 }
 0x419   : > { %5067 = vmax.xlane.f32.xlu0 %v5066_v61  ;;  %v16859_v61 = vpop.eup %13286 }
 0x41a   : > { %20608 = vst [vmem:[#allocation38_spill] sm:$0xff] %v16859_v61  ;;  %v16864_v13 = vpop.eup %13288 }
 0x41b   : > { %5070 = vmax.xlane.f32.xlu1 %v5069_v42  ;;  %20609 = vst [vmem:[#allocation37_spill] sm:$0xff] %v16864_v13 }
 0x41c   : > { %v5050_v33 = vpop.xlane.xlu0 %5049 }
 0x41d   : > { %5781 = vadd.xlane.f32.xlu0 %v5780_v21  ;;  %v5396_v7 = vsub.f32 %v16374_v14, %v5050_v33  ;;  %v5087_v21 = vsel %vm4993_vm2, %v16840_v46, -inf  ;;  %v5774_v14 = vsel %vm4993_vm2, %v16859_v61, 0.0 }
 0x41e   : > { %v5053_v35 = vpop.xlane.xlu1 %5052 }
 0x41f   : > { %5784 = vadd.xlane.f32.xlu1 %v5783_v4  ;;  %v5397_v42 = vsub.f32 %v16382_v27, %v5053_v35  ;;  %v5542_v49 = vmul.f32 1.442695, %v5396_v7  ;;  %v5777_v27 = vsel %vm4993_vm2, %v16864_v13, 0.0  ;;  %v5078_v7 = vsel %vm4993_vm2, %v16836_v28, -inf }
 0x420   : > { %v5044_v29 = vpop.xlane.xlu0 %5043 }
 0x421   : > { %5085 = vmax.xlane.f32.xlu0 %v5084_v11  ;;  %v5394_v12 = vsub.f32 %v16378_v15, %v5044_v29  ;;  %v5544_v33 = vmul.f32 1.442695, %v5397_v42  ;;  %13290 = vpow2.f32 %v5542_v49 }
 0x422   : > { %v5047_v34 = vpop.xlane.xlu1 %5046 }
 0x423   : > { %5088 = vmax.xlane.f32.xlu1 %v5087_v21  ;;  %v5395_v4 = vsub.f32 %v16392_v17, %v5047_v34  ;;  %v5538_v35 = vmul.f32 1.442695, %v5394_v12  ;;  %13292 = vpow2.f32 %v5544_v33  ;;  %v5081_v17 = vsel %vm4993_vm2, %v16842_v41, -inf }
 0x425   : > { %5775 = vadd.xlane.f32.xlu0 %v5774_v14  ;;  %v5540_v15 = vmul.f32 1.442695, %v5395_v4  ;;  %13294 = vpow2.f32 %v5538_v35 }
 0x426   : > { %v5065_v60 = vpop.xlane.xlu1 %5064 }
 0x427   : > { %5778 = vadd.xlane.f32.xlu1 %v5777_v27  ;;  %13296 = vpow2.f32 %v5540_v15 }
 0x428   : > { %v16872_v11 = vpop.f32.mrb[192].mxu0 }
 0x429   : > { %20610 = vst [vmem:[#allocation56_spill] sm:$0xff] %v16872_v11  ;;  %v16876_v29 = vpop.f32.mrb[193].mxu0  ;;  %5079 = vmax.xlane.f32.xlu0 %v5078_v7  ;;  %v5192_v49 = vsel %vm4993_vm2, %v16872_v11, -inf }
 0x42a   : > { %20611 = vst [vmem:[#allocation54_spill] sm:$0xff] %v16876_v29  ;;  %v16878_v42 = vpop.f32.mrb[194].mxu0  ;;  %v5186_v35 = vsel %vm4993_vm2, %v16876_v29, -inf  ;;  %v5059_v5 = vpop.xlane.xlu1 %5058 }
 0x42b   : > { %20612 = vst [vmem:[#allocation45_spill] sm:$0xff] %v16878_v42  ;;  %v16882_v34 = vpop.f32.mrb[195].mxu0  ;;  %5082 = vmax.xlane.f32.xlu1 %v5081_v17  ;;  %v5195_v14 = vsel %vm4993_vm2, %v16878_v42, -inf  ;;  %v16900_v7 = vpop.eup %13290 }
 0x42c   : > { %20613 = vst [vmem:[#allocation43_spill] sm:$0xff] %v16882_v34  ;;  %20618 = vst [vmem:[#allocation51_spill] sm:$0xff] %v16900_v7  ;;  %v5062_v17 = vpop.xlane.xlu0 %5061  ;;  %v5189_v50 = vsel %vm4993_vm2, %v16882_v34, -inf  ;;  %v5816_v23 = vsel %vm4993_vm2, %v16900_v7, 0.0 }
 0x42d   : > { %v16886_v12 = vpop.f32.mrb[240].mxu1  ;;  %5193 = vmax.xlane.f32.xlu0 %v5192_v49  ;;  %v16908_v26 = vpop.eup %13292  ;;  %v5400_v11 = vsub.f32 %v16408_v48, %v5062_v17  ;;  %v5399_v17 = vsub.f32 %v16434_v1, %v5059_v5 }
 0x42e   : > { %v16888_v21 = vpop.f32.mrb[241].mxu1  ;;  %20621 = vst [vmem:[#allocation59_spill] sm:$0xff] %v16908_v26  ;;  %v5819_v3 = vsel %vm4993_vm2, %v16908_v26, 0.0  ;;  %v5120_v48 = vsel %vm4993_vm2, %v16886_v12, -inf }
 0x42f   : > { %20614 = vst [vmem:[#allocation44_spill] sm:$0xff] %v16888_v21  ;;  %v16892_v33 = vpop.f32.mrb[242].mxu1  ;;  %5196 = vmax.xlane.f32.xlu1 %v5195_v14  ;;  %v16914_v19 = vpop.eup %13294  ;;  %v5550_v13 = vmul.f32 1.442695, %v5400_v11  ;;  %v5548_v11 = vmul.f32 1.442695, %v5399_v17 }
 0x430   : > { %20615 = vst [vmem:[#allocation42_spill] sm:$0xff] %v16892_v33  ;;  %v16894_v4 = vpop.f32.mrb[243].mxu1  ;;  %v16896_v27 = vpop.f32.mrb[196].mxu0  ;;  %20623 = vst [vmem:[#allocation2_spill] sm:$0xff] %v16914_v19  ;;  %v5810_v7 = vsel %vm4993_vm2, %v16914_v19, 0.0  ;;  %v5123_v19 = vsel %vm4993_vm2, %v16892_v33, -inf }
 0x431   : > { %20616 = vst [vmem:[#allocation53_spill] sm:$0xff] %v16894_v4  ;;  %20617 = vst [vmem:[#allocation49_spill] sm:$0xff] %v16896_v27  ;;  %v16902_v15 = vpop.f32.mrb[197].mxu0  ;;  %5187 = vmax.xlane.f32.xlu0 %v5186_v35  ;;  %v16922_v42 = vpop.eup %13296  ;;  %13298 = vpow2.f32 %v5550_v13  ;;  %v5204_v1 = vsel %vm4993_vm2, %v16896_v27, -inf }
 0x432   : > { %20619 = vst [vmem:[#allocation47_spill] sm:$0xff] %v16902_v15  ;;  %v16904_v49 = vpop.f32.mrb[198].mxu0  ;;  %20625 = vst [vmem:[#allocation58_spill] sm:$0xff] %v16922_v42  ;;  %v5813_v26 = vsel %vm4993_vm2, %v16922_v42, 0.0  ;;  %v5198_v13 = vsel %vm4993_vm2, %v16902_v15, -inf  ;;  %v20638_v15 = vld [vmem:[#allocation33_spill] sm:$0xff] }
 0x433   : > { %20620 = vst [vmem:[#allocation61_spill] sm:$0xff] %v16904_v49  ;;  %v16910_v14 = vpop.f32.mrb[199].mxu0  ;;  %5190 = vmax.xlane.f32.xlu1 %v5189_v50  ;;  %v5056_v50 = vpop.xlane.xlu0 %5055 }
 0x434   : > { %20622 = vst [vmem:[#allocation3_spill] sm:$0xff] %v16910_v14  ;;  %v5398_v61 = vsub.f32 %v16419_v25, %v5056_v50  ;;  %v5117_v25 = vsel %vm4993_vm2, %v16894_v4, -inf }
 0x435   : > { %5817 = vadd.xlane.f32.xlu0 %v5816_v23  ;;  %v5401_v23 = vsub.f32 %v16427_v38, %v5065_v60  ;;  %v5114_v60 = vsel %vm4993_vm2, %v16888_v21, -inf }
 0x436   : > { %v16916_v18 = vpop.f32.mrb[244].mxu1  ;;  %v5546_v38 = vmul.f32 1.442695, %v5398_v61 }
 0x437   : > { %v16918_v35 = vpop.f32.mrb[245].mxu1  ;;  %5820 = vadd.xlane.f32.xlu1 %v5819_v3  ;;  %v5552_v3 = vmul.f32 1.442695, %v5401_v23  ;;  %v5201_v23 = vsel %vm4993_vm2, %v16910_v14, -inf }
 0x438   : > { %20624 = vst [vmem:[#allocation60_spill] sm:$0xff] %v16918_v35  ;;  %v16925_v34 = vpop.f32.mrb[246].mxu1 }
 0x439   : > { %v16927_v29 = vpop.f32.mrb[247].mxu1  ;;  %5811 = vadd.xlane.f32.xlu0 %v5810_v7  ;;  %13300 = vpow2.f32 %v5552_v3 }
 0x43a   : > { %20626 = vst [vmem:[#allocation65_spill] sm:$0xff] %v16927_v29  ;;  %13302 = vpow2.f32 %v5546_v38 }
 0x43b   : > { %5814 = vadd.xlane.f32.xlu1 %v5813_v26  ;;  %13304 = vpow2.f32 %v5548_v11  ;;  %v5207_v26 = vsel %vm4993_vm2, %v16904_v49, -inf  ;;  %v16952_v5 = vpop.eup %13298 }
 0x43c   : > { %20628 = vst [vmem:[#allocation5_spill] sm:$0xff] %v16952_v5  ;;  %v5098_v61 = vpop.xlane.xlu0 %5097  ;;  %v5828_v38 = vsel %vm4993_vm2, %v16952_v5, 0.0 }
 0x43d   : > { %5121 = vmax.xlane.f32.xlu0 %v5120_v48 }
 0x43e   : > { %v5101_v17 = vpop.xlane.xlu1 %5100 }
 0x43f   : > { %5124 = vmax.xlane.f32.xlu1 %v5123_v19  ;;  %v5413_v5 = vsub.f32 %v20638_v15, %v5101_v17 }
 0x440   : > { %v5092_v49 = vpop.xlane.xlu0 %5091 }
 0x441   : > { %5115 = vmax.xlane.f32.xlu0 %v5114_v60  ;;  %v5576_v33 = vmul.f32 1.442695, %v5413_v5  ;;  %v5126_v5 = vsel %vm4993_vm2, %v16918_v35, -inf }
 0x443   : > { %5118 = vmax.xlane.f32.xlu1 %v5117_v25  ;;  %v16960_v48 = vpop.eup %13300 }
 0x444   : > { %20631 = vst [vmem:[#allocation62_spill] sm:$0xff] %v16960_v48  ;;  %v16966_v60 = vpop.eup %13302 }
 0x445   : > { %5205 = vmax.xlane.f32.xlu0 %v5204_v1  ;;  %20633 = vst [vmem:[#allocation9_spill] sm:$0xff] %v16966_v60  ;;  %v5831_v1 = vsel %vm4993_vm2, %v16960_v48, 0.0  ;;  %v5095_v48 = vpop.xlane.xlu1 %5094 }
 0x446   : > { %v5411_v15 = vsub.f32 %v16542_v10, %v5095_v48  ;;  %v5129_v48 = vsel %vm4993_vm2, %v16927_v29, -inf }
 0x447   : > { %5208 = vmax.xlane.f32.xlu1 %v5207_v26  ;;  %v16974_v26 = vpop.eup %13304 }
 0x448   : > { %v16948_v19 = vpop.f32.mrb[200].mxu0  ;;  %20635 = vst [vmem:[#allocation15_spill] sm:$0xff] %v16974_v26  ;;  %v5572_v10 = vmul.f32 1.442695, %v5411_v15 }
 0x449   : > { %20627 = vst [vmem:[#allocation63_spill] sm:$0xff] %v16948_v19  ;;  %v16954_v7 = vpop.f32.mrb[201].mxu0  ;;  %5199 = vmax.xlane.f32.xlu0 %v5198_v13  ;;  %v5412_v13 = vsub.f32 %v16525_v24, %v5098_v61  ;;  %v5825_v24 = vsel %vm4993_vm2, %v16974_v26, 0.0  ;;  %v5135_v26 = vsel %vm4993_vm2, %v16925_v34, -inf }
 0x44a   : > { %20629 = vst [vmem:[#allocation4_spill] sm:$0xff] %v16954_v7  ;;  %v16956_v50 = vpop.f32.mrb[202].mxu0 }
 0x44b   : > { %20630 = vst [vmem:[#allocation64_spill] sm:$0xff] %v16956_v50  ;;  %v16962_v3 = vpop.f32.mrb[203].mxu0  ;;  %5202 = vmax.xlane.f32.xlu1 %v5201_v23  ;;  %v5574_v61 = vmul.f32 1.442695, %v5412_v13 }
 0x44c   : > { %20632 = vst [vmem:[#allocation17_spill] sm:$0xff] %v16962_v3 }
 0x44d   : > { %5829 = vadd.xlane.f32.xlu0 %v5828_v38  ;;  %v5822_v38 = vsel %vm4993_vm2, %v16966_v60, 0.0  ;;  %v5132_v60 = vsel %vm4993_vm2, %v16916_v18, -inf  ;;  %13306 = vpow2.f32 %v5574_v61  ;;  %v5110_v61 = vpop.xlane.xlu0 %5109 }
 0x44e   : > { %v16968_v11 = vpop.f32.mrb[248].mxu1  ;;  %13308 = vpow2.f32 %v5576_v33 }
 0x44f   : > { %v16970_v25 = vpop.f32.mrb[249].mxu1  ;;  %5832 = vadd.xlane.f32.xlu1 %v5831_v1  ;;  %v5410_v1 = vsub.f32 %v16532_v31, %v5092_v49 }
 0x450   : > { %20634 = vst [vmem:[#allocation8_spill] sm:$0xff] %v16970_v25  ;;  %v16977_v23 = vpop.f32.mrb[250].mxu1  ;;  %v16981_v14 = vpop.f32.mrb[204].mxu0 }
 0x451   : > { %v16979_v27 = vpop.f32.mrb[251].mxu1  ;;  %20637 = vst [vmem:[#allocation90_spill] sm:$0xff] %v16981_v14  ;;  %v16986_v42 = vpop.f32.mrb[205].mxu0  ;;  %5823 = vadd.xlane.f32.xlu0 %v5822_v38  ;;  %v5570_v13 = vmul.f32 1.442695, %v5410_v1  ;;  %v5237_v1 = vsel %vm4993_vm2, %v16962_v3, -inf }
 0x452   : > { %20636 = vst [vmem:[#allocation14_spill] sm:$0xff] %v16979_v27  ;;  %20639 = vst [vmem:[#allocation33_spill] sm:$0xff] %v16986_v42  ;;  %v16988_v4 = vpop.f32.mrb[206].mxu0  ;;  %v20648_v3 = vld [vmem:[#allocation27_spill] sm:$0xff] }
 0x453   : > { %20640 = vst [vmem:[#allocation91_spill] sm:$0xff] %v16988_v4  ;;  %v16993_v21 = vpop.f32.mrb[207].mxu0  ;;  %5826 = vadd.xlane.f32.xlu1 %v5825_v24  ;;  %13310 = vpow2.f32 %v5570_v13  ;;  %v5234_v24 = vsel %vm4993_vm2, %v16954_v7, -inf  ;;  %v5113_v13 = vpop.xlane.xlu1 %5112 }
 0x454   : > { %20641 = vst [vmem:[#allocation92_spill] sm:$0xff] %v16993_v21  ;;  %13312 = vpow2.f32 %v5572_v10  ;;  %v5417_v7 = vsub.f32 %v20648_v3, %v5113_v13 }
 0x455   : > { %5133 = vmax.xlane.f32.xlu0 %v5132_v60  ;;  %v5240_v60 = vsel %vm4993_vm2, %v16948_v19, -inf }
 0x456   : > { %v16998_v17 = vpop.f32.mrb[252].mxu1 }
 0x457   : > { %v17000_v38 = vpop.f32.mrb[253].mxu1  ;;  %5136 = vmax.xlane.f32.xlu1 %v5135_v26  ;;  %v5243_v26 = vsel %vm4993_vm2, %v16956_v50, -inf  ;;  %v17018_v33 = vpop.eup %13306 }
 0x458   : > { %v17004_v31 = vpop.f32.mrb[254].mxu1  ;;  %20642 = vst [vmem:[#allocation93_spill] sm:$0xff] %v17018_v33  ;;  %v17022_v15 = vpop.eup %13308 }
 0x459   : > { %v17006_v49 = vpop.f32.mrb[255].mxu1  ;;  %5127 = vmax.xlane.f32.xlu0 %v5126_v5  ;;  %20643 = vst [vmem:[#allocation94_spill] sm:$0xff] %v17022_v15  ;;  %v5864_v5 = vsel %vm4993_vm2, %v17018_v33, 0.0  ;;  %v5104_v50 = vpop.xlane.xlu0 %5103 }
 0x45b   : > { %5130 = vmax.xlane.f32.xlu1 %v5129_v48  ;;  %v5867_v48 = vsel %vm4993_vm2, %v17022_v15, 0.0 }
 0x45d   : > { %5241 = vmax.xlane.f32.xlu0 %v5240_v60  ;;  %v17026_v10 = vpop.eup %13310 }
 0x45e   : > { %20644 = vst [vmem:[#allocation95_spill] sm:$0xff] %v17026_v10  ;;  %v17030_v60 = vpop.eup %13312 }
 0x45f   : > { %5244 = vmax.xlane.f32.xlu1 %v5243_v26  ;;  %20645 = vst [vmem:[#allocation96_spill] sm:$0xff] %v17030_v60  ;;  %v20646_v26 = vld [vmem:[#allocation29_spill] sm:$0xff]  ;;  %v5861_v15 = vsel %vm4993_vm2, %v17030_v60, 0.0 }
 0x461   : > { %5235 = vmax.xlane.f32.xlu0 %v5234_v24  ;;  %v5416_v24 = vsub.f32 %v20646_v26, %v5110_v61  ;;  %v5414_v61 = vsub.f32 %v16563_v0, %v5104_v50  ;;  %v5168_v26 = vsel %vm4993_vm2, %v16968_v11, -inf }
 0x463   : > { %5238 = vmax.xlane.f32.xlu1 %v5237_v1  ;;  %v5858_v1 = vsel %vm4993_vm2, %v17026_v10, 0.0  ;;  %v5582_v35 = vmul.f32 1.442695, %v5416_v24  ;;  %v5584_v10 = vmul.f32 1.442695, %v5417_v7  ;;  %v5171_v24 = vsel %vm4993_vm2, %v16977_v23, -inf }
 0x464   : > { %v5578_v0 = vmul.f32 1.442695, %v5414_v61 }
 0x465   : > { %5865 = vadd.xlane.f32.xlu0 %v5864_v5  ;;  %v5107_v5 = vpop.xlane.xlu1 %5106  ;;  %13314 = vpow2.f32 %v5582_v35  ;;  %v5165_v35 = vsel %vm4993_vm2, %v16979_v27, -inf }
 0x466   : > { %v5415_v3 = vsub.f32 %v16580_v63, %v5107_v5  ;;  %v5162_v63 = vsel %vm4993_vm2, %v16970_v25, -inf  ;;  %13316 = vpow2.f32 %v5584_v10 }
 0x467   : > { %5868 = vadd.xlane.f32.xlu1 %v5867_v48  ;;  %13318 = vpow2.f32 %v5578_v0 }
 0x468   : > { %v5580_v7 = vmul.f32 1.442695, %v5415_v3 }
 0x469   : > { %v17033_v19 = vpop.f32.mrb[208].mxu0  ;;  %5859 = vadd.xlane.f32.xlu0 %v5858_v1  ;;  %v5146_v1 = vpop.xlane.xlu0 %5145 }
 0x46a   : > { %20647 = vst [vmem:[#allocation29_spill] sm:$0xff] %v17033_v19  ;;  %v17038_v33 = vpop.f32.mrb[209].mxu0  ;;  %13320 = vpow2.f32 %v5580_v7  ;;  %v5428_v0 = vsub.f32 %v16649_v8, %v5146_v1 }
 0x46b   : > { %20649 = vst [vmem:[#allocation27_spill] sm:$0xff] %v17038_v33  ;;  %v17040_v29 = vpop.f32.mrb[210].mxu0  ;;  %5862 = vadd.xlane.f32.xlu1 %v5861_v15  ;;  %v5149_v15 = vpop.xlane.xlu1 %5148 }
 0x46c   : > { %20650 = vst [vmem:[#allocation97_spill] sm:$0xff] %v17040_v29  ;;  %v17045_v48 = vpop.f32.mrb[211].mxu0  ;;  %v5606_v8 = vmul.f32 1.442695, %v5428_v0 }
 0x46d   : > { %20651 = vst [vmem:[#allocation98_spill] sm:$0xff] %v17045_v48  ;;  %5169 = vmax.xlane.f32.xlu0 %v5168_v26  ;;  %v5252_v48 = vsel %vm4993_vm2, %v16981_v14, -inf  ;;  %v5246_v14 = vsel %vm4993_vm2, %v16986_v42, -inf }
 0x46e   : > { %v17050_v13 = vpop.f32.mrb[0].mxu1  ;;  %13322 = vpow2.f32 %v5606_v8 }
 0x46f   : > { %20652 = vst [vmem:[#allocation99_spill] sm:$0xff] %v17050_v13  ;;  %v17052_v29 = vpop.f32.mrb[1].mxu1  ;;  %5172 = vmax.xlane.f32.xlu1 %v5171_v24  ;;  %v5140_v24 = vpop.xlane.xlu0 %5139 }
 0x470   : > { %20653 = vst [vmem:[#allocation100_spill] sm:$0xff] %v17052_v29  ;;  %v17056_v50 = vpop.f32.mrb[2].mxu1  ;;  %v5143_v3 = vpop.xlane.xlu1 %5142  ;;  %v5426_v1 = vsub.f32 %v16652_v37, %v5140_v24 }
 0x471   : > { %20654 = vst [vmem:[#allocation101_spill] sm:$0xff] %v17056_v50  ;;  %v17058_v60 = vpop.f32.mrb[3].mxu1  ;;  %v17062_v5 = vpop.f32.mrb[212].mxu0  ;;  %5163 = vmax.xlane.f32.xlu0 %v5162_v63 }
 0x472   : > { %20655 = vst [vmem:[#allocation102_spill] sm:$0xff] %v17058_v60  ;;  %20656 = vst [vmem:[#allocation103_spill] sm:$0xff] %v17062_v5  ;;  %v17064_v26 = vpop.f32.mrb[213].mxu0  ;;  %v5255_v5 = vsel %vm4993_vm2, %v16988_v4, -inf  ;;  %v17087_v7 = vpop.eup %13314  ;;  %v5602_v0 = vmul.f32 1.442695, %v5426_v1 }
 0x473   : > { %20657 = vst [vmem:[#allocation104_spill] sm:$0xff] %v17064_v26  ;;  %v17068_v61 = vpop.f32.mrb[214].mxu0  ;;  %5166 = vmax.xlane.f32.xlu1 %v5165_v35  ;;  %20664 = vst [vmem:[#allocation111_spill] sm:$0xff] %v17087_v7  ;;  %v5249_v26 = vsel %vm4993_vm2, %v16993_v21, -inf  ;;  %v17092_v4 = vpop.eup %13316  ;;  %v5876_v27 = vsel %vm4993_vm2, %v17087_v7, 0.0  ;;  %v5174_v1 = vsel %vm4993_vm2, %v17000_v38, -inf }
 0x474   : > { %20658 = vst [vmem:[#allocation105_spill] sm:$0xff] %v17068_v61  ;;  %v17070_v19 = vpop.f32.mrb[215].mxu0  ;;  %v17097_v42 = vpop.eup %13318 }
 0x475   : > { %20659 = vst [vmem:[#allocation106_spill] sm:$0xff] %v17070_v19  ;;  %5253 = vmax.xlane.f32.xlu0 %v5252_v48  ;;  %v5429_v48 = vsub.f32 %v16656_v58, %v5149_v15  ;;  %v5158_v19 = vpop.xlane.xlu0 %5157  ;;  %20665 = vst [vmem:[#allocation112_spill] sm:$0xff] %v17097_v42  ;;  %v5427_v58 = vsub.f32 %v16660_v16, %v5143_v3  ;;  %v17102_v15 = vpop.eup %13320  ;;  %v5180_v3 = vsel %vm4993_vm2, %v16998_v17, -inf }
 0x476   : > { %v17074_v10 = vpop.f32.mrb[4].mxu1  ;;  %20666 = vst [vmem:[#allocation113_spill] sm:$0xff] %v17102_v15  ;;  %v5873_v16 = vsel %vm4993_vm2, %v17102_v15, 0.0  ;;  %v5432_v8 = vsub.f32 %v16677_v20, %v5158_v19 }
 0x477   : > { %20660 = vst [vmem:[#allocation107_spill] sm:$0xff] %v17074_v10  ;;  %v17076_v63 = vpop.f32.mrb[5].mxu1  ;;  %5256 = vmax.xlane.f32.xlu1 %v5255_v5  ;;  %v5161_v5 = vpop.xlane.xlu1 %5160  ;;  %v5608_v25 = vmul.f32 1.442695, %v5429_v48  ;;  %v5604_v24 = vmul.f32 1.442695, %v5427_v58 }
 0x478   : > { %20661 = vst [vmem:[#allocation108_spill] sm:$0xff] %v17076_v63  ;;  %v17081_v61 = vpop.f32.mrb[6].mxu1  ;;  %v17119_v58 = vpop.eup %13322  ;;  %v5614_v20 = vmul.f32 1.442695, %v5432_v8 }
 0x479   : > { %20662 = vst [vmem:[#allocation109_spill] sm:$0xff] %v17081_v61  ;;  %v17083_v35 = vpop.f32.mrb[7].mxu1  ;;  %5247 = vmax.xlane.f32.xlu0 %v5246_v14  ;;  %v5879_v14 = vsel %vm4993_vm2, %v17092_v4, 0.0  ;;  %v5152_v37 = vpop.xlane.xlu0 %5151  ;;  %13324 = vpow2.f32 %v5608_v25  ;;  %v5183_v25 = vsel %vm4993_vm2, %v17004_v31, -inf  ;;  %20667 = vst [vmem:[#allocation114_spill] sm:$0xff] %v17119_v58 }
 0x47a   : > { %20663 = vst [vmem:[#allocation110_spill] sm:$0xff] %v17083_v35  ;;  %13326 = vpow2.f32 %v5602_v0  ;;  %v5430_v19 = vsub.f32 %v16680_v30, %v5152_v37 }
 0x47b   : > { %5250 = vmax.xlane.f32.xlu1 %v5249_v26  ;;  %v5870_v26 = vsel %vm4993_vm2, %v17097_v42, 0.0  ;;  %v5155_v21 = vpop.xlane.xlu1 %5154  ;;  %13328 = vpow2.f32 %v5604_v24 }
 0x47c   : > { %13330 = vpow2.f32 %v5614_v20  ;;  %v5610_v8 = vmul.f32 1.442695, %v5430_v19 }
 0x47d   : > { %5877 = vadd.xlane.f32.xlu0 %v5876_v27  ;;  %v17108_v27 = vpop.xlane.xlu0 %5025 }
 0x47f   : > { %5880 = vadd.xlane.f32.xlu1 %v5879_v14  ;;  %v17112_v48 = vpop.xlane.xlu1 %5028  ;;  %v5433_v14 = vsub.f32 %v16685_v39, %v5161_v5  ;;  %v5912_v5 = vsel %vm4993_vm2, %v17119_v58, 0.0 }
 0x481   : > { %5871 = vadd.xlane.f32.xlu0 %v5870_v26  ;;  %v17124_v26 = vpop.xlane.xlu0 %5019 }
 0x483   : > { %5874 = vadd.xlane.f32.xlu1 %v5873_v16  ;;  %v5177_v16 = vsel %vm4993_vm2, %v17006_v49, -inf  ;;  %v5023_v7 = vpop.xlane.xlu1 %5022 }
 0x485   : > { %5181 = vmax.xlane.f32.xlu0 %v5180_v3  ;;  %v17130_v3 = vpop.eup %13324 }
 0x486   : > { %20670 = vst [vmem:[#allocation117_spill] sm:$0xff] %v17130_v3  ;;  %v5915_v30 = vsel %vm4993_vm2, %v17130_v3, 0.0 }
 0x487   : > { %5184 = vmax.xlane.f32.xlu1 %v5183_v25 }
 0x489   : > { %v17122_v0 = vpop.f32.mrb[216].mxu0  ;;  %5175 = vmax.xlane.f32.xlu0 %v5174_v1  ;;  %v17139_v1 = vpop.eup %13326 }
 0x48a   : > { %20668 = vst [vmem:[#allocation115_spill] sm:$0xff] %v17122_v0  ;;  %v17126_v24 = vpop.f32.mrb[217].mxu0  ;;  %20673 = vst [vmem:[#allocation120_spill] sm:$0xff] %v17139_v1  ;;  %v5616_v0 = vmul.f32 1.442695, %v5433_v14  ;;  %v17146_v37 = vpop.eup %13328 }
 0x48b   : > { %20669 = vst [vmem:[#allocation116_spill] sm:$0xff] %v17126_v24  ;;  %v17133_v25 = vpop.f32.mrb[218].mxu0  ;;  %5178 = vmax.xlane.f32.xlu1 %v5177_v16  ;;  %v5431_v24 = vsub.f32 %v16688_v59, %v5155_v21  ;;  %20675 = vst [vmem:[#allocation122_spill] sm:$0xff] %v17146_v37  ;;  %v5906_v59 = vsel %vm4993_vm2, %v17139_v1, 0.0  ;;  %v5909_v20 = vsel %vm4993_vm2, %v17146_v37, 0.0 }
 0x48c   : > { %20671 = vst [vmem:[#allocation118_spill] sm:$0xff] %v17133_v25  ;;  %v17135_v39 = vpop.f32.mrb[219].mxu0  ;;  %v17150_v25 = vpop.xlane.xlu0 %5037  ;;  %13332 = vpow2.f32 %v5616_v0  ;;  %v5216_v0 = vsel %vm4993_vm2, %v17050_v13, -inf  ;;  %v5389_v13 = vsub.f32 %v16751_v57, %v17112_v48  ;;  %v5213_v57 = vsel %vm4993_vm2, %v17058_v60, -inf }
 0x48d   : > { %20672 = vst [vmem:[#allocation119_spill] sm:$0xff] %v17135_v39  ;;  %5913 = vadd.xlane.f32.xlu0 %v5912_v5  ;;  %v5612_v21 = vmul.f32 1.442695, %v5431_v24  ;;  %v17158_v5 = vpop.xlane.xlu1 %5040  ;;  %13334 = vpow2.f32 %v5610_v8  ;;  %v5388_v8 = vsub.f32 %v16743_v62, %v17108_v27  ;;  %v5387_v62 = vsub.f32 %v16753_v45, %v5023_v7 }
 0x48e   : > { %v5528_v37 = vmul.f32 1.442695, %v5389_v13 }
 0x48f   : > { %v17142_v15 = vpop.f32.mrb[8].mxu1  ;;  %5916 = vadd.xlane.f32.xlu1 %v5915_v30  ;;  %13336 = vpow2.f32 %v5612_v21 }
 0x490   : > { %20674 = vst [vmem:[#allocation121_spill] sm:$0xff] %v17142_v15  ;;  %v17148_v16 = vpop.f32.mrb[9].mxu1 }
 0x491   : > { %20676 = vst [vmem:[#allocation123_spill] sm:$0xff] %v17148_v16  ;;  %v17152_v39 = vpop.f32.mrb[10].mxu1  ;;  %5907 = vadd.xlane.f32.xlu0 %v5906_v59  ;;  %v17172_v59 = vpop.xlane.xlu0 %5031 }
 0x492   : > { %20677 = vst [vmem:[#allocation124_spill] sm:$0xff] %v17152_v39  ;;  %v17156_v14 = vpop.f32.mrb[11].mxu1  ;;  %v17160_v58 = vpop.f32.mrb[220].mxu0 }
 0x493   : > { %20678 = vst [vmem:[#allocation125_spill] sm:$0xff] %v17156_v14  ;;  %20679 = vst [vmem:[#allocation126_spill] sm:$0xff] %v17160_v58  ;;  %v17164_v19 = vpop.f32.mrb[221].mxu0  ;;  %5910 = vadd.xlane.f32.xlu1 %v5909_v20  ;;  %v5219_v58 = vsel %vm4993_vm2, %v17056_v50, -inf  ;;  %v17184_v21 = vpop.xlane.xlu1 %5034  ;;  %v5386_v50 = vsub.f32 %v16747_v6, %v17124_v26  ;;  %v5524_v26 = vmul.f32 1.442695, %v5387_v62 }
 0x494   : > { %20680 = vst [vmem:[#allocation127_spill] sm:$0xff] %v17164_v19  ;;  %v17166_v30 = vpop.f32.mrb[222].mxu0 }
 0x495   : > { %20681 = vst [vmem:[#allocation128_spill] sm:$0xff] %v17166_v30  ;;  %v17170_v24 = vpop.f32.mrb[223].mxu0  ;;  %5217 = vmax.xlane.f32.xlu0 %v5216_v0  ;;  %v5210_v0 = vsel %vm4993_vm2, %v17052_v29, -inf  ;;  %v5522_v6 = vmul.f32 1.442695, %v5386_v50 }
 0x496   : > { %20682 = vst [vmem:[#allocation129_spill] sm:$0xff] %v17170_v24  ;;  %v17190_v24 = vpop.eup %13330 }
 0x497   : > { %v17174_v1 = vpop.f32.mrb[12].mxu1  ;;  %5220 = vmax.xlane.f32.xlu1 %v5219_v58  ;;  %v17199_v48 = vpop.eup %13332  ;;  %v5526_v58 = vmul.f32 1.442695, %v5388_v8  ;;  %v5924_v3 = vsel %vm4993_vm2, %v17190_v24, 0.0 }
 0x498   : > { %20683 = vst [vmem:[#allocation130_spill] sm:$0xff] %v17174_v1  ;;  %v17180_v20 = vpop.f32.mrb[13].mxu1  ;;  %v17203_v42 = vpop.eup %13334  ;;  %v5927_v45 = vsel %vm4993_vm2, %v17199_v48, 0.0 }
 0x499   : > { %20684 = vst [vmem:[#allocation131_spill] sm:$0xff] %v17180_v20  ;;  %v17186_v30 = vpop.f32.mrb[14].mxu1  ;;  %5211 = vmax.xlane.f32.xlu0 %v5210_v0  ;;  %v17209_v7 = vpop.eup %13336  ;;  %13338 = vpow2.f32 %v5526_v58  ;;  %v5918_v8 = vsel %vm4993_vm2, %v17203_v42, 0.0  ;;  %v5231_v58 = vsel %vm4993_vm2, %v17081_v61, -inf }
 0x49a   : > { %20685 = vst [vmem:[#allocation132_spill] sm:$0xff] %v17186_v30  ;;  %v17194_v19 = vpop.f32.mrb[15].mxu1  ;;  %v5770_v27 = vpop.xlane.xlu0 %5769  ;;  %13340 = vpow2.f32 %v5528_v37 }
 0x49b   : > { %20686 = vst [vmem:[#allocation133_spill] sm:$0xff] %v17194_v19  ;;  %5214 = vmax.xlane.f32.xlu1 %v5213_v57  ;;  %13342 = vpow2.f32 %v5522_v6  ;;  %v5228_v57 = vsel %vm4993_vm2, %v17074_v10, -inf  ;;  %v5392_v6 = vsub.f32 %v16763_v56, %v17150_v25  ;;  %v5391_v56 = vsub.f32 %v16772_v2, %v17184_v21 }
 0x49c   : > { %v5773_v29 = vpop.xlane.xlu1 %5772  ;;  %13344 = vpow2.f32 %v5524_v26 }
 0x49d   : > { %5925 = vadd.xlane.f32.xlu0 %v5924_v3  ;;  %v5921_v3 = vsel %vm4993_vm2, %v17209_v7, 0.0  ;;  %13346 = vrcp.f32 %v5773_v29  ;;  %v5393_v29 = vsub.f32 %v16770_v55, %v17158_v5  ;;  %v5225_v55 = vsel %vm4993_vm2, %v17083_v35, -inf }
 0x49e   : > { %v17205_v0 = vpop.xlane.xlu0 %5073  ;;  %v5532_v2 = vmul.f32 1.442695, %v5391_v56 }
 0x49f   : > { %5928 = vadd.xlane.f32.xlu1 %v5927_v45  ;;  %v5222_v45 = vsel %vm4993_vm2, %v17076_v63, -inf }
 0x4a0   : > { %v17211_v13 = vpop.xlane.xlu1 %5076 }
 0x4a1   : > { %5919 = vadd.xlane.f32.xlu0 %v5918_v8  ;;  %v5390_v8 = vsub.f32 %v16766_v51, %v17172_v59 }
 0x4a2   : > { %v5764_v50 = vpop.xlane.xlu0 %5763 }
 0x4a3   : > { %5922 = vadd.xlane.f32.xlu1 %v5921_v3  ;;  %13348 = vrcp.f32 %v5764_v50  ;;  %v5534_v3 = vmul.f32 1.442695, %v5392_v6 }
 0x4a4   : > { %v5767_v62 = vpop.xlane.xlu1 %5766  ;;  %13350 = vrcp.f32 %v5770_v27  ;;  %v17231_v27 = vpop.eup %13338 }
 0x4a5   : > { %5229 = vmax.xlane.f32.xlu0 %v5228_v57  ;;  %13352 = vrcp.f32 %v5767_v62  ;;  %20687 = vst [vmem:[#allocation134_spill] sm:$0xff] %v17231_v27  ;;  %v17235_v50 = vpop.eup %13340  ;;  %v5536_v57 = vmul.f32 1.442695, %v5393_v29  ;;  %v5792_v51 = vsel %vm4993_vm2, %v17231_v27, 0.0  ;;  %v5404_v27 = vsub.f32 %v16812_v54, %v17205_v0 }
 0x4a6   : > { %v17219_v37 = vpop.xlane.xlu0 %5067  ;;  %v17241_v5 = vpop.eup %13342  ;;  %v5795_v35 = vsel %vm4993_vm2, %v17235_v50, 0.0  ;;  %13354 = vpow2.f32 %v5534_v3 }
 0x4a7   : > { %5232 = vmax.xlane.f32.xlu1 %v5231_v58  ;;  %v17243_v62 = vpop.eup %13344  ;;  %13356 = vpow2.f32 %v5536_v57  ;;  %v5786_v56 = vsel %vm4993_vm2, %v17241_v5, 0.0 }
 0x4a8   : > { %v17227_v26 = vpop.xlane.xlu1 %5070  ;;  %v13347_v59 = vpop.eup %13346 }
 0x4a9   : > { %5223 = vmax.xlane.f32.xlu0 %v5222_v45  ;;  %v5530_v45 = vmul.f32 1.442695, %v5390_v8 }
 0x4aa   : > { %v5782_v25 = vpop.xlane.xlu0 %5781 }
 0x4ab   : > { %5226 = vmax.xlane.f32.xlu1 %v5225_v55  ;;  %v6277_v55 = vmul.f32 %v13347_v59, %v16810_v44  ;;  %13358 = vpow2.f32 %v5530_v45  ;;  %v5789_v59 = vsel %vm4993_vm2, %v17243_v62, 0.0 }
 0x4ac   : > { %v5785_v58 = vpop.xlane.xlu1 %5784  ;;  %13360 = vpow2.f32 %v5532_v2 }
 0x4ad   : > { %5793 = vadd.xlane.f32.xlu0 %v5792_v51  ;;  %v13349_v63 = vpop.eup %13348  ;;  %13362 = vrcp.f32 %v5785_v58  ;;  %v5258_v58 = vsel %vm4993_vm2, %v17148_v16, -inf  ;;  %v20708_v16 = vld [vmem:[#allocation59_spill] sm:$0xff] }
 0x4ae   : > { %v17247_v21 = vpop.xlane.xlu0 %5085  ;;  %v13351_v61 = vpop.eup %13350  ;;  %v6274_v3 = vmul.f32 %v13349_v63, %v16825_v22  ;;  %v5402_v63 = vsub.f32 %v16814_v43, %v17219_v37 }
 0x4af   : > { %v17251_v6 = vpop.f32.mrb[16].mxu1  ;;  %5796 = vadd.xlane.f32.xlu1 %v5795_v35  ;;  %v13353_v29 = vpop.eup %13352  ;;  %v6276_v35 = vmul.f32 %v13351_v61, %v16806_v47  ;;  %v5405_v47 = vsub.f32 %v16819_v36, %v17211_v13  ;;  %v5558_v61 = vmul.f32 1.442695, %v5404_v27  ;;  %v20690_v13 = vld [vmem:[#allocation16_spill] sm:$0xff]  ;;  %v5403_v27 = vsub.f32 %v16821_v40, %v17227_v26 }
 0x4b0   : > { %v17254_v10 = vpop.f32.mrb[17].mxu1  ;;  %v17256_v8 = vpop.xlane.xlu1 %5088  ;;  %v6275_v60 = vmul.f32 %v13353_v29, %v16830_v53  ;;  %v5264_v53 = vsel %vm4993_vm2, %v17142_v15, -inf }
 0x4b1   : > { %20688 = vst [vmem:[#allocation135_spill] sm:$0xff] %v17254_v10  ;;  %v17260_v51 = vpop.f32.mrb[18].mxu1  ;;  %5787 = vadd.xlane.f32.xlu0 %v5786_v56  ;;  %v6403_v56 = vpack.c.bf16 %v6277_v55, %v6276_v35  ;;  %v17289_v2 = vpop.eup %13354  ;;  %v5560_v29 = vmul.f32 1.442695, %v5405_v47  ;;  %v5261_v35 = vsel %vm4993_vm2, %v17156_v14, -inf  ;;  %v5409_v40 = vsub.f32 %v16840_v46, %v17256_v8 }
 0x4b2   : > { %v17265_v57 = vpop.f32.mrb[19].mxu1  ;;  %v5776_v44 = vpop.xlane.xlu0 %5775  ;;  %v6402_v45 = vpack.c.bf16 %v6275_v60, %v6274_v3  ;;  %v5267_v60 = vsel %vm4993_vm2, %v17152_v39, -inf }
 0x4b3   : > { %20689 = vst [vmem:[#allocation136_spill] sm:$0xff] %v17265_v57  ;;  %5790 = vadd.xlane.f32.xlu1 %v5789_v59  ;;  %13364 = vrcp.f32 %v5776_v44  ;;  %v17295_v37 = vpop.eup %13356  ;;  %v5554_v59 = vmul.f32 1.442695, %v5402_v63 }
 0x4b4   : > { %v5779_v22 = vpop.xlane.xlu1 %5778  ;;  %13366 = vrcp.f32 %v5782_v25  ;;  %12547 = vmatprep.mubr.msk.bf16.mxu0 %vm4993_vm2, %v6402_v45 }
 0x4b5   : > { %5265 = vmax.xlane.f32.xlu0 %v5264_v53  ;;  %13368 = vrcp.f32 %v5779_v22  ;;  %12548 = vmatmul.mubr.msk.bf16.vlgmr.msra.gmra.mrb[224].mxu0 %vm4993_vm2, %v6403_v56  ;;  %v17305_v44 = vpop.eup %13358  ;;  %v5804_v56 = vsel %vm4993_vm2, %v17289_v2, 0.0  ;;  %v5556_v53 = vmul.f32 1.442695, %v5403_v27 }
 0x4b6   : > { %v5080_v54 = vpop.xlane.xlu0 %5079  ;;  %12572 = vmatpush3.bf16.msra.mxu0 %v20584_v9  ;;  %v5408_v9 = vsub.f32 %v16834_v52, %v17247_v21  ;;  %13370 = vpow2.f32 %v5558_v61  ;;  %v17310_v26 = vpop.eup %13360  ;;  %v20691_v21 = vld [vmem:[#allocation19_spill] sm:$0xff]  ;;  %v5568_v61 = vmul.f32 1.442695, %v5409_v40 }
 0x4b7   : > { %v17281_v0 = vpop.f32.mrb[20].mxu1  ;;  %5268 = vmax.xlane.f32.xlu1 %v5267_v60  ;;  %12573 = vmatprep.subr.bf16.mxu0 %v20690_v13  ;;  %v5406_v52 = vsub.f32 %v16836_v28, %v5080_v54  ;;  %v13363_v22 = vpop.eup %13362  ;;  %13372 = vpow2.f32 %v5560_v29  ;;  %v5807_v28 = vsel %vm4993_vm2, %v17295_v37, 0.0 }
 0x4b8   : > { %v17284_v36 = vpop.f32.mrb[21].mxu1  ;;  %v5083_v25 = vpop.xlane.xlu1 %5082  ;;  %v5566_v8 = vmul.f32 1.442695, %v5408_v9  ;;  %13374 = vpow2.f32 %v5554_v59  ;;  %v20693_v9 = vld [vmem:[#allocation38_spill] sm:$0xff]  ;;  %v20694_v59 = vld [vmem:[#allocation37_spill] sm:$0xff] }
 0x4b9   : > { %v17293_v43 = vpop.f32.mrb[22].mxu1  ;;  %5259 = vmax.xlane.f32.xlu0 %v5258_v58  ;;  %v5407_v47 = vsub.f32 %v16842_v41, %v5083_v25  ;;  %v20692_v58 = vld [vmem:[#allocation18_spill] sm:$0xff]  ;;  %v5798_v41 = vsel %vm4993_vm2, %v17305_v44, 0.0  ;;  %v6281_v25 = vmul.f32 %v13363_v22, %v16850_v32  ;;  %13376 = vpow2.f32 %v5556_v53  ;;  %v20696_v32 = vld [vmem:[#allocation69_spill] sm:$0xff] }
 0x4ba   : > { %v17299_v55 = vpop.f32.mrb[23].mxu1  ;;  %v17301_v3 = vpop.xlane.xlu0 %5193  ;;  %12574 = vmatpush3.bf16.msra.mxu0 %v20690_v13  ;;  %v5562_v13 = vmul.f32 1.442695, %v5406_v52  ;;  %13378 = vpow2.f32 %v5566_v8  ;;  %v5801_v52 = vsel %vm4993_vm2, %v17310_v26, 0.0 }
 0x4bb   : > { %5262 = vmax.xlane.f32.xlu1 %v5261_v35  ;;  %12575 = vmatprep.subr.bf16.mxu0 %v20691_v21  ;;  %v5564_v27 = vmul.f32 1.442695, %v5407_v47  ;;  %13380 = vpow2.f32 %v5568_v61  ;;  %v5270_v47 = vsel %vm4993_vm2, %v17180_v20, -inf }
 0x4bc   : > { %v17314_v45 = vpop.xlane.xlu1 %5196  ;;  %13382 = vpow2.f32 %v5562_v13 }
 0x4bd   : > { %5805 = vadd.xlane.f32.xlu0 %v5804_v56  ;;  %v13365_v46 = vpop.eup %13364  ;;  %v20695_v56 = vld [vmem:[#allocation46_spill] sm:$0xff]  ;;  %13384 = vpow2.f32 %v5564_v27 }
 0x4be   : > { %v17319_v60 = vpop.xlane.xlu0 %5187  ;;  %v13367_v54 = vpop.eup %13366  ;;  %12576 = vmatpush3.bf16.msra.mxu0 %v20691_v21  ;;  %v6278_v35 = vmul.f32 %v13365_v46, %v20693_v9 }
 0x4bf   : > { %5808 = vadd.xlane.f32.xlu1 %v5807_v28  ;;  %v13369_v63 = vpop.eup %13368  ;;  %12577 = vmatprep.subr.bf16.mxu0 %v20692_v58  ;;  %v6280_v28 = vmul.f32 %v13367_v54, %v20695_v56  ;;  %v5273_v54 = vsel %vm4993_vm2, %v17194_v19, -inf  ;;  %v20707_v19 = vld [vmem:[#allocation53_spill] sm:$0xff] }
 0x4c0   : > { %v17325_v29 = vpop.xlane.xlu1 %5190  ;;  %v6279_v40 = vmul.f32 %v13369_v63, %v20694_v59  ;;  %v17339_v46 = vpop.eup %13370 }
 0x4c1   : > { %5799 = vadd.xlane.f32.xlu0 %v5798_v41  ;;  %v6405_v53 = vpack.c.bf16 %v6281_v25, %v6280_v28  ;;  %20697 = vst [vmem:[#allocation16_spill] sm:$0xff] %v17339_v46  ;;  %v17345_v61 = vpop.eup %13372  ;;  %v5840_v13 = vsel %vm4993_vm2, %v17339_v46, 0.0  ;;  %v20711_v46 = vld [vmem:[#allocation51_spill] sm:$0xff] }
 0x4c2   : > { %v5818_v21 = vpop.xlane.xlu0 %5817  ;;  %12578 = vmatpush3.bf16.msra.mxu0 %v20692_v58  ;;  %v6404_v14 = vpack.c.bf16 %v6279_v40, %v6278_v35  ;;  %20698 = vst [vmem:[#allocation19_spill] sm:$0xff] %v17345_v61  ;;  %v17349_v58 = vpop.eup %13374  ;;  %v5843_v41 = vsel %vm4993_vm2, %v17345_v61, 0.0 }
 0x4c3   : > { %5802 = vadd.xlane.f32.xlu1 %v5801_v52  ;;  %12603 = vmatprep.subr.bf16.mxu0 %v20696_v32  ;;  %20699 = vst [vmem:[#allocation18_spill] sm:$0xff] %v17349_v58  ;;  %v17353_v25 = vpop.eup %13376  ;;  %v5834_v59 = vsel %vm4993_vm2, %v17349_v58, 0.0  ;;  %v20703_v52 = vld [vmem:[#allocation42_spill] sm:$0xff] }
 0x4c4   : > { %v5821_v22 = vpop.xlane.xlu1 %5820  ;;  %12551 = vmatprep.mubr.msk.bf16.mxu0 %vm4993_vm2, %v6404_v14  ;;  %20700 = vst [vmem:[#allocation38_spill] sm:$0xff] %v17353_v25  ;;  %v17356_v9 = vpop.eup %13378 }
 0x4c5   : > { %5271 = vmax.xlane.f32.xlu0 %v5270_v47  ;;  %13386 = vrcp.f32 %v5821_v22  ;;  %12552 = vmatmul.mubr.msk.bf16.gmra.mrb[228].mxu0 %vm4993_vm2, %v6405_v53  ;;  %20701 = vst [vmem:[#allocation37_spill] sm:$0xff] %v17356_v9  ;;  %v17360_v40 = vpop.eup %13380  ;;  %v5837_v53 = vsel %vm4993_vm2, %v17353_v25, 0.0 }
 0x4c6   : > { %v5812_v8 = vpop.xlane.xlu0 %5811  ;;  %20702 = vst [vmem:[#allocation46_spill] sm:$0xff] %v17360_v40  ;;  %v17363_v28 = vpop.eup %13382 }
 0x4c7   : > { %13388 = vrcp.f32 %v5812_v8  ;;  %5274 = vmax.xlane.f32.xlu1 %v5273_v54  ;;  %20704 = vst [vmem:[#allocation69_spill] sm:$0xff] %v17363_v28  ;;  %v20706_v54 = vld [vmem:[#allocation44_spill] sm:$0xff] }
 0x4c8   : > { %13390 = vrcp.f32 %v5818_v21  ;;  %v5815_v63 = vpop.xlane.xlu1 %5814 }
 0x4c9   : > { %13392 = vrcp.f32 %v5815_v63  ;;  %5841 = vadd.xlane.f32.xlu0 %v5840_v13 }
 0x4ca   : > { %v5122_v14 = vpop.xlane.xlu0 %5121 }
 0x4cb   : > { %v5420_v27 = vsub.f32 %v16886_v12, %v5122_v14  ;;  %5844 = vadd.xlane.f32.xlu1 %v5843_v41  ;;  %v17367_v12 = vpop.eup %13384 }
 0x4cc   : > { %v5125_v35 = vpop.xlane.xlu1 %5124  ;;  %20705 = vst [vmem:[#allocation42_spill] sm:$0xff] %v17367_v12 }
 0x4cd   : > { %v5590_v21 = vmul.f32 1.442695, %v5420_v27  ;;  %v5421_v56 = vsub.f32 %v20703_v52, %v5125_v35  ;;  %5835 = vadd.xlane.f32.xlu0 %v5834_v59  ;;  %v5852_v27 = vsel %vm4993_vm2, %v17356_v9, 0.0 }
 0x4ce   : > { %v5116_v22 = vpop.xlane.xlu0 %5115 }
 0x4cf   : > { %13394 = vpow2.f32 %v5590_v21  ;;  %v5592_v47 = vmul.f32 1.442695, %v5421_v56  ;;  %v17369_v8 = vpop.f32.mrb[24].mxu1  ;;  %v5418_v63 = vsub.f32 %v20706_v54, %v5116_v22  ;;  %5838 = vadd.xlane.f32.xlu1 %v5837_v53  ;;  %v13387_v13 = vpop.eup %13386  ;;  %v5855_v53 = vsel %vm4993_vm2, %v17360_v40, 0.0 }
 0x4d0   : > { %v17372_v14 = vpop.f32.mrb[25].mxu1  ;;  %v5119_v41 = vpop.xlane.xlu1 %5118  ;;  %v6293_v39 = vmul.f32 %v13387_v13, %v20708_v16  ;;  %v5849_v16 = vsel %vm4993_vm2, %v17367_v12, 0.0 }
 0x4d1   : > { %v13389_v35 = vpop.eup %13388  ;;  %13396 = vpow2.f32 %v5592_v47  ;;  %v5586_v59 = vmul.f32 1.442695, %v5418_v63  ;;  %v17376_v52 = vpop.f32.mrb[26].mxu1  ;;  %v5419_v21 = vsub.f32 %v20707_v19, %v5119_v41  ;;  %5853 = vadd.xlane.f32.xlu0 %v5852_v27  ;;  %v5846_v19 = vsel %vm4993_vm2, %v17363_v28, 0.0  ;;  %v20709_v63 = vld [vmem:[#allocation2_spill] sm:$0xff] }
 0x4d2   : > { %v13391_v56 = vpop.eup %13390  ;;  %v17379_v20 = vpop.f32.mrb[27].mxu1  ;;  %v6290_v41 = vmul.f32 %v13389_v35, %v20709_v63  ;;  %v20710_v27 = vld [vmem:[#allocation58_spill] sm:$0xff] }
 0x4d3   : > { %v17381_v22 = vpop.xlane.xlu0 %5205  ;;  %v13393_v54 = vpop.eup %13392  ;;  %13398 = vpow2.f32 %v5586_v59  ;;  %v5588_v15 = vmul.f32 1.442695, %v5419_v21  ;;  %5856 = vadd.xlane.f32.xlu1 %v5855_v53  ;;  %v6292_v25 = vmul.f32 %v13391_v56, %v20711_v46  ;;  %v20717_v56 = vld [vmem:[#allocation67_spill] sm:$0xff] }
 0x4d4   : > { %v17386_v47 = vpop.xlane.xlu1 %5208  ;;  %v6291_v9 = vmul.f32 %v13393_v54, %v20710_v27 }
 0x4d5   : > { %13400 = vpow2.f32 %v5588_v15  ;;  %5847 = vadd.xlane.f32.xlu0 %v5846_v19  ;;  %v6411_v59 = vpack.c.bf16 %v6293_v39, %v6292_v25 }
 0x4d6   : > { %v6410_v13 = vpack.c.bf16 %v6291_v9, %v6290_v41 }
 0x4d7   : > { %v17393_v40 = vpop.xlane.xlu0 %5199  ;;  %v17397_v21 = vpop.f32.mrb[28].mxu1  ;;  %5850 = vadd.xlane.f32.xlu1 %v5849_v16 }
 0x4d8   : > { %20712 = vst [vmem:[#allocation44_spill] sm:$0xff] %v17397_v21  ;;  %v17399_v53 = vpop.f32.mrb[29].mxu1  ;;  %12579 = vmatprep.mubr.msk.bf16.mxu0 %vm4993_vm2, %v6410_v13  ;;  %v17402_v35 = vpop.xlane.xlu1 %5202  ;;  %v20720_v13 = vld [vmem:[#allocation73_spill] sm:$0xff] }
 0x4d9   : > { %v17404_v54 = vpop.eup %13394  ;;  %v17406_v15 = vpop.f32.mrb[30].mxu1  ;;  %12580 = vmatmul.mubr.msk.bf16.vlgmr.msra.gmra.mrb[232].mxu0 %vm4993_vm2, %v6411_v59  ;;  %v20726_v21 = vld [vmem:[#allocation9_spill] sm:$0xff] }
 0x4da   : > { %20713 = vst [vmem:[#allocation53_spill] sm:$0xff] %v17404_v54  ;;  %20714 = vst [vmem:[#allocation59_spill] sm:$0xff] %v17406_v15  ;;  %v17409_v46 = vpop.f32.mrb[31].mxu1  ;;  %12604 = vmatpush3.bf16.msra.mxu0 %v20696_v32  ;;  %v5888_v25 = vsel %vm4993_vm2, %v17404_v54, 0.0  ;;  %v20724_v15 = vld [vmem:[#allocation65_spill] sm:$0xff] }
 0x4db   : > { %20715 = vst [vmem:[#allocation2_spill] sm:$0xff] %v17409_v46  ;;  %v5830_v39 = vpop.xlane.xlu0 %5829  ;;  %v17414_v9 = vpop.eup %13396  ;;  %12605 = vmatprep.subr.bf16.mxu0 %v20717_v56  ;;  %5889 = vadd.xlane.f32.xlu0 %v5888_v25  ;;  %v20728_v46 = vld [vmem:[#allocation5_spill] sm:$0xff] }
 0x4dc   : > { %20716 = vst [vmem:[#allocation58_spill] sm:$0xff] %v17414_v9  ;;  %v5833_v19 = vpop.xlane.xlu1 %5832  ;;  %v5891_v63 = vsel %vm4993_vm2, %v17414_v9, 0.0 }
 0x4dd   : > { %v17419_v41 = vpop.eup %13398  ;;  %5892 = vadd.xlane.f32.xlu1 %v5891_v63  ;;  %13402 = vrcp.f32 %v5833_v19  ;;  %v20721_v19 = vld [vmem:[#allocation71_spill] sm:$0xff] }
 0x4de   : > { %20718 = vst [vmem:[#allocation51_spill] sm:$0xff] %v17419_v41  ;;  %12606 = vmatpush3.bf16.msra.mxu0 %v20717_v56  ;;  %v5882_v27 = vsel %vm4993_vm2, %v17419_v41, 0.0 }
 0x4df   : > { %v5824_v32 = vpop.xlane.xlu0 %5823  ;;  %v17424_v16 = vpop.eup %13400  ;;  %12607 = vmatprep.subr.bf16.mxu0 %v20720_v13  ;;  %5883 = vadd.xlane.f32.xlu0 %v5882_v27  ;;  %v20722_v27 = vld [vmem:[#allocation85_spill] sm:$0xff] }
 0x4e0   : > { %20719 = vst [vmem:[#allocation67_spill] sm:$0xff] %v17424_v16  ;;  %13404 = vrcp.f32 %v5824_v32  ;;  %v5827_v59 = vpop.xlane.xlu1 %5826  ;;  %v5885_v25 = vsel %vm4993_vm2, %v17424_v16, 0.0 }
 0x4e1   : > { %13406 = vrcp.f32 %v5830_v39  ;;  %5886 = vadd.xlane.f32.xlu1 %v5885_v25 }
 0x4e2   : > { %13408 = vrcp.f32 %v5827_v59  ;;  %12608 = vmatpush3.bf16.msra.mxu0 %v20720_v13  ;;  %v20723_v59 = vld [vmem:[#allocation60_spill] sm:$0xff] }
 0x4e3   : > { %v5134_v56 = vpop.xlane.xlu0 %5133  ;;  %12609 = vmatprep.subr.bf16.mxu0 %v20721_v19 }
 0x4e4   : > { %v5424_v63 = vsub.f32 %v16916_v18, %v5134_v56  ;;  %v5137_v54 = vpop.xlane.xlu1 %5136 }
 0x4e5   : > { %v5425_v9 = vsub.f32 %v16925_v34, %v5137_v54 }
 0x4e6   : > { %v5598_v41 = vmul.f32 1.442695, %v5424_v63  ;;  %12610 = vmatpush3.bf16.msra.mxu0 %v20721_v19  ;;  %v20725_v19 = vld [vmem:[#allocation62_spill] sm:$0xff] }
 0x4e7   : > { %v5128_v39 = vpop.xlane.xlu0 %5127  ;;  %v5600_v32 = vmul.f32 1.442695, %v5425_v9  ;;  %12635 = vmatprep.subr.bf16.mxu0 %v20722_v27  ;;  %v13403_v16 = vpop.eup %13402 }
 0x4e8   : > { %13410 = vpow2.f32 %v5598_v41  ;;  %v5422_v25 = vsub.f32 %v20723_v59, %v5128_v39  ;;  %v5131_v13 = vpop.xlane.xlu1 %5130  ;;  %v6297_v41 = vmul.f32 %v13403_v16, %v20725_v19  ;;  %v20727_v39 = vld [vmem:[#allocation15_spill] sm:$0xff] }
 0x4e9   : > { %13412 = vpow2.f32 %v5600_v32  ;;  %v5423_v18 = vsub.f32 %v20724_v15, %v5131_v13 }
 0x4ea   : > { %v13405_v12 = vpop.eup %13404  ;;  %v5594_v28 = vmul.f32 1.442695, %v5422_v25 }
 0x4eb   : > { %v13407_v56 = vpop.eup %13406  ;;  %v17437_v63 = vpop.xlane.xlu0 %5241  ;;  %v5596_v54 = vmul.f32 1.442695, %v5423_v18  ;;  %v6294_v58 = vmul.f32 %v13405_v12, %v20726_v21 }
 0x4ec   : > { %v13409_v34 = vpop.eup %13408  ;;  %13414 = vpow2.f32 %v5594_v28  ;;  %v17440_v9 = vpop.xlane.xlu1 %5244  ;;  %v6296_v32 = vmul.f32 %v13407_v56, %v20728_v46 }
 0x4ed   : > { %v6295_v59 = vmul.f32 %v13409_v34, %v20727_v39  ;;  %13416 = vpow2.f32 %v5596_v54 }
 0x4ee   : > { %v6413_v13 = vpack.c.bf16 %v6297_v41, %v6296_v32 }
 0x4ef   : > { %v17445_v25 = vpop.xlane.xlu0 %5235  ;;  %v6412_v15 = vpack.c.bf16 %v6295_v59, %v6294_v58  ;;  %v5276_v59 = vsel %vm4993_vm2, %v17174_v1, -inf }
 0x4f0   : > { %v17448_v61 = vpop.xlane.xlu1 %5238 }
 0x4f1   : > { %12583 = vmatprep.mubr.msk.bf16.mxu0 %vm4993_vm2, %v6412_v15 }
 0x4f2   : > { %v17450_v28 = vpop.eup %13410  ;;  %12584 = vmatmul.mubr.msk.bf16.gmra.mrb[236].mxu0 %vm4993_vm2, %v6413_v13  ;;  %v5279_v13 = vsel %vm4993_vm2, %v17186_v30, -inf  ;;  %v20735_v30 = vld [vmem:[#allocation14_spill] sm:$0xff] }
 0x4f3   : > { %20729 = vst [vmem:[#allocation73_spill] sm:$0xff] %v17450_v28  ;;  %v5866_v16 = vpop.xlane.xlu0 %5865  ;;  %v5900_v12 = vsel %vm4993_vm2, %v17450_v28, 0.0  ;;  %v17455_v21 = vpop.eup %13412  ;;  %v20737_v28 = vld [vmem:[#allocation29_spill] sm:$0xff] }
 0x4f4   : > { %20730 = vst [vmem:[#allocation71_spill] sm:$0xff] %v17455_v21  ;;  %5901 = vadd.xlane.f32.xlu0 %v5900_v12  ;;  %v5869_v46 = vpop.xlane.xlu1 %5868  ;;  %v5903_v58 = vsel %vm4993_vm2, %v17455_v21, 0.0  ;;  %v20743_v21 = vld [vmem:[#allocation93_spill] sm:$0xff] }
 0x4f5   : > { %5904 = vadd.xlane.f32.xlu1 %v5903_v58  ;;  %13418 = vrcp.f32 %v5869_v46  ;;  %v5282_v58 = vsel %vm4993_vm2, %v17038_v33, -inf  ;;  %v20744_v33 = vld [vmem:[#allocation104_spill] sm:$0xff] }
 0x4f6   : > { %v17459_v18 = vpop.eup %13414 }
 0x4f7   : > { %20731 = vst [vmem:[#allocation85_spill] sm:$0xff] %v17459_v18  ;;  %v5860_v56 = vpop.xlane.xlu0 %5859  ;;  %v5894_v34 = vsel %vm4993_vm2, %v17459_v18, 0.0  ;;  %v17463_v54 = vpop.eup %13416  ;;  %v20740_v18 = vld [vmem:[#allocation97_spill] sm:$0xff] }
 0x4f8   : > { %20732 = vst [vmem:[#allocation60_spill] sm:$0xff] %v17463_v54  ;;  %13420 = vrcp.f32 %v5860_v56  ;;  %5895 = vadd.xlane.f32.xlu0 %v5894_v34  ;;  %v5863_v19 = vpop.xlane.xlu1 %5862  ;;  %v5897_v41 = vsel %vm4993_vm2, %v17463_v54, 0.0  ;;  %v20733_v34 = vld [vmem:[#allocation8_spill] sm:$0xff] }
 0x4f9   : > { %13422 = vrcp.f32 %v5866_v16  ;;  %5898 = vadd.xlane.f32.xlu1 %v5897_v41 }
 0x4fa   : > { %13424 = vrcp.f32 %v5863_v19 }
 0x4fb   : > { %v5170_v39 = vpop.xlane.xlu0 %5169 }
 0x4fc   : > { %v5436_v32 = vsub.f32 %v16968_v11, %v5170_v39  ;;  %5277 = vmax.xlane.f32.xlu0 %v5276_v59  ;;  %v5173_v15 = vpop.xlane.xlu1 %5172  ;;  %v20734_v39 = vld [vmem:[#allocation98_spill] sm:$0xff] }
 0x4fd   : > { %v5437_v16 = vsub.f32 %v16977_v23, %v5173_v15  ;;  %5280 = vmax.xlane.f32.xlu1 %v5279_v13  ;;  %v5285_v59 = vsel %vm4993_vm2, %v20734_v39, -inf }
 0x4fe   : > { %v5622_v12 = vmul.f32 1.442695, %v5436_v32 }
 0x4ff   : > { %v5164_v46 = vpop.xlane.xlu0 %5163  ;;  %v5624_v56 = vmul.f32 1.442695, %v5437_v16  ;;  %v13419_v41 = vpop.eup %13418 }
 0x500   : > { %13426 = vpow2.f32 %v5622_v12  ;;  %v5434_v19 = vsub.f32 %v20733_v34, %v5164_v46  ;;  %5283 = vmax.xlane.f32.xlu0 %v5282_v58  ;;  %v5167_v11 = vpop.xlane.xlu1 %5166  ;;  %v5288_v12 = vsel %vm4993_vm2, %v20737_v28, -inf  ;;  %v20738_v46 = vld [vmem:[#allocation94_spill] sm:$0xff] }
 0x501   : > { %13428 = vpow2.f32 %v5624_v56  ;;  %v5435_v23 = vsub.f32 %v20735_v30, %v5167_v11  ;;  %5286 = vmax.xlane.f32.xlu1 %v5285_v59  ;;  %v6309_v58 = vmul.f32 %v13419_v41, %v20738_v46  ;;  %v5291_v56 = vsel %vm4993_vm2, %v20740_v18, -inf  ;;  %v20742_v11 = vld [vmem:[#allocation96_spill] sm:$0xff]  ;;  %v20745_v46 = vld [vmem:[#allocation106_spill] sm:$0xff] }
 0x502   : > { %v13421_v1 = vpop.eup %13420  ;;  %v5618_v32 = vmul.f32 1.442695, %v5434_v19  ;;  %v20741_v19 = vld [vmem:[#allocation95_spill] sm:$0xff]  ;;  %v5294_v41 = vsel %vm4993_vm2, %v20744_v33, -inf }
 0x503   : > { %v13423_v15 = vpop.eup %13422  ;;  %v17479_v13 = vpop.xlane.xlu0 %5253  ;;  %v5620_v34 = vmul.f32 1.442695, %v5435_v23  ;;  %v6306_v30 = vmul.f32 %v13421_v1, %v20741_v19  ;;  %v5297_v1 = vsel %vm4993_vm2, %v20745_v46, -inf }
 0x504   : > { %20736 = vst [vmem:[#allocation65_spill] sm:$0xff] %v17479_v13  ;;  %v13425_v16 = vpop.eup %13424  ;;  %13430 = vpow2.f32 %v5618_v32  ;;  %5289 = vmax.xlane.f32.xlu0 %v5288_v12  ;;  %v17484_v54 = vpop.xlane.xlu1 %5256  ;;  %v6308_v39 = vmul.f32 %v13423_v15, %v20743_v21 }
 0x505   : > { %20739 = vst [vmem:[#allocation62_spill] sm:$0xff] %v17484_v54  ;;  %v6307_v59 = vmul.f32 %v13425_v16, %v20742_v11  ;;  %13432 = vpow2.f32 %v5620_v34  ;;  %5292 = vmax.xlane.f32.xlu1 %v5291_v56  ;;  %v20768_v54 = vld [vmem:[#allocation116_spill] sm:$0xff] }
 0x506   : > { %v6419_v23 = vpack.c.bf16 %v6309_v58, %v6308_v39  ;;  %v20748_v58 = vld [vmem:[#allocation83_spill] sm:$0xff] }
 0x507   : > { %v17491_v28 = vpop.xlane.xlu0 %5247  ;;  %v6418_v32 = vpack.c.bf16 %v6307_v59, %v6306_v30  ;;  %v20751_v59 = vld [vmem:[#allocation13_spill] sm:$0xff] }
 0x508   : > { %5295 = vmax.xlane.f32.xlu0 %v5294_v41  ;;  %v17496_v12 = vpop.xlane.xlu1 %5250 }
 0x509   : > { %12611 = vmatprep.mubr.msk.bf16.mxu0 %vm4993_vm2, %v6418_v32  ;;  %5298 = vmax.xlane.f32.xlu1 %v5297_v1  ;;  %v20752_v1 = vld [vmem:[#allocation7_spill] sm:$0xff] }
 0x50a   : > { %v17500_v16 = vpop.eup %13426  ;;  %12612 = vmatmul.mubr.msk.bf16.vlgmr.msra.gmra.mrb[240].mxu0 %vm4993_vm2, %v6419_v23 }
 0x50b   : > { %20746 = vst [vmem:[#allocation9_spill] sm:$0xff] %v17500_v16  ;;  %12636 = vmatpush3.bf16.msra.mxu0 %v20722_v27  ;;  %v5878_v21 = vpop.xlane.xlu0 %5877  ;;  %v5936_v15 = vsel %vm4993_vm2, %v17500_v16, 0.0  ;;  %v17506_v39 = vpop.eup %13428 }
 0x50c   : > { %20747 = vst [vmem:[#allocation15_spill] sm:$0xff] %v17506_v39  ;;  %12637 = vmatprep.subr.bf16.mxu0 %v20748_v58  ;;  %5937 = vadd.xlane.f32.xlu0 %v5936_v15  ;;  %v5881_v34 = vpop.xlane.xlu1 %5880  ;;  %v5939_v56 = vsel %vm4993_vm2, %v17506_v39, 0.0  ;;  %v20755_v39 = vld [vmem:[#allocation113_spill] sm:$0xff] }
 0x50d   : > { %5940 = vadd.xlane.f32.xlu1 %v5939_v56  ;;  %13434 = vrcp.f32 %v5881_v34 }
 0x50e   : > { %v17511_v19 = vpop.eup %13430 }
 0x50f   : > { %20749 = vst [vmem:[#allocation5_spill] sm:$0xff] %v17511_v19  ;;  %12638 = vmatpush3.bf16.msra.mxu0 %v20748_v58  ;;  %v5872_v27 = vpop.xlane.xlu0 %5871  ;;  %v5930_v30 = vsel %vm4993_vm2, %v17511_v19, 0.0  ;;  %v17516_v11 = vpop.eup %13432 }
 0x510   : > { %20750 = vst [vmem:[#allocation8_spill] sm:$0xff] %v17516_v11  ;;  %12639 = vmatprep.subr.bf16.mxu0 %v20751_v59  ;;  %13436 = vrcp.f32 %v5872_v27  ;;  %5931 = vadd.xlane.f32.xlu0 %v5930_v30  ;;  %v5875_v41 = vpop.xlane.xlu1 %5874  ;;  %v5933_v32 = vsel %vm4993_vm2, %v17516_v11, 0.0  ;;  %v20753_v30 = vld [vmem:[#allocation68_spill] sm:$0xff] }
 0x511   : > { %13438 = vrcp.f32 %v5878_v21  ;;  %5934 = vadd.xlane.f32.xlu1 %v5933_v32 }
 0x512   : > { %13440 = vrcp.f32 %v5875_v41 }
 0x513   : > { %12640 = vmatpush3.bf16.msra.mxu0 %v20751_v59  ;;  %v5182_v23 = vpop.xlane.xlu0 %5181 }
 0x514   : > { %12641 = vmatprep.subr.bf16.mxu0 %v20752_v1  ;;  %v5440_v15 = vsub.f32 %v16998_v17, %v5182_v23  ;;  %v5185_v58 = vpop.xlane.xlu1 %5184 }
 0x515   : > { %v5441_v56 = vsub.f32 %v17004_v31, %v5185_v58 }
 0x516   : > { %v5630_v34 = vmul.f32 1.442695, %v5440_v15 }
 0x517   : > { %12642 = vmatpush3.bf16.msra.mxu0 %v20752_v1  ;;  %v5176_v21 = vpop.xlane.xlu0 %5175  ;;  %v5632_v27 = vmul.f32 1.442695, %v5441_v56  ;;  %v13435_v32 = vpop.eup %13434 }
 0x518   : > { %13442 = vpow2.f32 %v5630_v34  ;;  %12667 = vmatprep.subr.bf16.mxu0 %v20753_v30  ;;  %v5438_v41 = vsub.f32 %v17000_v38, %v5176_v21  ;;  %v5179_v59 = vpop.xlane.xlu1 %5178  ;;  %v6313_v1 = vmul.f32 %v13435_v32, %v17092_v4  ;;  %v20754_v34 = vld [vmem:[#allocation112_spill] sm:$0xff]  ;;  %v20756_v38 = vld [vmem:[#allocation111_spill] sm:$0xff] }
 0x519   : > { %13444 = vpow2.f32 %v5632_v27  ;;  %v5439_v17 = vsub.f32 %v17006_v49, %v5179_v59 }
 0x51a   : > { %v13437_v16 = vpop.eup %13436  ;;  %v5626_v11 = vmul.f32 1.442695, %v5438_v41 }
 0x51b   : > { %v13439_v23 = vpop.eup %13438  ;;  %v5914_v15 = vpop.xlane.xlu0 %5913  ;;  %v5628_v31 = vmul.f32 1.442695, %v5439_v17  ;;  %v6310_v56 = vmul.f32 %v13437_v16, %v20754_v34 }
 0x51c   : > { %v13441_v19 = vpop.eup %13440  ;;  %13446 = vpow2.f32 %v5626_v11  ;;  %v5917_v58 = vpop.xlane.xlu1 %5916  ;;  %v6312_v21 = vmul.f32 %v13439_v23, %v20756_v38 }
 0x51d   : > { %v6311_v46 = vmul.f32 %v13441_v19, %v20755_v39  ;;  %13448 = vpow2.f32 %v5628_v31 }
 0x51e   : > { %13450 = vrcp.f32 %v5917_v58  ;;  %v6421_v49 = vpack.c.bf16 %v6313_v1, %v6312_v21  ;;  %v20762_v21 = vld [vmem:[#allocation103_spill] sm:$0xff] }
 0x51f   : > { %v5908_v27 = vpop.xlane.xlu0 %5907  ;;  %v6420_v41 = vpack.c.bf16 %v6311_v46, %v6310_v56 }
 0x520   : > { %13452 = vrcp.f32 %v5908_v27  ;;  %v5911_v11 = vpop.xlane.xlu1 %5910  ;;  %v5300_v27 = vsel %vm4993_vm2, %v20762_v21, -inf  ;;  %v5330_v21 = vsel %vm4993_vm2, %v20768_v54, -inf }
 0x521   : > { %13454 = vrcp.f32 %v5914_v15  ;;  %12615 = vmatprep.mubr.msk.bf16.mxu0 %vm4993_vm2, %v6420_v41 }
 0x522   : > { %v17534_v59 = vpop.eup %13442  ;;  %13456 = vrcp.f32 %v5911_v11  ;;  %12616 = vmatmul.mubr.msk.bf16.gmra.mrb[244].mxu0 %vm4993_vm2, %v6421_v49  ;;  %v20763_v49 = vld [vmem:[#allocation117_spill] sm:$0xff] }
 0x523   : > { %20757 = vst [vmem:[#allocation14_spill] sm:$0xff] %v17534_v59  ;;  %v17537_v4 = vpop.xlane.xlu0 %5217  ;;  %v5948_v16 = vsel %vm4993_vm2, %v17534_v59, 0.0  ;;  %v17541_v39 = vpop.eup %13444  ;;  %v20765_v59 = vld [vmem:[#allocation120_spill] sm:$0xff] }
 0x524   : > { %20758 = vst [vmem:[#allocation94_spill] sm:$0xff] %v17541_v39  ;;  %5949 = vadd.xlane.f32.xlu0 %v5948_v16  ;;  %v17543_v46 = vpop.xlane.xlu1 %5220  ;;  %v5951_v19 = vsel %vm4993_vm2, %v17541_v39, 0.0  ;;  %v20766_v39 = vld [vmem:[#allocation122_spill] sm:$0xff] }
 0x525   : > { %5952 = vadd.xlane.f32.xlu1 %v5951_v19  ;;  %v20764_v19 = vld [vmem:[#allocation105_spill] sm:$0xff] }
 0x526   : > { %v17547_v32 = vpop.eup %13446 }
 0x527   : > { %20759 = vst [vmem:[#allocation95_spill] sm:$0xff] %v17547_v32  ;;  %v17549_v17 = vpop.xlane.xlu0 %5211  ;;  %v5942_v23 = vsel %vm4993_vm2, %v17547_v32, 0.0  ;;  %v17553_v15 = vpop.eup %13448 }
 0x528   : > { %20760 = vst [vmem:[#allocation96_spill] sm:$0xff] %v17553_v15  ;;  %5943 = vadd.xlane.f32.xlu0 %v5942_v23  ;;  %v13451_v31 = vpop.eup %13450  ;;  %v17555_v1 = vpop.xlane.xlu1 %5214  ;;  %v5945_v58 = vsel %vm4993_vm2, %v17553_v15, 0.0  ;;  %v5303_v23 = vsel %vm4993_vm2, %v20764_v19, -inf  ;;  %v20767_v15 = vld [vmem:[#allocation114_spill] sm:$0xff] }
 0x529   : > { %20761 = vst [vmem:[#allocation93_spill] sm:$0xff] %v17555_v1  ;;  %5946 = vadd.xlane.f32.xlu1 %v5945_v58  ;;  %v6325_v11 = vmul.f32 %v13451_v31, %v20763_v49  ;;  %v20775_v49 = vld [vmem:[#allocation72_spill] sm:$0xff] }
 0x52a   : > { %v13453_v34 = vpop.eup %13452 }
 0x52b   : > { %v13455_v56 = vpop.eup %13454  ;;  %v5926_v38 = vpop.xlane.xlu0 %5925  ;;  %v6322_v32 = vmul.f32 %v13453_v34, %v20765_v59 }
 0x52c   : > { %v13457_v41 = vpop.eup %13456  ;;  %5301 = vmax.xlane.f32.xlu0 %v5300_v27  ;;  %v5929_v16 = vpop.xlane.xlu1 %5928  ;;  %v6324_v18 = vmul.f32 %v13455_v56, %v20767_v15  ;;  %v20769_v27 = vld [vmem:[#allocation119_spill] sm:$0xff]  ;;  %v20773_v56 = vld [vmem:[#allocation118_spill] sm:$0xff] }
 0x52d   : > { %v6323_v33 = vmul.f32 %v13457_v41, %v20766_v39  ;;  %5304 = vmax.xlane.f32.xlu1 %v5303_v23  ;;  %13458 = vrcp.f32 %v5929_v16  ;;  %v5333_v59 = vsel %vm4993_vm2, %v20769_v27, -inf  ;;  %v20770_v15 = vld [vmem:[#allocation115_spill] sm:$0xff]  ;;  %v5306_v41 = vsel %vm4993_vm2, %v17254_v10, -inf  ;;  %v20779_v10 = vld [vmem:[#allocation45_spill] sm:$0xff] }
 0x52e   : > { %v6427_v1 = vpack.c.bf16 %v6325_v11, %v6324_v18  ;;  %v20771_v18 = vld [vmem:[#allocation66_spill] sm:$0xff]  ;;  %v5309_v23 = vsel %vm4993_vm2, %v17265_v57, -inf }
 0x52f   : > { %v5920_v58 = vpop.xlane.xlu0 %5919  ;;  %v6426_v13 = vpack.c.bf16 %v6323_v33, %v6322_v32  ;;  %v5336_v33 = vsel %vm4993_vm2, %v20770_v15, -inf }
 0x530   : > { %13460 = vrcp.f32 %v5920_v58  ;;  %5331 = vmax.xlane.f32.xlu0 %v5330_v21  ;;  %v5923_v31 = vpop.xlane.xlu1 %5922 }
 0x531   : > { %13462 = vrcp.f32 %v5926_v38  ;;  %12643 = vmatprep.mubr.msk.bf16.mxu0 %vm4993_vm2, %v6426_v13  ;;  %5334 = vmax.xlane.f32.xlu1 %v5333_v59  ;;  %v20772_v13 = vld [vmem:[#allocation54_spill] sm:$0xff]  ;;  %v5339_v38 = vsel %vm4993_vm2, %v20773_v56, -inf }
 0x532   : > { %13464 = vrcp.f32 %v5923_v31  ;;  %12644 = vmatmul.mubr.msk.bf16.vlgmr.msra.gmra.mrb[248].mxu0 %vm4993_vm2, %v6427_v1  ;;  %v5442_v32 = vsub.f32 %v20772_v13, %v17319_v60  ;;  %v20774_v1 = vld [vmem:[#allocation43_spill] sm:$0xff]  ;;  %v20776_v13 = vld [vmem:[#allocation70_spill] sm:$0xff] }
 0x533   : > { %12668 = vmatpush3.bf16.msra.mxu0 %v20753_v30  ;;  %v17574_v39 = vpop.xlane.xlu0 %5229  ;;  %v5443_v21 = vsub.f32 %v20774_v1, %v17325_v29  ;;  %v5315_v1 = vsel %vm4993_vm2, %v17260_v51, -inf }
 0x534   : > { %12669 = vmatprep.subr.bf16.mxu0 %v20771_v18  ;;  %5337 = vmax.xlane.f32.xlu0 %v5336_v33  ;;  %v17581_v34 = vpop.xlane.xlu1 %5232  ;;  %v5634_v11 = vmul.f32 1.442695, %v5442_v32  ;;  %v5312_v33 = vsel %vm4993_vm2, %v17251_v6, -inf }
 0x535   : > { %5340 = vmax.xlane.f32.xlu1 %v5339_v38  ;;  %v5636_v29 = vmul.f32 1.442695, %v5443_v21 }
 0x536   : > { %13466 = vpow2.f32 %v5634_v11 }
 0x537   : > { %12670 = vmatpush3.bf16.msra.mxu0 %v20771_v18  ;;  %v17588_v30 = vpop.xlane.xlu0 %5223  ;;  %v13459_v60 = vpop.eup %13458  ;;  %13468 = vpow2.f32 %v5636_v29 }
 0x538   : > { %12671 = vmatprep.subr.bf16.mxu0 %v20775_v49  ;;  %5307 = vmax.xlane.f32.xlu0 %v5306_v41  ;;  %v17593_v16 = vpop.xlane.xlu1 %5226  ;;  %v6329_v32 = vmul.f32 %v13459_v60, %v17199_v48  ;;  %v20778_v60 = vld [vmem:[#allocation127_spill] sm:$0xff] }
 0x539   : > { %5310 = vmax.xlane.f32.xlu1 %v5309_v23  ;;  %v5342_v11 = vsel %vm4993_vm2, %v20778_v60, -inf }
 0x53a   : > { %v13461_v58 = vpop.eup %13460 }
 0x53b   : > { %v13463_v31 = vpop.eup %13462  ;;  %12672 = vmatpush3.bf16.msra.mxu0 %v20775_v49  ;;  %v5794_v59 = vpop.xlane.xlu0 %5793  ;;  %v6326_v21 = vmul.f32 %v13461_v58, %v17203_v42  ;;  %v20777_v49 = vld [vmem:[#allocation56_spill] sm:$0xff]  ;;  %v5445_v42 = vsub.f32 %v20779_v10, %v17314_v45  ;;  %v20783_v45 = vld [vmem:[#allocation126_spill] sm:$0xff] }
 0x53c   : > { %v13465_v18 = vpop.eup %13464  ;;  %12673 = vmatprep.subr.bf16.mxu0 %v20776_v13  ;;  %5313 = vmax.xlane.f32.xlu0 %v5312_v33  ;;  %v5797_v38 = vpop.xlane.xlu1 %5796  ;;  %v5444_v23 = vsub.f32 %v20777_v49, %v17301_v3  ;;  %v6328_v57 = vmul.f32 %v13463_v31, %v17190_v24  ;;  %v20780_v58 = vld [vmem:[#allocation84_spill] sm:$0xff]  ;;  %v20781_v3 = vld [vmem:[#allocation129_spill] sm:$0xff] }
 0x53d   : > { %v6327_v41 = vmul.f32 %v13465_v18, %v17209_v7  ;;  %5316 = vmax.xlane.f32.xlu1 %v5315_v1  ;;  %13470 = vrcp.f32 %v5797_v38  ;;  %v5345_v29 = vsel %vm4993_vm2, %v20781_v3, -inf  ;;  %v20782_v18 = vld [vmem:[#allocation47_spill] sm:$0xff]  ;;  %v20785_v1 = vld [vmem:[#allocation49_spill] sm:$0xff] }
 0x53e   : > { %v6429_v7 = vpack.c.bf16 %v6329_v32, %v6328_v57  ;;  %v5638_v31 = vmul.f32 1.442695, %v5444_v23  ;;  %v5348_v57 = vsel %vm4993_vm2, %v20783_v45, -inf  ;;  %v20784_v32 = vld [vmem:[#allocation3_spill] sm:$0xff]  ;;  %v20787_v23 = vld [vmem:[#allocation61_spill] sm:$0xff] }
 0x53f   : > { %12674 = vmatpush3.bf16.msra.mxu0 %v20776_v13  ;;  %v5788_v48 = vpop.xlane.xlu0 %5787  ;;  %v6428_v33 = vpack.c.bf16 %v6327_v41, %v6326_v21  ;;  %v5446_v13 = vsub.f32 %v20782_v18, %v17393_v40  ;;  %v5447_v38 = vsub.f32 %v20784_v32, %v17402_v35  ;;  %v5448_v21 = vsub.f32 %v20785_v1, %v17381_v22  ;;  %v20786_v40 = vld [vmem:[#allocation128_spill] sm:$0xff] }
 0x540   : > { %12699 = vmatprep.subr.bf16.mxu0 %v20780_v58  ;;  %13472 = vrcp.f32 %v5788_v48  ;;  %5343 = vmax.xlane.f32.xlu0 %v5342_v11  ;;  %v5791_v24 = vpop.xlane.xlu1 %5790  ;;  %v5351_v49 = vsel %vm4993_vm2, %v20786_v40, -inf  ;;  %v5449_v48 = vsub.f32 %v20787_v23, %v17386_v47  ;;  %v5318_v35 = vsel %vm4993_vm2, %v17284_v36, -inf }
 0x541   : > { %13474 = vrcp.f32 %v5794_v59  ;;  %12647 = vmatprep.mubr.msk.bf16.mxu0 %vm4993_vm2, %v6428_v33  ;;  %5346 = vmax.xlane.f32.xlu1 %v5345_v29  ;;  %v5640_v59 = vmul.f32 1.442695, %v5445_v42  ;;  %v5642_v11 = vmul.f32 1.442695, %v5446_v13  ;;  %v17635_v33 = vpop.eup %13466  ;;  %v5644_v22 = vmul.f32 1.442695, %v5447_v38 }
 0x542   : > { %13476 = vrcp.f32 %v5791_v24  ;;  %12648 = vmatmul.mubr.msk.bf16.gmra.mrb[252].mxu0 %vm4993_vm2, %v6429_v7  ;;  %v17641_v7 = vpop.eup %13468  ;;  %v5646_v29 = vmul.f32 1.442695, %v5448_v21  ;;  %v5321_v47 = vsel %vm4993_vm2, %v17299_v55, -inf  ;;  %v5648_v13 = vmul.f32 1.442695, %v5449_v48 }
 0x543   : > { %v17621_v10 = vpop.xlane.xlu0 %5265  ;;  %13478 = vpow2.f32 %v5638_v31  ;;  %v5954_v1 = vsel %vm4993_vm2, %v17635_v33, 0.0  ;;  %v5957_v21 = vsel %vm4993_vm2, %v17641_v7, 0.0 }
 0x544   : > { %5349 = vmax.xlane.f32.xlu0 %v5348_v57  ;;  %v17629_v41 = vpop.xlane.xlu1 %5268  ;;  %13480 = vpow2.f32 %v5640_v59 }
 0x545   : > { %5352 = vmax.xlane.f32.xlu1 %v5351_v49  ;;  %13482 = vpow2.f32 %v5642_v11  ;;  %v20788_v11 = vld [vmem:[#allocation134_spill] sm:$0xff] }
 0x546   : > { %13484 = vpow2.f32 %v5644_v22  ;;  %v5324_v22 = vsel %vm4993_vm2, %v17281_v0, -inf }
 0x547   : > { %v17637_v42 = vpop.xlane.xlu0 %5259  ;;  %v13471_v24 = vpop.eup %13470  ;;  %13486 = vpow2.f32 %v5646_v29 }
 0x548   : > { %5319 = vmax.xlane.f32.xlu0 %v5318_v35  ;;  %v17643_v31 = vpop.xlane.xlu1 %5262  ;;  %v6285_v59 = vmul.f32 %v13471_v24, %v17235_v50  ;;  %13488 = vpow2.f32 %v5648_v13  ;;  %v20790_v13 = vld [vmem:[#allocation4_spill] sm:$0xff] }
 0x549   : > { %5322 = vmax.xlane.f32.xlu1 %v5321_v47 }
 0x54a   : > { %v13473_v18 = vpop.eup %13472 }
 0x54b   : > { %v13475_v57 = vpop.eup %13474  ;;  %v5806_v32 = vpop.xlane.xlu0 %5805  ;;  %v6282_v23 = vmul.f32 %v13473_v18, %v17241_v5 }
 0x54c   : > { %v13477_v49 = vpop.eup %13476  ;;  %5955 = vadd.xlane.f32.xlu0 %v5954_v1  ;;  %v5809_v38 = vpop.xlane.xlu1 %5808  ;;  %v6284_v35 = vmul.f32 %v13475_v57, %v20788_v11  ;;  %v5458_v57 = vsub.f32 %v20790_v13, %v17445_v25  ;;  %v20791_v1 = vld [vmem:[#allocation25_spill] sm:$0xff] }
 0x54d   : > { %v6283_v48 = vmul.f32 %v13477_v49, %v17243_v62  ;;  %5958 = vadd.xlane.f32.xlu1 %v5957_v21  ;;  %13490 = vrcp.f32 %v5809_v38  ;;  %v17657_v24 = vpop.eup %13478  ;;  %v5327_v62 = vsel %vm4993_vm2, %v17293_v43, -inf  ;;  %v20793_v38 = vld [vmem:[#allocation24_spill] sm:$0xff] }
 0x54e   : > { %v6407_v29 = vpack.c.bf16 %v6285_v59, %v6284_v35  ;;  %v17662_v18 = vpop.eup %13480 }
 0x54f   : > { %v5800_v47 = vpop.xlane.xlu0 %5799  ;;  %v6406_v50 = vpack.c.bf16 %v6283_v48, %v6282_v23  ;;  %20789 = vst [vmem:[#allocation83_spill] sm:$0xff] %v17662_v18  ;;  %v17672_v59 = vpop.eup %13482  ;;  %v5963_v25 = vsel %vm4993_vm2, %v17662_v18, 0.0  ;;  %v5666_v48 = vmul.f32 1.442695, %v5458_v57  ;;  %v20797_v18 = vld [vmem:[#allocation30_spill] sm:$0xff] }
 0x550   : > { %13492 = vrcp.f32 %v5800_v47  ;;  %5325 = vmax.xlane.f32.xlu0 %v5324_v22  ;;  %v5803_v5 = vpop.xlane.xlu1 %5802  ;;  %20792 = vst [vmem:[#allocation13_spill] sm:$0xff] %v17672_v59  ;;  %v17679_v23 = vpop.eup %13484  ;;  %v5966_v47 = vsel %vm4993_vm2, %v17672_v59, 0.0 }
 0x551   : > { %13494 = vrcp.f32 %v5806_v32  ;;  %12563 = vmatprep.mubr.msk.bf16.mxu1 %vm4993_vm2, %v6406_v50  ;;  %5328 = vmax.xlane.f32.xlu1 %v5327_v62  ;;  %v5960_v32 = vsel %vm4993_vm2, %v17657_v24, 0.0  ;;  %v17681_v11 = vpop.eup %13486  ;;  %v20794_v50 = vld [vmem:[#allocation17_spill] sm:$0xff]  ;;  %v5969_v57 = vsel %vm4993_vm2, %v17679_v23, 0.0 }
 0x552   : > { %13496 = vrcp.f32 %v5803_v5  ;;  %12564 = vmatmul.mubr.msk.bf16.vlgmr.msra.gmra.mrb[32].mxu1 %vm4993_vm2, %v6407_v29  ;;  %v17686_v22 = vpop.eup %13488  ;;  %v5459_v29 = vsub.f32 %v20794_v50, %v17448_v61  ;;  %v20795_v5 = vld [vmem:[#allocation31_spill] sm:$0xff]  ;;  %v5972_v61 = vsel %vm4993_vm2, %v17681_v11, 0.0 }
 0x553   : > { %12588 = vmatpush3.bf16.msra.mxu1 %v20791_v1  ;;  %v17668_v49 = vpop.xlane.xlu0 %5271  ;;  %13498 = vpow2.f32 %v5666_v48  ;;  %v5975_v48 = vsel %vm4993_vm2, %v17686_v22, 0.0 }
 0x554   : > { %12589 = vmatprep.subr.bf16.mxu1 %v20793_v38  ;;  %5961 = vadd.xlane.f32.xlu0 %v5960_v32  ;;  %v17675_v21 = vpop.xlane.xlu1 %5274  ;;  %v20796_v32 = vld [vmem:[#allocation63_spill] sm:$0xff]  ;;  %v5668_v50 = vmul.f32 1.442695, %v5459_v29  ;;  %v20798_v29 = vld [vmem:[#allocation64_spill] sm:$0xff] }
 0x555   : > { %5964 = vadd.xlane.f32.xlu1 %v5963_v25 }
 0x557   : > { %12590 = vmatpush3.bf16.msra.mxu1 %v20793_v38  ;;  %v5842_v35 = vpop.xlane.xlu0 %5841  ;;  %v13491_v62 = vpop.eup %13490  ;;  %v5460_v38 = vsub.f32 %v20796_v32, %v17437_v63 }
 0x558   : > { %12591 = vmatprep.subr.bf16.mxu1 %v20795_v5  ;;  %5967 = vadd.xlane.f32.xlu0 %v5966_v47  ;;  %v5845_v13 = vpop.xlane.xlu1 %5844  ;;  %v6289_v59 = vmul.f32 %v13491_v62, %v17295_v37  ;;  %v5461_v62 = vsub.f32 %v20798_v29, %v17440_v9  ;;  %v20802_v9 = vld [vmem:[#allocation99_spill] sm:$0xff] }
 0x559   : > { %5970 = vadd.xlane.f32.xlu1 %v5969_v57  ;;  %13500 = vrcp.f32 %v5845_v13  ;;  %v5670_v57 = vmul.f32 1.442695, %v5460_v38  ;;  %v20801_v38 = vld [vmem:[#allocation92_spill] sm:$0xff] }
 0x55a   : > { %v13493_v1 = vpop.eup %13492 }
 0x55b   : > { %v13495_v25 = vpop.eup %13494  ;;  %12592 = vmatpush3.bf16.msra.mxu1 %v20795_v5  ;;  %v5836_v58 = vpop.xlane.xlu0 %5835  ;;  %v6286_v13 = vmul.f32 %v13493_v1, %v17305_v44  ;;  %v20799_v44 = vld [vmem:[#allocation77_spill] sm:$0xff] }
 0x55c   : > { %v13497_v47 = vpop.eup %13496  ;;  %12593 = vmatprep.subr.bf16.mxu1 %v20797_v18  ;;  %13502 = vrcp.f32 %v5836_v58  ;;  %5973 = vadd.xlane.f32.xlu0 %v5972_v61  ;;  %v5839_v63 = vpop.xlane.xlu1 %5838  ;;  %v6288_v32 = vmul.f32 %v13495_v25, %v17289_v2  ;;  %v5354_v58 = vsel %vm4993_vm2, %v17372_v14, -inf  ;;  %v5463_v25 = vsub.f32 %v20801_v38, %v17496_v12  ;;  %v20806_v38 = vld [vmem:[#allocation18_spill] sm:$0xff] }
 0x55d   : > { %13504 = vrcp.f32 %v5842_v35  ;;  %v6287_v5 = vmul.f32 %v13497_v47, %v17310_v26  ;;  %5976 = vadd.xlane.f32.xlu1 %v5975_v48  ;;  %v20800_v26 = vld [vmem:[#allocation33_spill] sm:$0xff] }
 0x55e   : > { %13506 = vrcp.f32 %v5839_v63  ;;  %v6409_v61 = vpack.c.bf16 %v6289_v59, %v6288_v32  ;;  %v5462_v2 = vsub.f32 %v20800_v26, %v17491_v28  ;;  %v5452_v59 = vsub.f32 %v20802_v9, %v17537_v4  ;;  %v20803_v48 = vld [vmem:[#allocation101_spill] sm:$0xff]  ;;  %v20804_v26 = vld [vmem:[#allocation19_spill] sm:$0xff]  ;;  %v20807_v9 = vld [vmem:[#allocation38_spill] sm:$0xff] }
 0x55f   : > { %12594 = vmatpush3.bf16.msra.mxu1 %v20797_v18  ;;  %v5854_v37 = vpop.xlane.xlu0 %5853  ;;  %v6408_v35 = vpack.c.bf16 %v6287_v5, %v6286_v13  ;;  %13508 = vpow2.f32 %v5668_v50  ;;  %v5357_v18 = vsel %vm4993_vm2, %v17379_v20, -inf  ;;  %v5360_v28 = vsel %vm4993_vm2, %v17369_v8, -inf  ;;  %v17723_v50 = vpop.eup %13498 }
 0x560   : > { %12619 = vmatprep.subr.bf16.mxu1 %v20799_v44  ;;  %5355 = vmax.xlane.f32.xlu0 %v5354_v58  ;;  %v5857_v1 = vpop.xlane.xlu1 %5856  ;;  %13510 = vpow2.f32 %v5670_v57  ;;  %v5672_v63 = vmul.f32 1.442695, %v5461_v62  ;;  %v5453_v13 = vsub.f32 %v20803_v48, %v17543_v46  ;;  %v5674_v5 = vmul.f32 1.442695, %v5462_v2  ;;  %v20805_v2 = vld [vmem:[#allocation2_spill] sm:$0xff] }
 0x561   : > { %12567 = vmatprep.mubr.msk.bf16.mxu1 %vm4993_vm2, %v6408_v35  ;;  %5358 = vmax.xlane.f32.xlu1 %v5357_v18  ;;  %13512 = vrcp.f32 %v5857_v1  ;;  %v5363_v4 = vsel %vm4993_vm2, %v17376_v52, -inf  ;;  %v5676_v58 = vmul.f32 1.442695, %v5463_v25  ;;  %v5654_v29 = vmul.f32 1.442695, %v5452_v59  ;;  %v20809_v59 = vld [vmem:[#allocation100_spill] sm:$0xff] }
 0x562   : > { %12568 = vmatmul.mubr.msk.bf16.gmra.mrb[36].mxu1 %vm4993_vm2, %v6409_v61  ;;  %v5366_v62 = vsel %vm4993_vm2, %v17399_v53, -inf  ;;  %v5656_v46 = vmul.f32 1.442695, %v5453_v13  ;;  %v5369_v18 = vsel %vm4993_vm2, %v20805_v2, -inf  ;;  %v5450_v48 = vsub.f32 %v20809_v59, %v17549_v17 }
 0x563   : > { %v5848_v47 = vpop.xlane.xlu0 %5847  ;;  %v13501_v12 = vpop.eup %13500 }
 0x564   : > { %13514 = vrcp.f32 %v5848_v47  ;;  %5361 = vmax.xlane.f32.xlu0 %v5360_v28  ;;  %v5851_v57 = vpop.xlane.xlu1 %5850  ;;  %v6301_v1 = vmul.f32 %v13501_v12, %v20804_v26 }
 0x565   : > { %13516 = vrcp.f32 %v5854_v37  ;;  %5364 = vmax.xlane.f32.xlu1 %v5363_v4 }
 0x566   : > { %v13503_v32 = vpop.eup %13502  ;;  %13518 = vrcp.f32 %v5851_v57 }
 0x567   : > { %v13505_v35 = vpop.eup %13504  ;;  %13520 = vpow2.f32 %v5672_v63  ;;  %v6298_v25 = vmul.f32 %v13503_v32, %v20806_v38  ;;  %v20810_v63 = vld [vmem:[#allocation16_spill] sm:$0xff]  ;;  %v20812_v32 = vld [vmem:[#allocation93_spill] sm:$0xff]  ;;  %v20814_v38 = vld [vmem:[#allocation107_spill] sm:$0xff] }
 0x568   : > { %v13507_v61 = vpop.eup %13506  ;;  %5367 = vmax.xlane.f32.xlu0 %v5366_v62  ;;  %13522 = vpow2.f32 %v5674_v5  ;;  %v5890_v37 = vpop.xlane.xlu0 %5889  ;;  %v6300_v13 = vmul.f32 %v13505_v35, %v20810_v63  ;;  %v6002_v5 = vsel %vm4993_vm2, %v17723_v50, 0.0  ;;  %v20813_v62 = vld [vmem:[#allocation102_spill] sm:$0xff] }
 0x569   : > { %v6299_v47 = vmul.f32 %v13507_v61, %v20807_v9  ;;  %v17736_v28 = vpop.eup %13508  ;;  %13524 = vpow2.f32 %v5676_v58  ;;  %5370 = vmax.xlane.f32.xlu1 %v5369_v18  ;;  %v5451_v61 = vsub.f32 %v20813_v62, %v20812_v32  ;;  %v5650_v18 = vmul.f32 1.442695, %v5450_v48  ;;  %v20815_v9 = vld [vmem:[#allocation44_spill] sm:$0xff]  ;;  %v20820_v32 = vld [vmem:[#allocation69_spill] sm:$0xff]  ;;  %v20821_v62 = vld [vmem:[#allocation42_spill] sm:$0xff] }
 0x56a   : > { %20808 = vst [vmem:[#allocation7_spill] sm:$0xff] %v17736_v28  ;;  %13526 = vpow2.f32 %v5654_v29  ;;  %v5893_v12 = vpop.xlane.xlu1 %5892  ;;  %v17743_v4 = vpop.eup %13510  ;;  %v6415_v26 = vpack.c.bf16 %v6301_v1, %v6300_v13  ;;  %v6005_v35 = vsel %vm4993_vm2, %v17736_v28, 0.0  ;;  %v20816_v13 = vld [vmem:[#allocation109_spill] sm:$0xff] }
 0x56b   : > { %v6414_v57 = vpack.c.bf16 %v6299_v47, %v6298_v25  ;;  %20811 = vst [vmem:[#allocation68_spill] sm:$0xff] %v17743_v4  ;;  %13528 = vpow2.f32 %v5656_v46  ;;  %v13513_v58 = vpop.eup %13512  ;;  %v5456_v25 = vsub.f32 %v20814_v38, %v17574_v39  ;;  %v5372_v47 = vsel %vm4993_vm2, %v20815_v9, -inf  ;;  %v20818_v39 = vld [vmem:[#allocation75_spill] sm:$0xff]  ;;  %v20824_v38 = vld [vmem:[#allocation37_spill] sm:$0xff] }
 0x56c   : > { %6003 = vadd.xlane.f32.xlu0 %v6002_v5  ;;  %13530 = vrcp.f32 %v5893_v12  ;;  %v5884_v17 = vpop.xlane.xlu0 %5883  ;;  %v5652_v63 = vmul.f32 1.442695, %v5451_v61  ;;  %v5457_v48 = vsub.f32 %v20816_v13, %v17581_v34  ;;  %v20817_v12 = vld [vmem:[#allocation46_spill] sm:$0xff] }
 0x56d   : > { %12595 = vmatprep.mubr.msk.bf16.mxu1 %vm4993_vm2, %v6414_v57  ;;  %13532 = vrcp.f32 %v5884_v17  ;;  %6006 = vadd.xlane.f32.xlu1 %v6005_v35  ;;  %v6305_v5 = vmul.f32 %v13513_v58, %v20817_v12  ;;  %v20819_v57 = vld [vmem:[#allocation59_spill] sm:$0xff]  ;;  %v5662_v61 = vmul.f32 1.442695, %v5456_v25  ;;  %v20823_v35 = vld [vmem:[#allocation108_spill] sm:$0xff] }
 0x56e   : > { %v13515_v29 = vpop.eup %13514  ;;  %12596 = vmatmul.mubr.msk.bf16.vlgmr.msra.gmra.mrb[40].mxu1 %vm4993_vm2, %v6415_v26  ;;  %13534 = vrcp.f32 %v5890_v37  ;;  %v5887_v1 = vpop.xlane.xlu1 %5886  ;;  %v5375_v37 = vsel %vm4993_vm2, %v20819_v57, -inf  ;;  %v5454_v34 = vsub.f32 %v20823_v35, %v17588_v30  ;;  %v20828_v30 = vld [vmem:[#allocation81_spill] sm:$0xff]  ;;  %v20834_v35 = vld [vmem:[#allocation91_spill] sm:$0xff] }
 0x56f   : > { %v13517_v46 = vpop.eup %13516  ;;  %12620 = vmatpush3.bf16.msra.mxu1 %v20799_v44  ;;  %13536 = vrcp.f32 %v5887_v1  ;;  %v6302_v44 = vmul.f32 %v13515_v29, %v20820_v32  ;;  %v6008_v1 = vsel %vm4993_vm2, %v17743_v4, 0.0  ;;  %v20831_v32 = vld [vmem:[#allocation65_spill] sm:$0xff] }
 0x570   : > { %v13519_v59 = vpop.eup %13518  ;;  %12621 = vmatprep.subr.bf16.mxu1 %v20818_v39  ;;  %5373 = vmax.xlane.f32.xlu0 %v5372_v47  ;;  %13538 = vpow2.f32 %v5650_v18  ;;  %v6304_v58 = vmul.f32 %v13517_v46, %v20824_v38  ;;  %v20827_v18 = vld [vmem:[#allocation110_spill] sm:$0xff] }
 0x571   : > { %v6303_v26 = vmul.f32 %v13519_v59, %v20821_v62  ;;  %v17764_v17 = vpop.eup %13520  ;;  %5376 = vmax.xlane.f32.xlu1 %v5375_v37  ;;  %13540 = vpow2.f32 %v5652_v63  ;;  %v5664_v59 = vmul.f32 1.442695, %v5457_v48  ;;  %v5455_v25 = vsub.f32 %v20827_v18, %v17593_v16 }
 0x572   : > { %20822 = vst [vmem:[#allocation112_spill] sm:$0xff] %v17764_v17  ;;  %v17769_v13 = vpop.eup %13522  ;;  %v6417_v12 = vpack.c.bf16 %v6305_v5, %v6304_v58  ;;  %13542 = vpow2.f32 %v5662_v61  ;;  %v5658_v48 = vmul.f32 1.442695, %v5454_v34 }
 0x573   : > { %20825 = vst [vmem:[#allocation113_spill] sm:$0xff] %v17769_v13  ;;  %12622 = vmatpush3.bf16.msra.mxu1 %v20818_v39  ;;  %v6416_v29 = vpack.c.bf16 %v6303_v26, %v6302_v44  ;;  %v17774_v47 = vpop.eup %13524  ;;  %v6011_v39 = vsel %vm4993_vm2, %v17764_v17, 0.0  ;;  %v20832_v44 = vld [vmem:[#allocation90_spill] sm:$0xff]  ;;  %v6014_v5 = vsel %vm4993_vm2, %v17769_v13, 0.0  ;;  %13544 = vpow2.f32 %v5664_v59  ;;  %v20837_v59 = vld [vmem:[#allocation51_spill] sm:$0xff]  ;;  %v20866_v17 = vld [vmem:[#allocation73_spill] sm:$0xff] }
 0x574   : > { %20826 = vst [vmem:[#allocation111_spill] sm:$0xff] %v17774_v47  ;;  %12623 = vmatprep.subr.bf16.mxu1 %v20828_v30  ;;  %6009 = vadd.xlane.f32.xlu0 %v6008_v1  ;;  %v17779_v46 = vpop.eup %13526  ;;  %v5464_v63 = vsub.f32 %v20832_v44, %v20831_v32  ;;  %v20833_v26 = vld [vmem:[#allocation62_spill] sm:$0xff]  ;;  %v5660_v58 = vmul.f32 1.442695, %v5455_v25  ;;  %v20835_v1 = vld [vmem:[#allocation79_spill] sm:$0xff]  ;;  %v6017_v34 = vsel %vm4993_vm2, %v17774_v47, 0.0  ;;  %13546 = vpow2.f32 %v5658_v48 }
 0x575   : > { %20829 = vst [vmem:[#allocation117_spill] sm:$0xff] %v17779_v46  ;;  %12599 = vmatprep.mubr.msk.bf16.mxu1 %vm4993_vm2, %v6416_v29  ;;  %v17784_v37 = vpop.eup %13528  ;;  %6012 = vadd.xlane.f32.xlu1 %v6011_v39  ;;  %v5465_v38 = vsub.f32 %v20834_v35, %v20833_v26  ;;  %v5984_v39 = vsel %vm4993_vm2, %v17779_v46, 0.0  ;;  %v20838_v32 = vld [vmem:[#allocation67_spill] sm:$0xff]  ;;  %v20840_v35 = vld [vmem:[#allocation53_spill] sm:$0xff] }
 0x576   : > { %20830 = vst [vmem:[#allocation105_spill] sm:$0xff] %v17784_v37  ;;  %12600 = vmatmul.mubr.msk.bf16.gmra.mrb[44].mxu1 %vm4993_vm2, %v6417_v12  ;;  %v13531_v16 = vpop.eup %13530  ;;  %v5678_v18 = vmul.f32 1.442695, %v5464_v63  ;;  %v20836_v12 = vld [vmem:[#allocation58_spill] sm:$0xff]  ;;  %13548 = vpow2.f32 %v5660_v58  ;;  %v20841_v63 = vld [vmem:[#allocation23_spill] sm:$0xff]  ;;  %v5987_v48 = vsel %vm4993_vm2, %v17784_v37, 0.0 }
 0x577   : > { %12624 = vmatpush3.bf16.msra.mxu1 %v20828_v30  ;;  %v13533_v62 = vpop.eup %13532  ;;  %v6317_v30 = vmul.f32 %v13531_v16, %v20836_v12  ;;  %v5680_v26 = vmul.f32 1.442695, %v5465_v38 }
 0x578   : > { %12625 = vmatprep.subr.bf16.mxu1 %v20835_v1  ;;  %6015 = vadd.xlane.f32.xlu0 %v6014_v5  ;;  %v13535_v61 = vpop.eup %13534  ;;  %v6314_v25 = vmul.f32 %v13533_v62, %v20837_v59  ;;  %13550 = vpow2.f32 %v5678_v18 }
 0x579   : > { %v13537_v29 = vpop.eup %13536  ;;  %6018 = vadd.xlane.f32.xlu1 %v6017_v34  ;;  %v6316_v47 = vmul.f32 %v13535_v61, %v20840_v35  ;;  %13552 = vpow2.f32 %v5680_v26 }
 0x57a   : > { %v6315_v44 = vmul.f32 %v13537_v29, %v20838_v32  ;;  %v17803_v5 = vpop.eup %13538  ;;  %v20848_v32 = vld [vmem:[#allocation89_spill] sm:$0xff] }
 0x57b   : > { %12626 = vmatpush3.bf16.msra.mxu1 %v20835_v1  ;;  %20839 = vst [vmem:[#allocation120_spill] sm:$0xff] %v17803_v5  ;;  %v17809_v1 = vpop.eup %13540  ;;  %v6423_v34 = vpack.c.bf16 %v6317_v30, %v6316_v47  ;;  %v5978_v62 = vsel %vm4993_vm2, %v17803_v5, 0.0  ;;  %v20845_v47 = vld [vmem:[#allocation12_spill] sm:$0xff] }
 0x57c   : > { %12651 = vmatprep.subr.bf16.mxu1 %v20841_v63  ;;  %5985 = vadd.xlane.f32.xlu0 %v5984_v39  ;;  %v6422_v16 = vpack.c.bf16 %v6315_v44, %v6314_v25  ;;  %20842 = vst [vmem:[#allocation122_spill] sm:$0xff] %v17809_v1  ;;  %v17814_v38 = vpop.eup %13542  ;;  %v5981_v61 = vsel %vm4993_vm2, %v17809_v1, 0.0 }
 0x57d   : > { %5988 = vadd.xlane.f32.xlu1 %v5987_v48  ;;  %20843 = vst [vmem:[#allocation114_spill] sm:$0xff] %v17814_v38  ;;  %v17820_v29 = vpop.eup %13544  ;;  %v5996_v12 = vsel %vm4993_vm2, %v17814_v38, 0.0  ;;  %v20858_v38 = vld [vmem:[#allocation121_spill] sm:$0xff] }
 0x57e   : > { %12627 = vmatprep.mubr.msk.bf16.mxu1 %vm4993_vm2, %v6422_v16  ;;  %20844 = vst [vmem:[#allocation116_spill] sm:$0xff] %v17820_v29  ;;  %v17825_v30 = vpop.eup %13546  ;;  %v5999_v59 = vsel %vm4993_vm2, %v17820_v29, 0.0 }
 0x57f   : > { %12628 = vmatmul.mubr.msk.bf16.vlgmr.msra.gmra.mrb[48].mxu1 %vm4993_vm2, %v6423_v34  ;;  %20846 = vst [vmem:[#allocation119_spill] sm:$0xff] %v17825_v30  ;;  %v5990_v26 = vsel %vm4993_vm2, %v17825_v30, 0.0 }
 0x580   : > { %5979 = vadd.xlane.f32.xlu0 %v5978_v62  ;;  %12652 = vmatpush3.bf16.msra.mxu1 %v20841_v63  ;;  %v17830_v25 = vpop.eup %13548  ;;  %v20852_v62 = vld [vmem:[#allocation87_spill] sm:$0xff] }
 0x581   : > { %v5902_v58 = vpop.xlane.xlu0 %5901  ;;  %12653 = vmatprep.subr.bf16.mxu1 %v20845_v47  ;;  %5982 = vadd.xlane.f32.xlu1 %v5981_v61  ;;  %20847 = vst [vmem:[#allocation115_spill] sm:$0xff] %v17830_v25  ;;  %v5993_v48 = vsel %vm4993_vm2, %v17830_v25, 0.0 }
 0x582   : > { %v5905_v18 = vpop.xlane.xlu1 %5904  ;;  %v17835_v35 = vpop.eup %13550 }
 0x583   : > { %13554 = vrcp.f32 %v5905_v18  ;;  %20849 = vst [vmem:[#allocation66_spill] sm:$0xff] %v17835_v35  ;;  %v17842_v16 = vpop.eup %13552 }
 0x584   : > { %5997 = vadd.xlane.f32.xlu0 %v5996_v12  ;;  %12654 = vmatpush3.bf16.msra.mxu1 %v20845_v47  ;;  %20850 = vst [vmem:[#allocation54_spill] sm:$0xff] %v17842_v16  ;;  %v6020_v47 = vsel %vm4993_vm2, %v17835_v35, 0.0  ;;  %v20857_v35 = vld [vmem:[#allocation76_spill] sm:$0xff]  ;;  %v5468_v12 = vsub.f32 %v20858_v38, %v17621_v10  ;;  %v20863_v10 = vld [vmem:[#allocation123_spill] sm:$0xff] }
 0x585   : > { %v5896_v39 = vpop.xlane.xlu0 %5895  ;;  %12655 = vmatprep.subr.bf16.mxu1 %v20848_v32  ;;  %6000 = vadd.xlane.f32.xlu1 %v5999_v59  ;;  %v5466_v38 = vsub.f32 %v20863_v10, %v17637_v42 }
 0x586   : > { %13556 = vrcp.f32 %v5896_v39  ;;  %v5899_v44 = vpop.xlane.xlu1 %5898  ;;  %v5686_v5 = vmul.f32 1.442695, %v5468_v12  ;;  %v20868_v12 = vld [vmem:[#allocation104_spill] sm:$0xff] }
 0x587   : > { %13558 = vrcp.f32 %v5902_v58  ;;  %v5682_v42 = vmul.f32 1.442695, %v5466_v38 }
 0x588   : > { %13560 = vrcp.f32 %v5899_v44  ;;  %5991 = vadd.xlane.f32.xlu0 %v5990_v26  ;;  %12656 = vmatpush3.bf16.msra.mxu1 %v20848_v32  ;;  %v17844_v34 = vpop.f32.mrb[224].mxu0  ;;  %v6023_v32 = vsel %vm4993_vm2, %v17842_v16, 0.0  ;;  %v20856_v26 = vld [vmem:[#allocation27_spill] sm:$0xff]  ;;  %v20860_v16 = vld [vmem:[#allocation124_spill] sm:$0xff] }
 0x589   : > { %v17838_v63 = vpop.xlane.xlu0 %5277  ;;  %20851 = vst [vmem:[#allocation118_spill] sm:$0xff] %v17844_v34  ;;  %12657 = vmatprep.subr.bf16.mxu1 %v20852_v62  ;;  %5994 = vadd.xlane.f32.xlu1 %v5993_v48  ;;  %v17847_v58 = vpop.f32.mrb[225].mxu0  ;;  %v5469_v46 = vsub.f32 %v20860_v16, %v17629_v41  ;;  %v20867_v16 = vld [vmem:[#allocation97_spill] sm:$0xff] }
 0x58a   : > { %20853 = vst [vmem:[#allocation43_spill] sm:$0xff] %v17847_v58  ;;  %v17849_v61 = vpop.xlane.xlu1 %5280  ;;  %v17853_v18 = vpop.f32.mrb[226].mxu0  ;;  %v20861_v58 = vld [vmem:[#allocation71_spill] sm:$0xff] }
 0x58b   : > { %20854 = vst [vmem:[#allocation72_spill] sm:$0xff] %v17853_v18  ;;  %v17857_v39 = vpop.f32.mrb[227].mxu0 }
 0x58c   : > { %6021 = vadd.xlane.f32.xlu0 %v6020_v47  ;;  %20855 = vst [vmem:[#allocation70_spill] sm:$0xff] %v17857_v39  ;;  %12658 = vmatpush3.bf16.msra.mxu1 %v20852_v62  ;;  %v20859_v62 = vld [vmem:[#allocation98_spill] sm:$0xff] }
 0x58d   : > { %v5284_v59 = vpop.xlane.xlu0 %5283  ;;  %12683 = vmatprep.subr.bf16.mxu1 %v20857_v35  ;;  %6024 = vadd.xlane.f32.xlu1 %v6023_v32  ;;  %v13555_v47 = vpop.eup %13554  ;;  %v20862_v32 = vld [vmem:[#allocation29_spill] sm:$0xff] }
 0x58e   : > { %v5474_v48 = vsub.f32 %v20856_v26, %v5284_v59  ;;  %v5287_v34 = vpop.xlane.xlu1 %5286  ;;  %v6321_v59 = vmul.f32 %v13555_v47, %v20861_v58  ;;  %v5688_v58 = vmul.f32 1.442695, %v5469_v46 }
 0x58f   : > { %v5475_v30 = vsub.f32 %v20859_v62, %v5287_v34  ;;  %v20865_v34 = vld [vmem:[#allocation60_spill] sm:$0xff] }
 0x590   : > { %v13557_v18 = vpop.eup %13556  ;;  %v5698_v25 = vmul.f32 1.442695, %v5474_v48  ;;  %v20864_v48 = vld [vmem:[#allocation85_spill] sm:$0xff] }
 0x591   : > { %v13559_v29 = vpop.eup %13558  ;;  %v5290_v1 = vpop.xlane.xlu0 %5289  ;;  %v5700_v26 = vmul.f32 1.442695, %v5475_v30  ;;  %v6318_v13 = vmul.f32 %v13557_v18, %v20864_v48 }
 0x592   : > { %v13561_v44 = vpop.eup %13560  ;;  %13562 = vpow2.f32 %v5698_v25  ;;  %v5476_v39 = vsub.f32 %v20862_v32, %v5290_v1  ;;  %v5293_v37 = vpop.xlane.xlu1 %5292  ;;  %v6320_v4 = vmul.f32 %v13559_v29, %v20866_v17  ;;  %v20869_v17 = vld [vmem:[#allocation106_spill] sm:$0xff] }
 0x593   : > { %v6319_v62 = vmul.f32 %v13561_v44, %v20865_v34  ;;  %13564 = vpow2.f32 %v5700_v26  ;;  %v5477_v28 = vsub.f32 %v20867_v16, %v5293_v37  ;;  %v20873_v26 = vld [vmem:[#allocation130_spill] sm:$0xff] }
 0x594   : > { %v5702_v41 = vmul.f32 1.442695, %v5476_v39  ;;  %v6425_v47 = vpack.c.bf16 %v6321_v59, %v6320_v4  ;;  %v5472_v10 = vsub.f32 %v20873_v26, %v17838_v63 }
 0x595   : > { %v5296_v25 = vpop.xlane.xlu0 %5295  ;;  %v6424_v30 = vpack.c.bf16 %v6319_v62, %v6318_v13  ;;  %v5704_v1 = vmul.f32 1.442695, %v5477_v28  ;;  %v20870_v13 = vld [vmem:[#allocation125_spill] sm:$0xff] }
 0x596   : > { %13566 = vpow2.f32 %v5702_v41  ;;  %v5478_v32 = vsub.f32 %v20868_v12, %v5296_v25  ;;  %v5299_v18 = vpop.xlane.xlu1 %5298  ;;  %v5467_v4 = vsub.f32 %v20870_v13, %v17643_v31  ;;  %v20877_v12 = vld [vmem:[#allocation131_spill] sm:$0xff] }
 0x597   : > { %13568 = vpow2.f32 %v5686_v5  ;;  %12631 = vmatprep.mubr.msk.bf16.mxu1 %vm4993_vm2, %v6424_v30  ;;  %v5479_v29 = vsub.f32 %v20869_v17, %v5299_v18  ;;  %v20878_v17 = vld [vmem:[#allocation133_spill] sm:$0xff] }
 0x598   : > { %13570 = vpow2.f32 %v5704_v1  ;;  %v5706_v44 = vmul.f32 1.442695, %v5478_v32  ;;  %12632 = vmatmul.mubr.msk.bf16.gmra.mrb[52].mxu1 %vm4993_vm2, %v6425_v47  ;;  %v17885_v37 = vpop.f32.mrb[228].mxu0  ;;  %v5684_v16 = vmul.f32 1.442695, %v5467_v4  ;;  %v5470_v32 = vsub.f32 %v20877_v12, %v17668_v49 }
 0x599   : > { %13572 = vpow2.f32 %v5688_v58  ;;  %v5938_v46 = vpop.xlane.xlu0 %5937  ;;  %v5708_v28 = vmul.f32 1.442695, %v5479_v29  ;;  %20871 = vst [vmem:[#allocation56_spill] sm:$0xff] %v17885_v37  ;;  %v17887_v5 = vpop.f32.mrb[229].mxu0  ;;  %v20876_v58 = vld [vmem:[#allocation132_spill] sm:$0xff]  ;;  %v5471_v29 = vsub.f32 %v20878_v17, %v17675_v21 }
 0x59a   : > { %13574 = vpow2.f32 %v5706_v44  ;;  %20872 = vst [vmem:[#allocation127_spill] sm:$0xff] %v17887_v5  ;;  %v5941_v39 = vpop.xlane.xlu1 %5940  ;;  %v17893_v38 = vpop.f32.mrb[230].mxu0  ;;  %v5473_v25 = vsub.f32 %v20876_v58, %v17849_v61  ;;  %v20881_v17 = vld [vmem:[#allocation8_spill] sm:$0xff]  ;;  %v20896_v5 = vld [vmem:[#allocation14_spill] sm:$0xff] }
 0x59b   : > { %13576 = vpow2.f32 %v5682_v42  ;;  %20874 = vst [vmem:[#allocation45_spill] sm:$0xff] %v17893_v38  ;;  %v17897_v31 = vpop.f32.mrb[231].mxu0  ;;  %v5694_v42 = vmul.f32 1.442695, %v5472_v10  ;;  %v5692_v21 = vmul.f32 1.442695, %v5471_v29 }
 0x59c   : > { %v17889_v59 = vpop.eup %13562  ;;  %13578 = vpow2.f32 %v5708_v28  ;;  %20875 = vst [vmem:[#allocation129_spill] sm:$0xff] %v17897_v31  ;;  %v5690_v28 = vmul.f32 1.442695, %v5470_v32  ;;  %v20895_v37 = vld [vmem:[#allocation96_spill] sm:$0xff] }
 0x59d   : > { %13580 = vrcp.f32 %v5941_v39  ;;  %v5932_v34 = vpop.xlane.xlu0 %5931  ;;  %v6050_v62 = vsel %vm4993_vm2, %v17889_v59, 0.0  ;;  %v17901_v41 = vpop.eup %13564 }
 0x59e   : > { %13582 = vrcp.f32 %v5932_v34  ;;  %6051 = vadd.xlane.f32.xlu0 %v6050_v62  ;;  %v5935_v30 = vpop.xlane.xlu1 %5934  ;;  %v6053_v47 = vsel %vm4993_vm2, %v17901_v41, 0.0 }
 0x59f   : > { %13584 = vrcp.f32 %v5938_v46  ;;  %6054 = vadd.xlane.f32.xlu1 %v6053_v47  ;;  %v5696_v46 = vmul.f32 1.442695, %v5473_v25  ;;  %v20879_v47 = vld [vmem:[#allocation15_spill] sm:$0xff] }
 0x5a0   : > { %v17909_v1 = vpop.eup %13566  ;;  %13586 = vrcp.f32 %v5935_v30 }
 0x5a1   : > { %v17913_v18 = vpop.eup %13568  ;;  %v6056_v61 = vsel %vm4993_vm2, %v17909_v1, 0.0  ;;  %13588 = vpow2.f32 %v5684_v16 }
 0x5a2   : > { %v17917_v44 = vpop.eup %13570  ;;  %6057 = vadd.xlane.f32.xlu0 %v6056_v61  ;;  %13590 = vpow2.f32 %v5694_v42  ;;  %v6032_v25 = vsel %vm4993_vm2, %v17913_v18, 0.0  ;;  %v20880_v42 = vld [vmem:[#allocation5_spill] sm:$0xff] }
 0x5a3   : > { %v17921_v13 = vpop.eup %13572  ;;  %v6059_v49 = vsel %vm4993_vm2, %v17917_v44, 0.0  ;;  %13592 = vpow2.f32 %v5696_v46 }
 0x5a4   : > { %v17925_v4 = vpop.eup %13574  ;;  %6060 = vadd.xlane.f32.xlu1 %v6059_v49  ;;  %13594 = vpow2.f32 %v5690_v28  ;;  %v6035_v32 = vsel %vm4993_vm2, %v17921_v13, 0.0  ;;  %v20882_v49 = vld [vmem:[#allocation9_spill] sm:$0xff] }
 0x5a5   : > { %v17927_v39 = vpop.eup %13576  ;;  %v6062_v26 = vsel %vm4993_vm2, %v17925_v4, 0.0  ;;  %13596 = vpow2.f32 %v5692_v21 }
 0x5a6   : > { %v17931_v10 = vpop.eup %13578  ;;  %6063 = vadd.xlane.f32.xlu0 %v6062_v26  ;;  %v6026_v21 = vsel %vm4993_vm2, %v17927_v39, 0.0 }
 0x5a7   : > { %v13581_v34 = vpop.eup %13580  ;;  %v6065_v62 = vsel %vm4993_vm2, %v17931_v10, 0.0 }
 0x5a8   : > { %v13583_v16 = vpop.eup %13582  ;;  %6066 = vadd.xlane.f32.xlu1 %v6065_v62  ;;  %v6333_v12 = vmul.f32 %v13581_v34, %v20879_v47 }
 0x5a9   : > { %v13585_v58 = vpop.eup %13584  ;;  %v6330_v61 = vmul.f32 %v13583_v16, %v20880_v42 }
 0x5aa   : > { %v13587_v30 = vpop.eup %13586  ;;  %6033 = vadd.xlane.f32.xlu0 %v6032_v25  ;;  %v6332_v28 = vmul.f32 %v13585_v58, %v20882_v49  ;;  %v20888_v49 = vld [vmem:[#allocation74_spill] sm:$0xff] }
 0x5ab   : > { %v6331_v29 = vmul.f32 %v13587_v30, %v20881_v17  ;;  %v17942_v46 = vpop.eup %13588 }
 0x5ac   : > { %6036 = vadd.xlane.f32.xlu1 %v6035_v32  ;;  %v17945_v26 = vpop.f32.mrb[232].mxu0  ;;  %v17949_v34 = vpop.eup %13590  ;;  %v6431_v25 = vpack.c.bf16 %v6333_v12, %v6332_v28  ;;  %v6029_v58 = vsel %vm4993_vm2, %v17942_v46, 0.0  ;;  %v20891_v12 = vld [vmem:[#allocation78_spill] sm:$0xff] }
 0x5ad   : > { %20883 = vst [vmem:[#allocation47_spill] sm:$0xff] %v17945_v26  ;;  %v6430_v62 = vpack.c.bf16 %v6331_v29, %v6330_v61  ;;  %20884 = vst [vmem:[#allocation126_spill] sm:$0xff] %v17949_v34  ;;  %v17951_v47 = vpop.f32.mrb[233].mxu0  ;;  %v17958_v30 = vpop.eup %13592  ;;  %v6044_v17 = vsel %vm4993_vm2, %v17949_v34, 0.0 }
 0x5ae   : > { %20885 = vst [vmem:[#allocation3_spill] sm:$0xff] %v17951_v47  ;;  %6027 = vadd.xlane.f32.xlu0 %v6026_v21  ;;  %v17953_v16 = vpop.f32.mrb[234].mxu0  ;;  %v17970_v29 = vpop.eup %13594  ;;  %v6047_v21 = vsel %vm4993_vm2, %v17958_v30, 0.0 }
 0x5af   : > { %20886 = vst [vmem:[#allocation49_spill] sm:$0xff] %v17953_v16  ;;  %12659 = vmatprep.mubr.msk.bf16.mxu1 %vm4993_vm2, %v6430_v62  ;;  %v17962_v42 = vpop.f32.mrb[235].mxu0  ;;  %v17975_v62 = vpop.eup %13596 }
 0x5b0   : > { %20887 = vst [vmem:[#allocation128_spill] sm:$0xff] %v17962_v42  ;;  %12660 = vmatmul.mubr.msk.bf16.vlgmr.msra.gmra.mrb[56].mxu1 %vm4993_vm2, %v6431_v25  ;;  %6030 = vadd.xlane.f32.xlu1 %v6029_v58  ;;  %v6038_v25 = vsel %vm4993_vm2, %v17970_v29, 0.0  ;;  %v20889_v58 = vld [vmem:[#allocation80_spill] sm:$0xff]  ;;  %v6041_v32 = vsel %vm4993_vm2, %v17975_v62, 0.0 }
 0x5b1   : > { %12684 = vmatpush3.bf16.msra.mxu1 %v20857_v35  ;;  %v5950_v61 = vpop.xlane.xlu0 %5949 }
 0x5b2   : > { %12685 = vmatprep.subr.bf16.mxu1 %v20888_v49  ;;  %6045 = vadd.xlane.f32.xlu0 %v6044_v17  ;;  %v5953_v28 = vpop.xlane.xlu1 %5952 }
 0x5b3   : > { %13598 = vrcp.f32 %v5953_v28 }
 0x5b4   : > { %6048 = vadd.xlane.f32.xlu1 %v6047_v21  ;;  %v20890_v21 = vld [vmem:[#allocation103_spill] sm:$0xff] }
 0x5b5   : > { %12686 = vmatpush3.bf16.msra.mxu1 %v20888_v49  ;;  %v5944_v35 = vpop.xlane.xlu0 %5943 }
 0x5b6   : > { %13600 = vrcp.f32 %v5944_v35  ;;  %12687 = vmatprep.subr.bf16.mxu1 %v20889_v58  ;;  %6039 = vadd.xlane.f32.xlu0 %v6038_v25  ;;  %v5947_v17 = vpop.xlane.xlu1 %5946 }
 0x5b7   : > { %13602 = vrcp.f32 %v5950_v61 }
 0x5b8   : > { %13604 = vrcp.f32 %v5947_v17  ;;  %6042 = vadd.xlane.f32.xlu1 %v6041_v32  ;;  %v20892_v17 = vld [vmem:[#allocation10_spill] sm:$0xff] }
 0x5b9   : > { %12688 = vmatpush3.bf16.msra.mxu1 %v20889_v58  ;;  %v5302_v28 = vpop.xlane.xlu0 %5301 }
 0x5ba   : > { %v5480_v49 = vsub.f32 %v20890_v21, %v5302_v28  ;;  %12689 = vmatprep.subr.bf16.mxu1 %v20891_v12  ;;  %v5305_v48 = vpop.xlane.xlu1 %5304 }
 0x5bb   : > { %v5481_v35 = vsub.f32 %v20764_v19, %v5305_v48  ;;  %v20893_v19 = vld [vmem:[#allocation94_spill] sm:$0xff] }
 0x5bc   : > { %v5710_v63 = vmul.f32 1.442695, %v5480_v49 }
 0x5bd   : > { %12690 = vmatpush3.bf16.msra.mxu1 %v20891_v12  ;;  %v5332_v61 = vpop.xlane.xlu0 %5331  ;;  %v5712_v25 = vmul.f32 1.442695, %v5481_v35  ;;  %v13599_v32 = vpop.eup %13598 }
 0x5be   : > { %13606 = vpow2.f32 %v5710_v63  ;;  %v5490_v26 = vsub.f32 %v20768_v54, %v5332_v61  ;;  %12715 = vmatprep.subr.bf16.mxu1 %v20892_v17  ;;  %v5335_v58 = vpop.xlane.xlu1 %5334  ;;  %v6337_v48 = vmul.f32 %v13599_v32, %v20893_v19  ;;  %v20894_v54 = vld [vmem:[#allocation95_spill] sm:$0xff] }
 0x5bf   : > { %13608 = vpow2.f32 %v5712_v25  ;;  %v5491_v21 = vsub.f32 %v20769_v27, %v5335_v58 }
 0x5c0   : > { %v13601_v16 = vpop.eup %13600  ;;  %v5730_v28 = vmul.f32 1.442695, %v5490_v26 }
 0x5c1   : > { %v13603_v47 = vpop.eup %13602  ;;  %v5338_v49 = vpop.xlane.xlu0 %5337  ;;  %v5732_v12 = vmul.f32 1.442695, %v5491_v21  ;;  %v6334_v61 = vmul.f32 %v13601_v16, %v20894_v54 }
 0x5c2   : > { %v13605_v42 = vpop.eup %13604  ;;  %13610 = vpow2.f32 %v5730_v28  ;;  %v5492_v63 = vsub.f32 %v20770_v15, %v5338_v49  ;;  %v5341_v35 = vpop.xlane.xlu1 %5340  ;;  %v6336_v31 = vmul.f32 %v13603_v47, %v20896_v5 }
 0x5c3   : > { %v6335_v38 = vmul.f32 %v13605_v42, %v20895_v37  ;;  %13612 = vpow2.f32 %v5732_v12  ;;  %v5493_v27 = vsub.f32 %v20773_v56, %v5341_v35 }
 0x5c4   : > { %v5734_v26 = vmul.f32 1.442695, %v5492_v63  ;;  %v6433_v32 = vpack.c.bf16 %v6337_v48, %v6336_v31 }
 0x5c5   : > { %v17997_v25 = vpop.f32.mrb[236].mxu0  ;;  %v5308_v58 = vpop.xlane.xlu0 %5307  ;;  %v6432_v34 = vpack.c.bf16 %v6335_v38, %v6334_v61  ;;  %v5736_v28 = vmul.f32 1.442695, %v5493_v27 }
 0x5c6   : > { %20897 = vst [vmem:[#allocation61_spill] sm:$0xff] %v17997_v25  ;;  %13614 = vpow2.f32 %v5734_v26  ;;  %v17999_v21 = vpop.f32.mrb[237].mxu0  ;;  %v5311_v37 = vpop.xlane.xlu1 %5310 }
 0x5c7   : > { %20898 = vst [vmem:[#allocation134_spill] sm:$0xff] %v17999_v21  ;;  %v18001_v15 = vpop.f32.mrb[238].mxu0  ;;  %12663 = vmatprep.mubr.msk.bf16.mxu1 %vm4993_vm2, %v6432_v34  ;;  %13616 = vpow2.f32 %v5736_v28  ;;  %v20901_v28 = vld [vmem:[#allocation135_spill] sm:$0xff] }
 0x5c8   : > { %20899 = vst [vmem:[#allocation4_spill] sm:$0xff] %v18001_v15  ;;  %v18004_v16 = vpop.eup %13606  ;;  %v18008_v5 = vpop.f32.mrb[239].mxu0  ;;  %12664 = vmatmul.mubr.msk.bf16.gmra.mrb[60].mxu1 %vm4993_vm2, %v6433_v32 }
 0x5c9   : > { %20900 = vst [vmem:[#allocation25_spill] sm:$0xff] %v18008_v5  ;;  %v5314_v31 = vpop.xlane.xlu0 %5313  ;;  %v6068_v47 = vsel %vm4993_vm2, %v18004_v16, 0.0  ;;  %v18015_v42 = vpop.eup %13608 }
 0x5ca   : > { %6069 = vadd.xlane.f32.xlu0 %v6068_v47  ;;  %v5484_v34 = vsub.f32 %v17251_v6, %v5314_v31  ;;  %v5317_v49 = vpop.xlane.xlu1 %5316  ;;  %v6071_v19 = vsel %vm4993_vm2, %v18015_v42, 0.0  ;;  %v5482_v31 = vsub.f32 %v20901_v28, %v5308_v58 }
 0x5cb   : > { %6072 = vadd.xlane.f32.xlu1 %v6071_v19  ;;  %v5485_v54 = vsub.f32 %v17260_v51, %v5317_v49 }
 0x5cc   : > { %v18020_v48 = vpop.eup %13610  ;;  %v5718_v26 = vmul.f32 1.442695, %v5484_v34 }
 0x5cd   : > { %v5344_v12 = vpop.xlane.xlu0 %5343  ;;  %v6098_v63 = vsel %vm4993_vm2, %v18020_v48, 0.0  ;;  %v18024_v35 = vpop.eup %13612 }
 0x5ce   : > { %v5494_v61 = vsub.f32 %v20778_v60, %v5344_v12  ;;  %6099 = vadd.xlane.f32.xlu0 %v6098_v63  ;;  %v5347_v6 = vpop.xlane.xlu1 %5346  ;;  %v6101_v27 = vsel %vm4993_vm2, %v18024_v35, 0.0  ;;  %v20902_v60 = vld [vmem:[#allocation136_spill] sm:$0xff]  ;;  %v5720_v12 = vmul.f32 1.442695, %v5485_v54 }
 0x5cf   : > { %v5495_v19 = vsub.f32 %v20781_v3, %v5347_v6  ;;  %6102 = vadd.xlane.f32.xlu1 %v6101_v27  ;;  %v5483_v34 = vsub.f32 %v20902_v60, %v5311_v37 }
 0x5d0   : > { %v18030_v32 = vpop.eup %13614  ;;  %v5738_v47 = vmul.f32 1.442695, %v5494_v61  ;;  %v5714_v61 = vmul.f32 1.442695, %v5482_v31 }
 0x5d1   : > { %v5350_v56 = vpop.xlane.xlu0 %5349  ;;  %v6104_v51 = vsel %vm4993_vm2, %v18030_v32, 0.0  ;;  %v18036_v49 = vpop.eup %13616  ;;  %v5740_v63 = vmul.f32 1.442695, %v5495_v19  ;;  %v5716_v27 = vmul.f32 1.442695, %v5483_v34 }
 0x5d2   : > { %13618 = vpow2.f32 %v5738_v47  ;;  %6105 = vadd.xlane.f32.xlu0 %v6104_v51  ;;  %v5353_v38 = vpop.xlane.xlu1 %5352  ;;  %v6107_v58 = vsel %vm4993_vm2, %v18036_v49, 0.0  ;;  %v5496_v3 = vsub.f32 %v20783_v45, %v5350_v56 }
 0x5d3   : > { %13620 = vpow2.f32 %v5718_v26  ;;  %6108 = vadd.xlane.f32.xlu1 %v6107_v58  ;;  %v5497_v28 = vsub.f32 %v20786_v40, %v5353_v38 }
 0x5d4   : > { %13622 = vpow2.f32 %v5740_v63  ;;  %v5742_v54 = vmul.f32 1.442695, %v5496_v3 }
 0x5d5   : > { %v5320_v6 = vpop.xlane.xlu0 %5319  ;;  %13624 = vpow2.f32 %v5720_v12  ;;  %v5744_v51 = vmul.f32 1.442695, %v5497_v28 }
 0x5d6   : > { %v5323_v37 = vpop.xlane.xlu1 %5322  ;;  %13626 = vpow2.f32 %v5714_v61  ;;  %v5486_v47 = vsub.f32 %v17284_v36, %v5320_v6 }
 0x5d7   : > { %v5487_v26 = vsub.f32 %v17299_v55, %v5323_v37  ;;  %13628 = vpow2.f32 %v5716_v27 }
 0x5d8   : > { %v5722_v45 = vmul.f32 1.442695, %v5486_v47 }
 0x5d9   : > { %v5956_v19 = vpop.xlane.xlu0 %5955  ;;  %v5724_v34 = vmul.f32 1.442695, %v5487_v26 }
 0x5da   : > { %13630 = vrcp.f32 %v5956_v19  ;;  %v5959_v31 = vpop.xlane.xlu1 %5958 }
 0x5db   : > { %13632 = vpow2.f32 %v5742_v54 }
 0x5dc   : > { %v18045_v60 = vpop.eup %13618  ;;  %13634 = vrcp.f32 %v5959_v31 }
 0x5dd   : > { %v18047_v56 = vpop.eup %13620  ;;  %v18049_v40 = vpop.f32.mrb[240].mxu0  ;;  %v6110_v36 = vsel %vm4993_vm2, %v18045_v60, 0.0  ;;  %13636 = vpow2.f32 %v5744_v51 }
 0x5de   : > { %20903 = vst [vmem:[#allocation24_spill] sm:$0xff] %v18049_v40  ;;  %v5326_v38 = vpop.xlane.xlu0 %5325  ;;  %v18053_v55 = vpop.eup %13622  ;;  %6111 = vadd.xlane.f32.xlu0 %v6110_v36  ;;  %13638 = vpow2.f32 %v5722_v45  ;;  %v6080_v26 = vsel %vm4993_vm2, %v18047_v56, 0.0 }
 0x5df   : > { %v5488_v12 = vsub.f32 %v17281_v0, %v5326_v38  ;;  %v18056_v63 = vpop.f32.mrb[241].mxu0  ;;  %v5329_v61 = vpop.xlane.xlu1 %5328  ;;  %v6113_v3 = vsel %vm4993_vm2, %v18053_v55, 0.0  ;;  %13640 = vpow2.f32 %v5724_v34 }
 0x5e0   : > { %v18058_v58 = vpop.f32.mrb[242].mxu0  ;;  %v18062_v6 = vpop.eup %13624  ;;  %v5489_v37 = vsub.f32 %v17293_v43, %v5329_v61  ;;  %6114 = vadd.xlane.f32.xlu1 %v6113_v3 }
 0x5e1   : > { %20904 = vst [vmem:[#allocation17_spill] sm:$0xff] %v18058_v58  ;;  %v5726_v27 = vmul.f32 1.442695, %v5488_v12  ;;  %v18067_v54 = vpop.f32.mrb[243].mxu0  ;;  %v18073_v19 = vpop.eup %13626  ;;  %v6083_v43 = vsel %vm4993_vm2, %v18062_v6, 0.0 }
 0x5e2   : > { %v5962_v47 = vpop.xlane.xlu0 %5961  ;;  %v5728_v51 = vmul.f32 1.442695, %v5489_v37  ;;  %6081 = vadd.xlane.f32.xlu0 %v6080_v26  ;;  %v18077_v45 = vpop.eup %13628  ;;  %v6074_v36 = vsel %vm4993_vm2, %v18073_v19, 0.0 }
 0x5e3   : > { %13642 = vpow2.f32 %v5726_v27  ;;  %v5965_v31 = vpop.xlane.xlu1 %5964  ;;  %v6077_v27 = vsel %vm4993_vm2, %v18077_v45, 0.0 }
 0x5e4   : > { %13644 = vrcp.f32 %v5962_v47  ;;  %6084 = vadd.xlane.f32.xlu1 %v6083_v43  ;;  %v13631_v34 = vpop.eup %13630 }
 0x5e5   : > { %13646 = vpow2.f32 %v5728_v51  ;;  %v18081_v12 = vpop.eup %13632  ;;  %v6338_v47 = vmul.f32 %v13631_v34, %v17635_v33 }
 0x5e6   : > { %13648 = vrcp.f32 %v5965_v31  ;;  %v5968_v38 = vpop.xlane.xlu0 %5967  ;;  %6075 = vadd.xlane.f32.xlu0 %v6074_v36  ;;  %v13635_v61 = vpop.eup %13634  ;;  %v6116_v31 = vsel %vm4993_vm2, %v18081_v12, 0.0 }
 0x5e7   : > { %13650 = vrcp.f32 %v5968_v38  ;;  %v5971_v3 = vpop.xlane.xlu1 %5970  ;;  %v18085_v37 = vpop.eup %13636  ;;  %v6339_v26 = vmul.f32 %v13635_v61, %v17641_v7 }
 0x5e8   : > { %13652 = vrcp.f32 %v5971_v3  ;;  %6078 = vadd.xlane.f32.xlu1 %v6077_v27  ;;  %v18091_v43 = vpop.eup %13638  ;;  %v6119_v3 = vsel %vm4993_vm2, %v18085_v37, 0.0 }
 0x5e9   : > { %v6434_v38 = vpack.c.bf16 %v6339_v26, %v6338_v47  ;;  %v18093_v36 = vpop.eup %13640  ;;  %v6086_v34 = vsel %vm4993_vm2, %v18091_v43, 0.0 }
 0x5ea   : > { %v5974_v51 = vpop.xlane.xlu0 %5973  ;;  %6117 = vadd.xlane.f32.xlu0 %v6116_v31  ;;  %v6089_v31 = vsel %vm4993_vm2, %v18093_v36, 0.0 }
 0x5eb   : > { %13654 = vrcp.f32 %v5974_v51  ;;  %v5977_v28 = vpop.xlane.xlu1 %5976  ;;  %12675 = vmatprep.mubr.msk.bf16.mxu0 %vm4993_vm2, %v6434_v38 }
 0x5ec   : > { %13656 = vrcp.f32 %v5977_v28  ;;  %6120 = vadd.xlane.f32.xlu1 %v6119_v3  ;;  %v20905_v28 = vld [vmem:[#allocation83_spill] sm:$0xff] }
 0x5ed   : > { %v18097_v27 = vpop.eup %13642 }
 0x5ee   : > { %v13645_v33 = vpop.eup %13644  ;;  %v5356_v7 = vpop.xlane.xlu0 %5355  ;;  %6087 = vadd.xlane.f32.xlu0 %v6086_v34  ;;  %v6092_v5 = vsel %vm4993_vm2, %v18097_v27, 0.0 }
 0x5ef   : > { %v18102_v61 = vpop.eup %13646  ;;  %v5498_v47 = vsub.f32 %v17372_v14, %v5356_v7  ;;  %v5359_v51 = vpop.xlane.xlu1 %5358  ;;  %v6340_v38 = vmul.f32 %v13645_v33, %v17657_v24  ;;  %v20906_v33 = vld [vmem:[#allocation13_spill] sm:$0xff] }
 0x5f0   : > { %v13649_v26 = vpop.eup %13648  ;;  %v5499_v15 = vsub.f32 %v17379_v20, %v5359_v51  ;;  %6090 = vadd.xlane.f32.xlu1 %v6089_v31  ;;  %v6095_v24 = vsel %vm4993_vm2, %v18102_v61, 0.0 }
 0x5f1   : > { %v13651_v0 = vpop.eup %13650  ;;  %v6341_v3 = vmul.f32 %v13649_v26, %v20905_v28  ;;  %v5746_v25 = vmul.f32 1.442695, %v5498_v47 }
 0x5f2   : > { %v5362_v21 = vpop.xlane.xlu0 %5361  ;;  %v13653_v14 = vpop.eup %13652  ;;  %v5748_v34 = vmul.f32 1.442695, %v5499_v15  ;;  %6093 = vadd.xlane.f32.xlu0 %v6092_v5  ;;  %v6342_v47 = vmul.f32 %v13651_v0, %v20906_v33  ;;  %v20908_v0 = vld [vmem:[#allocation82_spill] sm:$0xff] }
 0x5f3   : > { %v6435_v7 = vpack.c.bf16 %v6341_v3, %v6340_v38  ;;  %13658 = vpow2.f32 %v5746_v25  ;;  %v5500_v40 = vsub.f32 %v17369_v8, %v5362_v21  ;;  %v5365_v58 = vpop.xlane.xlu1 %5364  ;;  %v6343_v20 = vmul.f32 %v13653_v14, %v17679_v23  ;;  %v20907_v25 = vld [vmem:[#allocation84_spill] sm:$0xff] }
 0x5f4   : > { %13660 = vpow2.f32 %v5748_v34  ;;  %v5501_v31 = vsub.f32 %v17376_v52, %v5365_v58  ;;  %6096 = vadd.xlane.f32.xlu1 %v6095_v24 }
 0x5f5   : > { %v13655_v26 = vpop.eup %13654  ;;  %v5750_v51 = vmul.f32 1.442695, %v5500_v40  ;;  %12676 = vmatmul.mubr.msk.bf16.vlgmr.msra.gmra.mrb[0].mxu0 %vm4993_vm2, %v6435_v7  ;;  %v18120_v8 = vpop.f32.mrb[244].mxu0  ;;  %v6436_v15 = vpack.c.bf16 %v6343_v20, %v6342_v47  ;;  %v20909_v47 = vld [vmem:[#allocation6_spill] sm:$0xff] }
 0x5f6   : > { %12700 = vmatpush3.bf16.msra.mxu0 %v20907_v25  ;;  %v5368_v21 = vpop.xlane.xlu0 %5367  ;;  %v13657_v5 = vpop.eup %13656  ;;  %v5752_v38 = vmul.f32 1.442695, %v5501_v31  ;;  %v6344_v40 = vmul.f32 %v13655_v26, %v17681_v11  ;;  %v20910_v25 = vld [vmem:[#allocation86_spill] sm:$0xff] }
 0x5f7   : > { %13662 = vpow2.f32 %v5750_v51  ;;  %12701 = vmatprep.subr.bf16.mxu0 %v20908_v0  ;;  %v5502_v23 = vsub.f32 %v17399_v53, %v5368_v21  ;;  %v18124_v28 = vpop.f32.mrb[245].mxu0  ;;  %v6345_v52 = vmul.f32 %v13657_v5, %v17686_v22  ;;  %12679 = vmatprep.mubr.msk.bf16.mxu0 %vm4993_vm2, %v6436_v15  ;;  %v5371_v3 = vpop.xlane.xlu1 %5370 }
 0x5f8   : > { %v18128_v58 = vpop.f32.mrb[246].mxu0  ;;  %13664 = vpow2.f32 %v5752_v38  ;;  %v5503_v34 = vsub.f32 %v20805_v2, %v5371_v3 }
 0x5f9   : > { %v5754_v14 = vmul.f32 1.442695, %v5502_v23  ;;  %v18134_v24 = vpop.f32.mrb[247].mxu0  ;;  %v6437_v53 = vpack.c.bf16 %v6345_v52, %v6344_v40 }
 0x5fa   : > { %12702 = vmatpush3.bf16.msra.mxu0 %v20908_v0  ;;  %v6004_v22 = vpop.xlane.xlu0 %6003  ;;  %v5756_v33 = vmul.f32 1.442695, %v5503_v34 }
 0x5fb   : > { %13666 = vpow2.f32 %v5754_v14  ;;  %12703 = vmatprep.subr.bf16.mxu0 %v20909_v47  ;;  %v6007_v20 = vpop.xlane.xlu1 %6006  ;;  %v20911_v14 = vld [vmem:[#allocation20_spill] sm:$0xff] }
 0x5fc   : > { %13668 = vrcp.f32 %v6004_v22 }
 0x5fd   : > { %v18140_v26 = vpop.eup %13658  ;;  %13670 = vpow2.f32 %v5756_v33  ;;  %12680 = vmatmul.mubr.msk.bf16.gmra.mrb[4].mxu0 %vm4993_vm2, %v6437_v53 }
 0x5fe   : > { %12704 = vmatpush3.bf16.msra.mxu0 %v20909_v47  ;;  %13672 = vrcp.f32 %v6007_v20  ;;  %v5374_v2 = vpop.xlane.xlu0 %5373  ;;  %v6122_v51 = vsel %vm4993_vm2, %v18140_v26, 0.0  ;;  %v18146_v31 = vpop.eup %13660 }
 0x5ff   : > { %12705 = vmatprep.subr.bf16.mxu0 %v20910_v25  ;;  %v5504_v21 = vsub.f32 %v20815_v9, %v5374_v2  ;;  %6123 = vadd.xlane.f32.xlu0 %v6122_v51  ;;  %v5377_v15 = vpop.xlane.xlu1 %5376  ;;  %v6125_v5 = vsel %vm4993_vm2, %v18146_v31, 0.0 }
 0x600   : > { %v5505_v23 = vsub.f32 %v20819_v57, %v5377_v15  ;;  %6126 = vadd.xlane.f32.xlu1 %v6125_v5 }
 0x601   : > { %v18152_v38 = vpop.eup %13662  ;;  %v5758_v0 = vmul.f32 1.442695, %v5504_v21 }
 0x602   : > { %12706 = vmatpush3.bf16.msra.mxu0 %v20910_v25  ;;  %v6010_v40 = vpop.xlane.xlu0 %6009  ;;  %v6128_v52 = vsel %vm4993_vm2, %v18152_v38, 0.0  ;;  %v18158_v3 = vpop.eup %13664  ;;  %v5760_v9 = vmul.f32 1.442695, %v5505_v23 }
 0x603   : > { %13674 = vpow2.f32 %v5758_v0  ;;  %12731 = vmatprep.subr.bf16.mxu0 %v20911_v14  ;;  %6129 = vadd.xlane.f32.xlu0 %v6128_v52  ;;  %v6013_v34 = vpop.xlane.xlu1 %6012  ;;  %v6131_v53 = vsel %vm4993_vm2, %v18158_v3, 0.0  ;;  %v20917_v52 = vld [vmem:[#allocation7_spill] sm:$0xff] }
 0x604   : > { %13676 = vrcp.f32 %v6010_v40  ;;  %6132 = vadd.xlane.f32.xlu1 %v6131_v53 }
 0x605   : > { %v18163_v57 = vpop.eup %13666  ;;  %13678 = vpow2.f32 %v5760_v9  ;;  %v18165_v33 = vpop.f32.mrb[248].mxu0 }
 0x606   : > { %v13669_v22 = vpop.eup %13668  ;;  %13680 = vrcp.f32 %v6013_v34  ;;  %20912 = vst [vmem:[#allocation31_spill] sm:$0xff] %v18165_v33  ;;  %v6016_v47 = vpop.xlane.xlu0 %6015  ;;  %v6134_v20 = vsel %vm4993_vm2, %v18163_v57, 0.0 }
 0x607   : > { %v18169_v2 = vpop.eup %13670  ;;  %13682 = vrcp.f32 %v6016_v47  ;;  %v18171_v51 = vpop.f32.mrb[249].mxu0  ;;  %6135 = vadd.xlane.f32.xlu0 %v6134_v20  ;;  %v6354_v40 = vmul.f32 %v13669_v22, %v17723_v50 }
 0x608   : > { %20913 = vst [vmem:[#allocation63_spill] sm:$0xff] %v18169_v2  ;;  %20914 = vst [vmem:[#allocation30_spill] sm:$0xff] %v18171_v51  ;;  %v13673_v25 = vpop.eup %13672  ;;  %v18173_v21 = vpop.f32.mrb[250].mxu0  ;;  %v6137_v5 = vsel %vm4993_vm2, %v18169_v2, 0.0  ;;  %v20944_v2 = vld [vmem:[#allocation54_spill] sm:$0xff] }
 0x609   : > { %20915 = vst [vmem:[#allocation64_spill] sm:$0xff] %v18173_v21  ;;  %v6019_v15 = vpop.xlane.xlu1 %6018  ;;  %v18179_v23 = vpop.f32.mrb[251].mxu0  ;;  %6138 = vadd.xlane.f32.xlu1 %v6137_v5  ;;  %v6355_v9 = vmul.f32 %v13673_v25, %v20917_v52  ;;  %v20920_v52 = vld [vmem:[#allocation68_spill] sm:$0xff] }
 0x60a   : > { %13684 = vrcp.f32 %v6019_v15  ;;  %20916 = vst [vmem:[#allocation77_spill] sm:$0xff] %v18179_v23  ;;  %v5986_v53 = vpop.xlane.xlu0 %5985  ;;  %v20922_v23 = vld [vmem:[#allocation113_spill] sm:$0xff] }
 0x60b   : > { %v6442_v47 = vpack.c.bf16 %v6355_v9, %v6354_v40 }
 0x60d   : > { %v5989_v20 = vpop.xlane.xlu1 %5988  ;;  %v18185_v7 = vpop.eup %13674  ;;  %12707 = vmatprep.mubr.msk.bf16.mxu0 %vm4993_vm2, %v6442_v47  ;;  %v20921_v47 = vld [vmem:[#allocation112_spill] sm:$0xff] }
 0x60e   : > { %20918 = vst [vmem:[#allocation33_spill] sm:$0xff] %v18185_v7  ;;  %v13677_v11 = vpop.eup %13676  ;;  %13686 = vrcp.f32 %v5989_v20  ;;  %v5980_v15 = vpop.xlane.xlu0 %5979  ;;  %v6140_v5 = vsel %vm4993_vm2, %v18185_v7, 0.0 }
 0x60f   : > { %v18190_v0 = vpop.eup %13678  ;;  %13688 = vrcp.f32 %v5980_v15  ;;  %6141 = vadd.xlane.f32.xlu0 %v6140_v5  ;;  %v6356_v9 = vmul.f32 %v13677_v11, %v20920_v52  ;;  %v20923_v5 = vld [vmem:[#allocation111_spill] sm:$0xff] }
 0x610   : > { %20919 = vst [vmem:[#allocation92_spill] sm:$0xff] %v18190_v0  ;;  %v13681_v50 = vpop.eup %13680  ;;  %13690 = vrcp.f32 %v5986_v53  ;;  %v6143_v25 = vsel %vm4993_vm2, %v18190_v0, 0.0 }
 0x611   : > { %v5983_v22 = vpop.xlane.xlu1 %5982  ;;  %v13683_v40 = vpop.eup %13682  ;;  %v6357_v34 = vmul.f32 %v13681_v50, %v20921_v47  ;;  %6144 = vadd.xlane.f32.xlu1 %v6143_v25  ;;  %v20925_v50 = vld [vmem:[#allocation22_spill] sm:$0xff]  ;;  %v20929_v47 = vld [vmem:[#allocation105_spill] sm:$0xff] }
 0x612   : > { %13692 = vrcp.f32 %v5983_v22  ;;  %v5998_v20 = vpop.xlane.xlu0 %5997  ;;  %v6358_v15 = vmul.f32 %v13683_v40, %v20922_v23  ;;  %v20934_v23 = vld [vmem:[#allocation32_spill] sm:$0xff] }
 0x613   : > { %v6443_v21 = vpack.c.bf16 %v6357_v34, %v6356_v9 }
 0x614   : > { %v13685_v33 = vpop.eup %13684 }
 0x615   : > { %v6001_v51 = vpop.xlane.xlu1 %6000  ;;  %v6359_v7 = vmul.f32 %v13685_v33, %v20923_v5  ;;  %12708 = vmatmul.mubr.msk.bf16.vlgmr.msra.gmra.mrb[8].mxu0 %vm4993_vm2, %v6443_v21  ;;  %v18200_v53 = vpop.f32.mrb[252].mxu0 }
 0x616   : > { %12732 = vmatpush3.bf16.msra.mxu0 %v20911_v14  ;;  %13694 = vrcp.f32 %v6001_v51  ;;  %20924 = vst [vmem:[#allocation99_spill] sm:$0xff] %v18200_v53  ;;  %v5992_v11 = vpop.xlane.xlu0 %5991  ;;  %v18203_v22 = vpop.f32.mrb[253].mxu0  ;;  %v20932_v14 = vld [vmem:[#allocation122_spill] sm:$0xff]  ;;  %v20933_v53 = vld [vmem:[#allocation117_spill] sm:$0xff] }
 0x617   : > { %v6444_v52 = vpack.c.bf16 %v6359_v7, %v6358_v15  ;;  %12733 = vmatprep.subr.bf16.mxu0 %v20925_v50  ;;  %13696 = vrcp.f32 %v5992_v11  ;;  %20926 = vst [vmem:[#allocation101_spill] sm:$0xff] %v18203_v22  ;;  %v18205_v25 = vpop.f32.mrb[254].mxu0  ;;  %v20930_v15 = vld [vmem:[#allocation28_spill] sm:$0xff] }
 0x618   : > { %v13687_v34 = vpop.eup %13686  ;;  %13698 = vrcp.f32 %v5998_v20  ;;  %20927 = vst [vmem:[#allocation19_spill] sm:$0xff] %v18205_v25  ;;  %v18210_v51 = vpop.f32.mrb[255].mxu0  ;;  %v20931_v11 = vld [vmem:[#allocation120_spill] sm:$0xff] }
 0x619   : > { %12711 = vmatprep.mubr.msk.bf16.mxu0 %vm4993_vm2, %v6444_v52  ;;  %v5995_v33 = vpop.xlane.xlu1 %5994  ;;  %v13689_v21 = vpop.eup %13688  ;;  %20928 = vst [vmem:[#allocation2_spill] sm:$0xff] %v18210_v51  ;;  %v6349_v20 = vmul.f32 %v13687_v34, %v20929_v47 }
 0x61a   : > { %13700 = vrcp.f32 %v5995_v33  ;;  %v13691_v7 = vpop.eup %13690  ;;  %12734 = vmatpush3.bf16.msra.mxu0 %v20925_v50  ;;  %v6022_v40 = vpop.xlane.xlu0 %6021  ;;  %v6346_v52 = vmul.f32 %v13689_v21, %v20931_v11  ;;  %v20940_v11 = vld [vmem:[#allocation114_spill] sm:$0xff] }
 0x61b   : > { %12735 = vmatprep.subr.bf16.mxu0 %v20930_v15  ;;  %13702 = vrcp.f32 %v6022_v40  ;;  %v6348_v25 = vmul.f32 %v13691_v7, %v20933_v53  ;;  %v20935_v53 = vld [vmem:[#allocation116_spill] sm:$0xff] }
 0x61c   : > { %v13693_v9 = vpop.eup %13692  ;;  %v20936_v7 = vld [vmem:[#allocation48_spill] sm:$0xff] }
 0x61d   : > { %v6025_v5 = vpop.xlane.xlu1 %6024  ;;  %v6347_v33 = vmul.f32 %v13693_v9, %v20932_v14  ;;  %v6439_v0 = vpack.c.bf16 %v6349_v20, %v6348_v25  ;;  %v20937_v9 = vld [vmem:[#allocation11_spill] sm:$0xff] }
 0x61e   : > { %13704 = vrcp.f32 %v6025_v5  ;;  %12736 = vmatpush3.bf16.msra.mxu0 %v20930_v15  ;;  %v20938_v25 = vld [vmem:[#allocation119_spill] sm:$0xff] }
 0x61f   : > { %v6438_v50 = vpack.c.bf16 %v6347_v33, %v6346_v52  ;;  %12737 = vmatprep.subr.bf16.mxu0 %v20934_v23  ;;  %v20939_v20 = vld [vmem:[#allocation115_spill] sm:$0xff] }
 0x620   : > { %v13695_v22 = vpop.eup %13694 }
 0x621   : > { %12691 = vmatprep.mubr.msk.bf16.mxu1 %vm4993_vm2, %v6438_v50  ;;  %v13697_v34 = vpop.eup %13696  ;;  %v6353_v14 = vmul.f32 %v13695_v22, %v20935_v53  ;;  %v20942_v50 = vld [vmem:[#allocation88_spill] sm:$0xff]  ;;  %v20943_v53 = vld [vmem:[#allocation66_spill] sm:$0xff] }
 0x622   : > { %12692 = vmatmul.mubr.msk.bf16.vlgmr.msra.gmra.mrb[64].mxu1 %vm4993_vm2, %v6439_v0  ;;  %v13699_v40 = vpop.eup %13698  ;;  %12738 = vmatpush3.bf16.msra.mxu0 %v20934_v23  ;;  %v6350_v47 = vmul.f32 %v13697_v34, %v20938_v25 }
 0x623   : > { %12716 = vmatpush3.bf16.msra.mxu1 %v20892_v17  ;;  %12763 = vmatprep.subr.bf16.mxu0 %v20936_v7  ;;  %v6352_v52 = vmul.f32 %v13699_v40, %v20940_v11 }
 0x624   : > { %v13701_v21 = vpop.eup %13700  ;;  %12717 = vmatprep.subr.bf16.mxu1 %v20937_v9 }
 0x625   : > { %v6351_v15 = vmul.f32 %v13701_v21, %v20939_v20  ;;  %v13703_v5 = vpop.eup %13702  ;;  %v18233_v0 = vpop.f32.mrb[32].mxu1  ;;  %v6441_v33 = vpack.c.bf16 %v6353_v14, %v6352_v52 }
 0x626   : > { %20941 = vst [vmem:[#allocation18_spill] sm:$0xff] %v18233_v0  ;;  %v18236_v22 = vpop.f32.mrb[33].mxu1  ;;  %v6360_v51 = vmul.f32 %v13703_v5, %v20943_v53 }
 0x627   : > { %12718 = vmatpush3.bf16.msra.mxu1 %v20937_v9  ;;  %v6440_v23 = vpack.c.bf16 %v6351_v15, %v6350_v47  ;;  %v18240_v25 = vpop.f32.mrb[34].mxu1  ;;  %v20945_v47 = vld [vmem:[#allocation21_spill] sm:$0xff]  ;;  %v20946_v15 = vld [vmem:[#allocation35_spill] sm:$0xff] }
 0x628   : > { %v13705_v17 = vpop.eup %13704  ;;  %12719 = vmatprep.subr.bf16.mxu1 %v20942_v50  ;;  %v18245_v21 = vpop.f32.mrb[35].mxu1 }
 0x629   : > { %v6361_v34 = vmul.f32 %v13705_v17, %v20944_v2  ;;  %12695 = vmatprep.mubr.msk.bf16.mxu1 %vm4993_vm2, %v6440_v23 }
 0x62a   : > { %12696 = vmatmul.mubr.msk.bf16.gmra.mrb[68].mxu1 %vm4993_vm2, %v6441_v33 }
 0x62b   : > { %v6445_v14 = vpack.c.bf16 %v6361_v34, %v6360_v51  ;;  %12720 = vmatpush3.bf16.msra.mxu1 %v20942_v50  ;;  %v6052_v2 = vpop.xlane.xlu0 %6051 }
 0x62c   : > { %12721 = vmatprep.subr.bf16.mxu1 %v20945_v47  ;;  %13706 = vrcp.f32 %v6052_v2  ;;  %v6055_v20 = vpop.xlane.xlu1 %6054 }
 0x62d   : > { %12712 = vmatmul.mubr.msk.bf16.gmra.mrb[12].mxu0 %vm4993_vm2, %v6445_v14  ;;  %13708 = vrcp.f32 %v6055_v20 }
 0x62f   : > { %12722 = vmatpush3.bf16.msra.mxu1 %v20945_v47  ;;  %v6058_v5 = vpop.xlane.xlu0 %6057 }
 0x630   : > { %12747 = vmatprep.subr.bf16.mxu1 %v20946_v15  ;;  %13710 = vrcp.f32 %v6058_v5 }
 0x631   : > { %v6061_v51 = vpop.xlane.xlu1 %6060 }
 0x632   : > { %13712 = vrcp.f32 %v6061_v51 }
 0x633   : > { %v6064_v11 = vpop.xlane.xlu0 %6063 }
 0x634   : > { %13714 = vrcp.f32 %v6064_v11 }
 0x635   : > { %v18255_v52 = vpop.f32.mrb[36].mxu1  ;;  %v6067_v23 = vpop.xlane.xlu1 %6066 }
 0x636   : > { %20947 = vst [vmem:[#allocation38_spill] sm:$0xff] %v18255_v52  ;;  %v13707_v17 = vpop.eup %13706  ;;  %13716 = vrcp.f32 %v6067_v23  ;;  %v18257_v33 = vpop.f32.mrb[37].mxu1 }
 0x637   : > { %v6034_v50 = vpop.xlane.xlu0 %6033  ;;  %v18259_v53 = vpop.f32.mrb[38].mxu1  ;;  %v6370_v5 = vmul.f32 %v13707_v17, %v17889_v59 }
 0x638   : > { %20948 = vst [vmem:[#allocation100_spill] sm:$0xff] %v18259_v53  ;;  %v13709_v34 = vpop.eup %13708  ;;  %v18263_v47 = vpop.f32.mrb[39].mxu1 }
 0x639   : > { %v6037_v20 = vpop.xlane.xlu1 %6036  ;;  %v6371_v51 = vmul.f32 %v13709_v34, %v17901_v41 }
 0x63a   : > { %v13711_v11 = vpop.eup %13710  ;;  %13718 = vrcp.f32 %v6037_v20 }
 0x63b   : > { %v6028_v23 = vpop.xlane.xlu0 %6027  ;;  %v6450_v40 = vpack.c.bf16 %v6371_v51, %v6370_v5  ;;  %v6372_v0 = vmul.f32 %v13711_v11, %v17909_v1  ;;  %v20950_v5 = vld [vmem:[#allocation41_spill] sm:$0xff] }
 0x63c   : > { %v13713_v9 = vpop.eup %13712  ;;  %13720 = vrcp.f32 %v6028_v23 }
 0x63d   : > { %v6373_v14 = vmul.f32 %v13713_v9, %v17917_v44  ;;  %13722 = vrcp.f32 %v6034_v50  ;;  %12739 = vmatprep.mubr.msk.bf16.mxu0 %vm4993_vm2, %v6450_v40  ;;  %v6031_v52 = vpop.xlane.xlu1 %6030  ;;  %v20949_v40 = vld [vmem:[#allocation52_spill] sm:$0xff] }
 0x63e   : > { %v13715_v2 = vpop.eup %13714  ;;  %13724 = vrcp.f32 %v6031_v52 }
 0x63f   : > { %v6451_v53 = vpack.c.bf16 %v6373_v14, %v6372_v0  ;;  %v6046_v59 = vpop.xlane.xlu0 %6045  ;;  %v6374_v20 = vmul.f32 %v13715_v2, %v17925_v4 }
 0x640   : > { %v13717_v17 = vpop.eup %13716 }
 0x641   : > { %v18272_v41 = vpop.f32.mrb[40].mxu1  ;;  %12740 = vmatmul.mubr.msk.bf16.vlgmr.msra.gmra.mrb[16].mxu0 %vm4993_vm2, %v6451_v53  ;;  %v6049_v34 = vpop.xlane.xlu1 %6048  ;;  %v6375_v1 = vmul.f32 %v13717_v17, %v17931_v10 }
 0x642   : > { %12764 = vmatpush3.bf16.msra.mxu0 %v20936_v7  ;;  %v18278_v44 = vpop.f32.mrb[41].mxu1  ;;  %13726 = vrcp.f32 %v6049_v34 }
 0x643   : > { %12765 = vmatprep.subr.bf16.mxu0 %v20949_v40  ;;  %v6040_v9 = vpop.xlane.xlu0 %6039  ;;  %v18281_v0 = vpop.f32.mrb[42].mxu1  ;;  %v6452_v52 = vpack.c.bf16 %v6375_v1, %v6374_v20  ;;  %v20951_v1 = vld [vmem:[#allocation36_spill] sm:$0xff] }
 0x644   : > { %13728 = vrcp.f32 %v6040_v9  ;;  %v18285_v53 = vpop.f32.mrb[43].mxu1  ;;  %v13719_v4 = vpop.eup %13718 }
 0x645   : > { %13730 = vrcp.f32 %v6046_v59  ;;  %12743 = vmatprep.mubr.msk.bf16.mxu0 %vm4993_vm2, %v6452_v52  ;;  %v6043_v7 = vpop.xlane.xlu1 %6042  ;;  %v6365_v11 = vmul.f32 %v13719_v4, %v17921_v13 }
 0x646   : > { %v13721_v14 = vpop.eup %13720  ;;  %12766 = vmatpush3.bf16.msra.mxu0 %v20949_v40  ;;  %13732 = vrcp.f32 %v6043_v7 }
 0x647   : > { %v13723_v2 = vpop.eup %13722  ;;  %12767 = vmatprep.subr.bf16.mxu0 %v20950_v5  ;;  %v6362_v59 = vmul.f32 %v13721_v14, %v17927_v39  ;;  %v18311_v39 = vld [vmem:[%s20055_s9 + $0x4] sm:$0xf] }
 0x648   : > { %v13725_v51 = vpop.eup %13724  ;;  %v6364_v34 = vmul.f32 %v13723_v2, %v17913_v18 }
 0x649   : > { %v18293_v23 = vpop.f32.mrb[44].mxu1  ;;  %v6363_v17 = vmul.f32 %v13725_v51, %v17942_v46  ;;  %v20952_v51 = vld [vmem:[#allocation26_spill] sm:$0xff] }
 0x64a   : > { %12768 = vmatpush3.bf16.msra.mxu0 %v20950_v5  ;;  %v18299_v20 = vpop.f32.mrb[45].mxu1  ;;  %v6447_v52 = vpack.c.bf16 %v6365_v11, %v6364_v34 }
 0x64b   : > { %12769 = vmatprep.subr.bf16.mxu0 %v20951_v1  ;;  %v18302_v40 = vpop.f32.mrb[46].mxu1  ;;  %v6446_v9 = vpack.c.bf16 %v6363_v17, %v6362_v59  ;;  %v20953_v17 = vld [vmem:[#allocation126_spill] sm:$0xff] }
 0x64c   : > { %v18306_v4 = vpop.f32.mrb[47].mxu1  ;;  %v13727_v18 = vpop.eup %13726 }
 0x64d   : > { %12723 = vmatprep.mubr.msk.bf16.mxu1 %vm4993_vm2, %v6446_v9  ;;  %v6369_v5 = vmul.f32 %v13727_v18, %v17958_v30 }
 0x64e   : > { %v13729_v7 = vpop.eup %13728  ;;  %12770 = vmatpush3.bf16.msra.mxu0 %v20951_v1  ;;  %12724 = vmatmul.mubr.msk.bf16.vlgmr.msra.gmra.mrb[72].mxu1 %vm4993_vm2, %v6447_v52  ;;  %v20954_v52 = vld [vmem:[#allocation40_spill] sm:$0xff] }
 0x64f   : > { %v13731_v14 = vpop.eup %13730  ;;  %12748 = vmatpush3.bf16.msra.mxu1 %v20946_v15  ;;  %13167 = vmatprep.subr.msk.bf16.mxu0 %vm7813_vm3, %v18311_v39  ;;  %v6366_v11 = vmul.f32 %v13729_v7, %v17970_v29  ;;  %v20955_v7 = vld [vmem:[#allocation34_spill] sm:$0xff] }
 0x650   : > { %v13733_v2 = vpop.eup %13732  ;;  %12749 = vmatprep.subr.bf16.mxu1 %v20952_v51  ;;  %v6368_v34 = vmul.f32 %v13731_v14, %v20953_v17 }
 0x651   : > { %v6367_v59 = vmul.f32 %v13733_v2, %v17975_v62 }
 0x652   : > { %v18327_v1 = vpop.f32.mrb[48].mxu1  ;;  %v6449_v15 = vpack.c.bf16 %v6369_v5, %v6368_v34  ;;  %v20956_v5 = vld [vmem:[#allocation57_spill] sm:$0xff] }
 0x653   : > { %12750 = vmatpush3.bf16.msra.mxu1 %v20952_v51  ;;  %v6448_v9 = vpack.c.bf16 %v6367_v59, %v6366_v11  ;;  %v18330_v13 = vpop.f32.mrb[49].mxu1 }
 0x654   : > { %12751 = vmatprep.subr.bf16.mxu1 %v20954_v52  ;;  %v18332_v46 = vpop.f32.mrb[50].mxu1 }
 0x655   : > { %12727 = vmatprep.mubr.msk.bf16.mxu1 %vm4993_vm2, %v6448_v9  ;;  %v18337_v29 = vpop.f32.mrb[51].mxu1 }
 0x656   : > { %12728 = vmatmul.mubr.msk.bf16.gmra.mrb[76].mxu1 %vm4993_vm2, %v6449_v15  ;;  %v7718_v62 = vpack.c.bf16 %v18337_v29, %v18330_v13 }
 0x657   : > { %12752 = vmatpush3.bf16.msra.mxu1 %v20954_v52  ;;  %v6070_v18 = vpop.xlane.xlu0 %6069 }
 0x658   : > { %13734 = vrcp.f32 %v6070_v18  ;;  %12753 = vmatprep.subr.bf16.mxu1 %v20955_v7  ;;  %v6073_v14 = vpop.xlane.xlu1 %6072 }
 0x659   : > { %13736 = vrcp.f32 %v6073_v14 }
 0x65b   : > { %12754 = vmatpush3.bf16.msra.mxu1 %v20955_v7  ;;  %v6100_v2 = vpop.xlane.xlu0 %6099 }
 0x65c   : > { %13738 = vrcp.f32 %v6100_v2  ;;  %12779 = vmatprep.subr.bf16.mxu1 %v20956_v5  ;;  %v6103_v51 = vpop.xlane.xlu1 %6102 }
 0x65d   : > { %13740 = vrcp.f32 %v6103_v51 }
 0x65f   : > { %v6106_v11 = vpop.xlane.xlu0 %6105 }
 0x660   : > { %13742 = vrcp.f32 %v6106_v11  ;;  %v6109_v59 = vpop.xlane.xlu1 %6108 }
 0x661   : > { %13744 = vrcp.f32 %v6109_v59 }
 0x662   : > { %v13735_v17 = vpop.eup %13734 }
 0x663   : > { %v13737_v34 = vpop.eup %13736  ;;  %v6376_v9 = vmul.f32 %v13735_v17, %v18004_v16 }
 0x664   : > { %v6377_v15 = vmul.f32 %v13737_v34, %v18015_v42 }
 0x666   : > { %v13739_v52 = vpop.eup %13738  ;;  %v6453_v18 = vpack.c.bf16 %v6377_v15, %v6376_v9 }
 0x667   : > { %v13741_v14 = vpop.eup %13740  ;;  %v6386_v7 = vmul.f32 %v13739_v52, %v18020_v48 }
 0x668   : > { %12744 = vmatmul.mubr.msk.bf16.gmra.mrb[20].mxu0 %vm4993_vm2, %v6453_v18  ;;  %v6387_v2 = vmul.f32 %v13741_v14, %v18024_v35 }
 0x66a   : > { %v13743_v51 = vpop.eup %13742  ;;  %v6458_v10 = vpack.c.bf16 %v6387_v2, %v6386_v7 }
 0x66b   : > { %v6112_v50 = vpop.xlane.xlu0 %6111  ;;  %v18351_v11 = vpop.f32.mrb[52].mxu1  ;;  %v6388_v16 = vmul.f32 %v13743_v51, %v18030_v32  ;;  %v7815_v32 = vsel %vm7813_vm3, %v18311_v39, 0 }
 0x66c   : > { %v13745_v59 = vpop.eup %13744  ;;  %13746 = vrcp.f32 %v6112_v50  ;;  %v18353_v30 = vpop.f32.mrb[53].mxu1  ;;  %12771 = vmatprep.mubr.msk.bf16.mxu0 %vm4993_vm2, %v6458_v10 }
 0x66d   : > { %v6389_v42 = vmul.f32 %v13745_v59, %v18036_v49  ;;  %v18357_v17 = vpop.f32.mrb[54].mxu1  ;;  %v6115_v48 = vpop.xlane.xlu1 %6114  ;;  %v18371_v49 = vld [vmem:[%s20055_s9] sm:$0xf] }
 0x66e   : > { %v7721_v35 = vpack.c.bf16 %v18357_v17, %v18351_v11  ;;  %13748 = vrcp.f32 %v6115_v48  ;;  %v18362_v34 = vpop.f32.mrb[55].mxu1  ;;  %v20979_v11 = vld [vmem:[#allocation19_spill] sm:$0xff] }
 0x66f   : > { %v6459_v9 = vpack.c.bf16 %v6389_v42, %v6388_v16  ;;  %v7720_v50 = vpack.c.bf16 %v18362_v34, %v18353_v30  ;;  %v6082_v15 = vpop.xlane.xlu0 %6081  ;;  %v20973_v34 = vld [vmem:[#allocation64_spill] sm:$0xff]  ;;  %v20980_v17 = vld [vmem:[#allocation99_spill] sm:$0xff] }
 0x671   : > { %12772 = vmatmul.mubr.msk.bf16.vlgmr.msra.gmra.mrb[24].mxu0 %vm4993_vm2, %v6459_v9  ;;  %v6085_v10 = vpop.xlane.xlu1 %6084 }
 0x672   : > { %12796 = vmatpush3.bf16.msra.mxu0 %v7815_v32  ;;  %13750 = vrcp.f32 %v6085_v10 }
 0x673   : > { %v6076_v52 = vpop.xlane.xlu0 %6075  ;;  %13168 = vmatprep.subr.msk.bf16.mxu0 %vm7813_vm3, %v18371_v49 }
 0x674   : > { %13752 = vrcp.f32 %v6076_v52 }
 0x675   : > { %13754 = vrcp.f32 %v6082_v15  ;;  %v6079_v18 = vpop.xlane.xlu1 %6078 }
 0x676   : > { %v13747_v14 = vpop.eup %13746  ;;  %13756 = vrcp.f32 %v6079_v18 }
 0x677   : > { %v6118_v39 = vpop.xlane.xlu0 %6117  ;;  %v6390_v51 = vmul.f32 %v13747_v14, %v18045_v60 }
 0x678   : > { %v13749_v7 = vpop.eup %13748  ;;  %13758 = vrcp.f32 %v6118_v39 }
 0x679   : > { %v6121_v2 = vpop.xlane.xlu1 %6120  ;;  %v6391_v59 = vmul.f32 %v13749_v7, %v18053_v55 }
 0x67a   : > { %13760 = vrcp.f32 %v6121_v2 }
 0x67b   : > { %v6088_v16 = vpop.xlane.xlu0 %6087  ;;  %v6460_v42 = vpack.c.bf16 %v6391_v59, %v6390_v51 }
 0x67c   : > { %13762 = vrcp.f32 %v6088_v16  ;;  %v13751_v48 = vpop.eup %13750 }
 0x67d   : > { %12775 = vmatprep.mubr.msk.bf16.mxu0 %vm4993_vm2, %v6460_v42  ;;  %v6091_v9 = vpop.xlane.xlu1 %6090  ;;  %v6381_v18 = vmul.f32 %v13751_v48, %v18062_v6 }
 0x67e   : > { %v13753_v15 = vpop.eup %13752  ;;  %13764 = vrcp.f32 %v6091_v9 }
 0x67f   : > { %v13755_v32 = vpop.eup %13754  ;;  %v6094_v10 = vpop.xlane.xlu0 %6093  ;;  %v6378_v60 = vmul.f32 %v13753_v15, %v18073_v19 }
 0x680   : > { %v13757_v52 = vpop.eup %13756  ;;  %13766 = vrcp.f32 %v6094_v10  ;;  %v6380_v7 = vmul.f32 %v13755_v32, %v18047_v56 }
 0x681   : > { %v6097_v39 = vpop.xlane.xlu1 %6096  ;;  %v6379_v55 = vmul.f32 %v13757_v52, %v18077_v45 }
 0x682   : > { %v13759_v14 = vpop.eup %13758  ;;  %13768 = vrcp.f32 %v6097_v39  ;;  %v6455_v16 = vpack.c.bf16 %v6381_v18, %v6380_v7  ;;  %v20958_v39 = vpack.c.bf16 %v18067_v54, %v18056_v63  ;;  %v8027_v54 = vsel %vm7813_vm3, %v18371_v49, 0 }
 0x683   : > { %v18383_v2 = vpop.f32.mrb[56].mxu1  ;;  %v6454_v51 = vpack.c.bf16 %v6379_v55, %v6378_v60  ;;  %v6392_v9 = vmul.f32 %v13759_v14, %v18081_v12  ;;  %v20959_v14 = vld [vmem:[#allocation50_spill] sm:$0xff]  ;;  %v20964_v49 = vpack.c.bf16 %v18134_v24, %v18124_v28 }
 0x684   : > { %v13761_v59 = vpop.eup %13760  ;;  %v18385_v42 = vpop.f32.mrb[57].mxu1 }
 0x685   : > { %v6393_v6 = vmul.f32 %v13761_v59, %v18085_v37  ;;  %v18389_v48 = vpop.f32.mrb[58].mxu1  ;;  %12755 = vmatprep.mubr.msk.bf16.mxu1 %vm4993_vm2, %v6454_v51  ;;  %v20957_v37 = vld [vmem:[#allocation39_spill] sm:$0xff] }
 0x686   : > { %v13763_v19 = vpop.eup %13762  ;;  %v7727_v56 = vpack.c.bf16 %v18389_v48, %v18383_v2  ;;  %v18394_v45 = vpop.f32.mrb[59].mxu1  ;;  %12756 = vmatmul.mubr.msk.bf16.vlgmr.msra.gmra.mrb[80].mxu1 %vm4993_vm2, %v6455_v16  ;;  %v20960_v59 = vld [vmem:[#allocation55_spill] sm:$0xff]  ;;  %v20962_v16 = vld [vmem:[#allocation24_spill] sm:$0xff] }
 0x687   : > { %v6461_v15 = vpack.c.bf16 %v6393_v6, %v6392_v9  ;;  %v7726_v32 = vpack.c.bf16 %v18394_v45, %v18385_v42  ;;  %12780 = vmatpush3.bf16.msra.mxu1 %v20956_v5  ;;  %v6382_v10 = vmul.f32 %v13763_v19, %v18091_v43 }
 0x688   : > { %v13765_v12 = vpop.eup %13764  ;;  %12781 = vmatprep.subr.bf16.mxu1 %v20957_v37 }
 0x689   : > { %12776 = vmatmul.mubr.msk.bf16.gmra.mrb[28].mxu0 %vm4993_vm2, %v6461_v15  ;;  %v6383_v52 = vmul.f32 %v13765_v12, %v18093_v36 }
 0x68a   : > { %v13767_v18 = vpop.eup %13766  ;;  %12797 = vmatprep.mubr.msk.bf16.mxu0 %vm3568_vm1, %v20958_v39 }
 0x68b   : > { %12782 = vmatpush3.bf16.msra.mxu1 %v20957_v37  ;;  %v6456_v55 = vpack.c.bf16 %v6383_v52, %v6382_v10  ;;  %v6384_v7 = vmul.f32 %v13767_v18, %v18097_v27  ;;  %v18420_v27 = vld [vmem:[%s20055_s9 + $0x8] sm:$0xf]  ;;  %v20965_v10 = vpack.c.bf16 %v18128_v58, %v18120_v8 }
 0x68c   : > { %v6124_v60 = vpop.xlane.xlu0 %6123  ;;  %v13769_v5 = vpop.eup %13768  ;;  %12783 = vmatprep.subr.bf16.mxu1 %v20959_v14  ;;  %v8241_v2 = vsel %vm7813_vm3, %v18420_v27, 0 }
 0x68d   : > { %13770 = vrcp.f32 %v6124_v60  ;;  %v6385_v43 = vmul.f32 %v13769_v5, %v18102_v61  ;;  %12759 = vmatprep.mubr.msk.bf16.mxu1 %vm4993_vm2, %v6456_v55  ;;  %v6127_v36 = vpop.xlane.xlu1 %6126  ;;  %v20961_v61 = vld [vmem:[#allocation17_spill] sm:$0xff] }
 0x68e   : > { %13772 = vrcp.f32 %v6127_v36  ;;  %v20963_v9 = vpack.c.bf16 %v20961_v61, %v20962_v16  ;;  %v20966_v36 = vpack.c.bf16 %v18332_v46, %v18327_v1  ;;  %v20968_v61 = vld [vmem:[#allocation33_spill] sm:$0xff]  ;;  %v20971_v1 = vld [vmem:[#allocation30_spill] sm:$0xff] }
 0x68f   : > { %v6457_v51 = vpack.c.bf16 %v6385_v43, %v6384_v7  ;;  %12784 = vmatpush3.bf16.msra.mxu1 %v20959_v14 }
 0x690   : > { %v6130_v63 = vpop.xlane.xlu0 %6129  ;;  %12785 = vmatprep.subr.bf16.mxu1 %v20960_v59 }
 0x691   : > { %13774 = vrcp.f32 %v6130_v63  ;;  %12760 = vmatmul.mubr.msk.bf16.gmra.mrb[84].mxu1 %vm4993_vm2, %v6457_v51  ;;  %12798 = vmatmul.mubr.msk.bf16.vlgmr.msra.gmra.mrb[32].mxu0 %vm3568_vm1, %v20963_v9  ;;  %v6133_v6 = vpop.xlane.xlu1 %6132  ;;  %v20969_v9 = vld [vmem:[#allocation92_spill] sm:$0xff] }
 0x692   : > { %13776 = vrcp.f32 %v6133_v6  ;;  %12801 = vmatprep.mubr.msk.bf16.mxu0 %vm3568_vm1, %v20964_v49  ;;  %12830 = vmatpush3.bf16.msra.mxu0 %v8027_v54 }
 0x693   : > { %12786 = vmatpush3.bf16.msra.mxu1 %v20960_v59  ;;  %13169 = vmatprep.subr.msk.bf16.mxu0 %vm7813_vm3, %v18420_v27 }
 0x694   : > { %v6136_v19 = vpop.xlane.xlu0 %6135 }
 0x695   : > { %13778 = vrcp.f32 %v6136_v19  ;;  %v20976_v19 = vld [vmem:[#allocation2_spill] sm:$0xff] }
 0x696   : > { %v6139_v15 = vpop.xlane.xlu1 %6138 }
 0x697   : > { %v13771_v12 = vpop.eup %13770  ;;  %13780 = vrcp.f32 %v6139_v15  ;;  %v20977_v15 = vld [vmem:[#allocation101_spill] sm:$0xff] }
 0x698   : > { %v13773_v37 = vpop.eup %13772  ;;  %v6394_v28 = vmul.f32 %v13771_v12, %v18140_v26  ;;  %v20978_v12 = vpack.c.bf16 %v20976_v19, %v20977_v15 }
 0x699   : > { %12802 = vmatmul.mubr.msk.bf16.gmra.mrb[36].mxu0 %vm3568_vm1, %v20965_v10  ;;  %v6395_v24 = vmul.f32 %v13773_v37, %v18146_v31 }
 0x69a   : > { %12805 = vmatprep.mubr.msk.bf16.mxu0 %vm3568_vm1, %v7718_v62 }
 0x69b   : > { %v13775_v52 = vpop.eup %13774  ;;  %v12665_v39 = vpop.f32.mrb[60].mxu1  ;;  %v6462_v60 = vpack.c.bf16 %v6395_v24, %v6394_v28 }
 0x69c   : > { %v6142_v18 = vpop.xlane.xlu0 %6141  ;;  %v13777_v55 = vpop.eup %13776  ;;  %v6396_v8 = vmul.f32 %v13775_v52, %v18152_v38 }
 0x69d   : > { %13782 = vrcp.f32 %v6142_v18  ;;  %v7067_v5 = vpop.f32.mrb[61].mxu1  ;;  %v6397_v58 = vmul.f32 %v13777_v55, %v18158_v3  ;;  %12787 = vmatprep.mubr.msk.bf16.mxu1 %vm4993_vm2, %v6462_v60  ;;  %v20967_v3 = vld [vmem:[#allocation63_spill] sm:$0xff]  ;;  %v20982_v18 = vld [vmem:[#allocation70_spill] sm:$0xff]  ;;  %v20985_v55 = vld [vmem:[#allocation72_spill] sm:$0xff] }
 0x69e   : > { %v12666_v14 = vpop.f32.mrb[62].mxu1  ;;  %v6145_v26 = vpop.xlane.xlu1 %6144 }
 0x69f   : > { %v13779_v31 = vpop.eup %13778  ;;  %v7729_v7 = vpack.c.bf16 %v12666_v14, %v12665_v39  ;;  %13784 = vrcp.f32 %v6145_v26  ;;  %v7070_v13 = vpop.f32.mrb[63].mxu1  ;;  %v6463_v29 = vpack.c.bf16 %v6397_v58, %v6396_v8  ;;  %v20983_v39 = vld [vmem:[#allocation43_spill] sm:$0xff]  ;;  %v20988_v26 = vld [vmem:[#allocation129_spill] sm:$0xff] }
 0x6a0   : > { %v7728_v62 = vpack.c.bf16 %v7070_v13, %v7067_v5  ;;  %v6398_v38 = vmul.f32 %v13779_v31, %v18163_v57  ;;  %v20970_v57 = vld [vmem:[#allocation77_spill] sm:$0xff]  ;;  %v20984_v60 = vpack.c.bf16 %v20982_v18, %v20983_v39  ;;  %v20986_v5 = vld [vmem:[#allocation118_spill] sm:$0xff]  ;;  %v20989_v31 = vld [vmem:[#allocation127_spill] sm:$0xff] }
 0x6a1   : > { %v13781_v43 = vpop.eup %13780  ;;  %12788 = vmatmul.mubr.msk.bf16.vlgmr.msra.gmra.mrb[88].mxu1 %vm4993_vm2, %v6463_v29  ;;  %12806 = vmatmul.mubr.msk.bf16.gmra.mrb[40].mxu0 %vm3568_vm1, %v20966_v36  ;;  %v20972_v6 = vpack.c.bf16 %v20970_v57, %v20971_v1  ;;  %v20987_v8 = vpack.c.bf16 %v20985_v55, %v20986_v5  ;;  %v20991_v13 = vld [vmem:[#allocation45_spill] sm:$0xff]  ;;  %v20992_v29 = vld [vmem:[#allocation56_spill] sm:$0xff]  ;;  %v20995_v36 = vld [vmem:[#allocation18_spill] sm:$0xff] }
 0x6a2   : > { %v6399_v51 = vmul.f32 %v13781_v43, %v20967_v3  ;;  %12809 = vmatprep.mubr.msk.bf16.mxu0 %vm3568_vm1, %v7720_v50  ;;  %v20974_v50 = vld [vmem:[#allocation31_spill] sm:$0xff]  ;;  %v20994_v43 = vpack.c.bf16 %v18245_v21, %v18236_v22  ;;  %v20997_v3 = vpack.c.bf16 %v18263_v47, %v18257_v33  ;;  %v21004_v47 = vld [vmem:[#allocation49_spill] sm:$0xff] }
 0x6a3   : > { %v20975_v49 = vpack.c.bf16 %v20973_v34, %v20974_v50  ;;  %v21005_v57 = vld [vmem:[#allocation47_spill] sm:$0xff] }
 0x6a4   : > { %v6464_v63 = vpack.c.bf16 %v6399_v51, %v6398_v38  ;;  %v20996_v38 = vpack.c.bf16 %v18240_v25, %v20995_v36  ;;  %v21001_v25 = vld [vmem:[#allocation128_spill] sm:$0xff]  ;;  %v21006_v1 = vpack.c.bf16 %v21004_v47, %v21005_v57 }
 0x6a6   : > { %12791 = vmatprep.mubr.msk.bf16.mxu1 %vm4993_vm2, %v6464_v63 }
 0x6a7   : > { %v13783_v54 = vpop.eup %13782 }
 0x6a8   : > { %v6400_v16 = vmul.f32 %v13783_v54, %v20968_v61  ;;  %v20999_v61 = vld [vmem:[#allocation38_spill] sm:$0xff] }
 0x6a9   : > { %v13785_v59 = vpop.eup %13784  ;;  %12810 = vmatmul.mubr.msk.bf16.gmra.mrb[44].mxu0 %vm3568_vm1, %v7721_v35  ;;  %v20981_v35 = vpack.c.bf16 %v20979_v11, %v20980_v17  ;;  %v21010_v17 = vld [vmem:[#allocation4_spill] sm:$0xff] }
 0x6aa   : > { %v6401_v46 = vmul.f32 %v13785_v59, %v20969_v9  ;;  %12813 = vmatprep.mubr.msk.bf16.mxu0 %vm3568_vm1, %v20972_v6  ;;  %v20998_v59 = vld [vmem:[#allocation100_spill] sm:$0xff]  ;;  %v21002_v9 = vld [vmem:[#allocation3_spill] sm:$0xff]  ;;  %v21007_v6 = vld [vmem:[#allocation25_spill] sm:$0xff] }
 0x6ac   : > { %v6465_v30 = vpack.c.bf16 %v6401_v46, %v6400_v16  ;;  %v21000_v16 = vpack.c.bf16 %v20998_v59, %v20999_v61  ;;  %v21003_v46 = vpack.c.bf16 %v21001_v25, %v21002_v9 }
 0x6ae   : > { %12792 = vmatmul.mubr.msk.bf16.gmra.mrb[92].mxu1 %vm4993_vm2, %v6465_v30  ;;  %v21008_v30 = vld [vmem:[#allocation134_spill] sm:$0xff] }
 0x6af   : > { %v21009_v34 = vpack.c.bf16 %v21007_v6, %v21008_v30 }
 0x6b1   : > { %12814 = vmatmul.mubr.msk.bf16.gmra.mrb[48].mxu0 %vm3568_vm1, %v20975_v49 }
 0x6b2   : > { %12817 = vmatprep.mubr.msk.bf16.mxu0 %vm3568_vm1, %v20978_v12 }
 0x6b9   : > { %12818 = vmatmul.mubr.msk.bf16.gmra.mrb[52].mxu0 %vm3568_vm1, %v20981_v35  ;;  %v21011_v35 = vld [vmem:[#allocation61_spill] sm:$0xff] }
 0x6ba   : > { %12821 = vmatprep.mubr.msk.bf16.mxu0 %vm3568_vm1, %v7726_v32 }
 0x6c1   : > { %12822 = vmatmul.mubr.msk.bf16.gmra.mrb[56].mxu0 %vm3568_vm1, %v7727_v56  ;;  %v11209_v56 = vld [vmem:[%s20055_s9 + $0xc] sm:$0xf] }
 0x6c2   : > { %12825 = vmatprep.mubr.msk.bf16.mxu0 %vm3568_vm1, %v7728_v62  ;;  %v20993_v62 = vpack.c.bf16 %v20991_v13, %v20992_v29 }
 0x6c8   : > { %v12677_v37 = vpop.f32.mrb[0].mxu0 }
 0x6c9   : > { %v7128_v10 = vpop.f32.mrb[1].mxu0  ;;  %12826 = vmatmul.mubr.msk.bf16.gmra.mrb[60].mxu0 %vm3568_vm1, %v7729_v7  ;;  %v20990_v7 = vpack.c.bf16 %v20988_v26, %v20989_v31  ;;  %v8487_v26 = vsel %vm7813_vm3, %v11209_v56, 0 }
 0x6ca   : > { %v12678_v28 = vpop.f32.mrb[2].mxu0  ;;  %12831 = vmatprep.mubr.msk.bf16.mxu0 %vm3568_vm1, %v20984_v60 }
 0x6cb   : > { %v7731_v24 = vpack.c.bf16 %v12678_v28, %v12677_v37  ;;  %v7131_v52 = vpop.f32.mrb[3].mxu0  ;;  %v21012_v37 = vpack.c.bf16 %v21010_v17, %v21011_v35 }
 0x6cc   : > { %v7730_v42 = vpack.c.bf16 %v7131_v52, %v7128_v10  ;;  %v21013_v10 = vpack.c.bf16 %v18285_v53, %v18278_v44  ;;  %v21015_v44 = vpack.c.bf16 %v18306_v4, %v18299_v20  ;;  %v21016_v53 = vpack.c.bf16 %v18302_v40, %v18293_v23 }
 0x6d0   : > { %v12681_v45 = vpop.f32.mrb[4].mxu0 }
 0x6d1   : > { %v7144_v48 = vpop.f32.mrb[5].mxu0  ;;  %12832 = vmatmul.mubr.msk.bf16.vlgmr.msra.gmra.mrb[32].mxu0 %vm3568_vm1, %v20987_v8  ;;  %v21014_v8 = vpack.c.bf16 %v18281_v0, %v18272_v41 }
 0x6d2   : > { %v12682_v32 = vpop.f32.mrb[6].mxu0  ;;  %12835 = vmatprep.mubr.msk.bf16.mxu0 %vm3568_vm1, %v20990_v7  ;;  %12864 = vmatpush3.bf16.msra.mxu0 %v8241_v2 }
 0x6d3   : > { %v7733_v58 = vpack.c.bf16 %v12682_v32, %v12681_v45  ;;  %v7147_v14 = vpop.f32.mrb[7].mxu0  ;;  %13170 = vmatprep.subr.msk.bf16.mxu0 %vm7813_vm3, %v11209_v56 }
 0x6d4   : > { %v7732_v27 = vpack.c.bf16 %v7147_v14, %v7144_v48 }
 0x6d9   : > { %12836 = vmatmul.mubr.msk.bf16.gmra.mrb[36].mxu0 %vm3568_vm1, %v20993_v62 }
 0x6da   : > { %12839 = vmatprep.mubr.msk.bf16.mxu0 %vm3568_vm1, %v20994_v43 }
 0x6e1   : > { %12840 = vmatmul.mubr.msk.bf16.gmra.mrb[40].mxu0 %vm3568_vm1, %v20996_v38 }
 0x6e2   : > { %12843 = vmatprep.mubr.msk.bf16.mxu0 %vm3568_vm1, %v20997_v3 }
 0x6e8   : > { %v18526_v51 = vpop.f32.mrb[8].mxu0 }
 0x6e9   : > { %v7282_v63 = vpop.f32.mrb[9].mxu0  ;;  %12844 = vmatmul.mubr.msk.bf16.gmra.mrb[44].mxu0 %vm3568_vm1, %v21000_v16 }
 0x6ea   : > { %v12710_v54 = vpop.f32.mrb[10].mxu0  ;;  %12847 = vmatprep.mubr.msk.bf16.mxu0 %vm3568_vm1, %v21003_v46 }
 0x6eb   : > { %v7739_v22 = vpack.c.bf16 %v12710_v54, %v18526_v51  ;;  %v7285_v21 = vpop.f32.mrb[11].mxu0 }
 0x6ec   : > { %v7738_v33 = vpack.c.bf16 %v7285_v21, %v7282_v63 }
 0x6f1   : > { %12848 = vmatmul.mubr.msk.bf16.gmra.mrb[48].mxu0 %vm3568_vm1, %v21006_v1 }
 0x6f2   : > { %12851 = vmatprep.mubr.msk.bf16.mxu0 %vm3568_vm1, %v21009_v34 }
 0x6f5   : > { %v12693_v50 = vpop.f32.mrb[64].mxu1 }
 0x6f6   : > { %v7205_v49 = vpop.f32.mrb[65].mxu1 }
 0x6f7   : > { %v12694_v19 = vpop.f32.mrb[66].mxu1 }
 0x6f8   : > { %v7735_v15 = vpack.c.bf16 %v12694_v19, %v12693_v50  ;;  %v7208_v12 = vpop.f32.mrb[67].mxu1 }
 0x6f9   : > { %v7734_v11 = vpack.c.bf16 %v7208_v12, %v7205_v49  ;;  %12852 = vmatmul.mubr.msk.bf16.gmra.mrb[52].mxu0 %vm3568_vm1, %v21012_v37 }
 0x6fa   : > { %12855 = vmatprep.mubr.msk.bf16.mxu0 %vm3568_vm1, %v21013_v10 }
 0x6fd   : > { %v12697_v28 = vpop.f32.mrb[68].mxu1 }
 0x6fe   : > { %v7221_v52 = vpop.f32.mrb[69].mxu1 }
 0x6ff   : > { %v12698_v18 = vpop.f32.mrb[70].mxu1 }
 0x700   : > { %v7737_v39 = vpack.c.bf16 %v12698_v18, %v12697_v28  ;;  %v7224_v60 = vpop.f32.mrb[71].mxu1  ;;  %v12713_v45 = vpop.f32.mrb[12].mxu0 }
 0x701   : > { %v7736_v2 = vpack.c.bf16 %v7224_v60, %v7221_v52  ;;  %v7298_v48 = vpop.f32.mrb[13].mxu0  ;;  %12856 = vmatmul.mubr.msk.bf16.gmra.mrb[56].mxu0 %vm3568_vm1, %v21014_v8 }
 0x702   : > { %v12714_v32 = vpop.f32.mrb[14].mxu0  ;;  %12859 = vmatprep.mubr.msk.bf16.mxu0 %vm3568_vm1, %v21015_v44  ;;  %v18601_v44 = vld [vmem:[%s20056_s10] ss:$0 sm:$0xff] }
 0x703   : > { %v7741_v55 = vpack.c.bf16 %v12714_v32, %v12713_v45  ;;  %v7301_v5 = vpop.f32.mrb[15].mxu0 }
 0x704   : > { %v7740_v14 = vpack.c.bf16 %v7301_v5, %v7298_v48 }
 0x709   : > { %12860 = vmatmul.mubr.msk.bf16.gmra.mrb[60].mxu0 %vm3568_vm1, %v21016_v53 }
 0x70a   : > { %12865 = vmatprep.mubr.msk.bf16.mxu0 %vm3568_vm1, %v7730_v42 }
 0x711   : > { %12866 = vmatmul.mubr.msk.bf16.vlgmr.msra.gmra.mrb[32].mxu0 %vm3568_vm1, %v7731_v24 }
 0x712   : > { %12869 = vmatprep.mubr.msk.bf16.mxu0 %vm3568_vm1, %v7732_v27  ;;  %12898 = vmatpush3.bf16.msra.mxu0 %v8487_v26  ;;  %v13978_v26 = vld [vmem:[%s14126_s30 + $0x10] sm:$0xff] }
 0x714   : > { %v12741_v41 = vpop.f32.mrb[16].mxu0 }
 0x715   : > { %v7436_v0 = vpop.f32.mrb[17].mxu0 }
 0x716   : > { %v12742_v31 = vpop.f32.mrb[18].mxu0 }
 0x717   : > { %v7747_v20 = vpack.c.bf16 %v12742_v31, %v12741_v41  ;;  %v7439_v4 = vpop.f32.mrb[19].mxu0 }
 0x718   : > { %v7746_v7 = vpack.c.bf16 %v7439_v4, %v7436_v0  ;;  %v13979_v0 = vld [vmem:[%s14126_s30] sm:$0xff] }
 0x719   : > { %12870 = vmatmul.mubr.msk.bf16.gmra.mrb[36].mxu0 %vm3568_vm1, %v7733_v58 }
 0x71a   : > { %12873 = vmatprep.mubr.msk.bf16.mxu0 %vm3568_vm1, %v7734_v11 }
 0x721   : > { %v12725_v23 = vpop.f32.mrb[72].mxu1  ;;  %12874 = vmatmul.mubr.msk.bf16.gmra.mrb[40].mxu0 %vm3568_vm1, %v7735_v15 }
 0x722   : > { %v7359_v40 = vpop.f32.mrb[73].mxu1  ;;  %12877 = vmatprep.mubr.msk.bf16.mxu0 %vm3568_vm1, %v7736_v2 }
 0x723   : > { %v12726_v24 = vpop.f32.mrb[74].mxu1 }
 0x724   : > { %v7743_v42 = vpack.c.bf16 %v12726_v24, %v12725_v23  ;;  %v7362_v56 = vpop.f32.mrb[75].mxu1  ;;  %v13980_v23 = vld [vmem:[%s14126_s30 + $0x18] sm:$0xff]  ;;  %v13981_v24 = vld [vmem:[%s14126_s30 + $0x8] sm:$0xff] }
 0x725   : > { %v7742_v27 = vpack.c.bf16 %v7362_v56, %v7359_v40 }
 0x729   : > { %v12729_v13 = vpop.f32.mrb[76].mxu1  ;;  %12878 = vmatmul.mubr.msk.bf16.gmra.mrb[44].mxu0 %vm3568_vm1, %v7737_v39 }
 0x72a   : > { %v7375_v29 = vpop.f32.mrb[77].mxu1  ;;  %12881 = vmatprep.mubr.msk.bf16.mxu0 %vm3568_vm1, %v7738_v33 }
 0x72b   : > { %v12730_v62 = vpop.f32.mrb[78].mxu1 }
 0x72c   : > { %v7745_v58 = vpack.c.bf16 %v12730_v62, %v12729_v13  ;;  %v7378_v43 = vpop.f32.mrb[79].mxu1 }
 0x72d   : > { %v7744_v36 = vpack.c.bf16 %v7378_v43, %v7375_v29 }
 0x731   : > { %12882 = vmatmul.mubr.msk.bf16.gmra.mrb[48].mxu0 %vm3568_vm1, %v7739_v22 }
 0x732   : > { %12885 = vmatprep.mubr.msk.bf16.mxu0 %vm3568_vm1, %v7740_v14 }
 0x739   : > { %12886 = vmatmul.mubr.msk.bf16.gmra.mrb[52].mxu0 %vm3568_vm1, %v7741_v55 }
 0x73a   : > { %12889 = vmatprep.mubr.msk.bf16.mxu0 %vm3568_vm1, %v7742_v27 }
 0x73b   : > { %v12745_v38 = vpop.f32.mrb[20].mxu0 }
 0x73c   : > { %v7452_v3 = vpop.f32.mrb[21].mxu0 }
 0x73d   : > { %v12746_v51 = vpop.f32.mrb[22].mxu0 }
 0x73e   : > { %v7749_v63 = vpack.c.bf16 %v12746_v51, %v12745_v38  ;;  %v7455_v54 = vpop.f32.mrb[23].mxu0 }
 0x73f   : > { %v7748_v59 = vpack.c.bf16 %v7455_v54, %v7452_v3  ;;  %v13983_v3 = vld [vmem:[%s14126_s30 + $0x20] sm:$0xff] }
 0x741   : > { %12890 = vmatmul.mubr.msk.bf16.gmra.mrb[56].mxu0 %vm3568_vm1, %v7743_v42 }
 0x742   : > { %12893 = vmatprep.mubr.msk.bf16.mxu0 %vm3568_vm1, %v7744_v36  ;;  %v13982_v36 = vld [vmem:[%s14126_s30 + $0x30] sm:$0xff] }
 0x744   : > { %v12773_v61 = vpop.f32.mrb[24].mxu0 }
 0x745   : > { %v7590_v16 = vpop.f32.mrb[25].mxu0 }
 0x746   : > { %v12774_v21 = vpop.f32.mrb[26].mxu0 }
 0x747   : > { %v7755_v22 = vpack.c.bf16 %v12774_v21, %v12773_v61  ;;  %v7593_v25 = vpop.f32.mrb[27].mxu0 }
 0x748   : > { %v7754_v9 = vpack.c.bf16 %v7593_v25, %v7590_v16  ;;  %v13984_v16 = vld [vmem:[%s14126_s30 + $0x38] sm:$0xff] }
 0x749   : > { %12894 = vmatmul.mubr.msk.bf16.gmra.mrb[60].mxu0 %vm3568_vm1, %v7745_v58 }
 0x74a   : > { %12899 = vmatprep.mubr.msk.bf16.mxu0 %vm3568_vm1, %v7746_v7 }
 0x751   : > { %12900 = vmatmul.mubr.msk.bf16.vlgmr.msra.gmra.mrb[32].mxu0 %vm3568_vm1, %v7747_v20 }
 0x752   : > { %12903 = vmatprep.mubr.msk.bf16.mxu0 %vm3568_vm1, %v7748_v59 }
 0x759   : > { %v12757_v46 = vpop.f32.mrb[80].mxu1  ;;  %12904 = vmatmul.mubr.msk.bf16.gmra.mrb[36].mxu0 %vm3568_vm1, %v7749_v63 }
 0x75a   : > { %v7513_v33 = vpop.f32.mrb[81].mxu1 }
 0x75b   : > { %v12758_v47 = vpop.f32.mrb[82].mxu1 }
 0x75c   : > { %v7751_v57 = vpack.c.bf16 %v12758_v47, %v12757_v46  ;;  %v7516_v1 = vpop.f32.mrb[83].mxu1  ;;  %v12777_v6 = vpop.f32.mrb[28].mxu0 }
 0x75d   : > { %v7750_v30 = vpack.c.bf16 %v7516_v1, %v7513_v33  ;;  %v7606_v34 = vpop.f32.mrb[29].mxu0 }
 0x75e   : > { %v12778_v50 = vpop.f32.mrb[30].mxu0 }
 0x75f   : > { %v7757_v49 = vpack.c.bf16 %v12778_v50, %v12777_v6  ;;  %v7609_v19 = vpop.f32.mrb[31].mxu0  ;;  %12907 = vmatprep.mubr.msk.bf16.mxu0 %vm3568_vm1, %v7750_v30 }
 0x760   : > { %v7756_v15 = vpack.c.bf16 %v7609_v19, %v7606_v34  ;;  %v13986_v34 = vld [vmem:[%s14126_s30 + $0x50] sm:$0xff] }
 0x761   : > { %12908 = vmatmul.mubr.msk.bf16.gmra.mrb[40].mxu0 %vm3568_vm1, %v7751_v57 }
 0x764   : > { %v12761_v12 = vpop.f32.mrb[84].mxu1 }
 0x765   : > { %v7529_v11 = vpop.f32.mrb[85].mxu1 }
 0x766   : > { %v12762_v17 = vpop.f32.mrb[86].mxu1 }
 0x767   : > { %v7753_v35 = vpack.c.bf16 %v12762_v17, %v12761_v12  ;;  %v7532_v37 = vpop.f32.mrb[87].mxu1 }
 0x768   : > { %v7752_v10 = vpack.c.bf16 %v7532_v37, %v7529_v11 }
 0x76a   : > { %12911 = vmatprep.mubr.msk.bf16.mxu0 %vm3568_vm1, %v7752_v10  ;;  %v13989_v10 = vld [vmem:[%s14126_s30 + $0x48] sm:$0xff] }
 0x76b   : > { %12912 = vmatmul.mubr.msk.bf16.gmra.mrb[44].mxu0 %vm3568_vm1, %v7753_v35  ;;  %v13988_v35 = vld [vmem:[%s14126_s30 + $0x58] sm:$0xff] }
 0x76c   : > { %12915 = vmatprep.mubr.msk.bf16.mxu0 %vm3568_vm1, %v7754_v9 }
 0x773   : > { %12916 = vmatmul.mubr.msk.bf16.gmra.mrb[48].mxu0 %vm3568_vm1, %v7755_v22  ;;  %v13985_v22 = vld [vmem:[%s14126_s30 + $0x28] sm:$0xff] }
 0x774   : > { %v12789_v28 = vpop.f32.mrb[88].mxu1  ;;  %12919 = vmatprep.mubr.msk.bf16.mxu0 %vm3568_vm1, %v7756_v15 }
 0x775   : > { %v7667_v52 = vpop.f32.mrb[89].mxu1 }
 0x776   : > { %v12790_v18 = vpop.f32.mrb[90].mxu1 }
 0x777   : > { %v7759_v39 = vpack.c.bf16 %v12790_v18, %v12789_v28  ;;  %v7670_v60 = vpop.f32.mrb[91].mxu1 }
 0x778   : > { %v7758_v45 = vpack.c.bf16 %v7670_v60, %v7667_v52 }
 0x77b   : > { %12920 = vmatmul.mubr.msk.bf16.gmra.mrb[52].mxu0 %vm3568_vm1, %v7757_v49  ;;  %v13987_v49 = vld [vmem:[%s14126_s30 + $0x40] sm:$0xff] }
 0x77c   : > { %12923 = vmatprep.mubr.msk.bf16.mxu0 %vm3568_vm1, %v7758_v45 }
 0x781   : > { %v12793_v2 = vpop.f32.mrb[92].mxu1 }
 0x782   : > { %v7683_v48 = vpop.f32.mrb[93].mxu1 }
 0x783   : > { %v12794_v32 = vpop.f32.mrb[94].mxu1  ;;  %12924 = vmatmul.mubr.msk.bf16.gmra.mrb[56].mxu0 %vm3568_vm1, %v7759_v39 }
 0x784   : > { %v7761_v55 = vpack.c.bf16 %v12794_v32, %v12793_v2  ;;  %v7686_v5 = vpop.f32.mrb[95].mxu1 }
 0x785   : > { %v7760_v8 = vpack.c.bf16 %v7686_v5, %v7683_v48  ;;  %v13990_v5 = vld [vmem:[%s14126_s30 + $0x70] sm:$0xff] }
 0x787   : > { %12927 = vmatprep.mubr.msk.bf16.mxu0 %vm3568_vm1, %v7760_v8 }
 0x78b   : > { %12928 = vmatmul.mubr.msk.bf16.gmra.mrb[60].mxu0 %vm3568_vm1, %v7761_v55 }
 0x824   : > { %v12901_v14 = vpop.f32.mrb[32].mxu0 }
 0x825   : > { %v8523_v53 = vpop.f32.mrb[33].mxu0  ;;  %v8684_v41 = vadd.f32 %v13978_v26, %v12901_v14  ;;  %v13991_v14 = vld [vmem:[%s14126_s30 + $0x60] sm:$0xff] }
 0x826   : > { %v8682_v31 = vadd.f32 %v13979_v0, %v8523_v53  ;;  %v12902_v20 = vpop.f32.mrb[34].mxu0 }
 0x827   : > { %v8526_v4 = vpop.f32.mrb[35].mxu0  ;;  %v8685_v40 = vadd.f32 %v13980_v23, %v12902_v20  ;;  %v18611_v56 = vadd.f32 %v18601_v44, %v8684_v41  ;;  %v13992_v20 = vld [vmem:[%s14126_s30 + $0x78] sm:$0xff]  ;;  %v13993_v23 = vld [vmem:[%s14126_s30 + $0x68] sm:$0xff] }
 0x828   : > { %v18606_v7 = vadd.f32 %v18601_v44, %v8682_v31  ;;  %v8683_v42 = vadd.f32 %v13981_v24, %v8526_v4 }
 0x829   : > { %21018 = vst [vmem:[#allocation93_spill] sm:$0xff] %v18611_v56  ;;  %v18619_v29 = vadd.f32 %v18601_v44, %v8685_v40  ;;  %v8761_v54 = vsel %vm592_vm0, %v18611_v56, 0.0 }
 0x82a   : > { %21017 = vst [vmem:[#allocation16_spill] sm:$0xff] %v18606_v7  ;;  %v18614_v27 = vadd.f32 %v18601_v44, %v8683_v42  ;;  %v8755_v13 = vsel %vm592_vm0, %v18606_v7, 0.0 }
 0x82b   : > { %8756 = vadd.xlane.f32.xlu0 %v8755_v13  ;;  %21020 = vst [vmem:[#allocation107_spill] sm:$0xff] %v18619_v29  ;;  %v8764_v9 = vsel %vm592_vm0, %v18619_v29, 0.0 }
 0x82c   : > { %21019 = vst [vmem:[#allocation102_spill] sm:$0xff] %v18614_v27  ;;  %v12905_v62 = vpop.f32.mrb[36].mxu0  ;;  %v8758_v58 = vsel %vm592_vm0, %v18614_v27, 0.0 }
 0x82d   : > { %8759 = vadd.xlane.f32.xlu1 %v8758_v58  ;;  %v8539_v43 = vpop.f32.mrb[37].mxu0  ;;  %v8688_v38 = vadd.f32 %v13982_v36, %v12905_v62 }
 0x82e   : > { %v8686_v51 = vadd.f32 %v13983_v3, %v8539_v43  ;;  %v12906_v63 = vpop.f32.mrb[38].mxu0 }
 0x82f   : > { %8762 = vadd.xlane.f32.xlu0 %v8761_v54  ;;  %v8542_v59 = vpop.f32.mrb[39].mxu0  ;;  %v8689_v21 = vadd.f32 %v13984_v16, %v12906_v63  ;;  %v18635_v46 = vadd.f32 %v18601_v44, %v8688_v38  ;;  %v13994_v38 = vld [vmem:[%s14126_s30 + $0x90] sm:$0xff] }
 0x830   : > { %v18628_v61 = vadd.f32 %v18601_v44, %v8686_v51  ;;  %v8687_v25 = vadd.f32 %v13985_v22, %v8542_v59  ;;  %v13995_v51 = vld [vmem:[%s14126_s30 + $0x80] sm:$0xff]  ;;  %v13996_v22 = vld [vmem:[%s14126_s30 + $0x98] sm:$0xff] }
 0x831   : > { %8765 = vadd.xlane.f32.xlu1 %v8764_v9  ;;  %21022 = vst [vmem:[#allocation109_spill] sm:$0xff] %v18635_v46  ;;  %v18643_v57 = vadd.f32 %v18601_v44, %v8689_v21  ;;  %v8773_v12 = vsel %vm592_vm0, %v18635_v46, 0.0  ;;  %v13997_v9 = vld [vmem:[%s14126_s30 + $0x88] sm:$0xff] }
 0x832   : > { %21021 = vst [vmem:[#allocation44_spill] sm:$0xff] %v18628_v61  ;;  %v18638_v33 = vadd.f32 %v18601_v44, %v8687_v25  ;;  %v8767_v47 = vsel %vm592_vm0, %v18628_v61, 0.0 }
 0x833   : > { %8768 = vadd.xlane.f32.xlu0 %v8767_v47  ;;  %21024 = vst [vmem:[#allocation75_spill] sm:$0xff] %v18643_v57  ;;  %v8776_v52 = vsel %vm592_vm0, %v18643_v57, 0.0 }
 0x834   : > { %21023 = vst [vmem:[#allocation46_spill] sm:$0xff] %v18638_v33  ;;  %v12909_v1 = vpop.f32.mrb[40].mxu0  ;;  %v8770_v6 = vsel %vm592_vm0, %v18638_v33, 0.0 }
 0x835   : > { %8771 = vadd.xlane.f32.xlu1 %v8770_v6  ;;  %v8555_v30 = vpop.f32.mrb[41].mxu0  ;;  %v8692_v50 = vadd.f32 %v13986_v34, %v12909_v1 }
 0x836   : > { %v8690_v19 = vadd.f32 %v13987_v49, %v8555_v30  ;;  %v12910_v15 = vpop.f32.mrb[42].mxu0 }
 0x837   : > { %8774 = vadd.xlane.f32.xlu0 %v8773_v12  ;;  %v8558_v11 = vpop.f32.mrb[43].mxu0  ;;  %v8693_v37 = vadd.f32 %v13988_v35, %v12910_v15  ;;  %v18659_v18 = vadd.f32 %v18601_v44, %v8692_v50  ;;  %v13998_v12 = vld [vmem:[%s14126_s30 + $0xb0] sm:$0xff]  ;;  %v13999_v35 = vld [vmem:[%s14126_s30 + $0xa0] sm:$0xff] }
 0x838   : > { %v18652_v17 = vadd.f32 %v18601_v44, %v8690_v19  ;;  %v8691_v28 = vadd.f32 %v13989_v10, %v8558_v11 }
 0x839   : > { %8777 = vadd.xlane.f32.xlu1 %v8776_v52  ;;  %21026 = vst [vmem:[#allocation69_spill] sm:$0xff] %v18659_v18  ;;  %v18667_v45 = vadd.f32 %v18601_v44, %v8693_v37  ;;  %v8785_v32 = vsel %vm592_vm0, %v18659_v18, 0.0 }
 0x83a   : > { %21025 = vst [vmem:[#allocation59_spill] sm:$0xff] %v18652_v17  ;;  %v18662_v39 = vadd.f32 %v18601_v44, %v8691_v28  ;;  %v8779_v60 = vsel %vm592_vm0, %v18652_v17, 0.0 }
 0x83b   : > { %8780 = vadd.xlane.f32.xlu0 %v8779_v60  ;;  %21028 = vst [vmem:[#allocation108_spill] sm:$0xff] %v18667_v45  ;;  %v8788_v41 = vsel %vm592_vm0, %v18667_v45, 0.0 }
 0x83c   : > { %21027 = vst [vmem:[#allocation42_spill] sm:$0xff] %v18662_v39  ;;  %v8782_v2 = vsel %vm592_vm0, %v18662_v39, 0.0 }
 0x83d   : > { %8783 = vadd.xlane.f32.xlu1 %v8782_v2  ;;  %v14000_v2 = vld [vmem:[%s14126_s30 + $0xb8] sm:$0xff] }
 0x83e   : > { %v12913_v48 = vpop.f32.mrb[44].mxu0 }
 0x83f   : > { %8786 = vadd.xlane.f32.xlu0 %v8785_v32  ;;  %v8571_v55 = vpop.f32.mrb[45].mxu0  ;;  %v8696_v8 = vadd.f32 %v13990_v5, %v12913_v48  ;;  %v14001_v32 = vld [vmem:[%s14126_s30 + $0xa8] sm:$0xff] }
 0x840   : > { %v8694_v53 = vadd.f32 %v13991_v14, %v8571_v55  ;;  %v12914_v26 = vpop.f32.mrb[46].mxu0 }
 0x841   : > { %8789 = vadd.xlane.f32.xlu1 %v8788_v41  ;;  %v8574_v0 = vpop.f32.mrb[47].mxu0  ;;  %v8697_v4 = vadd.f32 %v13992_v20, %v12914_v26  ;;  %v18683_v24 = vadd.f32 %v18601_v44, %v8696_v8 }
 0x842   : > { %v18678_v31 = vadd.f32 %v18601_v44, %v8694_v53  ;;  %v8695_v40 = vadd.f32 %v13993_v23, %v8574_v0 }
 0x843   : > { %21030 = vst [vmem:[#allocation110_spill] sm:$0xff] %v18683_v24  ;;  %v18691_v62 = vadd.f32 %v18601_v44, %v8697_v4  ;;  %v8797_v59 = vsel %vm592_vm0, %v18683_v24, 0.0  ;;  %v14002_v4 = vld [vmem:[%s14126_s30 + $0xd0] sm:$0xff] }
 0x844   : > { %21029 = vst [vmem:[#allocation37_spill] sm:$0xff] %v18678_v31  ;;  %v18686_v42 = vadd.f32 %v18601_v44, %v8695_v40  ;;  %v8791_v13 = vsel %vm592_vm0, %v18678_v31, 0.0  ;;  %v14003_v40 = vld [vmem:[%s14126_s30 + $0xc0] sm:$0xff] }
 0x845   : > { %8792 = vadd.xlane.f32.xlu0 %v8791_v13  ;;  %21032 = vst [vmem:[#allocation65_spill] sm:$0xff] %v18691_v62  ;;  %v8800_v1 = vsel %vm592_vm0, %v18691_v62, 0.0 }
 0x846   : > { %21031 = vst [vmem:[#allocation81_spill] sm:$0xff] %v18686_v42  ;;  %v12917_v58 = vpop.f32.mrb[48].mxu0  ;;  %v8794_v43 = vsel %vm592_vm0, %v18686_v42, 0.0 }
 0x847   : > { %8795 = vadd.xlane.f32.xlu1 %v8794_v43  ;;  %v8587_v36 = vpop.f32.mrb[49].mxu0  ;;  %v8700_v3 = vadd.f32 %v13994_v38, %v12917_v58 }
 0x848   : > { %v8698_v63 = vadd.f32 %v13995_v51, %v8587_v36  ;;  %v12918_v54 = vpop.f32.mrb[50].mxu0 }
 0x849   : > { %8798 = vadd.xlane.f32.xlu0 %v8797_v59  ;;  %v8590_v16 = vpop.f32.mrb[51].mxu0  ;;  %v8701_v25 = vadd.f32 %v13996_v22, %v12918_v54  ;;  %v18707_v6 = vadd.f32 %v18601_v44, %v8700_v3  ;;  %v14004_v3 = vld [vmem:[%s14126_s30 + $0xd8] sm:$0xff] }
 0x84a   : > { %v18700_v21 = vadd.f32 %v18601_v44, %v8698_v63  ;;  %v8699_v47 = vadd.f32 %v13997_v9, %v8590_v16  ;;  %v14005_v63 = vld [vmem:[%s14126_s30 + $0xc8] sm:$0xff] }
 0x84b   : > { %8801 = vadd.xlane.f32.xlu1 %v8800_v1  ;;  %21034 = vst [vmem:[#allocation62_spill] sm:$0xff] %v18707_v6  ;;  %v18715_v50 = vadd.f32 %v18601_v44, %v8701_v25  ;;  %v8809_v28 = vsel %vm592_vm0, %v18707_v6, 0.0 }
 0x84c   : > { %21033 = vst [vmem:[#allocation90_spill] sm:$0xff] %v18700_v21  ;;  %v18710_v30 = vadd.f32 %v18601_v44, %v8699_v47  ;;  %v8803_v34 = vsel %vm592_vm0, %v18700_v21, 0.0 }
 0x84d   : > { %8804 = vadd.xlane.f32.xlu0 %v8803_v34  ;;  %21036 = vst [vmem:[#allocation79_spill] sm:$0xff] %v18715_v50  ;;  %v8812_v5 = vsel %vm592_vm0, %v18715_v50, 0.0 }
 0x84e   : > { %21035 = vst [vmem:[#allocation91_spill] sm:$0xff] %v18710_v30  ;;  %v12921_v49 = vpop.f32.mrb[52].mxu0  ;;  %v8806_v19 = vsel %vm592_vm0, %v18710_v30, 0.0 }
 0x84f   : > { %8807 = vadd.xlane.f32.xlu1 %v8806_v19  ;;  %v8603_v15 = vpop.f32.mrb[53].mxu0  ;;  %v8704_v11 = vadd.f32 %v13998_v12, %v12921_v49  ;;  %v14006_v49 = vld [vmem:[%s14126_s30 + $0xf0] sm:$0xff] }
 0x850   : > { %v8702_v37 = vadd.f32 %v13999_v35, %v8603_v15  ;;  %v12922_v10 = vpop.f32.mrb[54].mxu0  ;;  %v14007_v15 = vld [vmem:[%s14126_s30 + $0xe0] sm:$0xff] }
 0x851   : > { %8810 = vadd.xlane.f32.xlu0 %v8809_v28  ;;  %v8606_v52 = vpop.f32.mrb[55].mxu0  ;;  %v8705_v48 = vadd.f32 %v14000_v2, %v12922_v10  ;;  %v18731_v8 = vadd.f32 %v18601_v44, %v8704_v11  ;;  %v14009_v2 = vld [vmem:[%s14126_s30 + $0xe8] sm:$0xff] }
 0x852   : > { %v18724_v60 = vadd.f32 %v18601_v44, %v8702_v37  ;;  %v8703_v55 = vadd.f32 %v14001_v32, %v8606_v52  ;;  %v14008_v37 = vld [vmem:[%s14126_s30 + $0xf8] sm:$0xff]  ;;  %s19914_s30 = scalar_lea.vmem %s20063_s17, %s11271_s27 }
 0x853   : > { %8813 = vadd.xlane.f32.xlu1 %v8812_v5  ;;  %21038 = vst [vmem:[#allocation51_spill] sm:$0xff] %v18731_v8  ;;  %v18739_v26 = vadd.f32 %v18601_v44, %v8705_v48  ;;  %v8821_v43 = vsel %vm592_vm0, %v18731_v8, 0.0 }
 0x854   : > { %21037 = vst [vmem:[#allocation58_spill] sm:$0xff] %v18724_v60  ;;  %v18734_v14 = vadd.f32 %v18601_v44, %v8703_v55  ;;  %v8815_v53 = vsel %vm592_vm0, %v18724_v60, 0.0 }
 0x855   : > { %8816 = vadd.xlane.f32.xlu0 %v8815_v53  ;;  %21040 = vst [vmem:[#allocation53_spill] sm:$0xff] %v18739_v26  ;;  %v8824_v59 = vsel %vm592_vm0, %v18739_v26, 0.0 }
 0x856   : > { %21039 = vst [vmem:[#allocation67_spill] sm:$0xff] %v18734_v14  ;;  %v12925_v41 = vpop.f32.mrb[56].mxu0  ;;  %v8818_v0 = vsel %vm592_vm0, %v18734_v14, 0.0 }
 0x857   : > { %8819 = vadd.xlane.f32.xlu1 %v8818_v0  ;;  %v8619_v20 = vpop.f32.mrb[57].mxu0  ;;  %v8708_v23 = vadd.f32 %v14002_v4, %v12925_v41 }
 0x858   : > { %v8706_v13 = vadd.f32 %v14003_v40, %v8619_v20  ;;  %v12926_v58 = vpop.f32.mrb[58].mxu0 }
 0x859   : > { %8822 = vadd.xlane.f32.xlu0 %v8821_v43  ;;  %v8622_v36 = vpop.f32.mrb[59].mxu0  ;;  %v8709_v51 = vadd.f32 %v14004_v3, %v12926_v58  ;;  %v18755_v16 = vadd.f32 %v18601_v44, %v8708_v23 }
 0x85a   : > { %v18748_v38 = vadd.f32 %v18601_v44, %v8706_v13  ;;  %v8707_v54 = vadd.f32 %v14005_v63, %v8622_v36 }
 0x85b   : > { %8825 = vadd.xlane.f32.xlu1 %v8824_v59  ;;  %21042 = vst [vmem:[#allocation12_spill] sm:$0xff] %v18755_v16  ;;  %v18763_v9 = vadd.f32 %v18601_v44, %v8709_v51  ;;  %v8833_v35 = vsel %vm592_vm0, %v18755_v16, 0.0 }
 0x85c   : > { %21041 = vst [vmem:[#allocation23_spill] sm:$0xff] %v18748_v38  ;;  %v18758_v22 = vadd.f32 %v18601_v44, %v8707_v54  ;;  %v8827_v25 = vsel %vm592_vm0, %v18748_v38, 0.0 }
 0x85d   : > { %8828 = vadd.xlane.f32.xlu0 %v8827_v25  ;;  %21044 = vst [vmem:[#allocation87_spill] sm:$0xff] %v18763_v9  ;;  %v8836_v32 = vsel %vm592_vm0, %v18763_v9, 0.0 }
 0x85e   : > { %21043 = vst [vmem:[#allocation89_spill] sm:$0xff] %v18758_v22  ;;  %v12929_v47 = vpop.f32.mrb[60].mxu0  ;;  %v8830_v1 = vsel %vm592_vm0, %v18758_v22, 0.0 }
 0x85f   : > { %8831 = vadd.xlane.f32.xlu1 %v8830_v1  ;;  %v8635_v34 = vpop.f32.mrb[61].mxu0  ;;  %v8712_v19 = vadd.f32 %v14006_v49, %v12929_v47 }
 0x860   : > { %v8710_v12 = vadd.f32 %v14007_v15, %v8635_v34  ;;  %v12930_v11 = vpop.f32.mrb[62].mxu0 }
 0x861   : > { %v8713_v10 = vadd.f32 %v14008_v37, %v12930_v11  ;;  %8834 = vadd.xlane.f32.xlu0 %v8833_v35  ;;  %v8638_v28 = vpop.f32.mrb[63].mxu0  ;;  %v18782_v5 = vadd.f32 %v18601_v44, %v8712_v19 }
 0x862   : > { %v18773_v52 = vadd.f32 %v18601_v44, %v8710_v12  ;;  %v8711_v48 = vadd.f32 %v14009_v2, %v8638_v28 }
 0x863   : > { %v18779_v55 = vadd.f32 %v18601_v44, %v8713_v10  ;;  %8837 = vadd.xlane.f32.xlu1 %v8836_v32  ;;  %21047 = vst [vmem:[#allocation121_spill] sm:$0xff] %v18782_v5  ;;  %v8845_v20 = vsel %vm592_vm0, %v18782_v5, 0.0 }
 0x864   : > { %21045 = vst [vmem:[#allocation27_spill] sm:$0xff] %v18773_v52  ;;  %v18785_v53 = vadd.f32 %v18601_v44, %v8711_v48  ;;  %v8839_v41 = vsel %vm592_vm0, %v18773_v52, 0.0 }
 0x865   : > { %21046 = vst [vmem:[#allocation76_spill] sm:$0xff] %v18779_v55  ;;  %8840 = vadd.xlane.f32.xlu0 %v8839_v41  ;;  %v8848_v4 = vsel %vm592_vm0, %v18779_v55, 0.0 }
 0x866   : > { %21048 = vst [vmem:[#allocation98_spill] sm:$0xff] %v18785_v53  ;;  %v8842_v0 = vsel %vm592_vm0, %v18785_v53, 0.0 }
 0x867   : > { %8843 = vadd.xlane.f32.xlu1 %v8842_v0 }
 0x869   : > { %8846 = vadd.xlane.f32.xlu0 %v8845_v20 }
 0x86b   : > { %8849 = vadd.xlane.f32.xlu1 %v8848_v4 }
 0x8b8   : > { %v8757_v23 = vpop.xlane.xlu0 %8756 }
 0x8b9   : > { %v8851_v40 = vmul.f32 0.03125, %v8757_v23 }
 0x8ba   : > { %v8760_v44 = vpop.xlane.xlu1 %8759 }
 0x8bb   : > { %v18796_v13 = vsub.f32 %v18606_v7, %v8851_v40  ;;  %v8852_v58 = vmul.f32 0.03125, %v8760_v44 }
 0x8bc   : > { %v8763_v43 = vpop.xlane.xlu0 %8762 }
 0x8bd   : > { %v18799_v36 = vsub.f32 %v18614_v27, %v8852_v58  ;;  %v8853_v3 = vmul.f32 0.03125, %v8763_v43  ;;  %v8915_v51 = vmul.f32 %v18796_v13, %v18796_v13 }
 0x8be   : > { %v8766_v63 = vpop.xlane.xlu1 %8765 }
 0x8bf   : > { %v18804_v54 = vsub.f32 %v18611_v56, %v8853_v3  ;;  %v8854_v59 = vmul.f32 0.03125, %v8766_v63  ;;  %v8947_v25 = vsel %vm592_vm0, %v8915_v51, 0.0  ;;  %v8916_v47 = vmul.f32 %v18799_v36, %v18799_v36 }
 0x8c0   : > { %v8769_v1 = vpop.xlane.xlu0 %8768  ;;  %8948 = vadd.xlane.f32.xlu0 %v8947_v25 }
 0x8c1   : > { %v18810_v34 = vsub.f32 %v18619_v29, %v8854_v59  ;;  %v8855_v49 = vmul.f32 0.03125, %v8769_v1  ;;  %v8950_v19 = vsel %vm592_vm0, %v8916_v47, 0.0  ;;  %v8917_v15 = vmul.f32 %v18804_v54, %v18804_v54 }
 0x8c2   : > { %8951 = vadd.xlane.f32.xlu1 %v8950_v19  ;;  %v8772_v12 = vpop.xlane.xlu1 %8771 }
 0x8c3   : > { %v18816_v11 = vsub.f32 %v18628_v61, %v8855_v49  ;;  %v8856_v35 = vmul.f32 0.03125, %v8772_v12  ;;  %v8953_v37 = vsel %vm592_vm0, %v8917_v15, 0.0  ;;  %v8918_v10 = vmul.f32 %v18810_v34, %v18810_v34 }
 0x8c4   : > { %v8775_v28 = vpop.xlane.xlu0 %8774  ;;  %8954 = vadd.xlane.f32.xlu0 %v8953_v37 }
 0x8c5   : > { %v18822_v2 = vsub.f32 %v18638_v33, %v8856_v35  ;;  %v8857_v48 = vmul.f32 0.03125, %v8775_v28  ;;  %v8956_v32 = vsel %vm592_vm0, %v8918_v10, 0.0  ;;  %v8919_v41 = vmul.f32 %v18816_v11, %v18816_v11 }
 0x8c6   : > { %8957 = vadd.xlane.f32.xlu1 %v8956_v32  ;;  %v8778_v0 = vpop.xlane.xlu1 %8777 }
 0x8c7   : > { %v18828_v20 = vsub.f32 %v18635_v46, %v8857_v48  ;;  %v8858_v4 = vmul.f32 0.03125, %v8778_v0  ;;  %v8959_v23 = vsel %vm592_vm0, %v8919_v41, 0.0  ;;  %v8920_v40 = vmul.f32 %v18822_v2, %v18822_v2 }
 0x8c8   : > { %v8781_v44 = vpop.xlane.xlu0 %8780  ;;  %8960 = vadd.xlane.f32.xlu0 %v8959_v23 }
 0x8c9   : > { %v18834_v58 = vsub.f32 %v18643_v57, %v8858_v4  ;;  %v8859_v43 = vmul.f32 0.03125, %v8781_v44  ;;  %v8962_v3 = vsel %vm592_vm0, %v8920_v40, 0.0  ;;  %v8921_v51 = vmul.f32 %v18828_v20, %v18828_v20 }
 0x8ca   : > { %8963 = vadd.xlane.f32.xlu1 %v8962_v3  ;;  %v8784_v63 = vpop.xlane.xlu1 %8783 }
 0x8cb   : > { %v18840_v59 = vsub.f32 %v18652_v17, %v8859_v43  ;;  %v8860_v25 = vmul.f32 0.03125, %v8784_v63  ;;  %v8965_v47 = vsel %vm592_vm0, %v8921_v51, 0.0  ;;  %v8922_v1 = vmul.f32 %v18834_v58, %v18834_v58 }
 0x8cc   : > { %v8787_v49 = vpop.xlane.xlu0 %8786  ;;  %8966 = vadd.xlane.f32.xlu0 %v8965_v47 }
 0x8cd   : > { %v18846_v19 = vsub.f32 %v18662_v39, %v8860_v25  ;;  %v8861_v15 = vmul.f32 0.03125, %v8787_v49  ;;  %v8968_v12 = vsel %vm592_vm0, %v8922_v1, 0.0  ;;  %v8923_v35 = vmul.f32 %v18840_v59, %v18840_v59 }
 0x8ce   : > { %8969 = vadd.xlane.f32.xlu1 %v8968_v12  ;;  %v8790_v37 = vpop.xlane.xlu1 %8789 }
 0x8cf   : > { %v18852_v10 = vsub.f32 %v18659_v18, %v8861_v15  ;;  %v8862_v28 = vmul.f32 0.03125, %v8790_v37  ;;  %v8971_v48 = vsel %vm592_vm0, %v8923_v35, 0.0  ;;  %v8924_v32 = vmul.f32 %v18846_v19, %v18846_v19 }
 0x8d0   : > { %8972 = vadd.xlane.f32.xlu0 %v8971_v48 }
 0x8d1   : > { %v18858_v41 = vsub.f32 %v18667_v45, %v8862_v28  ;;  %v8974_v0 = vsel %vm592_vm0, %v8924_v32, 0.0  ;;  %v8925_v4 = vmul.f32 %v18852_v10, %v18852_v10 }
 0x8d2   : > { %v8793_v23 = vpop.xlane.xlu0 %8792  ;;  %8975 = vadd.xlane.f32.xlu1 %v8974_v0 }
 0x8d3   : > { %v8863_v40 = vmul.f32 0.03125, %v8793_v23  ;;  %v8977_v44 = vsel %vm592_vm0, %v8925_v4, 0.0  ;;  %v8926_v43 = vmul.f32 %v18858_v41, %v18858_v41 }
 0x8d4   : > { %8978 = vadd.xlane.f32.xlu0 %v8977_v44  ;;  %v8796_v3 = vpop.xlane.xlu1 %8795 }
 0x8d5   : > { %v18867_v51 = vsub.f32 %v18678_v31, %v8863_v40  ;;  %v8864_v63 = vmul.f32 0.03125, %v8796_v3  ;;  %v8980_v25 = vsel %vm592_vm0, %v8926_v43, 0.0 }
 0x8d6   : > { %v8799_v47 = vpop.xlane.xlu0 %8798  ;;  %8981 = vadd.xlane.f32.xlu1 %v8980_v25 }
 0x8d7   : > { %v18871_v1 = vsub.f32 %v18686_v42, %v8864_v63  ;;  %v8865_v49 = vmul.f32 0.03125, %v8799_v47  ;;  %v8927_v15 = vmul.f32 %v18867_v51, %v18867_v51 }
 0x8d8   : > { %v8802_v12 = vpop.xlane.xlu1 %8801 }
 0x8d9   : > { %v18876_v35 = vsub.f32 %v18683_v24, %v8865_v49  ;;  %v8866_v37 = vmul.f32 0.03125, %v8802_v12  ;;  %v8983_v28 = vsel %vm592_vm0, %v8927_v15, 0.0  ;;  %v8928_v48 = vmul.f32 %v18871_v1, %v18871_v1 }
 0x8da   : > { %v8805_v32 = vpop.xlane.xlu0 %8804  ;;  %8984 = vadd.xlane.f32.xlu0 %v8983_v28 }
 0x8db   : > { %v18882_v0 = vsub.f32 %v18691_v62, %v8866_v37  ;;  %v8867_v4 = vmul.f32 0.03125, %v8805_v32  ;;  %v8986_v23 = vsel %vm592_vm0, %v8928_v48, 0.0  ;;  %v8929_v40 = vmul.f32 %v18876_v35, %v18876_v35 }
 0x8dc   : > { %8987 = vadd.xlane.f32.xlu1 %v8986_v23  ;;  %v8808_v44 = vpop.xlane.xlu1 %8807 }
 0x8dd   : > { %v18888_v43 = vsub.f32 %v18700_v21, %v8867_v4  ;;  %v8868_v3 = vmul.f32 0.03125, %v8808_v44  ;;  %v8989_v63 = vsel %vm592_vm0, %v8929_v40, 0.0  ;;  %v8930_v25 = vmul.f32 %v18882_v0, %v18882_v0 }
 0x8de   : > { %v8811_v47 = vpop.xlane.xlu0 %8810  ;;  %8990 = vadd.xlane.f32.xlu0 %v8989_v63 }
 0x8df   : > { %v18894_v49 = vsub.f32 %v18710_v30, %v8868_v3  ;;  %v8869_v15 = vmul.f32 0.03125, %v8811_v47  ;;  %v8992_v12 = vsel %vm592_vm0, %v8930_v25, 0.0  ;;  %v8931_v37 = vmul.f32 %v18888_v43, %v18888_v43 }
 0x8e0   : > { %8993 = vadd.xlane.f32.xlu1 %v8992_v12  ;;  %v8814_v28 = vpop.xlane.xlu1 %8813 }
 0x8e1   : > { %v18900_v48 = vsub.f32 %v18707_v6, %v8869_v15  ;;  %v8870_v32 = vmul.f32 0.03125, %v8814_v28  ;;  %v8995_v4 = vsel %vm592_vm0, %v8931_v37, 0.0  ;;  %v8932_v23 = vmul.f32 %v18894_v49, %v18894_v49 }
 0x8e2   : > { %v8817_v40 = vpop.xlane.xlu0 %8816  ;;  %8996 = vadd.xlane.f32.xlu0 %v8995_v4 }
 0x8e3   : > { %v18906_v44 = vsub.f32 %v18715_v50, %v8870_v32  ;;  %v8871_v3 = vmul.f32 0.03125, %v8817_v40  ;;  %v8998_v63 = vsel %vm592_vm0, %v8932_v23, 0.0  ;;  %v8933_v25 = vmul.f32 %v18900_v48, %v18900_v48  ;;  %v13204_v32 = vld [vmem:[%s20059_s13] sm:$0xff]  }
 0x8e4   : > { %8999 = vadd.xlane.f32.xlu1 %v8998_v63  ;;  %v8820_v47 = vpop.xlane.xlu1 %8819  ;;  %12931 = vmatprep.subr.bf16.mxu1 %v13204_v32 }
 0x8e5   : > { %v18912_v15 = vsub.f32 %v18724_v60, %v8871_v3  ;;  %v8872_v12 = vmul.f32 0.03125, %v8820_v47  ;;  %v9001_v37 = vsel %vm592_vm0, %v8933_v25, 0.0  ;;  %v8934_v28 = vmul.f32 %v18906_v44, %v18906_v44  ;;  %12932 = vmatpush3.bf16.msra.mxu1 %v13204_v32 }
 0x8e6   : > { %v8823_v4 = vpop.xlane.xlu0 %8822  ;;  %9002 = vadd.xlane.f32.xlu0 %v9001_v37  ;;  %v13205_v37 = vld [vmem:[%s20059_s13 + $0x8] sm:$0xff]  }
 0x8e7   : > { %v18921_v23 = vsub.f32 %v18734_v14, %v8872_v12  ;;  %v8873_v40 = vmul.f32 0.03125, %v8823_v4  ;;  %v9004_v63 = vsel %vm592_vm0, %v8934_v28, 0.0  ;;  %v8935_v3 = vmul.f32 %v18912_v15, %v18912_v15  ;;  %12933 = vmatprep.subr.bf16.mxu1 %v13205_v37 }
 0x8e8   : > { %9005 = vadd.xlane.f32.xlu1 %v9004_v63  ;;  %v8826_v25 = vpop.xlane.xlu1 %8825 }
 0x8e9   : > { %v18927_v47 = vsub.f32 %v18731_v8, %v8873_v40  ;;  %v8874_v60 = vmul.f32 0.03125, %v8826_v25  ;;  %v9007_v30 = vsel %vm592_vm0, %v8935_v3, 0.0  ;;  %v8936_v12 = vmul.f32 %v18921_v23, %v18921_v23  ;;  %12934 = vmatpush3.bf16.msra.mxu1 %v13205_v37 }
 0x8ea   : > { %v8829_v28 = vpop.xlane.xlu0 %8828  ;;  %9008 = vadd.xlane.f32.xlu0 %v9007_v30 }
 0x8eb   : > { %v18936_v4 = vsub.f32 %v18739_v26, %v8874_v60  ;;  %v8875_v63 = vmul.f32 0.03125, %v8829_v28  ;;  %v9010_v32 = vsel %vm592_vm0, %v8936_v12, 0.0  ;;  %v8937_v40 = vmul.f32 %v18927_v47, %v18927_v47 }
 0x8ec   : > { %9011 = vadd.xlane.f32.xlu1 %v9010_v32  ;;  %v8832_v3 = vpop.xlane.xlu1 %8831 }
 0x8ed   : > { %v18942_v25 = vsub.f32 %v18748_v38, %v8875_v63  ;;  %v8876_v14 = vmul.f32 0.03125, %v8832_v3  ;;  %v9013_v8 = vsel %vm592_vm0, %v8937_v40, 0.0  ;;  %v8938_v30 = vmul.f32 %v18936_v4, %v18936_v4 }
 0x8ee   : > { %v8835_v60 = vpop.xlane.xlu0 %8834  ;;  %9014 = vadd.xlane.f32.xlu0 %v9013_v8 }
 0x8ef   : > { %v18948_v12 = vsub.f32 %v18758_v22, %v8876_v14  ;;  %v8877_v28 = vmul.f32 0.03125, %v8835_v60  ;;  %v9016_v26 = vsel %vm592_vm0, %v8938_v30, 0.0  ;;  %v8939_v37 = vmul.f32 %v18942_v25, %v18942_v25 }
 0x8f0   : > { %9017 = vadd.xlane.f32.xlu1 %v9016_v26  ;;  %v8838_v63 = vpop.xlane.xlu1 %8837 }
 0x8f1   : > { %v18954_v32 = vsub.f32 %v18755_v16, %v8877_v28  ;;  %v8878_v40 = vmul.f32 0.03125, %v8838_v63  ;;  %v9019_v3 = vsel %vm592_vm0, %v8939_v37, 0.0  ;;  %v8940_v8 = vmul.f32 %v18948_v12, %v18948_v12 }
 0x8f2   : > { %9020 = vadd.xlane.f32.xlu0 %v9019_v3  ;;  %v8841_v14 = vpop.xlane.xlu0 %8840 }
 0x8f3   : > { %v18960_v60 = vsub.f32 %v18763_v9, %v8878_v40  ;;  %v8879_v30 = vmul.f32 0.03125, %v8841_v14  ;;  %v9022_v22 = vsel %vm592_vm0, %v8940_v8, 0.0  ;;  %v8941_v26 = vmul.f32 %v18954_v32, %v18954_v32 }
 0x8f4   : > { %9023 = vadd.xlane.f32.xlu1 %v9022_v22  ;;  %v8844_v28 = vpop.xlane.xlu1 %8843 }
 0x8f5   : > { %v18966_v63 = vsub.f32 %v18773_v52, %v8879_v30  ;;  %v8880_v37 = vmul.f32 0.03125, %v8844_v28  ;;  %v9025_v38 = vsel %vm592_vm0, %v8941_v26, 0.0  ;;  %v8942_v3 = vmul.f32 %v18960_v60, %v18960_v60 }
 0x8f6   : > { %9026 = vadd.xlane.f32.xlu0 %v9025_v38  ;;  %v8847_v40 = vpop.xlane.xlu0 %8846 }
 0x8f7   : > { %v18972_v14 = vsub.f32 %v18785_v53, %v8880_v37  ;;  %v8881_v8 = vmul.f32 0.03125, %v8847_v40  ;;  %v9028_v9 = vsel %vm592_vm0, %v8942_v3, 0.0  ;;  %v8943_v22 = vmul.f32 %v18966_v63, %v18966_v63 }
 0x8f8   : > { %9029 = vadd.xlane.f32.xlu1 %v9028_v9  ;;  %v8850_v30 = vpop.xlane.xlu1 %8849 }
 0x8f9   : > { %v18978_v28 = vsub.f32 %v18782_v5, %v8881_v8  ;;  %v8882_v26 = vmul.f32 0.03125, %v8850_v30  ;;  %v9031_v52 = vsel %vm592_vm0, %v8943_v22, 0.0  ;;  %v8944_v38 = vmul.f32 %v18972_v14, %v18972_v14 }
 0x8fa   : > { %9032 = vadd.xlane.f32.xlu0 %v9031_v52 }
 0x8fb   : > { %v18984_v37 = vsub.f32 %v18779_v55, %v8882_v26  ;;  %v9034_v3 = vsel %vm592_vm0, %v8944_v38, 0.0  ;;  %v8945_v40 = vmul.f32 %v18978_v28, %v18978_v28 }
 0x8fc   : > { %9035 = vadd.xlane.f32.xlu1 %v9034_v3 }
 0x8fd   : > { %v9037_v9 = vsel %vm592_vm0, %v8945_v40, 0.0  ;;  %v8946_v8 = vmul.f32 %v18984_v37, %v18984_v37 }
 0x8fe   : > { %9038 = vadd.xlane.f32.xlu0 %v9037_v9 }
 0x8ff   : > { %v9040_v22 = vsel %vm592_vm0, %v8946_v8, 0.0 }
 0x900   : > { %9041 = vadd.xlane.f32.xlu1 %v9040_v22 }
 0x94d   : > { %v8949_v30 = vpop.xlane.xlu0 %8948 }
 0x94e   : > { %v9043_v52 = vmul.f32 0.03125, %v8949_v30 }
 0x94f   : > { %v8952_v53 = vpop.xlane.xlu1 %8951 }
 0x950   : > { %v9075_v26 = vadd.f32 1e-05, %v9043_v52  ;;  %v9044_v55 = vmul.f32 0.03125, %v8952_v53 }
 0x951   : > { %v8955_v5 = vpop.xlane.xlu0 %8954 }
 0x952   : > { %13786 = vrsqrt.f32 %v9075_v26  ;;  %v9076_v38 = vadd.f32 1e-05, %v9044_v55  ;;  %v9045_v16 = vmul.f32 0.03125, %v8955_v5  ;;  %v18996_v55 = vld [vmem:[%s20057_s11] ss:$0 sm:$0xff] }
 0x953   : > { %v8958_v50 = vpop.xlane.xlu1 %8957 }
 0x954   : > { %13788 = vrsqrt.f32 %v9076_v38  ;;  %v9077_v3 = vadd.f32 1e-05, %v9045_v16  ;;  %v9046_v40 = vmul.f32 0.03125, %v8958_v50 }
 0x955   : > { %v8961_v21 = vpop.xlane.xlu0 %8960 }
 0x956   : > { %13790 = vrsqrt.f32 %v9077_v3  ;;  %v9078_v6 = vadd.f32 1e-05, %v9046_v40  ;;  %v9047_v9 = vmul.f32 0.03125, %v8961_v21 }
 0x957   : > { %v8964_v42 = vpop.xlane.xlu1 %8963 }
 0x958   : > { %13792 = vrsqrt.f32 %v9078_v6  ;;  %v9079_v8 = vadd.f32 1e-05, %v9047_v9  ;;  %v9048_v22 = vmul.f32 0.03125, %v8964_v42 }
 0x959   : > { %v8967_v30 = vpop.xlane.xlu0 %8966 }
 0x95a   : > { %13794 = vrsqrt.f32 %v9079_v8  ;;  %v9080_v52 = vadd.f32 1e-05, %v9048_v22  ;;  %v9049_v53 = vmul.f32 0.03125, %v8967_v30  ;;  %v19004_v22 = vld [vmem:[%s20058_s12] ss:$0 sm:$0xff] }
 0x95b   : > { %v8970_v62 = vpop.xlane.xlu1 %8969 }
 0x95c   : > { %v13787_v26 = vpop.eup %13786  ;;  %13796 = vrsqrt.f32 %v9080_v52  ;;  %v9081_v50 = vadd.f32 1e-05, %v9049_v53  ;;  %v9050_v16 = vmul.f32 0.03125, %v8970_v62 }
 0x95d   : > { %v9139_v21 = vmul.f32 %v13787_v26, %v18796_v13  ;;  %v8973_v5 = vpop.xlane.xlu0 %8972 }
 0x95e   : > { %v13789_v6 = vpop.eup %13788  ;;  %13798 = vrsqrt.f32 %v9081_v50  ;;  %v9082_v42 = vadd.f32 1e-05, %v9050_v16  ;;  %v9051_v38 = vmul.f32 0.03125, %v8973_v5 }
 0x95f   : > { %v9140_v3 = vmul.f32 %v13789_v6, %v18799_v36  ;;  %v8976_v40 = vpop.xlane.xlu1 %8975  ;;  %v9177_v9 = vmul.f32 %v18996_v55, %v9139_v21 }
 0x960   : > { %v13791_v8 = vpop.eup %13790  ;;  %13800 = vrsqrt.f32 %v9082_v42  ;;  %v9083_v62 = vadd.f32 1e-05, %v9051_v38  ;;  %v9052_v30 = vmul.f32 0.03125, %v8976_v40 }
 0x961   : > { %v9141_v13 = vmul.f32 %v13791_v8, %v18804_v54  ;;  %v8979_v52 = vpop.xlane.xlu0 %8978  ;;  %v9178_v53 = vmul.f32 %v18996_v55, %v9140_v3  ;;  %v9215_v6 = vadd.f32 %v19004_v22, %v9177_v9 }
 0x962   : > { %v13793_v26 = vpop.eup %13792  ;;  %13802 = vrsqrt.f32 %v9083_v62  ;;  %v9084_v36 = vadd.f32 1e-05, %v9052_v30  ;;  %v9053_v50 = vmul.f32 0.03125, %v8979_v52 }
 0x963   : > { %v9179_v16 = vmul.f32 %v18996_v55, %v9141_v13  ;;  %v9142_v21 = vmul.f32 %v13793_v26, %v18810_v34  ;;  %v8982_v5 = vpop.xlane.xlu1 %8981  ;;  %v9216_v42 = vadd.f32 %v19004_v22, %v9178_v53 }
 0x964   : > { %v13795_v38 = vpop.eup %13794  ;;  %13804 = vrsqrt.f32 %v9084_v36  ;;  %v9085_v40 = vadd.f32 1e-05, %v9053_v50  ;;  %v9054_v54 = vmul.f32 0.03125, %v8982_v5 }
 0x965   : > { %v9180_v8 = vmul.f32 %v18996_v55, %v9142_v21  ;;  %v9143_v3 = vmul.f32 %v13795_v38, %v18816_v11  ;;  %v9247_v62 = vpack.c.bf16 %v9216_v42, %v9215_v6  ;;  %v9217_v13 = vadd.f32 %v19004_v22, %v9179_v16 }
 0x966   : > { %v13797_v30 = vpop.eup %13796  ;;  %13806 = vrsqrt.f32 %v9085_v40  ;;  %v9086_v52 = vadd.f32 1e-05, %v9054_v54 }
 0x967   : > { %v9218_v34 = vadd.f32 %v19004_v22, %v9180_v8  ;;  %v9144_v9 = vmul.f32 %v13797_v30, %v18822_v2  ;;  %v8985_v26 = vpop.xlane.xlu0 %8984  ;;  %12935 = vmatprep.mubr.msk.bf16.mxu1 %vm592_vm0, %v9247_v62  ;;  %v9181_v53 = vmul.f32 %v18996_v55, %v9143_v3 }
 0x968   : > { %v13799_v36 = vpop.eup %13798  ;;  %13808 = vrsqrt.f32 %v9086_v52  ;;  %v9055_v50 = vmul.f32 0.03125, %v8985_v26 }
 0x969   : > { %v9248_v21 = vpack.c.bf16 %v9218_v34, %v9217_v13  ;;  %v9145_v11 = vmul.f32 %v13799_v36, %v18828_v20  ;;  %v8988_v5 = vpop.xlane.xlu1 %8987  ;;  %v9182_v6 = vmul.f32 %v18996_v55, %v9144_v9  ;;  %v9219_v8 = vadd.f32 %v19004_v22, %v9181_v53 }
 0x96a   : > { %v13801_v42 = vpop.eup %13800  ;;  %v9087_v16 = vadd.f32 1e-05, %v9055_v50  ;;  %v9056_v38 = vmul.f32 0.03125, %v8988_v5 }
 0x96b   : > { %v9183_v40 = vmul.f32 %v18996_v55, %v9145_v11  ;;  %v9146_v2 = vmul.f32 %v13801_v42, %v18834_v58  ;;  %v8991_v54 = vpop.xlane.xlu0 %8990  ;;  %12936 = vmatmul.mubr.msk.bf16.vlgmr.msra.gmra.mrb[96].mxu1 %vm592_vm0, %v9248_v21  ;;  %v9220_v3 = vadd.f32 %v19004_v22, %v9182_v6 }
 0x96c   : > { %v13803_v62 = vpop.eup %13802  ;;  %13810 = vrsqrt.f32 %v9087_v16  ;;  %v9088_v20 = vadd.f32 1e-05, %v9056_v38  ;;  %v9057_v30 = vmul.f32 0.03125, %v8991_v54 }
 0x96d   : > { %v9184_v52 = vmul.f32 %v18996_v55, %v9146_v2  ;;  %v9147_v13 = vmul.f32 %v13803_v62, %v18840_v59  ;;  %v8994_v34 = vpop.xlane.xlu1 %8993  ;;  %v9249_v9 = vpack.c.bf16 %v9220_v3, %v9219_v8  ;;  %v9221_v50 = vadd.f32 %v19004_v22, %v9183_v40 }
 0x96e   : > { %v13805_v26 = vpop.eup %13804  ;;  %13812 = vrsqrt.f32 %v9088_v20  ;;  %v9089_v58 = vadd.f32 1e-05, %v9057_v30  ;;  %v9058_v36 = vmul.f32 0.03125, %v8994_v34 }
 0x96f   : > { %v9222_v53 = vadd.f32 %v19004_v22, %v9184_v52  ;;  %v9148_v21 = vmul.f32 %v13805_v26, %v18846_v19  ;;  %v8997_v11 = vpop.xlane.xlu0 %8996  ;;  %12939 = vmatprep.mubr.msk.bf16.mxu1 %vm592_vm0, %v9249_v9  ;;  %v9185_v5 = vmul.f32 %v18996_v55, %v9147_v13 }
 0x970   : > { %v13807_v6 = vpop.eup %13806  ;;  %13814 = vrsqrt.f32 %v9089_v58  ;;  %v9090_v59 = vadd.f32 1e-05, %v9058_v36  ;;  %v9059_v42 = vmul.f32 0.03125, %v8997_v11 }
 0x971   : > { %v9250_v16 = vpack.c.bf16 %v9222_v53, %v9221_v50  ;;  %v9149_v38 = vmul.f32 %v13807_v6, %v18852_v10  ;;  %v9000_v2 = vpop.xlane.xlu1 %8999  ;;  %v9186_v54 = vmul.f32 %v18996_v55, %v9148_v21  ;;  %v9223_v30 = vadd.f32 %v19004_v22, %v9185_v5 }
 0x972   : > { %v13809_v40 = vpop.eup %13808  ;;  %13816 = vrsqrt.f32 %v9090_v59  ;;  %v9091_v8 = vadd.f32 1e-05, %v9059_v42  ;;  %v9060_v3 = vmul.f32 0.03125, %v9000_v2 }
 0x973   : > { %v9187_v19 = vmul.f32 %v18996_v55, %v9149_v38  ;;  %v9150_v62 = vmul.f32 %v13809_v40, %v18858_v41  ;;  %v9003_v20 = vpop.xlane.xlu0 %9002  ;;  %12940 = vmatmul.mubr.msk.bf16.gmra.mrb[100].mxu1 %vm592_vm0, %v9250_v16  ;;  %v9224_v52 = vadd.f32 %v19004_v22, %v9186_v54 }
 0x974   : > { %13818 = vrsqrt.f32 %v9091_v8  ;;  %v9092_v10 = vadd.f32 1e-05, %v9060_v3  ;;  %v9061_v13 = vmul.f32 0.03125, %v9003_v20 }
 0x975   : > { %v9188_v34 = vmul.f32 %v18996_v55, %v9150_v62  ;;  %v9006_v9 = vpop.xlane.xlu1 %9005  ;;  %v9251_v26 = vpack.c.bf16 %v9224_v52, %v9223_v30  ;;  %v9225_v41 = vadd.f32 %v19004_v22, %v9187_v19 }
 0x976   : > { %v13811_v58 = vpop.eup %13810  ;;  %13820 = vrsqrt.f32 %v9092_v10  ;;  %v9093_v36 = vadd.f32 1e-05, %v9061_v13  ;;  %v9062_v50 = vmul.f32 0.03125, %v9006_v9 }
 0x977   : > { %v9226_v53 = vadd.f32 %v19004_v22, %v9188_v34  ;;  %v9151_v21 = vmul.f32 %v13811_v58, %v18867_v51  ;;  %v9009_v11 = vpop.xlane.xlu0 %9008  ;;  %12943 = vmatprep.mubr.msk.bf16.mxu1 %vm592_vm0, %v9251_v26 }
 0x978   : > { %v13813_v5 = vpop.eup %13812  ;;  %13822 = vrsqrt.f32 %v9093_v36  ;;  %v9094_v6 = vadd.f32 1e-05, %v9062_v50  ;;  %v9063_v59 = vmul.f32 0.03125, %v9009_v11 }
 0x979   : > { %v9252_v42 = vpack.c.bf16 %v9226_v53, %v9225_v41  ;;  %v9152_v16 = vmul.f32 %v13813_v5, %v18871_v1  ;;  %v9012_v38 = vpop.xlane.xlu1 %9011  ;;  %v9189_v2 = vmul.f32 %v18996_v55, %v9151_v21 }
 0x97a   : > { %v13815_v54 = vpop.eup %13814  ;;  %13824 = vrsqrt.f32 %v9094_v6  ;;  %v9095_v40 = vadd.f32 1e-05, %v9063_v59  ;;  %v9064_v8 = vmul.f32 0.03125, %v9012_v38 }
 0x97b   : > { %v9153_v3 = vmul.f32 %v13815_v54, %v18876_v35  ;;  %v9015_v51 = vpop.xlane.xlu0 %9014  ;;  %12944 = vmatmul.mubr.msk.bf16.gmra.mrb[104].mxu1 %vm592_vm0, %v9252_v42  ;;  %v9190_v19 = vmul.f32 %v18996_v55, %v9152_v16  ;;  %v9227_v13 = vadd.f32 %v19004_v22, %v9189_v2 }
 0x97c   : > { %v13817_v62 = vpop.eup %13816  ;;  %13826 = vrsqrt.f32 %v9095_v40  ;;  %v9096_v20 = vadd.f32 1e-05, %v9064_v8  ;;  %v9065_v30 = vmul.f32 0.03125, %v9015_v51 }
 0x97d   : > { %v9191_v1 = vmul.f32 %v18996_v55, %v9153_v3  ;;  %v9154_v52 = vmul.f32 %v13817_v62, %v18882_v0  ;;  %v9018_v10 = vpop.xlane.xlu1 %9017  ;;  %v9228_v34 = vadd.f32 %v19004_v22, %v9190_v19 }
 0x97e   : > { %v13819_v9 = vpop.eup %13818  ;;  %13828 = vrsqrt.f32 %v9096_v20  ;;  %v9097_v35 = vadd.f32 1e-05, %v9065_v30  ;;  %v9066_v26 = vmul.f32 0.03125, %v9018_v10 }
 0x97f   : > { %v9192_v58 = vmul.f32 %v18996_v55, %v9154_v52  ;;  %v9155_v36 = vmul.f32 %v13819_v9, %v18888_v43  ;;  %v9021_v50 = vpop.xlane.xlu0 %9020  ;;  %v9253_v41 = vpack.c.bf16 %v9228_v34, %v9227_v13  ;;  %v9229_v0 = vadd.f32 %v19004_v22, %v9191_v1 }
 0x980   : > { %v13821_v53 = vpop.eup %13820  ;;  %13830 = vrsqrt.f32 %v9097_v35  ;;  %v9098_v21 = vadd.f32 1e-05, %v9066_v26  ;;  %v9067_v11 = vmul.f32 0.03125, %v9021_v50 }
 0x981   : > { %v9230_v5 = vadd.f32 %v19004_v22, %v9192_v58  ;;  %v9156_v6 = vmul.f32 %v13821_v53, %v18894_v49  ;;  %12947 = vmatprep.mubr.msk.bf16.mxu1 %vm592_vm0, %v9253_v41  ;;  %v9024_v59 = vpop.xlane.xlu1 %9023  ;;  %v9193_v42 = vmul.f32 %v18996_v55, %v9155_v36 }
 0x982   : > { %v13823_v16 = vpop.eup %13822  ;;  %13832 = vrsqrt.f32 %v9098_v21  ;;  %v9099_v43 = vadd.f32 1e-05, %v9067_v11  ;;  %v9068_v38 = vmul.f32 0.03125, %v9024_v59 }
 0x983   : > { %v9254_v2 = vpack.c.bf16 %v9230_v5, %v9229_v0  ;;  %v9157_v54 = vmul.f32 %v13823_v16, %v18900_v48  ;;  %v9027_v40 = vpop.xlane.xlu0 %9026  ;;  %v9194_v8 = vmul.f32 %v18996_v55, %v9156_v6  ;;  %v9231_v30 = vadd.f32 %v19004_v22, %v9193_v42 }
 0x984   : > { %v13825_v3 = vpop.eup %13824  ;;  %13834 = vrsqrt.f32 %v9099_v43  ;;  %v9100_v51 = vadd.f32 1e-05, %v9068_v38  ;;  %v9069_v19 = vmul.f32 0.03125, %v9027_v40 }
 0x985   : > { %v9195_v49 = vmul.f32 %v18996_v55, %v9157_v54  ;;  %v9158_v62 = vmul.f32 %v13825_v3, %v18906_v44  ;;  %12948 = vmatmul.mubr.msk.bf16.gmra.mrb[108].mxu1 %vm592_vm0, %v9254_v2  ;;  %v9030_v20 = vpop.xlane.xlu1 %9029  ;;  %v9232_v1 = vadd.f32 %v19004_v22, %v9194_v8 }
 0x986   : > { %v13827_v52 = vpop.eup %13826  ;;  %13836 = vrsqrt.f32 %v9100_v51  ;;  %v9101_v48 = vadd.f32 1e-05, %v9069_v19  ;;  %v9070_v10 = vmul.f32 0.03125, %v9030_v20 }
 0x987   : > { %v9196_v13 = vmul.f32 %v18996_v55, %v9158_v62  ;;  %v9159_v34 = vmul.f32 %v13827_v52, %v18912_v15  ;;  %v9033_v9 = vpop.xlane.xlu0 %9032  ;;  %v9255_v35 = vpack.c.bf16 %v9232_v1, %v9231_v30  ;;  %v9233_v36 = vadd.f32 %v19004_v22, %v9195_v49 }
 0x988   : > { %v13829_v26 = vpop.eup %13828  ;;  %13838 = vrsqrt.f32 %v9101_v48  ;;  %v9102_v44 = vadd.f32 1e-05, %v9070_v10  ;;  %v9071_v58 = vmul.f32 0.03125, %v9033_v9 }
 0x989   : > { %v9234_v50 = vadd.f32 %v19004_v22, %v9196_v13  ;;  %v9160_v41 = vmul.f32 %v13829_v26, %v18921_v23  ;;  %12951 = vmatprep.mubr.msk.bf16.mxu1 %vm592_vm0, %v9255_v35  ;;  %v9036_v53 = vpop.xlane.xlu1 %9035  ;;  %v9197_v21 = vmul.f32 %v18996_v55, %v9159_v34 }
 0x98a   : > { %v13831_v11 = vpop.eup %13830  ;;  %13840 = vrsqrt.f32 %v9102_v44  ;;  %v9103_v15 = vadd.f32 1e-05, %v9071_v58  ;;  %v9072_v0 = vmul.f32 0.03125, %v9036_v53 }
 0x98b   : > { %v9256_v5 = vpack.c.bf16 %v9234_v50, %v9233_v36  ;;  %v9161_v6 = vmul.f32 %v13831_v11, %v18927_v47  ;;  %v9039_v59 = vpop.xlane.xlu0 %9038  ;;  %v9198_v42 = vmul.f32 %v18996_v55, %v9160_v41  ;;  %v9235_v40 = vadd.f32 %v19004_v22, %v9197_v21 }
 0x98c   : > { %v13833_v16 = vpop.eup %13832  ;;  %13842 = vrsqrt.f32 %v9103_v15  ;;  %v9104_v43 = vadd.f32 1e-05, %v9072_v0  ;;  %v9073_v38 = vmul.f32 0.03125, %v9039_v59 }
 0x98d   : > { %v9199_v23 = vmul.f32 %v18996_v55, %v9161_v6  ;;  %v9162_v2 = vmul.f32 %v13833_v16, %v18936_v4  ;;  %12952 = vmatmul.mubr.msk.bf16.gmra.mrb[112].mxu1 %vm592_vm0, %v9256_v5  ;;  %v9042_v54 = vpop.xlane.xlu1 %9041  ;;  %v9236_v8 = vadd.f32 %v19004_v22, %v9198_v42 }
 0x98e   : > { %v13835_v3 = vpop.eup %13834  ;;  %13844 = vrsqrt.f32 %v9104_v43  ;;  %v9105_v47 = vadd.f32 1e-05, %v9073_v38  ;;  %v9074_v51 = vmul.f32 0.03125, %v9042_v54  ;;  %v19124_v54 = vld [vmem:[%s20060_s14] ss:$0 sm:$0xff] }
 0x98f   : > { %v9200_v19 = vmul.f32 %v18996_v55, %v9162_v2  ;;  %v9163_v49 = vmul.f32 %v13835_v3, %v18942_v25  ;;  %v9257_v62 = vpack.c.bf16 %v9236_v8, %v9235_v40  ;;  %v9237_v4 = vadd.f32 %v19004_v22, %v9199_v23 }
 0x990   : > { %v13837_v20 = vpop.eup %13836  ;;  %13846 = vrsqrt.f32 %v9105_v47  ;;  %v9106_v30 = vadd.f32 1e-05, %v9074_v51 }
 0x991   : > { %v9238_v1 = vadd.f32 %v19004_v22, %v9200_v19  ;;  %v9164_v52 = vmul.f32 %v13837_v20, %v18948_v12  ;;  %12955 = vmatprep.mubr.msk.bf16.mxu1 %vm592_vm0, %v9257_v62  ;;  %v9201_v48 = vmul.f32 %v18996_v55, %v9163_v49 }
 0x992   : > { %v13839_v10 = vpop.eup %13838  ;;  %13848 = vrsqrt.f32 %v9106_v30 }
 0x993   : > { %v9258_v13 = vpack.c.bf16 %v9238_v1, %v9237_v4  ;;  %v9165_v34 = vmul.f32 %v13839_v10, %v18954_v32  ;;  %v9202_v25 = vmul.f32 %v18996_v55, %v9164_v52  ;;  %v9239_v12 = vadd.f32 %v19004_v22, %v9201_v48 }
 0x994   : > { %v13841_v9 = vpop.eup %13840 }
 0x995   : > { %v9203_v35 = vmul.f32 %v18996_v55, %v9165_v34  ;;  %v9166_v26 = vmul.f32 %v13841_v9, %v18960_v60  ;;  %12956 = vmatmul.mubr.msk.bf16.gmra.mrb[116].mxu1 %vm592_vm0, %v9258_v13  ;;  %v9240_v44 = vadd.f32 %v19004_v22, %v9202_v25 }
 0x996   : > { %v13843_v58 = vpop.eup %13842 }
 0x997   : > { %v9204_v36 = vmul.f32 %v18996_v55, %v9166_v26  ;;  %v9167_v50 = vmul.f32 %v13843_v58, %v18966_v63  ;;  %v9259_v41 = vpack.c.bf16 %v9240_v44, %v9239_v12  ;;  %v9241_v53 = vadd.f32 %v19004_v22, %v9203_v35 }
 0x998   : > { %v13845_v32 = vpop.eup %13844 }
 0x999   : > { %v9242_v21 = vadd.f32 %v19004_v22, %v9204_v36  ;;  %v9168_v11 = vmul.f32 %v13845_v32, %v18972_v14  ;;  %12959 = vmatprep.mubr.msk.bf16.mxu1 %vm592_vm0, %v9259_v41  ;;  %v9205_v60 = vmul.f32 %v18996_v55, %v9167_v50 }
 0x99a   : > { %v13847_v15 = vpop.eup %13846 }
 0x99b   : > { %v9260_v0 = vpack.c.bf16 %v9242_v21, %v9241_v53  ;;  %v9169_v5 = vmul.f32 %v13847_v15, %v18978_v28  ;;  %v9206_v6 = vmul.f32 %v18996_v55, %v9168_v11  ;;  %v9243_v16 = vadd.f32 %v19004_v22, %v9205_v60  ;;  %v13208_v21 = vld [vmem:[%s20061_s15 + $0x10] sm:$0xff]  }
 0x99c   : > { %v13849_v59 = vpop.eup %13848 }
 0x99d   : > { %v9207_v63 = vmul.f32 %v18996_v55, %v9169_v5  ;;  %v9170_v42 = vmul.f32 %v13849_v59, %v18984_v37  ;;  %12960 = vmatmul.mubr.msk.bf16.gmra.mrb[120].mxu1 %vm592_vm0, %v9260_v0  ;;  %v9244_v14 = vadd.f32 %v19004_v22, %v9206_v6  ;;  %v13206_v37 = vld [vmem:[%s20061_s15] sm:$0xff]  }
 0x99e   : > { %12967 = vmatprep.subr.bf16.mxu1 %v13206_v37 }
 0x99f   : > { %v9208_v43 = vmul.f32 %v18996_v55, %v9170_v42  ;;  %v9261_v38 = vpack.c.bf16 %v9244_v14, %v9243_v16  ;;  %v9245_v23 = vadd.f32 %v19004_v22, %v9207_v63  ;;  %12968 = vmatpush3.bf16.msra.mxu1 %v13206_v37  ;;  %v13207_v55 = vld [vmem:[%s20061_s15 + $0x8] sm:$0xff]  }
 0x9a0   : > { %12969 = vmatprep.subr.bf16.mxu1 %v13207_v55 }
 0x9a1   : > { %v9246_v28 = vadd.f32 %v19004_v22, %v9208_v43  ;;  %12963 = vmatprep.mubr.msk.bf16.mxu1 %vm592_vm0, %v9261_v38 }
 0x9a3   : > { %v9262_v2 = vpack.c.bf16 %v9246_v28, %v9245_v23  ;;  %12970 = vmatpush3.bf16.msra.mxu1 %v13207_v55  ;;  %v20354_v55 = vmov -1.0  }
 0x9a4   : > { %12971 = vmatprep.subr.bf16.mxu1 %v13208_v21 }
 0x9a5   : > { %12964 = vmatmul.mubr.msk.bf16.gmra.mrb[124].mxu1 %vm592_vm0, %v9262_v2 }
 0x9a7   : > { %12972 = vmatpush3.bf16.msra.mxu1 %v13208_v21 }
 0xa3e   : > { %v12937_v22 = vpop.f32.mrb[96].mxu1 }
 0xa3f   : > { %v9377_v40 = vadd.f32 %v12937_v22, %v19124_v54  ;;  %v9368_v8 = vpop.f32.mrb[97].mxu1 }
 0xa40   : > { %v9369_v3 = vadd.f32 %v19124_v54, %v9368_v8  ;;  %v12938_v47 = vpop.f32.mrb[98].mxu1 }
 0xa41   : > { %v9529_v51 = vmul.f32 0.70710677, %v9377_v40  ;;  %v9380_v19 = vadd.f32 %v12938_v47, %v19124_v54  ;;  %v9371_v49 = vpop.f32.mrb[99].mxu1  ;;  %v19133_v41 = vmul.f32 0.5, %v9377_v40 }
 0xa42   : > { %v9527_v62 = vmul.f32 0.70710677, %v9369_v3  ;;  %v9372_v4 = vadd.f32 %v19124_v54, %v9371_v49  ;;  %v19138_v11 = vmul.f32 0.5, %v9369_v3 }
 0xa43   : > { %v9625_v20 = vand.u32 2147483647, %v9529_v51  ;;  %v9530_v30 = vmul.f32 0.70710677, %v9380_v19  ;;  %vm9561_vm4 = vcmp.ge.f32.partialorder %v9529_v51, 0.0  ;;  %v19146_v0 = vmul.f32 0.5, %v9380_v19 }
 0xa44   : > { %v9623_v1 = vand.u32 2147483647, %v9527_v62  ;;  %v19130_v25 = vmul.f32 0.70710677, %v9372_v4  ;;  %vm9559_vm5 = vcmp.ge.f32.partialorder %v9527_v62, 0.0  ;;  %v19169_v22 = vsel %vm9561_vm4, 1.0, %v20354_v55 }
 0xa45   : > { %v9657_v52 = vmul.f32 0.3275911, %v9625_v20  ;;  %v9626_v10 = vand.u32 2147483647, %v9530_v30  ;;  %v10073_v34 = vsub.f32 0.0, %v9625_v20  ;;  %vm9562_vm6 = vcmp.ge.f32.partialorder %v9530_v30, 0.0 }
 0xa46   : > { %v9655_v48 = vmul.f32 0.3275911, %v9623_v1  ;;  %v12941_v9 = vpop.f32.mrb[100].mxu1  ;;  %v9624_v44 = vand.u32 2147483647, %v19130_v25  ;;  %v10071_v59 = vsub.f32 0.0, %v9623_v1 }
 0xa47   : > { %v9689_v13 = vadd.f32 1.0, %v9657_v52  ;;  %v9658_v26 = vmul.f32 0.3275911, %v9626_v10  ;;  %v9384_v12 = vpop.f32.mrb[101].mxu1  ;;  %v10105_v32 = vmul.f32 %v10073_v34, %v9625_v20  ;;  %v19141_v60 = vadd.f32 %v12941_v9, %v19124_v54 }
 0xa48   : > { %v9687_v35 = vadd.f32 1.0, %v9655_v48  ;;  %v12942_v58 = vpop.f32.mrb[102].mxu1  ;;  %v9656_v53 = vmul.f32 0.3275911, %v9624_v44  ;;  %v19144_v15 = vadd.f32 %v19124_v54, %v9384_v12  ;;  %v10074_v63 = vsub.f32 0.0, %v9626_v10 }
 0xa49   : > { %13850 = vrcp.f32 %v9689_v13  ;;  %v9690_v36 = vadd.f32 1.0, %v9658_v26  ;;  %v9387_v50 = vpop.f32.mrb[103].mxu1  ;;  %v19149_v6 = vadd.f32 %v12942_v58, %v19124_v54  ;;  %v19152_v42 = vmul.f32 0.70710677, %v19141_v60 }
 0xa4a   : > { %13852 = vrcp.f32 %v9687_v35  ;;  %v9688_v5 = vadd.f32 1.0, %v9656_v53  ;;  %v10139_v14 = vmul.f32 1.442695, %v10105_v32  ;;  %v19157_v43 = vmul.f32 0.70710677, %v19144_v15 }
 0xa4b   : > { %13854 = vrcp.f32 %v9690_v36  ;;  %v10072_v23 = vsub.f32 0.0, %v9624_v44  ;;  %v9629_v28 = vand.u32 2147483647, %v19152_v42  ;;  %v19163_v2 = vmul.f32 0.70710677, %v19149_v6 }
 0xa4c   : > { %13856 = vrcp.f32 %v9688_v5  ;;  %v19173_v40 = vsel %vm9559_vm5, 1.0, %v20354_v55  ;;  %v19175_v8 = vmul.f32 0.5, %v9372_v4  ;;  %v9627_v3 = vand.u32 2147483647, %v19157_v43 }
 0xa4d   : > { %v10103_v19 = vmul.f32 %v10071_v59, %v9623_v1  ;;  %v19181_v49 = vsel %vm9562_vm6, 1.0, %v20354_v55  ;;  %v10106_v20 = vmul.f32 %v10074_v63, %v9626_v10  ;;  %v9661_v30 = vmul.f32 0.3275911, %v9629_v28 }
 0xa4e   : > { %v19154_v16 = vpop.f32.mrb[104].mxu1  ;;  %13858 = vpow2.f32 %v10139_v14  ;;  %v10077_v51 = vsub.f32 0.0, %v9629_v28  ;;  %v9659_v48 = vmul.f32 0.3275911, %v9627_v3  ;;  %v9630_v62 = vand.u32 2147483647, %v19163_v2 }
 0xa4f   : > { %v19159_v38 = vpop.f32.mrb[105].mxu1  ;;  %v10104_v34 = vmul.f32 %v10072_v23, %v9624_v44  ;;  %v9693_v9 = vadd.f32 1.0, %v9661_v30  ;;  %v10075_v35 = vsub.f32 0.0, %v9627_v3  ;;  %v19191_v10 = vadd.f32 %v19124_v54, %v9387_v50 }
 0xa50   : > { %v19165_v37 = vpop.f32.mrb[106].mxu1  ;;  %v9691_v26 = vadd.f32 1.0, %v9659_v48  ;;  %v9662_v12 = vmul.f32 0.3275911, %v9630_v62  ;;  %v10135_v36 = vmul.f32 1.442695, %v10103_v19  ;;  %v10109_v21 = vmul.f32 %v10077_v51, %v9629_v28 }
 0xa51   : > { %v19178_v47 = vpop.f32.mrb[107].mxu1  ;;  %vm9560_vm7 = vcmp.ge.f32.partialorder %v19130_v25, 0.0  ;;  %13860 = vrcp.f32 %v9693_v9  ;;  %v10141_v63 = vmul.f32 1.442695, %v10106_v20  ;;  %v10107_v14 = vmul.f32 %v10075_v35, %v9627_v3 }
 0xa52   : > { %13862 = vrcp.f32 %v9691_v26  ;;  %v9694_v44 = vadd.f32 1.0, %v9662_v12  ;;  %v10137_v30 = vmul.f32 1.442695, %v10104_v34  ;;  %v10078_v48 = vsub.f32 0.0, %v9630_v62 }
 0xa53   : > { %v19183_v52 = vpop.eup %13850  ;;  %v19212_v3 = vsel %vm9560_vm7, 1.0, %v20354_v55  ;;  %v10147_v35 = vmul.f32 1.442695, %v10109_v21  ;;  %vm9565_vm8 = vcmp.ge.f32.partialorder %v19152_v42, 0.0  ;;  %vm9566_vm9 = vcmp.ge.f32.partialorder %v19163_v2, 0.0 }
 0xa54   : > { %v19186_v13 = vpop.eup %13852  ;;  %v9785_v4 = vmul.f32 1.0614054, %v19183_v52  ;;  %13864 = vrcp.f32 %v9694_v44  ;;  %v10110_v44 = vmul.f32 %v10078_v48, %v9630_v62  ;;  %v9501_v42 = vmul.f32 0.5, %v19141_v60 }
 0xa55   : > { %v9783_v1 = vmul.f32 1.0614054, %v19186_v13  ;;  %v19194_v32 = vpop.eup %13854  ;;  %13866 = vpow2.f32 %v10135_v36  ;;  %vm9563_vm10 = vcmp.ge.f32.partialorder %v19157_v43, 0.0  ;;  %v19355_v2 = vadd.f32 %v19124_v54, %v19178_v47 }
 0xa56   : > { %v9817_v58 = vadd.f32 -1.4531521, %v9785_v4  ;;  %v9786_v59 = vmul.f32 1.0614054, %v19194_v32  ;;  %v19200_v50 = vpop.eup %13856  ;;  %v19204_v4 = vmul.f32 0.70710677, %v19191_v10  ;;  %13868 = vpow2.f32 %v10141_v63 }
 0xa57   : > { %v9815_v53 = vadd.f32 -1.4531521, %v9783_v1  ;;  %v9784_v1 = vmul.f32 1.0614054, %v19200_v50  ;;  %13870 = vpow2.f32 %v10137_v30 }
 0xa58   : > { %v9849_v5 = vmul.f32 %v19183_v52, %v9817_v58  ;;  %v19198_v23 = vpop.f32.mrb[108].mxu1  ;;  %v9818_v9 = vadd.f32 -1.4531521, %v9786_v59  ;;  %v10143_v58 = vmul.f32 1.442695, %v10107_v14  ;;  %13872 = vpow2.f32 %v10147_v35 }
 0xa59   : > { %v9847_v19 = vmul.f32 %v19186_v13, %v9815_v53  ;;  %v19206_v28 = vpop.f32.mrb[109].mxu1  ;;  %v9816_v12 = vadd.f32 -1.4531521, %v9784_v1  ;;  %v19220_v36 = vand.u32 2147483647, %v19204_v4  ;;  %v19228_v1 = vadd.f32 %v19154_v16, %v19124_v54 }
 0xa5a   : > { %v9881_v51 = vadd.f32 1.4214138, %v9849_v5  ;;  %v9850_v26 = vmul.f32 %v19194_v32, %v9818_v9  ;;  %v19216_v53 = vpop.f32.mrb[110].mxu1  ;;  %v13859_v5 = vpop.eup %13858  ;;  %13874 = vpow2.f32 %v10143_v58  ;;  %vm9564_vm11 = vcmp.ge.f32.partialorder %v19204_v4, 0.0 }
 0xa5b   : > { %v9879_v20 = vadd.f32 1.4214138, %v9847_v19  ;;  %v19222_v25 = vpop.f32.mrb[111].mxu1  ;;  %v9660_v14 = vmul.f32 0.3275911, %v19220_v36  ;;  %v19230_v63 = vpop.eup %13860  ;;  %v10076_v17 = vsub.f32 0.0, %v19220_v36 }
 0xa5c   : > { %v9913_v34 = vmul.f32 %v19183_v52, %v9881_v51  ;;  %v9882_v21 = vadd.f32 1.4214138, %v9850_v26  ;;  %v9848_v51 = vmul.f32 %v19200_v50, %v9816_v12  ;;  %v19236_v26 = vpop.eup %13862  ;;  %v9789_v35 = vmul.f32 1.0614054, %v19230_v63 }
 0xa5d   : > { %v9911_v59 = vmul.f32 %v19186_v13, %v9879_v20  ;;  %v10149_v12 = vmul.f32 1.442695, %v10110_v44  ;;  %v19245_v24 = vmul.f32 0.70710677, %v19228_v1 }
 0xa5e   : > { %v9945_v19 = vadd.f32 -0.28449672, %v9913_v34  ;;  %v9914_v48 = vmul.f32 %v19194_v32, %v9882_v21  ;;  %v9880_v20 = vadd.f32 1.4214138, %v9848_v51  ;;  %v9787_v21 = vmul.f32 1.0614054, %v19236_v26  ;;  %v19247_v39 = vpop.eup %13864 }
 0xa5f   : > { %v9943_v9 = vadd.f32 -0.28449672, %v9911_v59  ;;  %v9692_v59 = vadd.f32 1.0, %v9660_v14  ;;  %v9821_v58 = vadd.f32 -1.4531521, %v9789_v35  ;;  %vm9569_vm12 = vcmp.ge.f32.partialorder %v19245_v24, 0.0 }
 0xa60   : > { %v9977_v62 = vmul.f32 %v19183_v52, %v9945_v19  ;;  %v19234_v34 = vpop.f32.mrb[112].mxu1  ;;  %v9946_v31 = vadd.f32 -0.28449672, %v9914_v48  ;;  %v9912_v19 = vmul.f32 %v19200_v50, %v9880_v20  ;;  %v9819_v45 = vadd.f32 -1.4531521, %v9787_v21  ;;  %v13209_v48 = vld [vmem:[%s20061_s15 + $0x18] sm:$0xff]   ;;  %v13867_v20 = vpop.eup %13866 }
 0xa61   : > { %v9975_v30 = vmul.f32 %v19186_v13, %v9943_v9  ;;  %v19240_v16 = vpop.f32.mrb[113].mxu1  ;;  %13876 = vrcp.f32 %v9692_v59  ;;  %v9853_v35 = vmul.f32 %v19230_v63, %v9821_v58  ;;  %v9790_v59 = vmul.f32 1.0614054, %v19247_v39  ;;  %12973 = vmatprep.subr.bf16.mxu1 %v13209_v48  ;;  %v13869_v18 = vpop.eup %13868 }
 0xa62   : > { %v10009_v55 = vadd.f32 0.2548296, %v9977_v62  ;;  %v9978_v44 = vmul.f32 %v19194_v32, %v9946_v31  ;;  %v9944_v14 = vadd.f32 -0.28449672, %v9912_v19  ;;  %v19251_v62 = vpop.f32.mrb[114].mxu1  ;;  %v9851_v21 = vmul.f32 %v19236_v26, %v9819_v45  ;;  %12974 = vmatpush3.bf16.msra.mxu1 %v13209_v48 }
 0xa63   : > { %v10007_v51 = vadd.f32 0.2548296, %v9975_v30  ;;  %v9885_v57 = vadd.f32 1.4214138, %v9853_v35  ;;  %v9822_v61 = vadd.f32 -1.4531521, %v9790_v59  ;;  %13878 = vpow2.f32 %v10149_v12 }
 0xa64   : > { %v10041_v9 = vmul.f32 %v19183_v52, %v10009_v55  ;;  %v19260_v55 = vpop.f32.mrb[115].mxu1  ;;  %v10010_v52 = vadd.f32 0.2548296, %v9978_v44  ;;  %v9976_v19 = vmul.f32 %v19200_v50, %v9944_v14 }
 0xa65   : > { %v10039_v30 = vmul.f32 %v19186_v13, %v10007_v51  ;;  %v19265_v13 = vand.u32 2147483647, %v19245_v24  ;;  %v13871_v51 = vpop.eup %13870  ;;  %v9917_v45 = vmul.f32 %v19230_v63, %v9885_v57  ;;  %v19410_v24 = vadd.f32 %v19216_v53, %v19124_v54 }
 0xa66   : > { %v10201_v31 = vmul.f32 %v13859_v5, %v10041_v9  ;;  %v10042_v46 = vmul.f32 %v19194_v32, %v10010_v52  ;;  %v10008_v27 = vadd.f32 0.2548296, %v9976_v19  ;;  %v9883_v5 = vadd.f32 1.4214138, %v9851_v21  ;;  %v13873_v44 = vpop.eup %13872 }
 0xa67   : > { %v10199_v33 = vmul.f32 %v13867_v20, %v10039_v30  ;;  %v9854_v20 = vmul.f32 %v19247_v39, %v9822_v61  ;;  %v9665_v30 = vmul.f32 0.3275911, %v19265_v13  ;;  %v13875_v59 = vpop.eup %13874  ;;  %v19423_v53 = vmul.f32 0.70710677, %v19410_v24 }
 0xa68   : > { %v10233_v58 = vsub.f32 1.0, %v10201_v31  ;;  %v19268_v9 = vpop.f32.mrb[116].mxu1  ;;  %v10202_v31 = vmul.f32 %v13869_v18, %v10042_v46  ;;  %v10040_v32 = vmul.f32 %v19200_v50, %v10008_v27  ;;  %v9915_v52 = vmul.f32 %v19236_v26, %v9883_v5 }
 0xa69   : > { %v10231_v14 = vsub.f32 1.0, %v10199_v33  ;;  %v19273_v35 = vpop.f32.mrb[117].mxu1  ;;  %v9949_v33 = vadd.f32 -0.28449672, %v9917_v45  ;;  %v9886_v57 = vadd.f32 1.4214138, %v9854_v20  ;;  %v10108_v50 = vmul.f32 %v10076_v17, %v19220_v36 }
 0xa6a   : > { %v10265_v48 = vmul.f32 %v10233_v58, %v19169_v22  ;;  %v19279_v19 = vpop.f32.mrb[118].mxu1  ;;  %v9697_v61 = vadd.f32 1.0, %v9665_v30  ;;  %v10234_v7 = vsub.f32 1.0, %v10202_v31  ;;  %v10200_v56 = vmul.f32 %v13871_v51, %v10040_v32 }
 0xa6b   : > { %v19281_v21 = vpop.f32.mrb[119].mxu1  ;;  %v10263_v29 = vmul.f32 %v10231_v14, %v19173_v40  ;;  %v9947_v22 = vadd.f32 -0.28449672, %v9915_v52  ;;  %v19284_v46 = vpop.eup %13876  ;;  %v9981_v27 = vmul.f32 %v19230_v63, %v9949_v33  ;;  %v9918_v18 = vmul.f32 %v19247_v39, %v9886_v57 }
 0xa6c   : > { %13880 = vrcp.f32 %v9697_v61  ;;  %v10297_v58 = vadd.f32 1.0, %v10265_v48  ;;  %v10266_v12 = vmul.f32 %v10234_v7, %v19181_v49  ;;  %v10232_v5 = vsub.f32 1.0, %v10200_v56 }
 0xa6d   : > { %v9979_v45 = vmul.f32 %v19236_v26, %v9947_v22  ;;  %v10013_v20 = vadd.f32 0.2548296, %v9981_v27  ;;  %v9950_v40 = vadd.f32 -0.28449672, %v9918_v18  ;;  %v9788_v51 = vmul.f32 1.0614054, %v19284_v46 }
 0xa6e   : > { %v19294_v14 = vadd.f32 %v19124_v54, %v19159_v38  ;;  %v10295_v30 = vadd.f32 1.0, %v10263_v29  ;;  %v10298_v31 = vadd.f32 1.0, %v10266_v12  ;;  %v10264_v32 = vmul.f32 %v10232_v5, %v19212_v3 }
 0xa6f   : > { %v10011_v17 = vadd.f32 0.2548296, %v9979_v45  ;;  %v10045_v7 = vmul.f32 %v19230_v63, %v10013_v20  ;;  %v9982_v56 = vmul.f32 %v19247_v39, %v9950_v40  ;;  %v9820_v49 = vadd.f32 -1.4531521, %v9788_v51 }
 0xa70   : > { %v19297_v36 = vpop.f32.mrb[120].mxu1  ;;  %v10145_v48 = vmul.f32 1.442695, %v10108_v50  ;;  %v10329_v33 = vmul.f32 %v10297_v58, %v19133_v41  ;;  %v10330_v38 = vmul.f32 %v10298_v31, %v19146_v0  ;;  %v10296_v57 = vadd.f32 1.0, %v10264_v32  ;;  %v13879_v0 = vpop.eup %13878 }
 0xa71   : > { %v19301_v52 = vpop.f32.mrb[121].mxu1  ;;  %v10043_v29 = vmul.f32 %v19236_v26, %v10011_v17  ;;  %v10205_v3 = vmul.f32 %v13873_v44, %v10045_v7  ;;  %v10014_v22 = vadd.f32 0.2548296, %v9982_v56  ;;  %v9852_v27 = vmul.f32 %v19284_v46, %v9820_v49 }
 0xa72   : > { %v19306_v61 = vpop.f32.mrb[122].mxu1  ;;  %v19310_v63 = vmul.f32 0.70710677, %v19294_v14  ;;  %v10327_v50 = vmul.f32 %v10295_v30, %v19138_v11  ;;  %v10360_v12 = vpack.c.bf16 %v10330_v38, %v10329_v33  ;;  %v10328_v41 = vmul.f32 %v10296_v57, %v19175_v8 }
 0xa73   : > { %v19312_v18 = vpop.f32.mrb[123].mxu1  ;;  %v21049_v58 = vmov -1.0   ;;  %v10237_v5 = vsub.f32 1.0, %v10205_v3  ;;  %v10046_v44 = vmul.f32 %v19247_v39, %v10014_v22  ;;  %v9884_v45 = vadd.f32 1.4214138, %v9852_v27 }
 0xa74   : > { %v9597_v26 = vsel %vm9565_vm8, 1.0, %v21049_v58  ;;  %v10359_v20 = vpack.c.bf16 %v10328_v41, %v10327_v50  ;;  %v10203_v40 = vmul.f32 %v13875_v59, %v10043_v29  ;;  %13882 = vpow2.f32 %v10145_v48 }
 0xa75   : > { %v10269_v11 = vmul.f32 %v10237_v5, %v9597_v26  ;;  %v10206_v30 = vmul.f32 %v13879_v0, %v10046_v44  ;;  %v9916_v8 = vmul.f32 %v19284_v46, %v9884_v45  ;;  %v19325_v31 = vand.u32 2147483647, %v19310_v63 }
 0xa76   : > { %v19321_v51 = vpop.eup %13880  ;;  %v19331_v39 = vadd.f32 %v19165_v37, %v19124_v54  ;;  %12975 = vmatprep.mubr.msk.bf16.mxu1 %vm4993_vm2, %v10359_v20  ;;  %v10235_v49 = vsub.f32 1.0, %v10203_v40  ;;  %v9598_v60 = vsel %vm9566_vm9, 1.0, %v21049_v58  ;;  %v10081_v37 = vsub.f32 0.0, %v19265_v13 }
 0xa77   : > { %v9793_v32 = vmul.f32 1.0614054, %v19321_v51  ;;  %v10238_v17 = vsub.f32 1.0, %v10206_v30  ;;  %v9948_v7 = vadd.f32 -0.28449672, %v9916_v8  ;;  %12976 = vmatmul.mubr.msk.bf16.vlgmr.msra.gmra.mrb[128].mxu1 %vm4993_vm2, %v10360_v12  ;;  %v10301_v38 = vadd.f32 1.0, %v10269_v11 }
 0xa78   : > { %v19334_v59 = vpop.f32.mrb[124].mxu1  ;;  %v9663_v56 = vmul.f32 0.3275911, %v19325_v31  ;;  %v9502_v27 = vmul.f32 0.5, %v19149_v6  ;;  %v19351_v12 = vmul.f32 0.70710677, %v19331_v39  ;;  %v10113_v45 = vmul.f32 %v10081_v37, %v19265_v13 }
 0xa79   : > { %v9825_v48 = vadd.f32 -1.4531521, %v9793_v32  ;;  %v19343_v33 = vpop.f32.mrb[125].mxu1  ;;  %v10270_v57 = vmul.f32 %v10238_v17, %v9598_v60  ;;  %v9980_v29 = vmul.f32 %v19284_v46, %v9948_v7  ;;  %v9595_v41 = vsel %vm9563_vm10, 1.0, %v21049_v58 }
 0xa7a   : > { %v9695_v3 = vadd.f32 1.0, %v9663_v56  ;;  %v19346_v22 = vpop.f32.mrb[126].mxu1  ;;  %v10267_v44 = vmul.f32 %v10235_v49, %v9595_v41  ;;  %v19363_v20 = vmul.f32 %v10301_v38, %v9501_v42  ;;  %v9634_v11 = vand.u32 2147483647, %v19351_v12 }
 0xa7b   : > { %21050 = vst [vmem:[#allocation124_spill] sm:$0xff] %v19346_v22  ;;  %v9857_v50 = vmul.f32 %v19321_v51, %v9825_v48  ;;  %v10302_v0 = vadd.f32 1.0, %v10270_v57  ;;  %v10012_v26 = vadd.f32 0.2548296, %v9980_v29  ;;  %v19360_v5 = vpop.f32.mrb[127].mxu1  ;;  %v19375_v32 = vadd.f32 %v19198_v23, %v19124_v54 }
 0xa7c   : > { %13884 = vrcp.f32 %v9695_v3  ;;  %21051 = vst [vmem:[#allocation71_spill] sm:$0xff] %v19360_v5  ;;  %v19371_v8 = vmul.f32 0.70710677, %v19355_v2  ;;  %v9666_v17 = vmul.f32 0.3275911, %v9634_v11  ;;  %v9499_v49 = vmul.f32 0.5, %v19144_v15 }
 0xa7d   : > { %v9889_v6 = vadd.f32 1.4214138, %v9857_v50  ;;  %v19365_v40 = vmul.f32 %v10302_v0, %v9502_v27  ;;  %v10044_v47 = vmul.f32 %v19284_v46, %v10012_v26  ;;  %v10155_v7 = vmul.f32 1.442695, %v10113_v45 }
 0xa7e   : > { %v13883_v30 = vpop.eup %13882  ;;  %v19381_v56 = vand.u32 2147483647, %v19371_v8  ;;  %v10299_v60 = vadd.f32 1.0, %v10267_v44  ;;  %v9698_v37 = vadd.f32 1.0, %v9666_v17  ;;  %v9596_v23 = vsel %vm9564_vm11, 1.0, %v21049_v58 }
 0xa7f   : > { %v9921_v43 = vmul.f32 %v19321_v51, %v9889_v6  ;;  %v10362_v13 = vpack.c.bf16 %v19365_v40, %v19363_v20  ;;  %v10204_v42 = vmul.f32 %v13883_v30, %v10044_v47  ;;  %v10079_v38 = vsub.f32 0.0, %v19325_v31 }
 0xa80   : > { %v9664_v57 = vmul.f32 0.3275911, %v19381_v56  ;;  %v19388_v4 = vmul.f32 0.70710677, %v19375_v32  ;;  %13886 = vrcp.f32 %v9698_v37  ;;  %v19393_v27 = vadd.f32 %v19124_v54, %v19206_v28 }
 0xa81   : > { %v9953_v46 = vadd.f32 -0.28449672, %v9921_v43  ;;  %v10236_v48 = vsub.f32 1.0, %v10204_v42  ;;  %v9500_v15 = vmul.f32 0.5, %v19191_v10  ;;  %13888 = vpow2.f32 %v10155_v7 }
 0xa82   : > { %v9696_v50 = vadd.f32 1.0, %v9664_v57  ;;  %v10331_v0 = vmul.f32 %v10299_v60, %v9499_v49  ;;  %v9637_v44 = vand.u32 2147483647, %v19388_v4  ;;  %v10111_v45 = vmul.f32 %v10079_v38, %v19325_v31 }
 0xa83   : > { %v10268_v29 = vmul.f32 %v10236_v48, %v9596_v23  ;;  %v9985_v3 = vmul.f32 %v19321_v51, %v9953_v46  ;;  %v10082_v20 = vsub.f32 0.0, %v9634_v11  ;;  %v19403_v10 = vmul.f32 0.70710677, %v19393_v27 }
 0xa84   : > { %13890 = vrcp.f32 %v9696_v50  ;;  %v9669_v47 = vmul.f32 0.3275911, %v9637_v44  ;;  %v19406_v30 = vmul.f32 0.5, %v19228_v1  ;;  %v9601_v17 = vsel %vm9569_vm12, 1.0, %v21049_v58 }
 0xa85   : > { %v10300_v26 = vadd.f32 1.0, %v10268_v29  ;;  %v10017_v40 = vadd.f32 0.2548296, %v9985_v3  ;;  %vm9567_vm13 = vcmp.ge.f32.partialorder %v19310_v63, 0.0  ;;  %v19415_v46 = vmul.f32 0.5, %v19294_v14 }
 0xa86   : > { %v19396_v41 = vpop.eup %13884  ;;  %v9701_v31 = vadd.f32 1.0, %v9669_v47  ;;  %v10151_v49 = vmul.f32 1.442695, %v10111_v45  ;;  %v19419_v1 = vand.u32 2147483647, %v19403_v10  ;;  %v10114_v48 = vmul.f32 %v10082_v20, %v9634_v11 }
 0xa87   : > { %v9791_v6 = vmul.f32 1.0614054, %v19396_v41  ;;  %v10332_v28 = vmul.f32 %v10300_v26, %v9500_v15  ;;  %v10049_v60 = vmul.f32 %v19321_v51, %v10017_v40  ;;  %v19427_v63 = vsel %vm9567_vm13, 1.0, %v21049_v58 }
 0xa88   : > { %13892 = vrcp.f32 %v9701_v31  ;;  %v10080_v37 = vsub.f32 0.0, %v19381_v56  ;;  %v9667_v23 = vmul.f32 0.3275911, %v19419_v1  ;;  %v19435_v51 = vmul.f32 0.5, %v19331_v39 }
 0xa89   : > { %v9823_v43 = vadd.f32 -1.4531521, %v9791_v6  ;;  %v10361_v42 = vpack.c.bf16 %v10332_v28, %v10331_v0  ;;  %vm9570_vm14 = vcmp.ge.f32.partialorder %v19351_v12, 0.0  ;;  %v10085_v11 = vsub.f32 0.0, %v9637_v44 }
 0xa8a   : > { %v19432_v38 = vpop.eup %13886  ;;  %v19439_v57 = vand.u32 2147483647, %v19423_v53  ;;  %v9699_v50 = vadd.f32 1.0, %v9667_v23  ;;  %13894 = vpow2.f32 %v10151_v49  ;;  %v10157_v39 = vmul.f32 1.442695, %v10114_v48 }
 0xa8b   : > { %v9855_v7 = vmul.f32 %v19396_v41, %v9823_v43  ;;  %12979 = vmatprep.mubr.msk.bf16.mxu1 %vm4993_vm2, %v10361_v42  ;;  %v13889_v29 = vpop.eup %13888  ;;  %v9794_v15 = vmul.f32 1.0614054, %v19432_v38  ;;  %v10112_v28 = vmul.f32 %v10080_v37, %v19381_v56  ;;  %v19454_v40 = vsel %vm9570_vm14, 1.0, %v21049_v58 }
 0xa8c   : > { %12980 = vmatmul.mubr.msk.bf16.gmra.mrb[132].mxu1 %vm4993_vm2, %v10362_v13  ;;  %v19445_v13 = vadd.f32 %v19124_v54, %v19222_v25  ;;  %v10209_v0 = vmul.f32 %v13889_v29, %v10049_v60  ;;  %v9670_v26 = vmul.f32 0.3275911, %v19439_v57  ;;  %13896 = vrcp.f32 %v9699_v50 }
 0xa8d   : > { %v9887_v14 = vadd.f32 1.4214138, %v9855_v7  ;;  %v9826_v20 = vadd.f32 -1.4531521, %v9794_v15  ;;  %v19457_v25 = vmul.f32 0.5, %v19355_v2  ;;  %v10117_v7 = vmul.f32 %v10085_v11, %v9637_v44 }
 0xa8e   : > { %v19448_v6 = vpop.eup %13890  ;;  %v9702_v43 = vadd.f32 1.0, %v9670_v26  ;;  %v19463_v49 = vmul.f32 0.70710677, %v19445_v13  ;;  %v10241_v56 = vsub.f32 1.0, %v10209_v0  ;;  %13898 = vpow2.f32 %v10157_v39 }
 0xa8f   : > { %v9919_v3 = vmul.f32 %v19396_v41, %v9887_v14  ;;  %v9792_v47 = vmul.f32 1.0614054, %v19448_v6  ;;  %v9858_v31 = vmul.f32 %v19432_v38, %v9826_v20  ;;  %vm9568_vm15 = vcmp.ge.f32.partialorder %v19371_v8, 0.0 }
 0xa90   : > { %v10153_v2 = vmul.f32 1.442695, %v10112_v28  ;;  %13900 = vrcp.f32 %v9702_v43  ;;  %v10083_v23 = vsub.f32 0.0, %v19419_v1  ;;  %v9636_v44 = vand.u32 2147483647, %v19463_v49 }
 0xa91   : > { %v9951_v45 = vadd.f32 -0.28449672, %v9919_v3  ;;  %v9824_v12 = vadd.f32 -1.4531521, %v9792_v47  ;;  %v9890_v48 = vadd.f32 1.4214138, %v9858_v31  ;;  %v19473_v11 = vadd.f32 %v19234_v34, %v19124_v54 }
 0xa92   : > { %v19466_v14 = vpop.eup %13892  ;;  %v10163_v50 = vmul.f32 1.442695, %v10117_v7  ;;  %v10273_v0 = vmul.f32 %v10241_v56, %v9601_v17  ;;  %v19481_v39 = vsel %vm9568_vm15, 1.0, %v21049_v58  ;;  %13902 = vpow2.f32 %v10153_v2 }
 0xa93   : > { %v9983_v42 = vmul.f32 %v19396_v41, %v9951_v45  ;;  %v9856_v37 = vmul.f32 %v19448_v6, %v9824_v12  ;;  %v9922_v3 = vmul.f32 %v19432_v38, %v9890_v48  ;;  %v9797_v15 = vmul.f32 1.0614054, %v19466_v14 }
 0xa94   : > { %v9668_v45 = vmul.f32 0.3275911, %v9636_v44  ;;  %v10086_v34 = vsub.f32 0.0, %v19439_v57  ;;  %v13895_v47 = vpop.eup %13894  ;;  %v10115_v43 = vmul.f32 %v10083_v23, %v19419_v1  ;;  %v19487_v17 = vmul.f32 0.70710677, %v19473_v11 }
 0xa95   : > { %v10015_v60 = vadd.f32 0.2548296, %v9983_v42  ;;  %v9888_v26 = vadd.f32 1.4214138, %v9856_v37  ;;  %v9954_v20 = vadd.f32 -0.28449672, %v9922_v3  ;;  %13904 = vpow2.f32 %v10163_v50 }
 0xa96   : > { %v9829_v28 = vadd.f32 -1.4531521, %v9797_v15  ;;  %v9700_v42 = vadd.f32 1.0, %v9668_v45  ;;  %v19489_v31 = vpop.eup %13896  ;;  %v10305_v12 = vadd.f32 1.0, %v10273_v0  ;;  %v10118_v1 = vmul.f32 %v10086_v34, %v19439_v57 }
 0xa97   : > { %v10047_v29 = vmul.f32 %v19396_v41, %v10015_v60  ;;  %v9920_v41 = vmul.f32 %v19448_v6, %v9888_v26  ;;  %v9986_v7 = vmul.f32 %v19432_v38, %v9954_v20  ;;  %v9795_v48 = vmul.f32 1.0614054, %v19489_v31 }
 0xa98   : > { %v9861_v56 = vmul.f32 %v19466_v14, %v9829_v28  ;;  %13906 = vrcp.f32 %v9700_v42  ;;  %v10084_v23 = vsub.f32 0.0, %v9636_v44  ;;  %v13899_v3 = vpop.eup %13898  ;;  %v19497_v45 = vand.u32 2147483647, %v19487_v17 }
 0xa99   : > { %v10207_v8 = vmul.f32 %v13895_v47, %v10047_v29  ;;  %v9952_v60 = vadd.f32 -0.28449672, %v9920_v41  ;;  %v10018_v2 = vadd.f32 0.2548296, %v9986_v7  ;;  %v9827_v26 = vadd.f32 -1.4531521, %v9795_v48 }
 0xa9a   : > { %v9893_v37 = vadd.f32 1.4214138, %v9861_v56  ;;  %v10159_v29 = vmul.f32 1.442695, %v10115_v43  ;;  %v19499_v20 = vpop.eup %13900  ;;  %v19505_v47 = vadd.f32 %v19124_v54, %v19240_v16  ;;  %v9673_v43 = vmul.f32 0.3275911, %v19497_v45 }
 0xa9b   : > { %v9984_v15 = vmul.f32 %v19448_v6, %v9952_v60  ;;  %v10239_v50 = vsub.f32 1.0, %v10207_v8  ;;  %v10050_v0 = vmul.f32 %v19432_v38, %v10018_v2  ;;  %v9859_v34 = vmul.f32 %v19489_v31, %v9827_v26 }
 0xa9c   : > { %v9925_v28 = vmul.f32 %v19466_v14, %v9893_v37  ;;  %v9798_v41 = vmul.f32 1.0614054, %v19499_v20  ;;  %v10165_v56 = vmul.f32 1.442695, %v10118_v1  ;;  %v10116_v60 = vmul.f32 %v10084_v23, %v9636_v44  ;;  %v13903_v37 = vpop.eup %13902 }
 0xa9d   : > { %v10016_v57 = vadd.f32 0.2548296, %v9984_v15  ;;  %v10210_v42 = vmul.f32 %v13899_v3, %v10050_v0  ;;  %v9891_v38 = vadd.f32 1.4214138, %v9859_v34  ;;  %v9705_v2 = vadd.f32 1.0, %v9673_v43 }
 0xa9e   : > { %v9957_v7 = vadd.f32 -0.28449672, %v9925_v28  ;;  %v9830_v48 = vadd.f32 -1.4531521, %v9798_v41  ;;  %v10271_v16 = vmul.f32 %v10239_v50, %v19427_v63  ;;  %v19514_v26 = vmul.f32 0.70710677, %v19505_v47 }
 0xa9f   : > { %v10048_v8 = vmul.f32 %v19448_v6, %v10016_v57  ;;  %v10242_v5 = vsub.f32 1.0, %v10210_v42  ;;  %v9923_v3 = vmul.f32 %v19489_v31, %v9891_v38  ;;  %13908 = vrcp.f32 %v9705_v2  ;;  %v13905_v44 = vpop.eup %13904 }
 0xaa0   : > { %v9989_v15 = vmul.f32 %v19466_v14, %v9957_v7  ;;  %v9862_v1 = vmul.f32 %v19499_v20, %v9830_v48  ;;  %13910 = vpow2.f32 %v10159_v29  ;;  %v10161_v0 = vmul.f32 1.442695, %v10116_v60 }
 0xaa1   : > { %v10208_v22 = vmul.f32 %v13903_v37, %v10048_v8  ;;  %v10274_v6 = vmul.f32 %v10242_v5, %v19454_v40  ;;  %v9955_v50 = vadd.f32 -0.28449672, %v9923_v3  ;;  %13912 = vpow2.f32 %v10165_v56 }
 0xaa2   : > { %v10021_v23 = vadd.f32 0.2548296, %v9989_v15  ;;  %v19519_v28 = vpop.eup %13906  ;;  %v9894_v57 = vadd.f32 1.4214138, %v9862_v1  ;;  %v10303_v34 = vadd.f32 1.0, %v10271_v16  ;;  %v19533_v60 = vadd.f32 %v19251_v62, %v19124_v54 }
 0xaa3   : > { %v10240_v63 = vsub.f32 1.0, %v10208_v22  ;;  %v10306_v41 = vadd.f32 1.0, %v10274_v6  ;;  %v9796_v42 = vmul.f32 1.0614054, %v19519_v28  ;;  %v9987_v8 = vmul.f32 %v19489_v31, %v9955_v50 }
 0xaa4   : > { %v10053_v43 = vmul.f32 %v19466_v14, %v10021_v23  ;;  %v9926_v5 = vmul.f32 %v19499_v20, %v9894_v57  ;;  %v19527_v40 = vand.u32 2147483647, %v19514_v26  ;;  %v10337_v22 = vmul.f32 %v10305_v12, %v19406_v30 }
 0xaa5   : > { %v10272_v7 = vmul.f32 %v10240_v63, %v19481_v39  ;;  %v10338_v29 = vmul.f32 %v10306_v41, %v19435_v51  ;;  %v9828_v56 = vadd.f32 -1.4531521, %v9796_v42  ;;  %v10019_v48 = vadd.f32 0.2548296, %v9987_v8 }
 0xaa6   : > { %v10213_v38 = vmul.f32 %v13905_v44, %v10053_v43  ;;  %v9958_v39 = vadd.f32 -0.28449672, %v9926_v5  ;;  %vm9573_vm1 = vcmp.ge.f32.partialorder %v19388_v4, 0.0  ;;  %v9671_v16 = vmul.f32 0.3275911, %v19527_v40 }
 0xaa7   : > { %v10304_v14 = vadd.f32 1.0, %v10272_v7  ;;  %v10364_v2 = vpack.c.bf16 %v10338_v29, %v10337_v22  ;;  %v9860_v37 = vmul.f32 %v19519_v28, %v9828_v56  ;;  %v10335_v30 = vmul.f32 %v10303_v34, %v19415_v46 }
 0xaa8   : > { %v9990_v12 = vmul.f32 %v19499_v20, %v9958_v39  ;;  %13914 = vpow2.f32 %v10161_v0  ;;  %v10051_v54 = vmul.f32 %v19489_v31, %v10019_v48  ;;  %v10089_v15 = vsub.f32 0.0, %v19497_v45 }
 0xaa9   : > { %v10336_v51 = vmul.f32 %v10304_v14, %v19457_v25  ;;  %v9892_v62 = vadd.f32 1.4214138, %v9860_v37  ;;  %v9703_v3 = vadd.f32 1.0, %v9671_v16  ;;  %v19543_v1 = vpop.eup %13908  ;;  %v10245_v6 = vsub.f32 1.0, %v10213_v38 }
 0xaaa   : > { %v10022_v23 = vadd.f32 0.2548296, %v9990_v12  ;;  %v19546_v63 = vmul.f32 0.70710677, %v19533_v60  ;;  %v13911_v46 = vpop.eup %13910  ;;  %v9801_v50 = vmul.f32 1.0614054, %v19543_v1 }
 0xaab   : > { %v10363_v44 = vpack.c.bf16 %v10336_v51, %v10335_v30  ;;  %v9924_v25 = vmul.f32 %v19519_v28, %v9892_v62  ;;  %13916 = vrcp.f32 %v9703_v3  ;;  %v13913_v0 = vpop.eup %13912  ;;  %v9509_v31 = vmul.f32 0.5, %v19375_v32 }
 0xaac   : > { %v9605_v57 = vsel %vm9573_vm1, 1.0, %v21049_v58  ;;  %vm9571_vm3 = vcmp.ge.f32.partialorder %v19403_v10, 0.0  ;;  %v10054_v34 = vmul.f32 %v19499_v20, %v10022_v23  ;;  %v10211_v41 = vmul.f32 %v13911_v46, %v10051_v54 }
 0xaad   : > { %12983 = vmatprep.mubr.msk.bf16.mxu1 %vm4993_vm2, %v10363_v44  ;;  %vm9574_vm4 = vcmp.ge.f32.partialorder %v19423_v53, 0.0  ;;  %v9956_v43 = vadd.f32 -0.28449672, %v9924_v25  ;;  %v9833_v42 = vadd.f32 -1.4531521, %v9801_v50  ;;  %v10277_v7 = vmul.f32 %v10245_v6, %v9605_v57 }
 0xaae   : > { %12984 = vmatmul.mubr.msk.bf16.gmra.mrb[136].mxu1 %vm4993_vm2, %v10364_v2  ;;  %v10214_v8 = vmul.f32 %v13913_v0, %v10054_v34  ;;  %v10121_v32 = vmul.f32 %v10089_v15, %v19497_v45  ;;  %v9642_v4 = vand.u32 2147483647, %v19546_v63  ;;  %v9603_v5 = vsel %vm9571_vm3, 1.0, %v21049_v58  ;;  %v19567_v53 = vld [vmem:[%s20060_s14] ss:$0 sm:$0xff] }
 0xaaf   : > { %v9988_v10 = vmul.f32 %v19519_v28, %v9956_v43  ;;  %v9865_v20 = vmul.f32 %v19543_v1, %v9833_v42  ;;  %v19571_v22 = vadd.f32 %v19567_v53, %v19260_v55  ;;  %v9606_v29 = vsel %vm9574_vm4, 1.0, %v21049_v58 }
 0xab0   : > { %v10246_v45 = vsub.f32 1.0, %v10214_v8  ;;  %v9674_v56 = vmul.f32 0.3275911, %v9642_v4  ;;  %v19576_v14 = vadd.f32 %v19567_v53, %v19268_v9  ;;  %v10243_v38 = vsub.f32 1.0, %v10211_v41 }
 0xab1   : > { %vm9572_vm5 = vcmp.ge.f32.partialorder %v19463_v49, 0.0  ;;  %v10020_v48 = vadd.f32 0.2548296, %v9988_v10  ;;  %v9897_v39 = vadd.f32 1.4214138, %v9865_v20  ;;  %v10309_v37 = vadd.f32 1.0, %v10277_v7 }
 0xab2   : > { %v13915_v2 = vpop.eup %13914  ;;  %v10278_v16 = vmul.f32 %v10246_v45, %v9606_v29  ;;  %v10171_v30 = vmul.f32 1.442695, %v10121_v32  ;;  %v9706_v51 = vadd.f32 1.0, %v9674_v56  ;;  %v9510_v55 = vmul.f32 0.5, %v19410_v24 }
 0xab3   : > { %v10052_v12 = vmul.f32 %v19519_v28, %v10020_v48  ;;  %v9929_v54 = vmul.f32 %v19543_v1, %v9897_v39  ;;  %v19583_v62 = vmul.f32 0.70710677, %v19571_v22  ;;  %v9604_v15 = vsel %vm9572_vm5, 1.0, %v21049_v58 }
 0xab4   : > { %v10310_v9 = vadd.f32 1.0, %v10278_v16  ;;  %13918 = vrcp.f32 %v9706_v51  ;;  %v19587_v49 = vmul.f32 0.70710677, %v19576_v14  ;;  %v10275_v44 = vmul.f32 %v10243_v38, %v9603_v5 }
 0xab5   : > { %v19589_v3 = vpop.eup %13916  ;;  %v10212_v6 = vmul.f32 %v13915_v2, %v10052_v12  ;;  %v9961_v23 = vadd.f32 -0.28449672, %v9929_v54  ;;  %v9640_v24 = vand.u32 2147483647, %v19583_v62  ;;  %v10341_v28 = vmul.f32 %v10309_v37, %v9509_v31 }
 0xab6   : > { %v10342_v46 = vmul.f32 %v10310_v9, %v9510_v55  ;;  %13920 = vpow2.f32 %v10171_v30  ;;  %v9799_v25 = vmul.f32 1.0614054, %v19589_v3  ;;  %v10087_v57 = vsub.f32 0.0, %v19527_v40 }
 0xab7   : > { %v10244_v50 = vsub.f32 1.0, %v10212_v6  ;;  %v9993_v0 = vmul.f32 %v19543_v1, %v9961_v23  ;;  %v9672_v34 = vmul.f32 0.3275911, %v9640_v24  ;;  %v9645_v42 = vand.u32 2147483647, %v19587_v49 }
 0xab8   : > { %v10366_v41 = vpack.c.bf16 %v10342_v46, %v10341_v28  ;;  %v9831_v43 = vadd.f32 -1.4531521, %v9799_v25  ;;  %v19598_v7 = vadd.f32 %v19567_v53, %v19273_v35  ;;  %v10307_v8 = vadd.f32 1.0, %v10275_v44 }
 0xab9   : > { %v10276_v31 = vmul.f32 %v10244_v50, %v9604_v15  ;;  %v10090_v32 = vsub.f32 0.0, %v9642_v4  ;;  %v9704_v5 = vadd.f32 1.0, %v9672_v34  ;;  %v9507_v10 = vmul.f32 0.5, %v19393_v27 }
 0xaba   : > { %v9508_v20 = vmul.f32 0.5, %v19445_v13  ;;  %v9863_v29 = vmul.f32 %v19589_v3, %v9831_v43  ;;  %v9677_v45 = vmul.f32 0.3275911, %v9645_v42  ;;  %v19604_v38 = vmul.f32 0.5, %v19473_v11 }
 0xabb   : > { %v10308_v56 = vadd.f32 1.0, %v10276_v31  ;;  %v10025_v48 = vadd.f32 0.2548296, %v9993_v0  ;;  %13922 = vrcp.f32 %v9704_v5  ;;  %v10119_v35 = vmul.f32 %v10087_v57, %v19527_v40 }
 0xabc   : > { %v9895_v39 = vadd.f32 1.4214138, %v9863_v29  ;;  %v9709_v2 = vadd.f32 1.0, %v9677_v45  ;;  %v19608_v37 = vmul.f32 0.70710677, %v19598_v7  ;;  %v10339_v16 = vmul.f32 %v10307_v8, %v9507_v10 }
 0xabd   : > { %v10340_v27 = vmul.f32 %v10308_v56, %v9508_v20  ;;  %v10122_v30 = vmul.f32 %v10090_v32, %v9642_v4  ;;  %v19612_v13 = vadd.f32 %v19567_v53, %v19279_v19  ;;  %v19617_v11 = vmul.f32 0.5, %v19505_v47 }
 0xabe   : > { %v19614_v51 = vpop.eup %13918  ;;  %v9927_v55 = vmul.f32 %v19589_v3, %v9895_v39  ;;  %v10088_v12 = vsub.f32 0.0, %v9640_v24  ;;  %13924 = vrcp.f32 %v9709_v2  ;;  %vm9577_vm6 = vcmp.ge.f32.partialorder %v19487_v17, 0.0 }
 0xabf   : > { %v10365_v40 = vpack.c.bf16 %v10340_v27, %v10339_v16  ;;  %v9802_v54 = vmul.f32 1.0614054, %v19614_v51  ;;  %v10093_v9 = vsub.f32 0.0, %v9645_v42  ;;  %v10057_v15 = vmul.f32 %v19543_v1, %v10025_v48 }
 0xac0   : > { %v13921_v4 = vpop.eup %13920  ;;  %v9959_v19 = vadd.f32 -0.28449672, %v9927_v55  ;;  %v10167_v44 = vmul.f32 1.442695, %v10119_v35  ;;  %v9643_v6 = vand.u32 2147483647, %v19608_v37  ;;  %v10120_v17 = vmul.f32 %v10088_v12, %v9640_v24 }
 0xac1   : > { %v9834_v23 = vadd.f32 -1.4531521, %v9802_v54  ;;  %v10173_v47 = vmul.f32 1.442695, %v10122_v30  ;;  %v19625_v28 = vmul.f32 0.70710677, %v19612_v13  ;;  %12987 = vmatprep.mubr.msk.bf16.mxu1 %vm4993_vm2, %v10365_v40  ;;  %v10125_v0 = vmul.f32 %v10093_v9, %v9645_v42 }
 0xac2   : > { %v9609_v46 = vsel %vm9577_vm6, 1.0, %v21049_v58  ;;  %vm9575_vm7 = vcmp.ge.f32.partialorder %v19514_v26, 0.0  ;;  %v9675_v25 = vmul.f32 0.3275911, %v9643_v6  ;;  %12988 = vmatmul.mubr.msk.bf16.gmra.mrb[140].mxu1 %vm4993_vm2, %v10366_v41  ;;  %v9991_v1 = vmul.f32 %v19589_v3, %v9959_v19 }
 0xac3   : > { %v9866_v50 = vmul.f32 %v19614_v51, %v9834_v23  ;;  %v9646_v57 = vand.u32 2147483647, %v19625_v28  ;;  %v10217_v34 = vmul.f32 %v13921_v4, %v10057_v15  ;;  %13926 = vpow2.f32 %v10167_v44 }
 0xac4   : > { %v9707_v43 = vadd.f32 1.0, %v9675_v25  ;;  %v19636_v8 = vadd.f32 %v19567_v53, %v19281_v21  ;;  %v19641_v26 = vsel %vm9575_vm7, 1.0, %v21049_v58  ;;  %13928 = vpow2.f32 %v10173_v47 }
 0xac5   : > { %v19638_v31 = vpop.eup %13922  ;;  %v9898_v24 = vadd.f32 1.4214138, %v9866_v50  ;;  %v9678_v41 = vmul.f32 0.3275911, %v9646_v57  ;;  %v19644_v32 = vmul.f32 0.5, %v19533_v60  ;;  %v10249_v56 = vsub.f32 1.0, %v10217_v34 }
 0xac6   : > { %v9800_v42 = vmul.f32 1.0614054, %v19638_v31  ;;  %v10169_v5 = vmul.f32 1.442695, %v10120_v17  ;;  %13930 = vrcp.f32 %v9707_v43  ;;  %v10023_v10 = vadd.f32 0.2548296, %v9991_v1 }
 0xac7   : > { %v9930_v20 = vmul.f32 %v19614_v51, %v9898_v24  ;;  %v10179_v21 = vmul.f32 1.442695, %v10125_v0  ;;  %v9710_v29 = vadd.f32 1.0, %v9678_v41  ;;  %vm9578_vm8 = vcmp.ge.f32.partialorder %v19546_v63, 0.0 }
 0xac8   : > { %v19648_v45 = vpop.eup %13924  ;;  %v9832_v48 = vadd.f32 -1.4531521, %v9800_v42  ;;  %v19652_v39 = vmul.f32 0.70710677, %v19636_v8  ;;  %v19657_v2 = vadd.f32 %v19567_v53, %v19297_v36  ;;  %v10091_v27 = vsub.f32 0.0, %v9643_v6 }
 0xac9   : > { %v9962_v60 = vadd.f32 -0.28449672, %v9930_v20  ;;  %v9805_v35 = vmul.f32 1.0614054, %v19648_v45  ;;  %13932 = vrcp.f32 %v9710_v29  ;;  %v10094_v30 = vsub.f32 0.0, %v9646_v57 }
 0xaca   : > { %v9864_v16 = vmul.f32 %v19638_v31, %v9832_v48  ;;  %v19661_v55 = vand.u32 2147483647, %v19652_v39  ;;  %v10055_v12 = vmul.f32 %v19589_v3, %v10023_v10  ;;  %13934 = vpow2.f32 %v10169_v5 }
 0xacb   : > { %v9994_v40 = vmul.f32 %v19614_v51, %v9962_v60  ;;  %v9837_v54 = vadd.f32 -1.4531521, %v9805_v35  ;;  %vm9576_vm9 = vcmp.ge.f32.partialorder %v19583_v62, 0.0  ;;  %13936 = vpow2.f32 %v10179_v21 }
 0xacc   : > { %v9896_v9 = vadd.f32 1.4214138, %v9864_v16  ;;  %v9676_v36 = vmul.f32 0.3275911, %v19661_v55  ;;  %v10281_v4 = vmul.f32 %v10249_v56, %v9609_v46  ;;  %v19669_v44 = vmul.f32 0.70710677, %v19657_v2 }
 0xacd   : > { %v10026_v15 = vadd.f32 0.2548296, %v9994_v40  ;;  %v9869_v19 = vmul.f32 %v19648_v45, %v9837_v54  ;;  %v13927_v23 = vpop.eup %13926  ;;  %v10123_v47 = vmul.f32 %v10091_v27, %v9643_v6  ;;  %v10126_v17 = vmul.f32 %v10094_v30, %v9646_v57 }
 0xace   : > { %v9928_v3 = vmul.f32 %v19638_v31, %v9896_v9  ;;  %v9708_v25 = vadd.f32 1.0, %v9676_v36  ;;  %v13929_v1 = vpop.eup %13928  ;;  %v10215_v50 = vmul.f32 %v13927_v23, %v10055_v12  ;;  %v19674_v43 = vand.u32 2147483647, %v19669_v44 }
 0xacf   : > { %v10058_v0 = vmul.f32 %v19614_v51, %v10026_v15  ;;  %v9901_v34 = vadd.f32 1.4214138, %v9869_v19  ;;  %v9610_v24 = vsel %vm9578_vm8, 1.0, %v21049_v58  ;;  %v9608_v6 = vsel %vm9576_vm9, 1.0, %v21049_v58 }
 0xad0   : > { %v19676_v46 = vpop.eup %13930  ;;  %v9960_v57 = vadd.f32 -0.28449672, %v9928_v3  ;;  %13938 = vrcp.f32 %v9708_v25  ;;  %v10313_v41 = vadd.f32 1.0, %v10281_v4  ;;  %v10175_v20 = vmul.f32 1.442695, %v10123_v47 }
 0xad1   : > { %v10218_v42 = vmul.f32 %v13929_v1, %v10058_v0  ;;  %v9933_v51 = vmul.f32 %v19648_v45, %v9901_v34  ;;  %v9803_v5 = vmul.f32 1.0614054, %v19676_v46  ;;  %v10181_v21 = vmul.f32 1.442695, %v10126_v17 }
 0xad2   : > { %v9992_v10 = vmul.f32 %v19638_v31, %v9960_v57  ;;  %v9681_v29 = vmul.f32 0.3275911, %v19674_v43  ;;  %v10247_v56 = vsub.f32 1.0, %v10215_v50  ;;  %v19693_v30 = vadd.f32 %v19567_v53, %v19301_v52 }
 0xad3   : > { %v19688_v63 = vpop.eup %13932  ;;  %v10250_v48 = vsub.f32 1.0, %v10218_v42  ;;  %v9965_v62 = vadd.f32 -0.28449672, %v9933_v51  ;;  %v9835_v60 = vadd.f32 -1.4531521, %v9803_v5  ;;  %v10092_v36 = vsub.f32 0.0, %v19661_v55 }
 0xad4   : > { %v10024_v35 = vadd.f32 0.2548296, %v9992_v10  ;;  %v9806_v16 = vmul.f32 1.0614054, %v19688_v63  ;;  %v9713_v27 = vadd.f32 1.0, %v9681_v29  ;;  %v13935_v12 = vpop.eup %13934  ;;  %v19699_v15 = vmul.f32 %v10313_v41, %v19604_v38 }
 0xad5   : > { %v10282_v40 = vmul.f32 %v10250_v48, %v9610_v24  ;;  %v9997_v54 = vmul.f32 %v19648_v45, %v9965_v62  ;;  %v9867_v9 = vmul.f32 %v19676_v46, %v9835_v60  ;;  %v13937_v4 = vpop.eup %13936  ;;  %v10279_v3 = vmul.f32 %v10247_v56, %v19641_v26 }
 0xad6   : > { %v10056_v19 = vmul.f32 %v19638_v31, %v10024_v35  ;;  %v9838_v23 = vadd.f32 -1.4531521, %v9806_v16  ;;  %13940 = vrcp.f32 %v9713_v27  ;;  %v19705_v50 = vmul.f32 0.70710677, %v19693_v30 }
 0xad7   : > { %v10314_v52 = vadd.f32 1.0, %v10282_v40  ;;  %v10029_v47 = vadd.f32 0.2548296, %v9997_v54  ;;  %v9899_v17 = vadd.f32 1.4214138, %v9867_v9  ;;  %13942 = vpow2.f32 %v10175_v20 }
 0xad8   : > { %v10216_v25 = vmul.f32 %v13935_v12, %v10056_v19  ;;  %v9870_v1 = vmul.f32 %v19688_v63, %v9838_v23  ;;  %13944 = vpow2.f32 %v10181_v21  ;;  %v10124_v31 = vmul.f32 %v10092_v36, %v19661_v55 }
 0xad9   : > { %v10346_v0 = vmul.f32 %v10314_v52, %v19644_v32  ;;  %v9931_v38 = vmul.f32 %v19676_v46, %v9899_v17  ;;  %v10061_v24 = vmul.f32 %v19648_v45, %v10029_v47  ;;  %v19714_v41 = vand.u32 2147483647, %v19705_v50 }
 0xada   : > { %v19710_v34 = vpop.eup %13938  ;;  %v10248_v26 = vsub.f32 1.0, %v10216_v25  ;;  %v9902_v57 = vadd.f32 1.4214138, %v9870_v1  ;;  %v10311_v42 = vadd.f32 1.0, %v10279_v3  ;;  %v19722_v21 = vadd.f32 %v19567_v53, %v19306_v61 }
 0xadb   : > { %v10368_v51 = vpack.c.bf16 %v10346_v0, %v19699_v15  ;;  %v9963_v5 = vadd.f32 -0.28449672, %v9931_v38  ;;  %v9804_v32 = vmul.f32 1.0614054, %v19710_v34  ;;  %v9679_v55 = vmul.f32 0.3275911, %v19714_v41 }
 0xadc   : > { %v10280_v10 = vmul.f32 %v10248_v26, %v9608_v6  ;;  %v9934_v20 = vmul.f32 %v19688_v63, %v9902_v57  ;;  %v9512_v45 = vmul.f32 0.5, %v19571_v22  ;;  %v10177_v48 = vmul.f32 1.442695, %v10124_v31 }
 0xadd   : > { %v9995_v29 = vmul.f32 %v19676_v46, %v9963_v5  ;;  %v9836_v56 = vadd.f32 -1.4531521, %v9804_v32  ;;  %v10221_v60 = vmul.f32 %v13937_v4, %v10061_v24  ;;  %v9711_v16 = vadd.f32 1.0, %v9679_v55 }
 0xade   : > { %v10312_v62 = vadd.f32 1.0, %v10280_v10  ;;  %v9966_v35 = vadd.f32 -0.28449672, %v9934_v20  ;;  %v10343_v6 = vmul.f32 %v10311_v42, %v19617_v11  ;;  %vm9581_vm10 = vcmp.ge.f32.partialorder %v19587_v49, 0.0 }
 0xadf   : > { %v10027_v27 = vadd.f32 0.2548296, %v9995_v29  ;;  %v9868_v12 = vmul.f32 %v19710_v34, %v9836_v56  ;;  %13946 = vrcp.f32 %v9711_v16  ;;  %v19733_v54 = vmul.f32 0.70710677, %v19722_v21 }
 0xae0   : > { %v19729_v40 = vpop.eup %13940  ;;  %v10344_v61 = vmul.f32 %v10312_v62, %v9512_v45  ;;  %v9998_v22 = vmul.f32 %v19688_v63, %v9966_v35  ;;  %13948 = vpow2.f32 %v10177_v48  ;;  %v10253_v19 = vsub.f32 1.0, %v10221_v60 }
 0xae1   : > { %v10059_v9 = vmul.f32 %v19676_v46, %v10027_v27  ;;  %v9900_v36 = vadd.f32 1.4214138, %v9868_v12  ;;  %v9809_v11 = vmul.f32 1.0614054, %v19729_v40  ;;  %v13943_v4 = vpop.eup %13942  ;;  %v10097_v3 = vsub.f32 0.0, %v19674_v43 }
 0xae2   : > { %v10367_v15 = vpack.c.bf16 %v10344_v61, %v10343_v6  ;;  %v10030_v23 = vadd.f32 0.2548296, %v9998_v22  ;;  %v13945_v52 = vpop.eup %13944  ;;  %v9517_v47 = vmul.f32 0.5, %v19576_v14  ;;  %vm9579_vm11 = vcmp.ge.f32.partialorder %v19608_v37, 0.0 }
 0xae3   : > { %v9932_v17 = vmul.f32 %v19710_v34, %v9900_v36  ;;  %v9841_v25 = vadd.f32 -1.4531521, %v9809_v11  ;;  %vm9582_vm12 = vcmp.ge.f32.partialorder %v19625_v28, 0.0  ;;  %v19744_v1 = vand.u32 2147483647, %v19733_v54 }
 0xae4   : > { %v10062_v46 = vmul.f32 %v19688_v63, %v10030_v23  ;;  %v19748_v0 = vadd.f32 %v19567_v53, %v19312_v18  ;;  %12991 = vmatprep.mubr.msk.bf16.mxu1 %vm4993_vm2, %v10367_v15  ;;  %v9613_v14 = vsel %vm9581_vm10, 1.0, %v21049_v58  ;;  %v10219_v38 = vmul.f32 %v13943_v4, %v10059_v9 }
 0xae5   : > { %v9964_v31 = vadd.f32 -0.28449672, %v9932_v17  ;;  %v9873_v26 = vmul.f32 %v19729_v40, %v9841_v25  ;;  %12992 = vmatmul.mubr.msk.bf16.gmra.mrb[144].mxu1 %vm4993_vm2, %v10368_v51  ;;  %v10285_v28 = vmul.f32 %v10253_v19, %v9613_v14  ;;  %v10129_v24 = vmul.f32 %v10097_v3, %v19674_v43 }
 0xae6   : > { %v10222_v63 = vmul.f32 %v13945_v52, %v10062_v46  ;;  %v9682_v57 = vmul.f32 0.3275911, %v19744_v1  ;;  %v9611_v18 = vsel %vm9579_vm11, 1.0, %v21049_v58  ;;  %v9614_v42 = vsel %vm9582_vm12, 1.0, %v21049_v58 }
 0xae7   : > { %v9996_v49 = vmul.f32 %v19710_v34, %v9964_v31  ;;  %v9905_v5 = vadd.f32 1.4214138, %v9873_v26  ;;  %v19764_v20 = vmul.f32 0.70710677, %v19748_v0  ;;  %v19768_v51 = vadd.f32 %v19567_v53, %v19334_v59 }
 0xae8   : > { %v10254_v32 = vsub.f32 1.0, %v10222_v63  ;;  %v9714_v10 = vadd.f32 1.0, %v9682_v57  ;;  %v10251_v43 = vsub.f32 1.0, %v10219_v38  ;;  %vm9580_vm13 = vcmp.ge.f32.partialorder %v19652_v39, 0.0 }
 0xae9   : > { %v10028_v55 = vadd.f32 0.2548296, %v9996_v49  ;;  %v9937_v37 = vmul.f32 %v19729_v40, %v9905_v5  ;;  %v19772_v45 = vpop.eup %13946  ;;  %v10317_v29 = vadd.f32 1.0, %v10285_v28  ;;  %v10187_v48 = vmul.f32 1.442695, %v10129_v24 }
 0xaea   : > { %v10286_v56 = vmul.f32 %v10254_v32, %v9614_v42  ;;  %13950 = vrcp.f32 %v9714_v10  ;;  %v13949_v62 = vpop.eup %13948  ;;  %v9518_v60 = vmul.f32 0.5, %v19612_v13  ;;  %v9807_v59 = vmul.f32 1.0614054, %v19772_v45 }
 0xaeb   : > { %v10060_v35 = vmul.f32 %v19710_v34, %v10028_v55  ;;  %v9969_v16 = vadd.f32 -0.28449672, %v9937_v37  ;;  %v9612_v39 = vsel %vm9580_vm13, 1.0, %v21049_v58  ;;  %v9648_v27 = vand.u32 2147483647, %v19764_v20 }
 0xaec   : > { %v10318_v6 = vadd.f32 1.0, %v10286_v56  ;;  %v19780_v12 = vmul.f32 0.70710677, %v19768_v51  ;;  %v10283_v61 = vmul.f32 %v10251_v43, %v9611_v18  ;;  %v9839_v9 = vadd.f32 -1.4531521, %v9807_v59  ;;  %v21052_v43 = vld [vmem:[#allocation124_spill] sm:$0xff] }
 0xaed   : > { %v10220_v22 = vmul.f32 %v13949_v62, %v10060_v35  ;;  %v10095_v36 = vsub.f32 0.0, %v19714_v41  ;;  %v10349_v11 = vmul.f32 %v10317_v29, %v9517_v47  ;;  %13952 = vpow2.f32 %v10187_v48 }
 0xaee   : > { %v10350_v13 = vmul.f32 %v10318_v6, %v9518_v60  ;;  %v9680_v34 = vmul.f32 0.3275911, %v9648_v27  ;;  %v9871_v15 = vmul.f32 %v19772_v45, %v9839_v9  ;;  %v10098_v19 = vsub.f32 0.0, %v19744_v1 }
 0xaef   : > { %v10252_v4 = vsub.f32 1.0, %v10220_v22  ;;  %v19787_v23 = vadd.f32 %v19567_v53, %v19343_v33  ;;  %v10001_v52 = vmul.f32 %v19729_v40, %v9969_v16  ;;  %v19791_v25 = vand.u32 2147483647, %v19780_v12 }
 0xaf0   : > { %v10370_v3 = vpack.c.bf16 %v10350_v13, %v10349_v11  ;;  %v9712_v17 = vadd.f32 1.0, %v9680_v34  ;;  %v10315_v47 = vadd.f32 1.0, %v10283_v61  ;;  %v9903_v14 = vadd.f32 1.4214138, %v9871_v15 }
 0xaf1   : > { %v10284_v46 = vmul.f32 %v10252_v4, %v9612_v39  ;;  %v10127_v38 = vmul.f32 %v10095_v36, %v19714_v41  ;;  %v9515_v31 = vmul.f32 0.5, %v19598_v7  ;;  %v9516_v26 = vmul.f32 0.5, %v19636_v8  ;;  %v21053_v36 = vld [vmem:[#allocation71_spill] sm:$0xff] }
 0xaf2   : > { %13954 = vrcp.f32 %v9712_v17  ;;  %v9685_v33 = vmul.f32 0.3275911, %v19791_v25  ;;  %v9935_v63 = vmul.f32 %v19772_v45, %v9903_v14  ;;  %v10130_v24 = vmul.f32 %v10098_v19, %v19744_v1 }
 0xaf3   : > { %v10316_v28 = vadd.f32 1.0, %v10284_v46  ;;  %v19800_v57 = vmul.f32 0.70710677, %v19787_v23  ;;  %v10033_v42 = vadd.f32 0.2548296, %v10001_v52  ;;  %v10347_v41 = vmul.f32 %v10315_v47, %v9515_v31 }
 0xaf4   : > { %v19802_v18 = vpop.eup %13950  ;;  %v9717_v49 = vadd.f32 1.0, %v9685_v33  ;;  %v10183_v7 = vmul.f32 1.442695, %v10127_v38  ;;  %v9967_v32 = vadd.f32 -0.28449672, %v9935_v63  ;;  %v19810_v1 = vadd.f32 %v19567_v53, %v21052_v43 }
 0xaf5   : > { %v10348_v5 = vmul.f32 %v10316_v28, %v9516_v26  ;;  %v9810_v8 = vmul.f32 1.0614054, %v19802_v18  ;;  %v19806_v10 = vand.u32 2147483647, %v19800_v57  ;;  %v10189_v29 = vmul.f32 1.442695, %v10130_v24 }
 0xaf6   : > { %13956 = vrcp.f32 %v9717_v49  ;;  %v10096_v56 = vsub.f32 0.0, %v9648_v27  ;;  %v10065_v62 = vmul.f32 %v19729_v40, %v10033_v42  ;;  %v9999_v16 = vmul.f32 %v19772_v45, %v9967_v32 }
 0xaf7   : > { %v10369_v55 = vpack.c.bf16 %v10348_v5, %v10347_v41  ;;  %v9842_v37 = vadd.f32 -1.4531521, %v9810_v8  ;;  %v13953_v48 = vpop.eup %13952  ;;  %v9683_v60 = vmul.f32 0.3275911, %v19806_v10  ;;  %13958 = vpow2.f32 %v10183_v7 }
 0xaf8   : > { %v19818_v6 = vmul.f32 0.70710677, %v19810_v1  ;;  %13960 = vpow2.f32 %v10189_v29  ;;  %v10128_v61 = vmul.f32 %v10096_v56, %v9648_v27  ;;  %v10225_v40 = vmul.f32 %v13953_v48, %v10065_v62 }
 0xaf9   : > { %v9874_v35 = vmul.f32 %v19802_v18, %v9842_v37  ;;  %12995 = vmatprep.mubr.msk.bf16.mxu1 %vm4993_vm2, %v10369_v55  ;;  %v9715_v59 = vadd.f32 1.0, %v9683_v60  ;;  %v19828_v11 = vadd.f32 %v19567_v53, %v21053_v36  ;;  %v10031_v4 = vadd.f32 0.2548296, %v9999_v16 }
 0xafa   : > { %12996 = vmatmul.mubr.msk.bf16.gmra.mrb[148].mxu1 %vm4993_vm2, %v10370_v3  ;;  %v19824_v9 = vand.u32 2147483647, %v19818_v6  ;;  %vm9585_vm14 = vcmp.ge.f32.partialorder %v19669_v44, 0.0  ;;  %v10101_v3 = vsub.f32 0.0, %v19791_v25  ;;  %v10257_v17 = vsub.f32 1.0, %v10225_v40 }
 0xafb   : > { %v9906_v39 = vadd.f32 1.4214138, %v9874_v35  ;;  %13962 = vrcp.f32 %v9715_v59  ;;  %v10185_v47 = vmul.f32 1.442695, %v10128_v61  ;;  %v19838_v53 = vmul.f32 0.70710677, %v19828_v11 }
 0xafc   : > { %v19821_v22 = vpop.eup %13954  ;;  %v9686_v15 = vmul.f32 0.3275911, %v19824_v9  ;;  %v9521_v14 = vmul.f32 0.5, %v19657_v2  ;;  %v9617_v26 = vsel %vm9585_vm14, 1.0, %v21049_v58  ;;  %v10063_v33 = vmul.f32 %v19772_v45, %v10031_v4 }
 0xafd   : > { %v9938_v13 = vmul.f32 %v19802_v18, %v9906_v39  ;;  %v9808_v34 = vmul.f32 1.0614054, %v19821_v22  ;;  %v19847_v28 = vand.u32 2147483647, %v19838_v53  ;;  %v9522_v63 = vmul.f32 0.5, %v19722_v21 }
 0xafe   : > { %v9718_v46 = vadd.f32 1.0, %v9686_v15  ;;  %v10133_v2 = vmul.f32 %v10101_v3, %v19791_v25  ;;  %v10289_v41 = vmul.f32 %v10257_v17, %v9617_v26  ;;  %vm9583_vm15 = vcmp.ge.f32.partialorder %v19705_v50, 0.0 }
 0xaff   : > { %v9970_v27 = vadd.f32 -0.28449672, %v9938_v13  ;;  %v9840_v19 = vadd.f32 -1.4531521, %v9808_v34  ;;  %v9684_v7 = vmul.f32 0.3275911, %v19847_v28 }
 0xb00   : > { %v19835_v52 = vpop.eup %13956  ;;  %13964 = vrcp.f32 %v9718_v46  ;;  %vm9586_vm1 = vcmp.ge.f32.partialorder %v19733_v54, 0.0  ;;  %v10099_v55 = vsub.f32 0.0, %v19806_v10  ;;  %v10195_v48 = vmul.f32 1.442695, %v10133_v2 }
 0xb01   : > { %v10002_v38 = vmul.f32 %v19802_v18, %v9970_v27  ;;  %v9872_v31 = vmul.f32 %v19821_v22, %v9840_v19  ;;  %v9813_v44 = vmul.f32 1.0614054, %v19835_v52  ;;  %v13959_v49 = vpop.eup %13958  ;;  %13966 = vpow2.f32 %v10185_v47 }
 0xb02   : > { %v13961_v8 = vpop.eup %13960  ;;  %v10223_v43 = vmul.f32 %v13959_v49, %v10063_v33  ;;  %v9716_v37 = vadd.f32 1.0, %v9684_v7  ;;  %v10321_v60 = vadd.f32 1.0, %v10289_v41  ;;  %v10102_v16 = vsub.f32 0.0, %v19824_v9 }
 0xb03   : > { %v10034_v24 = vadd.f32 0.2548296, %v10002_v38  ;;  %v9904_v42 = vadd.f32 1.4214138, %v9872_v31  ;;  %v9845_v5 = vadd.f32 -1.4531521, %v9813_v44  ;;  %v10131_v34 = vmul.f32 %v10099_v55, %v19806_v10 }
 0xb04   : > { %13968 = vrcp.f32 %v9716_v37  ;;  %v10255_v40 = vsub.f32 1.0, %v10223_v43  ;;  %v9618_v36 = vsel %vm9586_vm1, 1.0, %v21049_v58  ;;  %vm9584_vm3 = vcmp.ge.f32.partialorder %v19764_v20, 0.0 }
 0xb05   : > { %v10066_v45 = vmul.f32 %v19802_v18, %v10034_v24  ;;  %v9936_v32 = vmul.f32 %v19821_v22, %v9904_v42  ;;  %v19856_v21 = vpop.eup %13962  ;;  %v9877_v25 = vmul.f32 %v19835_v52, %v9845_v5  ;;  %v9615_v18 = vsel %vm9583_vm15, 1.0, %v21049_v58 }
 0xb06   : > { %v9811_v62 = vmul.f32 1.0614054, %v19856_v21  ;;  %v10353_v19 = vmul.f32 %v10321_v60, %v9521_v14  ;;  %13970 = vpow2.f32 %v10195_v48  ;;  %v10134_v17 = vmul.f32 %v10102_v16, %v19824_v9 }
 0xb07   : > { %v10226_v29 = vmul.f32 %v13961_v8, %v10066_v45  ;;  %v9968_v56 = vadd.f32 -0.28449672, %v9936_v32  ;;  %v9909_v35 = vadd.f32 1.4214138, %v9877_v25  ;;  %v10287_v44 = vmul.f32 %v10255_v40, %v9615_v18 }
 0xb08   : > { %v9843_v61 = vadd.f32 -1.4531521, %v9811_v62  ;;  %v10191_v26 = vmul.f32 1.442695, %v10131_v34  ;;  %v10100_v33 = vsub.f32 0.0, %v19847_v28  ;;  %v9616_v9 = vsel %vm9584_vm3, 1.0, %v21049_v58 }
 0xb09   : > { %v10258_v59 = vsub.f32 1.0, %v10226_v29  ;;  %v10000_v39 = vmul.f32 %v19821_v22, %v9968_v56  ;;  %v9941_v13 = vmul.f32 %v19835_v52, %v9909_v35  ;;  %v10319_v32 = vadd.f32 1.0, %v10287_v44 }
 0xb0a   : > { %v9875_v50 = vmul.f32 %v19856_v21, %v9843_v61  ;;  %v13965_v27 = vpop.eup %13964  ;;  %13972 = vpow2.f32 %v10191_v26  ;;  %v9519_v20 = vmul.f32 0.5, %v19693_v30  ;;  %v9520_v56 = vmul.f32 0.5, %v19748_v0 }
 0xb0b   : > { %v10290_v4 = vmul.f32 %v10258_v59, %v9618_v36  ;;  %v10032_v15 = vadd.f32 0.2548296, %v10000_v39  ;;  %v9973_v3 = vadd.f32 -0.28449672, %v9941_v13  ;;  %v9814_v38 = vmul.f32 1.0614054, %v13965_v27  ;;  %v13967_v31 = vpop.eup %13966 }
 0xb0c   : > { %v9907_v46 = vadd.f32 1.4214138, %v9875_v50  ;;  %v10351_v18 = vmul.f32 %v10319_v32, %v9519_v20  ;;  %vm9589_vm4 = vcmp.ge.f32.partialorder %v19780_v12, 0.0  ;;  %vm9590_vm5 = vcmp.ge.f32.partialorder %v19818_v6, 0.0 }
 0xb0d   : > { %v10322_v47 = vadd.f32 1.0, %v10290_v4  ;;  %v10064_v54 = vmul.f32 %v19821_v22, %v10032_v15  ;;  %v10005_v10 = vmul.f32 %v19835_v52, %v9973_v3  ;;  %v9846_v2 = vadd.f32 -1.4531521, %v9814_v38 }
 0xb0e   : > { %v9939_v14 = vmul.f32 %v19856_v21, %v9907_v46  ;;  %v10197_v22 = vmul.f32 1.442695, %v10134_v17  ;;  %v13969_v45 = vpop.eup %13968  ;;  %vm9587_vm6 = vcmp.ge.f32.partialorder %v19800_v57, 0.0  ;;  %v9622_v44 = vsel %vm9590_vm5, 1.0, %v21049_v58 }
 0xb0f   : > { %v10354_v24 = vmul.f32 %v10322_v47, %v9522_v63  ;;  %v10224_v42 = vmul.f32 %v13967_v31, %v10064_v54  ;;  %v10037_v49 = vadd.f32 0.2548296, %v10005_v10  ;;  %v9878_v8 = vmul.f32 %v13965_v27, %v9846_v2 }
 0xb10   : > { %v9971_v7 = vadd.f32 -0.28449672, %v9939_v14  ;;  %v10132_v63 = vmul.f32 %v10100_v33, %v19847_v28  ;;  %v9812_v29 = vmul.f32 1.0614054, %v13969_v45  ;;  %13974 = vpow2.f32 %v10197_v22  ;;  %v13971_v16 = vpop.eup %13970 }
 0xb11   : > { %v10372_v41 = vpack.c.bf16 %v10354_v24, %v10353_v19  ;;  %v10256_v5 = vsub.f32 1.0, %v10224_v42  ;;  %v10069_v43 = vmul.f32 %v19835_v52, %v10037_v49  ;;  %v9910_v37 = vadd.f32 1.4214138, %v9878_v8 }
 0xb12   : > { %v10003_v55 = vmul.f32 %v19856_v21, %v9971_v7  ;;  %v9844_v35 = vadd.f32 -1.4531521, %v9812_v29  ;;  %v10193_v52 = vmul.f32 1.442695, %v10132_v63  ;;  %v9621_v47 = vsel %vm9589_vm4, 1.0, %v21049_v58 }
 0xb13   : > { %v10288_v25 = vmul.f32 %v10256_v5, %v9616_v9  ;;  %v9942_v60 = vmul.f32 %v13965_v27, %v9910_v37  ;;  %v10229_v39 = vmul.f32 %v13971_v16, %v10069_v43  ;;  %v9525_v24 = vmul.f32 0.5, %v19768_v51  ;;  %v21054_v37 = vld [vmem:[#allocation93_spill] sm:$0xff] }
 0xb14   : > { %v10035_v62 = vadd.f32 0.2548296, %v10003_v55  ;;  %v9876_v61 = vmul.f32 %v13969_v45, %v9844_v35  ;;  %13976 = vpow2.f32 %v10193_v52  ;;  %v13973_v15 = vpop.eup %13972  ;;  %v9619_v42 = vsel %vm9587_vm6, 1.0, %v21049_v58  ;;  %v21056_v35 = vld [vmem:[#allocation107_spill] sm:$0xff] }
 0xb15   : > { %v10320_v48 = vadd.f32 1.0, %v10288_v25  ;;  %v9974_v28 = vadd.f32 -0.28449672, %v9942_v60  ;;  %v10261_v30 = vsub.f32 1.0, %v10229_v39  ;;  %v9526_v14 = vmul.f32 0.5, %v19810_v1 }
 0xb16   : > { %v10067_v36 = vmul.f32 %v19856_v21, %v10035_v62  ;;  %v9908_v34 = vadd.f32 1.4214138, %v9876_v61  ;;  %vm9588_vm7 = vcmp.ge.f32.partialorder %v19838_v53, 0.0  ;;  %v9523_v51 = vmul.f32 0.5, %v19787_v23 }
 0xb17   : > { %v10352_v59 = vmul.f32 %v10320_v48, %v9520_v56  ;;  %v10006_v13 = vmul.f32 %v13965_v27, %v9974_v28  ;;  %v10293_v21 = vmul.f32 %v10261_v30, %v9621_v47  ;;  %v21055_v48 = vld [vmem:[#allocation16_spill] sm:$0xff] }
 0xb18   : > { %v9940_v4 = vmul.f32 %v13969_v45, %v9908_v34  ;;  %v10227_v50 = vmul.f32 %v13973_v15, %v10067_v36  ;;  %v21058_v36 = vld [vmem:[#allocation109_spill] sm:$0xff] }
 0xb19   : > { %v10371_v40 = vpack.c.bf16 %v10352_v59, %v10351_v18  ;;  %v10038_v0 = vadd.f32 0.2548296, %v10006_v13  ;;  %v10325_v10 = vadd.f32 1.0, %v10293_v21  ;;  %v21057_v18 = vld [vmem:[#allocation102_spill] sm:$0xff] }
 0xb1a   : > { %v9972_v3 = vadd.f32 -0.28449672, %v9940_v4  ;;  %v13975_v17 = vpop.eup %13974  ;;  %v10259_v12 = vsub.f32 1.0, %v10227_v50  ;;  %v21060_v50 = vld [vmem:[#allocation75_spill] sm:$0xff] }
 0xb1b   : > { %12999 = vmatprep.mubr.msk.bf16.mxu1 %vm4993_vm2, %v10371_v40  ;;  %v10070_v19 = vmul.f32 %v13965_v27, %v10038_v0  ;;  %v10357_v9 = vmul.f32 %v10325_v10, %v9525_v24  ;;  %v21059_v0 = vld [vmem:[#allocation44_spill] sm:$0xff] }
 0xb1c   : > { %13000 = vmatmul.mubr.msk.bf16.gmra.mrb[152].mxu1 %vm4993_vm2, %v10372_v41  ;;  %v10004_v46 = vmul.f32 %v13969_v45, %v9972_v3  ;;  %v10291_v6 = vmul.f32 %v10259_v12, %v9619_v42  ;;  %v9620_v41 = vsel %vm9588_vm7, 1.0, %v21049_v58  ;;  %v19906_v58 = vld [vmem:[%s20062_s16] ss:$0 sm:$0xff]  ;;  %v21064_v24 = vld [vmem:[#allocation108_spill] sm:$0xff] }
 0xb1d   : > { %v10230_v54 = vmul.f32 %v13975_v17, %v10070_v19  ;;  %v21061_v3 = vld [vmem:[#allocation46_spill] sm:$0xff] }
 0xb1e   : > { %v10036_v31 = vadd.f32 0.2548296, %v10004_v46  ;;  %v13977_v27 = vpop.eup %13976  ;;  %v10323_v5 = vadd.f32 1.0, %v10291_v6 }
 0xb1f   : > { %v10262_v38 = vsub.f32 1.0, %v10230_v54 }
 0xb20   : > { %v10068_v33 = vmul.f32 %v13969_v45, %v10036_v31  ;;  %v9524_v45 = vmul.f32 0.5, %v19828_v11  ;;  %v10355_v1 = vmul.f32 %v10323_v5, %v9523_v51  ;;  %v21067_v51 = vld [vmem:[#allocation37_spill] sm:$0xff] }
 0xb21   : > { %v10294_v26 = vmul.f32 %v10262_v38, %v9622_v44  ;;  %v21062_v38 = vld [vmem:[#allocation69_spill] sm:$0xff] }
 0xb22   : > { %v10228_v57 = vmul.f32 %v13977_v27, %v10068_v33 }
 0xb23   : > { %v10326_v2 = vadd.f32 1.0, %v10294_v26  ;;  %v21063_v26 = vld [vmem:[#allocation59_spill] sm:$0xff] }
 0xb24   : > { %v10260_v22 = vsub.f32 1.0, %v10228_v57 }
 0xb25   : > { %v10358_v49 = vmul.f32 %v10326_v2, %v9526_v14  ;;  %v21065_v14 = vld [vmem:[#allocation42_spill] sm:$0xff] }
 0xb26   : > { %v10292_v8 = vmul.f32 %v10260_v22, %v9620_v41  ;;  %v21066_v41 = vld [vmem:[#allocation110_spill] sm:$0xff] }
 0xb27   : > { %v10374_v7 = vpack.c.bf16 %v10358_v49, %v10357_v9 }
 0xb28   : > { %v10324_v32 = vadd.f32 1.0, %v10292_v8 }
 0xb2a   : > { %v10356_v43 = vmul.f32 %v10324_v32, %v9524_v45 }
 0xb2c   : > { %v10373_v63 = vpack.c.bf16 %v10356_v43, %v10355_v1  ;;  %v21068_v1 = vld [vmem:[#allocation65_spill] sm:$0xff] }
 0xb2e   : > { %13003 = vmatprep.mubr.msk.bf16.mxu1 %vm4993_vm2, %v10373_v63  ;;  %v21069_v63 = vld [vmem:[#allocation81_spill] sm:$0xff] }
 0xb2f   : > { %13004 = vmatmul.mubr.msk.bf16.gmra.mrb[156].mxu1 %vm4993_vm2, %v10374_v7 }
 0xb4a   : > { %v12977_v53 = vpop.f32.mrb[128].mxu1 }
 0xb4b   : > { %v10505_v25 = vadd.f32 %v12977_v53, %v19906_v58  ;;  %v10496_v55 = vpop.f32.mrb[129].mxu1 }
 0xb4c   : > { %v10497_v23 = vadd.f32 %v19906_v58, %v10496_v55  ;;  %v12978_v11 = vpop.f32.mrb[130].mxu1 }
 0xb4d   : > { %v10625_v29 = vadd.f32 %v10505_v25, %v21054_v37  ;;  %v10508_v20 = vadd.f32 %v12978_v11, %v19906_v58  ;;  %v10499_v56 = vpop.f32.mrb[131].mxu1 }
 0xb4e   : > { %v10623_v62 = vadd.f32 %v10497_v23, %v21055_v48  ;;  %v10500_v60 = vadd.f32 %v19906_v58, %v10499_v56 }
 0xb4f   : > { %10657 = vst.msk [vmem:[%s19914_s30 + $0x10] sm:$0xff] %vm592_vm0, %v10625_v29  ;;  %v10626_v16 = vadd.f32 %v10508_v20, %v21056_v35  ;;  %v21070_v29 = vld [vmem:[#allocation62_spill] sm:$0xff] }
 0xb50   : > { %10655 = vst.msk [vmem:[%s19914_s30] sm:$0xff] %vm592_vm0, %v10623_v62  ;;  %v10624_v52 = vadd.f32 %v10500_v60, %v21057_v18  ;;  %v21071_v62 = vld [vmem:[#allocation90_spill] sm:$0xff] }
 0xb51   : > { %10658 = vst.msk [vmem:[%s19914_s30 + $0x18] sm:$0xff] %vm592_vm0, %v10626_v16  ;;  %v21072_v16 = vld [vmem:[#allocation79_spill] sm:$0xff] }
 0xb52   : > { %10656 = vst.msk [vmem:[%s19914_s30 + $0x8] sm:$0xff] %vm592_vm0, %v10624_v52  ;;  %v21073_v52 = vld [vmem:[#allocation91_spill] sm:$0xff] }
 0xb5f   : > { %v12981_v59 = vpop.f32.mrb[132].mxu1 }
 0xb60   : > { %v10521_v39 = vadd.f32 %v12981_v59, %v19906_v58  ;;  %v10512_v28 = vpop.f32.mrb[133].mxu1 }
 0xb61   : > { %v10513_v61 = vadd.f32 %v19906_v58, %v10512_v28  ;;  %v12982_v40 = vpop.f32.mrb[134].mxu1 }
 0xb62   : > { %v10629_v13 = vadd.f32 %v10521_v39, %v21058_v36  ;;  %v10524_v34 = vadd.f32 %v12982_v40, %v19906_v58  ;;  %v10515_v30 = vpop.f32.mrb[135].mxu1 }
 0xb63   : > { %v10627_v4 = vadd.f32 %v10513_v61, %v21059_v0  ;;  %v10516_v15 = vadd.f32 %v19906_v58, %v10515_v30 }
 0xb64   : > { %10661 = vst.msk [vmem:[%s19914_s30 + $0x30] sm:$0xff] %vm592_vm0, %v10629_v13  ;;  %v10630_v19 = vadd.f32 %v10524_v34, %v21060_v50  ;;  %v21074_v13 = vld [vmem:[#allocation51_spill] sm:$0xff] }
 0xb65   : > { %10659 = vst.msk [vmem:[%s19914_s30 + $0x20] sm:$0xff] %vm592_vm0, %v10627_v4  ;;  %v10628_v17 = vadd.f32 %v10516_v15, %v21061_v3  ;;  %v21075_v4 = vld [vmem:[#allocation58_spill] sm:$0xff] }
 0xb66   : > { %10662 = vst.msk [vmem:[%s19914_s30 + $0x38] sm:$0xff] %vm592_vm0, %v10630_v19  ;;  %v21076_v19 = vld [vmem:[#allocation53_spill] sm:$0xff] }
 0xb67   : > { %10660 = vst.msk [vmem:[%s19914_s30 + $0x28] sm:$0xff] %vm592_vm0, %v10628_v17  ;;  %v21077_v17 = vld [vmem:[#allocation67_spill] sm:$0xff] }
 0xb81   : > { %v12985_v47 = vpop.f32.mrb[136].mxu1 }
 0xb82   : > { %v10537_v21 = vadd.f32 %v12985_v47, %v19906_v58  ;;  %v10528_v54 = vpop.f32.mrb[137].mxu1 }
 0xb83   : > { %v10529_v46 = vadd.f32 %v19906_v58, %v10528_v54  ;;  %v12986_v12 = vpop.f32.mrb[138].mxu1 }
 0xb84   : > { %v10633_v31 = vadd.f32 %v10537_v21, %v21062_v38  ;;  %v10540_v44 = vadd.f32 %v12986_v12, %v19906_v58  ;;  %v10531_v10 = vpop.f32.mrb[139].mxu1 }
 0xb85   : > { %v10631_v33 = vadd.f32 %v10529_v46, %v21063_v26  ;;  %v10532_v27 = vadd.f32 %v19906_v58, %v10531_v10 }
 0xb86   : > { %10665 = vst.msk [vmem:[%s19914_s30 + $0x50] sm:$0xff] %vm592_vm0, %v10633_v31  ;;  %v10634_v42 = vadd.f32 %v10540_v44, %v21064_v24  ;;  %v21078_v31 = vld [vmem:[#allocation12_spill] sm:$0xff] }
 0xb87   : > { %10663 = vst.msk [vmem:[%s19914_s30 + $0x40] sm:$0xff] %vm592_vm0, %v10631_v33  ;;  %v10632_v6 = vadd.f32 %v10532_v27, %v21065_v14  ;;  %v21079_v33 = vld [vmem:[#allocation23_spill] sm:$0xff] }
 0xb88   : > { %10666 = vst.msk [vmem:[%s19914_s30 + $0x58] sm:$0xff] %vm592_vm0, %v10634_v42  ;;  %v21080_v42 = vld [vmem:[#allocation87_spill] sm:$0xff] }
 0xb89   : > { %10664 = vst.msk [vmem:[%s19914_s30 + $0x48] sm:$0xff] %vm592_vm0, %v10632_v6  ;;  %v21081_v6 = vld [vmem:[#allocation89_spill] sm:$0xff] }
 0xb95   : > { %v12989_v2 = vpop.f32.mrb[140].mxu1 }
 0xb96   : > { %v10553_v57 = vadd.f32 %v12989_v2, %v19906_v58  ;;  %v10544_v9 = vpop.f32.mrb[141].mxu1 }
 0xb97   : > { %v10545_v49 = vadd.f32 %v19906_v58, %v10544_v9  ;;  %v12990_v22 = vpop.f32.mrb[142].mxu1 }
 0xb98   : > { %v10637_v5 = vadd.f32 %v10553_v57, %v21066_v41  ;;  %v10556_v7 = vadd.f32 %v12990_v22, %v19906_v58  ;;  %v10547_v8 = vpop.f32.mrb[143].mxu1 }
 0xb99   : > { %v10635_v45 = vadd.f32 %v10545_v49, %v21067_v51  ;;  %v10548_v32 = vadd.f32 %v19906_v58, %v10547_v8 }
 0xb9a   : > { %10669 = vst.msk [vmem:[%s19914_s30 + $0x70] sm:$0xff] %vm592_vm0, %v10637_v5  ;;  %v10638_v43 = vadd.f32 %v10556_v7, %v21068_v1  ;;  %v21082_v5 = vld [vmem:[#allocation121_spill] sm:$0xff] }
 0xb9b   : > { %10667 = vst.msk [vmem:[%s19914_s30 + $0x60] sm:$0xff] %vm592_vm0, %v10635_v45  ;;  %v10636_v53 = vadd.f32 %v10548_v32, %v21069_v63  ;;  %v21083_v45 = vld [vmem:[#allocation27_spill] sm:$0xff] }
 0xb9c   : > { %10670 = vst.msk [vmem:[%s19914_s30 + $0x78] sm:$0xff] %vm592_vm0, %v10638_v43  ;;  %v21084_v43 = vld [vmem:[#allocation76_spill] sm:$0xff] }
 0xb9d   : > { %10668 = vst.msk [vmem:[%s19914_s30 + $0x68] sm:$0xff] %vm592_vm0, %v10636_v53  ;;  %v21085_v53 = vld [vmem:[#allocation98_spill] sm:$0xff] }
 0xbb8   : > { %v12993_v25 = vpop.f32.mrb[144].mxu1 }
 0xbb9   : > { %v10569_v55 = vadd.f32 %v12993_v25, %v19906_v58  ;;  %v10560_v23 = vpop.f32.mrb[145].mxu1 }
 0xbba   : > { %v10561_v11 = vadd.f32 %v19906_v58, %v10560_v23  ;;  %v12994_v37 = vpop.f32.mrb[146].mxu1 }
 0xbbb   : > { %v10641_v20 = vadd.f32 %v10569_v55, %v21070_v29  ;;  %v10572_v56 = vadd.f32 %v12994_v37, %v19906_v58  ;;  %v10563_v48 = vpop.f32.mrb[147].mxu1 }
 0xbbc   : > { %v10639_v60 = vadd.f32 %v10561_v11, %v21071_v62  ;;  %v10564_v35 = vadd.f32 %v19906_v58, %v10563_v48 }
 0xbbd   : > { %10673 = vst.msk [vmem:[%s19914_s30 + $0x90] sm:$0xff] %vm592_vm0, %v10641_v20  ;;  %v10642_v18 = vadd.f32 %v10572_v56, %v21072_v16 }
 0xbbe   : > { %10671 = vst.msk [vmem:[%s19914_s30 + $0x80] sm:$0xff] %vm592_vm0, %v10639_v60  ;;  %v10640_v59 = vadd.f32 %v10564_v35, %v21073_v52 }
 0xbbf   : > { %10674 = vst.msk [vmem:[%s19914_s30 + $0x98] sm:$0xff] %vm592_vm0, %v10642_v18 }
 0xbc0   : > { %10672 = vst.msk [vmem:[%s19914_s30 + $0x88] sm:$0xff] %vm592_vm0, %v10640_v59 }
 0xbcd   : > { %v12997_v39 = vpop.f32.mrb[148].mxu1 }
 0xbce   : > { %v10585_v28 = vadd.f32 %v12997_v39, %v19906_v58  ;;  %v10576_v61 = vpop.f32.mrb[149].mxu1 }
 0xbcf   : > { %v10577_v40 = vadd.f32 %v19906_v58, %v10576_v61  ;;  %v12998_v36 = vpop.f32.mrb[150].mxu1 }
 0xbd0   : > { %v10645_v34 = vadd.f32 %v10585_v28, %v21074_v13  ;;  %v10588_v30 = vadd.f32 %v12998_v36, %v19906_v58  ;;  %v10579_v0 = vpop.f32.mrb[151].mxu1 }
 0xbd1   : > { %v10643_v15 = vadd.f32 %v10577_v40, %v21075_v4  ;;  %v10580_v50 = vadd.f32 %v19906_v58, %v10579_v0 }
 0xbd2   : > { %10677 = vst.msk [vmem:[%s19914_s30 + $0xb0] sm:$0xff] %vm592_vm0, %v10645_v34  ;;  %v10646_v3 = vadd.f32 %v10588_v30, %v21076_v19 }
 0xbd3   : > { %10675 = vst.msk [vmem:[%s19914_s30 + $0xa0] sm:$0xff] %vm592_vm0, %v10643_v15  ;;  %v10644_v47 = vadd.f32 %v10580_v50, %v21077_v17 }
 0xbd4   : > { %10678 = vst.msk [vmem:[%s19914_s30 + $0xb8] sm:$0xff] %vm592_vm0, %v10646_v3 }
 0xbd5   : > { %10676 = vst.msk [vmem:[%s19914_s30 + $0xa8] sm:$0xff] %vm592_vm0, %v10644_v47 }
 0xbef   : > { %v13001_v21 = vpop.f32.mrb[152].mxu1 }
 0xbf0   : > { %v10601_v54 = vadd.f32 %v13001_v21, %v19906_v58  ;;  %v10592_v46 = vpop.f32.mrb[153].mxu1 }
 0xbf1   : > { %v10593_v12 = vadd.f32 %v19906_v58, %v10592_v46  ;;  %v13002_v38 = vpop.f32.mrb[154].mxu1 }
 0xbf2   : > { %v10649_v44 = vadd.f32 %v10601_v54, %v21078_v31  ;;  %v10604_v10 = vadd.f32 %v13002_v38, %v19906_v58  ;;  %v10595_v26 = vpop.f32.mrb[155].mxu1 }
 0xbf3   : > { %v10647_v27 = vadd.f32 %v10593_v12, %v21079_v33  ;;  %v10596_v24 = vadd.f32 %v19906_v58, %v10595_v26 }
 0xbf4   : > { %10681 = vst.msk [vmem:[%s19914_s30 + $0xd0] sm:$0xff] %vm592_vm0, %v10649_v44  ;;  %v10650_v14 = vadd.f32 %v10604_v10, %v21080_v42 }
 0xbf5   : > { %10679 = vst.msk [vmem:[%s19914_s30 + $0xc0] sm:$0xff] %vm592_vm0, %v10647_v27  ;;  %v10648_v2 = vadd.f32 %v10596_v24, %v21081_v6 }
 0xbf6   : > { %10682 = vst.msk [vmem:[%s19914_s30 + $0xd8] sm:$0xff] %vm592_vm0, %v10650_v14 }
 0xbf7   : > { %10680 = vst.msk [vmem:[%s19914_s30 + $0xc8] sm:$0xff] %vm592_vm0, %v10648_v2 }
 0xc02   : > { %v13005_v57 = vpop.f32.mrb[156].mxu1 }
 0xc03   : > { %v10617_v9 = vadd.f32 %v13005_v57, %v19906_v58  ;;  %v10608_v49 = vpop.f32.mrb[157].mxu1 }
 0xc04   : > { %v10609_v22 = vadd.f32 %v19906_v58, %v10608_v49  ;;  %v13006_v41 = vpop.f32.mrb[158].mxu1 }
 0xc05   : > { %v10653_v7 = vadd.f32 %v10617_v9, %v21082_v5  ;;  %v10620_v8 = vadd.f32 %v13006_v41, %v19906_v58  ;;  %v10611_v51 = vpop.f32.mrb[159].mxu1 }
 0xc06   : > { %v10651_v32 = vadd.f32 %v10609_v22, %v21083_v45  ;;  %v10612_v1 = vadd.f32 %v19906_v58, %v10611_v51 }
 0xc07   : > { %10685 = vst.msk [vmem:[%s19914_s30 + $0xf0] sm:$0xff] %vm592_vm0, %v10653_v7  ;;  %v10654_v63 = vadd.f32 %v10620_v8, %v21084_v43 }
 0xc08   : > { %10683 = vst.msk [vmem:[%s19914_s30 + $0xe0] sm:$0xff] %vm592_vm0, %v10651_v32  ;;  %v10652_v25 = vadd.f32 %v10612_v1, %v21085_v53 }
 0xc09   : > { %10686 = vst.msk [vmem:[%s19914_s30 + $0xf8] sm:$0xff] %vm592_vm0, %v10654_v63 }
 0xc0a   : > { %10684 = vst.msk [vmem:[%s19914_s30 + $0xe8] sm:$0xff] %vm592_vm0, %v10652_v25 }
 0xc0b PF: > { %s27_s24 = sadd.s32 1, %s14017_s24  }
 0xc0c   : > { %p24_p4 = scmp.ge.s32.totalorder %s27_s24, 4  }
 0xc0e   :  { %26 = sbr.rel (!%p24_p4) target bundleno = 3 (0x3), region = 139 }

</bundles_post_ra>
